<compile_context>
chip_gen: v7x
topology: tpu7x:2x2x1
jax: 0.10.0
libtpu: 0.0.40
codegen_flags: <defaults>
</compile_context>

<pallas_src>
import functools

import jax
import jax.numpy as jnp
from jax import lax
from jax.experimental import pallas as pl
from jax.experimental.pallas import tpu as pltpu

Z_DIM = 100
LABEL_DIM = 10
BN_EPS = 1e-5


def _round_up(x, m):
    return ((x + m - 1) // m) * m


# ---------------------------------------------------------------------------
# Pallas kernels
# ---------------------------------------------------------------------------
def _bmm_kernel(a_ref, w_ref, o_ref, *, activation):
    # a_ref: (1, TM, K) bf16 ; w_ref: (1, K, C) bf16 ; o_ref: (1, TM, C) f32.
    acc = jnp.dot(a_ref[0], w_ref[0], preferred_element_type=jnp.float32)
    if activation == "tanh":
        acc = jnp.tanh(acc)                      # EUP, f32
    o_ref[0] = acc.astype(o_ref.dtype)


def _bn_relu_kernel(x_ref, g_ref, b_ref, o_ref):
    # x_ref: (M, TC) f32 with M = N*H*W (full rows, one channel tile).
    # BatchNorm2d train-mode: per-channel mean / biased var over rows, then
    # affine + ReLU.  One-pass variance E[x^2]-E[x]^2 (cancellation negligible
    # at BN-scale activations).  All math in f32; store in o_ref.dtype (bf16).
    x = x_ref[...]
    inv_m = 1.0 / x.shape[0]
    mean = jnp.sum(x, axis=0, keepdims=True) * inv_m
    ex2 = jnp.sum(x * x, axis=0, keepdims=True) * inv_m
    var = ex2 - mean * mean
    scale = g_ref[...] * lax.rsqrt(var + BN_EPS)
    shift = b_ref[...] - mean * scale
    o_ref[...] = jnp.maximum(x * scale + shift, 0.0).astype(o_ref.dtype)


# ---------------------------------------------------------------------------
# Pallas wrappers
# ---------------------------------------------------------------------------
def pallas_batched_matmul(a, w, activation=None, out_dtype=jnp.float32, tm=256):
    """a: (G, M, K) bf16, w: (G, K, C) bf16 -> (G, M, C) f32.

    Grid = (G, M-tiles), both axes "parallel"; each step is one MXU matmul of
    a (TM, K) tile against the resident (K, C) weight.
    """
    G, M, K = a.shape
    Gw, Kw, C = w.shape
    assert G == Gw and K == Kw
    m_pad = max(8, _round_up(M, 8))
    tm = min(tm, m_pad)
    m_pad = _round_up(m_pad, tm)
    if m_pad != M:
        a = jnp.pad(a, ((0, 0), (0, m_pad - M), (0, 0)))
    out = pl.pallas_call(
        functools.partial(_bmm_kernel, activation=activation),
        out_shape=jax.ShapeDtypeStruct((G, m_pad, C), out_dtype),
        grid=(G, m_pad // tm),
        in_specs=[pl.BlockSpec((1, tm, K), lambda g, i: (g, i, 0)),
                  pl.BlockSpec((1, K, C), lambda g, i: (g, 0, 0))],
        out_specs=pl.BlockSpec((1, tm, C), lambda g, i: (g, i, 0)),
        compiler_params=pltpu.CompilerParams(
            dimension_semantics=("parallel", "parallel")),
    )(a, w)
    return out[:, :M, :] if m_pad != M else out


def pallas_bn_relu(x_nhwc, gamma, beta, out_dtype=jnp.bfloat16):
    """Train-mode BatchNorm2d + ReLU; tiled over channels (stats are per-channel
    so channel tiles are independent -> 'parallel' grid, single read+write)."""
    N, H, W, C = x_nhwc.shape
    M = N * H * W
    x2 = x_nhwc.reshape(M, C)
    tc = C if C <= 128 else 128
    assert C % tc == 0
    out = pl.pallas_call(
        _bn_relu_kernel,
        out_shape=jax.ShapeDtypeStruct((M, C), out_dtype),
        grid=(C // tc,),
        in_specs=[pl.BlockSpec((M, tc), lambda j: (0, j)),
                  pl.BlockSpec((1, tc), lambda j: (0, j)),
                  pl.BlockSpec((1, tc), lambda j: (0, j))],
        out_specs=pl.BlockSpec((M, tc), lambda j: (0, j)),
        compiler_params=pltpu.CompilerParams(dimension_semantics=("parallel",)),
    )(x2, gamma.reshape(1, C), beta.reshape(1, C))
    return out.reshape(N, H, W, C)


# ---------------------------------------------------------------------------
# ConvTranspose2d(k=4, stride=2, padding in {1,3}, bias=False), subpixel form.
#
# out[n, 2m+ph, 2k+pw, co] = sum_{dh,dw in {0,1}, ci}
#     xpad[n, m+ph+dh, k+pw+dw, ci] * W[ci, co, 3-ph-2dh, 3-pw-2dw]
# with xpad = pad(x, (3-p)//2) and per-parity output size H+1-p.
# ---------------------------------------------------------------------------
def conv_transpose2d_s2(x_nhwc, w_par, padding, activation=None):
    # x_nhwc: (N, H, W, Cin) bf16 ; w_par: (4, 4*Cin, Cout) bf16 (_parity_weight)
    N, H, W, Cin = x_nhwc.shape
    Cout = w_par.shape[-1]
    lp = (3 - padding) // 2
    OHp, OWp = H + 1 - padding, W + 1 - padding
    xp = jnp.pad(x_nhwc, ((0, 0), (lp, lp), (lp, lp), (0, 0)))

    # Gather the 4 dense taps per output parity (JAX glue), one matmul group
    # per parity — no zero-dilated input, no 16-tap im2col.
    groups = []
    for ph in range(2):
        for pw in range(2):
            taps = [xp[:, ph + dh:ph + dh + OHp, pw + dw:pw + dw + OWp, :]
                    for dh in range(2) for dw in range(2)]
            a = jnp.concatenate(taps, axis=-1)               # (N, OHp, OWp, 4*Cin)
            groups.append(a.reshape(N * OHp * OWp, 4 * Cin))
    a_all = jnp.stack(groups, axis=0)                        # (4, M, 4*Cin) bf16

    mm = pallas_batched_matmul(a_all, w_par, activation=activation)  # (4, M, Cout)

    out = mm.reshape(2, 2, N, OHp, OWp, Cout)
    out = out.transpose(2, 3, 0, 4, 1, 5).reshape(N, 2 * OHp, 2 * OWp, Cout)
    return out


# ---------------------------------------------------------------------------
# Weight preparation (done ONCE at init)
# ---------------------------------------------------------------------------
def _parity_weight(w):
    """(Cin, Cout, 4, 4) ConvTranspose2d weight -> (4, 4*Cin, Cout) bf16,
    one dense matrix per output parity; tap order matches the A gather."""
    mats = []
    for ph in range(2):
        for pw in range(2):
            taps = [w[:, :, 3 - ph - 2 * dh, 3 - pw - 2 * dw]
                    for dh in range(2) for dw in range(2)]
            mats.append(jnp.concatenate(taps, axis=0))       # (4*Cin, Cout)
    return jnp.stack(mats, axis=0).astype(jnp.bfloat16)


def _merged_input_weight(w_x, w_y):
    """Fold both 1x1-input ConvT(k4,s1,p0) layers into one (110, 4*4*512) matrix.

    For a 1x1 input, out[n,co,i,j] = sum_ci x[n,ci] * w[ci,co,i,j]; the x path
    fills channels [0,256) and the y path fills [256,512) of the NHWC output.
    """
    cx, cox = w_x.shape[0], w_x.shape[1]
    cy, coy = w_y.shape[0], w_y.shape[1]
    wf = jnp.zeros((cx + cy, 4, 4, cox + coy), jnp.float32)
    wf = wf.at[:cx, :, :, :cox].set(jnp.transpose(w_x, (0, 2, 3, 1)))
    wf = wf.at[cx:, :, :, cox:].set(jnp.transpose(w_y, (0, 2, 3, 1)))
    return wf.reshape(cx + cy, 4 * 4 * (cox + coy)).astype(jnp.bfloat16)


def init_generator_params(key):
    def normal(k, shape):
        return 0.02 * jax.random.normal(k, shape, dtype=jnp.float32)

    ks = jax.random.split(key, 5)
    return {
        # PyTorch ConvTranspose2d weight layout: (Cin, Cout, K, K)
        "w_x": normal(ks[0], (Z_DIM, 256, 4, 4)),
        "w_y": normal(ks[1], (LABEL_DIM, 256, 4, 4)),
        "w1":  normal(ks[2], (512, 128, 4, 4)),
        "w2":  normal(ks[3], (128, 64, 4, 4)),
        "w3":  normal(ks[4], (64, 1, 4, 4)),
        # BatchNorm affine params (PyTorch init: gamma=1, beta=0)
        "g_x": jnp.ones((256,), jnp.float32), "b_x": jnp.zeros((256,), jnp.float32),
        "g_y": jnp.ones((256,), jnp.float32), "b_y": jnp.zeros((256,), jnp.float32),
        "g1":  jnp.ones((128,), jnp.float32), "b1":  jnp.zeros((128,), jnp.float32),
        "g2":  jnp.ones((64,),  jnp.float32), "b2":  jnp.zeros((64,),  jnp.float32),
    }


def prepare_generator_params(p):
    """Precompute matmul-ready (flipped / reshaped / bf16) weights once."""
    return {
        "w_in": _merged_input_weight(p["w_x"], p["w_y"]),     # (110, 8192) bf16
        "g_in": jnp.concatenate([p["g_x"], p["g_y"]]),        # (512,)  f32
        "b_in": jnp.concatenate([p["b_x"], p["b_y"]]),
        "w1p": _parity_weight(p["w1"]), "g1": p["g1"], "b1": p["b1"],
        "w2p": _parity_weight(p["w2"]), "g2": p["g2"], "b2": p["b2"],
        "w3p": _parity_weight(p["w3"]),
    }


# ---------------------------------------------------------------------------
# Generator forward
# ---------------------------------------------------------------------------
@jax.jit
def generator_forward(params, x, y):
    # x: (N, 100, 1, 1), y: (N, 10, 1, 1) NCHW (like PyTorch) -> (N, 1, 28, 28).
    n = x.shape[0]
    a0 = jnp.concatenate(
        [x.reshape(n, Z_DIM), y.reshape(n, LABEL_DIM)], axis=1
    ).astype(jnp.bfloat16)                                            # (N, 110)

    # input_x ++ input_y: both ConvT(k4,s1,p0) on a 1x1 map == one dense matmul.
    h = pallas_batched_matmul(a0[None], params["w_in"][None])[0]      # (N, 8192)
    h = h.reshape(n, 4, 4, 512)
    h = pallas_bn_relu(h, params["g_in"], params["b_in"])             # bf16

    # ConvT(512->128, k4, s2, p1) + BN + ReLU -> (N, 8, 8, 128)
    h = conv_transpose2d_s2(h, params["w1p"], padding=1)
    h = pallas_bn_relu(h, params["g1"], params["b1"])

    # ConvT(128->64, k4, s2, p1) + BN + ReLU  -> (N, 16, 16, 64)
    h = conv_transpose2d_s2(h, params["w2p"], padding=1)
    h = pallas_bn_relu(h, params["g2"], params["b2"])

    # ConvT(64->1, k4, s2, p3) + Tanh         -> (N, 28, 28, 1)
    out = conv_transpose2d_s2(h, params["w3p"], padding=3, activation="tanh")

    return jnp.transpose(out, (0, 3, 1, 2))          # back to NCHW (N,1,28,28)


if __name__ == "__main__":
    key = jax.random.PRNGKey(0)
    kp, kx, ky = jax.random.split(key, 3)

    params = prepare_generator_params(init_generator_params(kp))

    batch = 2
    x = jax.random.normal(kx, (batch, Z_DIM, 1, 1), dtype=jnp.float32)
    labels = jax.random.randint(ky, (batch,), 0, LABEL_DIM)
    y = jax.nn.one_hot(labels, LABEL_DIM, dtype=jnp.float32).reshape(
        batch, LABEL_DIM, 1, 1)

    out = generator_forward(params, x, y)
    out = jax.block_until_ready(out)

    assert out.shape == (batch, 1, 28, 28), out.shape
    assert bool(jnp.all(jnp.isfinite(out)))
    assert bool(jnp.all(jnp.abs(out) <= 1.0 + 1e-6))  # tanh range
    print("KERNEL_OK")
</pallas_src>

<mosaic_0001>
module attributes {stable_mosaic.version = 11 : i64} {
  func.func @_bmm_kernel(%arg0: i32, %arg1: i32, %arg2: memref<1x8x110xbf16, #tpu.memory_space<vmem>>, %arg3: memref<1x110x8192xbf16, #tpu.memory_space<vmem>>, %arg4: memref<1x8x8192xf32, #tpu.memory_space<vmem>>) attributes {dimension_semantics = [#tpu.dimension_semantics<parallel>, #tpu.dimension_semantics<parallel>], iteration_bounds = array<i64: 1, 1>, scalar_prefetch = 0 : i64, scratch_operands = 0 : i64, tpu.core_type = #tpu.core_type<tc>, window_params = [{transform_indices = @transform_0, window_bounds = array<i64: 1, 8, 110>}, {transform_indices = @transform_1, window_bounds = array<i64: 1, 110, 8192>}, {transform_indices = @transform_2, window_bounds = array<i64: 1, 8, 8192>}]} {
    %c0 = arith.constant 0 : index
    %c0_0 = arith.constant 0 : index
    %c0_1 = arith.constant 0 : index
    %0 = vector.load %arg2[%c0, %c0_0, %c0_1] : memref<1x8x110xbf16, #tpu.memory_space<vmem>>, vector<1x8x110xbf16>
    %1 = vector.shape_cast %0 : vector<1x8x110xbf16> to vector<8x110xbf16>
    %c0_2 = arith.constant 0 : index
    %c0_3 = arith.constant 0 : index
    %c0_4 = arith.constant 0 : index
    %2 = vector.load %arg3[%c0_2, %c0_3, %c0_4] : memref<1x110x8192xbf16, #tpu.memory_space<vmem>>, vector<1x110x8192xbf16>
    %3 = vector.shape_cast %2 : vector<1x110x8192xbf16> to vector<110x8192xbf16>
    %cst = arith.constant dense<0.000000e+00> : vector<8x8192xf32>
    %4 = tpu.matmul %1, %3, %cst {dimension_numbers = #tpu.dot_dimension_numbers<[1], [0], [0], [1], [0, 0, 1, 1], [], []>} : vector<8x110xbf16>, vector<110x8192xbf16>, vector<8x8192xf32> -> vector<8x8192xf32>
    %c0_5 = arith.constant 0 : index
    %c0_6 = arith.constant 0 : index
    %c0_7 = arith.constant 0 : index
    %5 = vector.load %arg4[%c0_5, %c0_6, %c0_7] : memref<1x8x8192xf32, #tpu.memory_space<vmem>>, vector<1x8x8192xf32>
    %6 = vector.shape_cast %5 : vector<1x8x8192xf32> to vector<8x8192xf32>
    %7 = vector.shape_cast %4 : vector<8x8192xf32> to vector<1x8x8192xf32>
    tpu.vector_store %arg4[%c0_5, %c0_6, %c0_7], %7 {strides = array<i32>} : memref<1x8x8192xf32, #tpu.memory_space<vmem>>, vector<1x8x8192xf32>,
    return
  }
  func.func @transform_0(%arg0: i32, %arg1: i32) -> (i32, i32, i32) {
    %c0_i32 = arith.constant 0 : i32
    %c0_i32_0 = arith.constant 0 : i32
    return %arg0, %arg1, %c0_i32 : i32, i32, i32
  }
  func.func @transform_1(%arg0: i32, %arg1: i32) -> (i32, i32, i32) {
    %c0_i32 = arith.constant 0 : i32
    %c0_i32_0 = arith.constant 0 : i32
    %c0_i32_1 = arith.constant 0 : i32
    return %arg0, %c0_i32, %c0_i32_0 : i32, i32, i32
  }
  func.func @transform_2(%arg0: i32, %arg1: i32) -> (i32, i32, i32) {
    %c0_i32 = arith.constant 0 : i32
    %c0_i32_0 = arith.constant 0 : i32
    return %arg0, %arg1, %c0_i32 : i32, i32, i32
  }
}

module attributes {stable_mosaic.version = 11 : i64} {
  func.func @_bn_relu_kernel(%arg0: i32, %arg1: memref<32x128xf32, #tpu.memory_space<vmem>>, %arg2: memref<1x128xf32, #tpu.memory_space<vmem>>, %arg3: memref<1x128xf32, #tpu.memory_space<vmem>>, %arg4: memref<32x128xbf16, #tpu.memory_space<vmem>>) attributes {dimension_semantics = [#tpu.dimension_semantics<parallel>], iteration_bounds = array<i64: 4>, scalar_prefetch = 0 : i64, scratch_operands = 0 : i64, tpu.core_type = #tpu.core_type<tc>, window_params = [{transform_indices = @transform_0, window_bounds = array<i64: 32, 128>}, {transform_indices = @transform_1, window_bounds = array<i64: 1, 128>}, {transform_indices = @transform_2, window_bounds = array<i64: 1, 128>}, {transform_indices = @transform_3, window_bounds = array<i64: 32, 128>}]} {
    %c0 = arith.constant 0 : index
    %c0_0 = arith.constant 0 : index
    %0 = vector.load %arg1[%c0, %c0_0] : memref<32x128xf32, #tpu.memory_space<vmem>>, vector<32x128xf32>
    %cst = arith.constant dense<0.000000e+00> : vector<128xf32>
    %1 = vector.multi_reduction <add>, %0, %cst [0] : vector<32x128xf32> to vector<128xf32>
    %2 = vector.shape_cast %1 : vector<128xf32> to vector<1x128xf32>
    %cst_1 = arith.constant 3.125000e-02 : f32
    %3 = vector.broadcast %cst_1 : f32 to vector<1x128xf32>
    %4 = arith.mulf %2, %3 : vector<1x128xf32>
    %5 = arith.mulf %0, %0 : vector<32x128xf32>
    %cst_2 = arith.constant dense<0.000000e+00> : vector<128xf32>
    %6 = vector.multi_reduction <add>, %5, %cst_2 [0] : vector<32x128xf32> to vector<128xf32>
    %7 = vector.shape_cast %6 : vector<128xf32> to vector<1x128xf32>
    %cst_3 = arith.constant 3.125000e-02 : f32
    %8 = vector.broadcast %cst_3 : f32 to vector<1x128xf32>
    %9 = arith.mulf %7, %8 : vector<1x128xf32>
    %10 = arith.mulf %4, %4 : vector<1x128xf32>
    %11 = arith.subf %9, %10 : vector<1x128xf32>
    %c0_4 = arith.constant 0 : index
    %c0_5 = arith.constant 0 : index
    %12 = vector.load %arg2[%c0_4, %c0_5] : memref<1x128xf32, #tpu.memory_space<vmem>>, vector<1x128xf32>
    %cst_6 = arith.constant 9.99999974E-6 : f32
    %13 = vector.broadcast %cst_6 : f32 to vector<1x128xf32>
    %14 = arith.addf %11, %13 : vector<1x128xf32>
    %15 = math.rsqrt %14 : vector<1x128xf32>
    %16 = arith.mulf %12, %15 : vector<1x128xf32>
    %c0_7 = arith.constant 0 : index
    %c0_8 = arith.constant 0 : index
    %17 = vector.load %arg3[%c0_7, %c0_8] : memref<1x128xf32, #tpu.memory_space<vmem>>, vector<1x128xf32>
    %18 = arith.mulf %4, %16 : vector<1x128xf32>
    %19 = arith.subf %17, %18 : vector<1x128xf32>
    %20 = vector.broadcast %16 : vector<1x128xf32> to vector<32x128xf32>
    %21 = arith.mulf %0, %20 : vector<32x128xf32>
    %22 = vector.broadcast %19 : vector<1x128xf32> to vector<32x128xf32>
    %23 = arith.addf %21, %22 : vector<32x128xf32>
    %cst_9 = arith.constant 0.000000e+00 : f32
    %24 = vector.broadcast %cst_9 : f32 to vector<32x128xf32>
    %25 = arith.maximumf %23, %24 : vector<32x128xf32>
    %26 = arith.truncf %25 : vector<32x128xf32> to vector<32x128xbf16>
    %c0_10 = arith.constant 0 : index
    %c0_11 = arith.constant 0 : index
    %27 = vector.load %arg4[%c0_10, %c0_11] : memref<32x128xbf16, #tpu.memory_space<vmem>>, vector<32x128xbf16>
    tpu.vector_store %arg4[%c0_10, %c0_11], %26 {strides = array<i32>} : memref<32x128xbf16, #tpu.memory_space<vmem>>, vector<32x128xbf16>,
    return
  }
  func.func @transform_0(%arg0: i32) -> (i32, i32) {
    %c0_i32 = arith.constant 0 : i32
    %c0_i32_0 = arith.constant 0 : i32
    return %c0_i32, %arg0 : i32, i32
  }
  func.func @transform_1(%arg0: i32) -> (i32, i32) {
    %c0_i32 = arith.constant 0 : i32
    %c0_i32_0 = arith.constant 0 : i32
    return %c0_i32, %arg0 : i32, i32
  }
  func.func @transform_2(%arg0: i32) -> (i32, i32) {
    %c0_i32 = arith.constant 0 : i32
    %c0_i32_0 = arith.constant 0 : i32
    return %c0_i32, %arg0 : i32, i32
  }
  func.func @transform_3(%arg0: i32) -> (i32, i32) {
    %c0_i32 = arith.constant 0 : i32
    %c0_i32_0 = arith.constant 0 : i32
    return %c0_i32, %arg0 : i32, i32
  }
}

module attributes {stable_mosaic.version = 11 : i64} {
  func.func @_bmm_kernel(%arg0: i32, %arg1: i32, %arg2: memref<1x32x2048xbf16, #tpu.memory_space<vmem>>, %arg3: memref<1x2048x128xbf16, #tpu.memory_space<vmem>>, %arg4: memref<1x32x128xf32, #tpu.memory_space<vmem>>) attributes {dimension_semantics = [#tpu.dimension_semantics<parallel>, #tpu.dimension_semantics<parallel>], iteration_bounds = array<i64: 4, 1>, scalar_prefetch = 0 : i64, scratch_operands = 0 : i64, tpu.core_type = #tpu.core_type<tc>, window_params = [{transform_indices = @transform_0, window_bounds = array<i64: 1, 32, 2048>}, {transform_indices = @transform_1, window_bounds = array<i64: 1, 2048, 128>}, {transform_indices = @transform_2, window_bounds = array<i64: 1, 32, 128>}]} {
    %c0 = arith.constant 0 : index
    %c0_0 = arith.constant 0 : index
    %c0_1 = arith.constant 0 : index
    %0 = vector.load %arg2[%c0, %c0_0, %c0_1] : memref<1x32x2048xbf16, #tpu.memory_space<vmem>>, vector<1x32x2048xbf16>
    %1 = vector.shape_cast %0 : vector<1x32x2048xbf16> to vector<32x2048xbf16>
    %c0_2 = arith.constant 0 : index
    %c0_3 = arith.constant 0 : index
    %c0_4 = arith.constant 0 : index
    %2 = vector.load %arg3[%c0_2, %c0_3, %c0_4] : memref<1x2048x128xbf16, #tpu.memory_space<vmem>>, vector<1x2048x128xbf16>
    %3 = vector.shape_cast %2 : vector<1x2048x128xbf16> to vector<2048x128xbf16>
    %cst = arith.constant dense<0.000000e+00> : vector<32x128xf32>
    %4 = tpu.matmul %1, %3, %cst {dimension_numbers = #tpu.dot_dimension_numbers<[1], [0], [0], [1], [0, 0, 1, 1], [], []>} : vector<32x2048xbf16>, vector<2048x128xbf16>, vector<32x128xf32> -> vector<32x128xf32>
    %c0_5 = arith.constant 0 : index
    %c0_6 = arith.constant 0 : index
    %c0_7 = arith.constant 0 : index
    %5 = vector.load %arg4[%c0_5, %c0_6, %c0_7] : memref<1x32x128xf32, #tpu.memory_space<vmem>>, vector<1x32x128xf32>
    %6 = vector.shape_cast %5 : vector<1x32x128xf32> to vector<32x128xf32>
    %7 = vector.shape_cast %4 : vector<32x128xf32> to vector<1x32x128xf32>
    tpu.vector_store %arg4[%c0_5, %c0_6, %c0_7], %7 {strides = array<i32>} : memref<1x32x128xf32, #tpu.memory_space<vmem>>, vector<1x32x128xf32>,
    return
  }
  func.func @transform_0(%arg0: i32, %arg1: i32) -> (i32, i32, i32) {
    %c0_i32 = arith.constant 0 : i32
    %c0_i32_0 = arith.constant 0 : i32
    return %arg0, %arg1, %c0_i32 : i32, i32, i32
  }
  func.func @transform_1(%arg0: i32, %arg1: i32) -> (i32, i32, i32) {
    %c0_i32 = arith.constant 0 : i32
    %c0_i32_0 = arith.constant 0 : i32
    %c0_i32_1 = arith.constant 0 : i32
    return %arg0, %c0_i32, %c0_i32_0 : i32, i32, i32
  }
  func.func @transform_2(%arg0: i32, %arg1: i32) -> (i32, i32, i32) {
    %c0_i32 = arith.constant 0 : i32
    %c0_i32_0 = arith.constant 0 : i32
    return %arg0, %arg1, %c0_i32 : i32, i32, i32
  }
}

module attributes {stable_mosaic.version = 11 : i64} {
  func.func @_bn_relu_kernel(%arg0: i32, %arg1: memref<128x128xf32, #tpu.memory_space<vmem>>, %arg2: memref<1x128xf32, #tpu.memory_space<vmem>>, %arg3: memref<1x128xf32, #tpu.memory_space<vmem>>, %arg4: memref<128x128xbf16, #tpu.memory_space<vmem>>) attributes {dimension_semantics = [#tpu.dimension_semantics<parallel>], iteration_bounds = array<i64: 1>, scalar_prefetch = 0 : i64, scratch_operands = 0 : i64, tpu.core_type = #tpu.core_type<tc>, window_params = [{transform_indices = @transform_0, window_bounds = array<i64: 128, 128>}, {transform_indices = @transform_1, window_bounds = array<i64: 1, 128>}, {transform_indices = @transform_2, window_bounds = array<i64: 1, 128>}, {transform_indices = @transform_3, window_bounds = array<i64: 128, 128>}]} {
    %c0 = arith.constant 0 : index
    %c0_0 = arith.constant 0 : index
    %0 = vector.load %arg1[%c0, %c0_0] : memref<128x128xf32, #tpu.memory_space<vmem>>, vector<128x128xf32>
    %cst = arith.constant dense<0.000000e+00> : vector<128xf32>
    %1 = vector.multi_reduction <add>, %0, %cst [0] : vector<128x128xf32> to vector<128xf32>
    %2 = vector.shape_cast %1 : vector<128xf32> to vector<1x128xf32>
    %cst_1 = arith.constant 7.812500e-03 : f32
    %3 = vector.broadcast %cst_1 : f32 to vector<1x128xf32>
    %4 = arith.mulf %2, %3 : vector<1x128xf32>
    %5 = arith.mulf %0, %0 : vector<128x128xf32>
    %cst_2 = arith.constant dense<0.000000e+00> : vector<128xf32>
    %6 = vector.multi_reduction <add>, %5, %cst_2 [0] : vector<128x128xf32> to vector<128xf32>
    %7 = vector.shape_cast %6 : vector<128xf32> to vector<1x128xf32>
    %cst_3 = arith.constant 7.812500e-03 : f32
    %8 = vector.broadcast %cst_3 : f32 to vector<1x128xf32>
    %9 = arith.mulf %7, %8 : vector<1x128xf32>
    %10 = arith.mulf %4, %4 : vector<1x128xf32>
    %11 = arith.subf %9, %10 : vector<1x128xf32>
    %c0_4 = arith.constant 0 : index
    %c0_5 = arith.constant 0 : index
    %12 = vector.load %arg2[%c0_4, %c0_5] : memref<1x128xf32, #tpu.memory_space<vmem>>, vector<1x128xf32>
    %cst_6 = arith.constant 9.99999974E-6 : f32
    %13 = vector.broadcast %cst_6 : f32 to vector<1x128xf32>
    %14 = arith.addf %11, %13 : vector<1x128xf32>
    %15 = math.rsqrt %14 : vector<1x128xf32>
    %16 = arith.mulf %12, %15 : vector<1x128xf32>
    %c0_7 = arith.constant 0 : index
    %c0_8 = arith.constant 0 : index
    %17 = vector.load %arg3[%c0_7, %c0_8] : memref<1x128xf32, #tpu.memory_space<vmem>>, vector<1x128xf32>
    %18 = arith.mulf %4, %16 : vector<1x128xf32>
    %19 = arith.subf %17, %18 : vector<1x128xf32>
    %20 = vector.broadcast %16 : vector<1x128xf32> to vector<128x128xf32>
    %21 = arith.mulf %0, %20 : vector<128x128xf32>
    %22 = vector.broadcast %19 : vector<1x128xf32> to vector<128x128xf32>
    %23 = arith.addf %21, %22 : vector<128x128xf32>
    %cst_9 = arith.constant 0.000000e+00 : f32
    %24 = vector.broadcast %cst_9 : f32 to vector<128x128xf32>
    %25 = arith.maximumf %23, %24 : vector<128x128xf32>
    %26 = arith.truncf %25 : vector<128x128xf32> to vector<128x128xbf16>
    %c0_10 = arith.constant 0 : index
    %c0_11 = arith.constant 0 : index
    %27 = vector.load %arg4[%c0_10, %c0_11] : memref<128x128xbf16, #tpu.memory_space<vmem>>, vector<128x128xbf16>
    tpu.vector_store %arg4[%c0_10, %c0_11], %26 {strides = array<i32>} : memref<128x128xbf16, #tpu.memory_space<vmem>>, vector<128x128xbf16>,
    return
  }
  func.func @transform_0(%arg0: i32) -> (i32, i32) {
    %c0_i32 = arith.constant 0 : i32
    %c0_i32_0 = arith.constant 0 : i32
    return %c0_i32, %arg0 : i32, i32
  }
  func.func @transform_1(%arg0: i32) -> (i32, i32) {
    %c0_i32 = arith.constant 0 : i32
    %c0_i32_0 = arith.constant 0 : i32
    return %c0_i32, %arg0 : i32, i32
  }
  func.func @transform_2(%arg0: i32) -> (i32, i32) {
    %c0_i32 = arith.constant 0 : i32
    %c0_i32_0 = arith.constant 0 : i32
    return %c0_i32, %arg0 : i32, i32
  }
  func.func @transform_3(%arg0: i32) -> (i32, i32) {
    %c0_i32 = arith.constant 0 : i32
    %c0_i32_0 = arith.constant 0 : i32
    return %c0_i32, %arg0 : i32, i32
  }
}

module attributes {stable_mosaic.version = 11 : i64} {
  func.func @_bmm_kernel(%arg0: i32, %arg1: i32, %arg2: memref<1x128x512xbf16, #tpu.memory_space<vmem>>, %arg3: memref<1x512x64xbf16, #tpu.memory_space<vmem>>, %arg4: memref<1x128x64xf32, #tpu.memory_space<vmem>>) attributes {dimension_semantics = [#tpu.dimension_semantics<parallel>, #tpu.dimension_semantics<parallel>], iteration_bounds = array<i64: 4, 1>, scalar_prefetch = 0 : i64, scratch_operands = 0 : i64, tpu.core_type = #tpu.core_type<tc>, window_params = [{transform_indices = @transform_0, window_bounds = array<i64: 1, 128, 512>}, {transform_indices = @transform_1, window_bounds = array<i64: 1, 512, 64>}, {transform_indices = @transform_2, window_bounds = array<i64: 1, 128, 64>}]} {
    %c0 = arith.constant 0 : index
    %c0_0 = arith.constant 0 : index
    %c0_1 = arith.constant 0 : index
    %0 = vector.load %arg2[%c0, %c0_0, %c0_1] : memref<1x128x512xbf16, #tpu.memory_space<vmem>>, vector<1x128x512xbf16>
    %1 = vector.shape_cast %0 : vector<1x128x512xbf16> to vector<128x512xbf16>
    %c0_2 = arith.constant 0 : index
    %c0_3 = arith.constant 0 : index
    %c0_4 = arith.constant 0 : index
    %2 = vector.load %arg3[%c0_2, %c0_3, %c0_4] : memref<1x512x64xbf16, #tpu.memory_space<vmem>>, vector<1x512x64xbf16>
    %3 = vector.shape_cast %2 : vector<1x512x64xbf16> to vector<512x64xbf16>
    %cst = arith.constant dense<0.000000e+00> : vector<128x64xf32>
    %4 = tpu.matmul %1, %3, %cst {dimension_numbers = #tpu.dot_dimension_numbers<[1], [0], [0], [1], [0, 0, 1, 1], [], []>} : vector<128x512xbf16>, vector<512x64xbf16>, vector<128x64xf32> -> vector<128x64xf32>
    %c0_5 = arith.constant 0 : index
    %c0_6 = arith.constant 0 : index
    %c0_7 = arith.constant 0 : index
    %5 = vector.load %arg4[%c0_5, %c0_6, %c0_7] : memref<1x128x64xf32, #tpu.memory_space<vmem>>, vector<1x128x64xf32>
    %6 = vector.shape_cast %5 : vector<1x128x64xf32> to vector<128x64xf32>
    %7 = vector.shape_cast %4 : vector<128x64xf32> to vector<1x128x64xf32>
    tpu.vector_store %arg4[%c0_5, %c0_6, %c0_7], %7 {strides = array<i32>} : memref<1x128x64xf32, #tpu.memory_space<vmem>>, vector<1x128x64xf32>,
    return
  }
  func.func @transform_0(%arg0: i32, %arg1: i32) -> (i32, i32, i32) {
    %c0_i32 = arith.constant 0 : i32
    %c0_i32_0 = arith.constant 0 : i32
    return %arg0, %arg1, %c0_i32 : i32, i32, i32
  }
  func.func @transform_1(%arg0: i32, %arg1: i32) -> (i32, i32, i32) {
    %c0_i32 = arith.constant 0 : i32
    %c0_i32_0 = arith.constant 0 : i32
    %c0_i32_1 = arith.constant 0 : i32
    return %arg0, %c0_i32, %c0_i32_0 : i32, i32, i32
  }
  func.func @transform_2(%arg0: i32, %arg1: i32) -> (i32, i32, i32) {
    %c0_i32 = arith.constant 0 : i32
    %c0_i32_0 = arith.constant 0 : i32
    return %arg0, %arg1, %c0_i32 : i32, i32, i32
  }
}

module attributes {stable_mosaic.version = 11 : i64} {
  func.func @_bn_relu_kernel(%arg0: i32, %arg1: memref<512x64xf32, #tpu.memory_space<vmem>>, %arg2: memref<1x64xf32, #tpu.memory_space<vmem>>, %arg3: memref<1x64xf32, #tpu.memory_space<vmem>>, %arg4: memref<512x64xbf16, #tpu.memory_space<vmem>>) attributes {dimension_semantics = [#tpu.dimension_semantics<parallel>], iteration_bounds = array<i64: 1>, scalar_prefetch = 0 : i64, scratch_operands = 0 : i64, tpu.core_type = #tpu.core_type<tc>, window_params = [{transform_indices = @transform_0, window_bounds = array<i64: 512, 64>}, {transform_indices = @transform_1, window_bounds = array<i64: 1, 64>}, {transform_indices = @transform_2, window_bounds = array<i64: 1, 64>}, {transform_indices = @transform_3, window_bounds = array<i64: 512, 64>}]} {
    %c0 = arith.constant 0 : index
    %c0_0 = arith.constant 0 : index
    %0 = vector.load %arg1[%c0, %c0_0] : memref<512x64xf32, #tpu.memory_space<vmem>>, vector<512x64xf32>
    %cst = arith.constant dense<0.000000e+00> : vector<64xf32>
    %1 = vector.multi_reduction <add>, %0, %cst [0] : vector<512x64xf32> to vector<64xf32>
    %2 = vector.shape_cast %1 : vector<64xf32> to vector<1x64xf32>
    %cst_1 = arith.constant 0.001953125 : f32
    %3 = vector.broadcast %cst_1 : f32 to vector<1x64xf32>
    %4 = arith.mulf %2, %3 : vector<1x64xf32>
    %5 = arith.mulf %0, %0 : vector<512x64xf32>
    %cst_2 = arith.constant dense<0.000000e+00> : vector<64xf32>
    %6 = vector.multi_reduction <add>, %5, %cst_2 [0] : vector<512x64xf32> to vector<64xf32>
    %7 = vector.shape_cast %6 : vector<64xf32> to vector<1x64xf32>
    %cst_3 = arith.constant 0.001953125 : f32
    %8 = vector.broadcast %cst_3 : f32 to vector<1x64xf32>
    %9 = arith.mulf %7, %8 : vector<1x64xf32>
    %10 = arith.mulf %4, %4 : vector<1x64xf32>
    %11 = arith.subf %9, %10 : vector<1x64xf32>
    %c0_4 = arith.constant 0 : index
    %c0_5 = arith.constant 0 : index
    %12 = vector.load %arg2[%c0_4, %c0_5] : memref<1x64xf32, #tpu.memory_space<vmem>>, vector<1x64xf32>
    %cst_6 = arith.constant 9.99999974E-6 : f32
    %13 = vector.broadcast %cst_6 : f32 to vector<1x64xf32>
    %14 = arith.addf %11, %13 : vector<1x64xf32>
    %15 = math.rsqrt %14 : vector<1x64xf32>
    %16 = arith.mulf %12, %15 : vector<1x64xf32>
    %c0_7 = arith.constant 0 : index
    %c0_8 = arith.constant 0 : index
    %17 = vector.load %arg3[%c0_7, %c0_8] : memref<1x64xf32, #tpu.memory_space<vmem>>, vector<1x64xf32>
    %18 = arith.mulf %4, %16 : vector<1x64xf32>
    %19 = arith.subf %17, %18 : vector<1x64xf32>
    %20 = vector.broadcast %16 : vector<1x64xf32> to vector<512x64xf32>
    %21 = arith.mulf %0, %20 : vector<512x64xf32>
    %22 = vector.broadcast %19 : vector<1x64xf32> to vector<512x64xf32>
    %23 = arith.addf %21, %22 : vector<512x64xf32>
    %cst_9 = arith.constant 0.000000e+00 : f32
    %24 = vector.broadcast %cst_9 : f32 to vector<512x64xf32>
    %25 = arith.maximumf %23, %24 : vector<512x64xf32>
    %26 = arith.truncf %25 : vector<512x64xf32> to vector<512x64xbf16>
    %c0_10 = arith.constant 0 : index
    %c0_11 = arith.constant 0 : index
    %27 = vector.load %arg4[%c0_10, %c0_11] : memref<512x64xbf16, #tpu.memory_space<vmem>>, vector<512x64xbf16>
    tpu.vector_store %arg4[%c0_10, %c0_11], %26 {strides = array<i32>} : memref<512x64xbf16, #tpu.memory_space<vmem>>, vector<512x64xbf16>,
    return
  }
  func.func @transform_0(%arg0: i32) -> (i32, i32) {
    %c0_i32 = arith.constant 0 : i32
    %c0_i32_0 = arith.constant 0 : i32
    return %c0_i32, %arg0 : i32, i32
  }
  func.func @transform_1(%arg0: i32) -> (i32, i32) {
    %c0_i32 = arith.constant 0 : i32
    %c0_i32_0 = arith.constant 0 : i32
    return %c0_i32, %arg0 : i32, i32
  }
  func.func @transform_2(%arg0: i32) -> (i32, i32) {
    %c0_i32 = arith.constant 0 : i32
    %c0_i32_0 = arith.constant 0 : i32
    return %c0_i32, %arg0 : i32, i32
  }
  func.func @transform_3(%arg0: i32) -> (i32, i32) {
    %c0_i32 = arith.constant 0 : i32
    %c0_i32_0 = arith.constant 0 : i32
    return %c0_i32, %arg0 : i32, i32
  }
}

module attributes {stable_mosaic.version = 11 : i64} {
  func.func @_bmm_kernel(%arg0: i32, %arg1: i32, %arg2: memref<1x256x256xbf16, #tpu.memory_space<vmem>>, %arg3: memref<1x256x1xbf16, #tpu.memory_space<vmem>>, %arg4: memref<1x256x1xf32, #tpu.memory_space<vmem>>) attributes {dimension_semantics = [#tpu.dimension_semantics<parallel>, #tpu.dimension_semantics<parallel>], iteration_bounds = array<i64: 4, 2>, scalar_prefetch = 0 : i64, scratch_operands = 0 : i64, tpu.core_type = #tpu.core_type<tc>, window_params = [{transform_indices = @transform_0, window_bounds = array<i64: 1, 256, 256>}, {transform_indices = @transform_1, window_bounds = array<i64: 1, 256, 1>}, {transform_indices = @transform_2, window_bounds = array<i64: 1, 256, 1>}]} {
    %c0 = arith.constant 0 : index
    %c0_0 = arith.constant 0 : index
    %c0_1 = arith.constant 0 : index
    %0 = vector.load %arg2[%c0, %c0_0, %c0_1] : memref<1x256x256xbf16, #tpu.memory_space<vmem>>, vector<1x256x256xbf16>
    %1 = vector.shape_cast %0 : vector<1x256x256xbf16> to vector<256x256xbf16>
    %c0_2 = arith.constant 0 : index
    %c0_3 = arith.constant 0 : index
    %c0_4 = arith.constant 0 : index
    %2 = vector.load %arg3[%c0_2, %c0_3, %c0_4] : memref<1x256x1xbf16, #tpu.memory_space<vmem>>, vector<1x256x1xbf16>
    %3 = vector.shape_cast %2 : vector<1x256x1xbf16> to vector<256x1xbf16>
    %cst = arith.constant dense<0.000000e+00> : vector<256x1xf32>
    %4 = tpu.matmul %1, %3, %cst {dimension_numbers = #tpu.dot_dimension_numbers<[1], [0], [0], [1], [0, 0, 1, 1], [], []>} : vector<256x256xbf16>, vector<256x1xbf16>, vector<256x1xf32> -> vector<256x1xf32>
    %5 = math.tanh %4 : vector<256x1xf32>
    %c0_5 = arith.constant 0 : index
    %c0_6 = arith.constant 0 : index
    %c0_7 = arith.constant 0 : index
    %6 = vector.load %arg4[%c0_5, %c0_6, %c0_7] : memref<1x256x1xf32, #tpu.memory_space<vmem>>, vector<1x256x1xf32>
    %7 = vector.shape_cast %6 : vector<1x256x1xf32> to vector<256x1xf32>
    %8 = vector.shape_cast %5 : vector<256x1xf32> to vector<1x256x1xf32>
    tpu.vector_store %arg4[%c0_5, %c0_6, %c0_7], %8 {strides = array<i32>} : memref<1x256x1xf32, #tpu.memory_space<vmem>>, vector<1x256x1xf32>,
    return
  }
  func.func @transform_0(%arg0: i32, %arg1: i32) -> (i32, i32, i32) {
    %c0_i32 = arith.constant 0 : i32
    %c0_i32_0 = arith.constant 0 : i32
    return %arg0, %arg1, %c0_i32 : i32, i32, i32
  }
  func.func @transform_1(%arg0: i32, %arg1: i32) -> (i32, i32, i32) {
    %c0_i32 = arith.constant 0 : i32
    %c0_i32_0 = arith.constant 0 : i32
    %c0_i32_1 = arith.constant 0 : i32
    return %arg0, %c0_i32, %c0_i32_0 : i32, i32, i32
  }
  func.func @transform_2(%arg0: i32, %arg1: i32) -> (i32, i32, i32) {
    %c0_i32 = arith.constant 0 : i32
    %c0_i32_0 = arith.constant 0 : i32
    return %arg0, %arg1, %c0_i32 : i32, i32, i32
  }
}

</mosaic_0001>

<bundles_post_ra>
// kernel: squeeze.1
= control target key start
LH: loop header
LB: loop body
LE: loop exit
PB: predicated region body
PF: predicated region fallthrough
CT: control target
= control target key end

     0   :  { %s1540_s0 = inlined_call_operand.vmem [shape: f32[1,2,8192], index: 0, kind: input, shape index: {}]   ;;  %s1541_s1 = inlined_call_operand.vmem [shape: f32[32,512], index: 1, kind: output, shape index: {}]  }
   0x1   :  { %v764_v0 = vld [vmem:[%s1540_s0 + $0x7e] sm:$0x3]  ;;  %v765_v1 = vld [vmem:[%s1540_s0 + $0x7c] sm:$0x3]  ;;  %v766_v2 = vld [vmem:[%s1540_s0 + $0x7a] sm:$0x3] }
   0x2   :  { %8 = vst [vmem:[#allocation0 + $0x1f8] sm:$0x3] %v764_v0  ;;  %13 = vst [vmem:[#allocation0 + $0x1f0] sm:$0x3] %v765_v1  ;;  %v767_v3 = vld [vmem:[%s1540_s0 + $0x78] sm:$0x3] }
   0x3   :  { %18 = vst [vmem:[#allocation0 + $0x1e8] sm:$0x3] %v766_v2  ;;  %v768_v4 = vld [vmem:[%s1540_s0 + $0x76] sm:$0x3]  ;;  %v769_v5 = vld [vmem:[%s1540_s0 + $0x74] sm:$0x3] }
   0x4   :  { %23 = vst [vmem:[#allocation0 + $0x1e0] sm:$0x3] %v767_v3  ;;  %28 = vst [vmem:[#allocation0 + $0x1d8] sm:$0x3] %v768_v4  ;;  %v770_v6 = vld [vmem:[%s1540_s0 + $0x72] sm:$0x3] }
   0x5   :  { %33 = vst [vmem:[#allocation0 + $0x1d0] sm:$0x3] %v769_v5  ;;  %v771_v7 = vld [vmem:[%s1540_s0 + $0x70] sm:$0x3]  ;;  %v772_v8 = vld [vmem:[%s1540_s0 + $0x6e] sm:$0x3] }
   0x6   :  { %38 = vst [vmem:[#allocation0 + $0x1c8] sm:$0x3] %v770_v6  ;;  %43 = vst [vmem:[#allocation0 + $0x1c0] sm:$0x3] %v771_v7  ;;  %v773_v9 = vld [vmem:[%s1540_s0 + $0x6c] sm:$0x3] }
   0x7   :  { %48 = vst [vmem:[#allocation0 + $0x1b8] sm:$0x3] %v772_v8  ;;  %v774_v10 = vld [vmem:[%s1540_s0 + $0x6a] sm:$0x3]  ;;  %v775_v11 = vld [vmem:[%s1540_s0 + $0x68] sm:$0x3] }
   0x8   :  { %53 = vst [vmem:[#allocation0 + $0x1b0] sm:$0x3] %v773_v9  ;;  %58 = vst [vmem:[#allocation0 + $0x1a8] sm:$0x3] %v774_v10  ;;  %v776_v12 = vld [vmem:[%s1540_s0 + $0x66] sm:$0x3] }
   0x9   :  { %63 = vst [vmem:[#allocation0 + $0x1a0] sm:$0x3] %v775_v11  ;;  %v777_v13 = vld [vmem:[%s1540_s0 + $0x64] sm:$0x3]  ;;  %v778_v14 = vld [vmem:[%s1540_s0 + $0x62] sm:$0x3] }
   0xa   :  { %68 = vst [vmem:[#allocation0 + $0x198] sm:$0x3] %v776_v12  ;;  %73 = vst [vmem:[#allocation0 + $0x190] sm:$0x3] %v777_v13  ;;  %v779_v15 = vld [vmem:[%s1540_s0 + $0x60] sm:$0x3] }
   0xb   :  { %78 = vst [vmem:[#allocation0 + $0x188] sm:$0x3] %v778_v14  ;;  %v780_v16 = vld [vmem:[%s1540_s0 + $0x5e] sm:$0x3]  ;;  %v781_v17 = vld [vmem:[%s1540_s0 + $0x5c] sm:$0x3] }
   0xc   :  { %83 = vst [vmem:[#allocation0 + $0x180] sm:$0x3] %v779_v15  ;;  %88 = vst [vmem:[#allocation0 + $0x178] sm:$0x3] %v780_v16  ;;  %v782_v18 = vld [vmem:[%s1540_s0 + $0x5a] sm:$0x3] }
   0xd   :  { %93 = vst [vmem:[#allocation0 + $0x170] sm:$0x3] %v781_v17  ;;  %v783_v19 = vld [vmem:[%s1540_s0 + $0x58] sm:$0x3]  ;;  %v784_v20 = vld [vmem:[%s1540_s0 + $0x56] sm:$0x3] }
   0xe   :  { %98 = vst [vmem:[#allocation0 + $0x168] sm:$0x3] %v782_v18  ;;  %103 = vst [vmem:[#allocation0 + $0x160] sm:$0x3] %v783_v19  ;;  %v785_v21 = vld [vmem:[%s1540_s0 + $0x54] sm:$0x3] }
   0xf   :  { %108 = vst [vmem:[#allocation0 + $0x158] sm:$0x3] %v784_v20  ;;  %v786_v22 = vld [vmem:[%s1540_s0 + $0x52] sm:$0x3]  ;;  %v787_v23 = vld [vmem:[%s1540_s0 + $0x50] sm:$0x3] }
  0x10   :  { %113 = vst [vmem:[#allocation0 + $0x150] sm:$0x3] %v785_v21  ;;  %118 = vst [vmem:[#allocation0 + $0x148] sm:$0x3] %v786_v22  ;;  %v788_v24 = vld [vmem:[%s1540_s0 + $0x4e] sm:$0x3] }
  0x11   :  { %123 = vst [vmem:[#allocation0 + $0x140] sm:$0x3] %v787_v23  ;;  %v789_v25 = vld [vmem:[%s1540_s0 + $0x4c] sm:$0x3]  ;;  %v790_v26 = vld [vmem:[%s1540_s0 + $0x4a] sm:$0x3] }
  0x12   :  { %128 = vst [vmem:[#allocation0 + $0x138] sm:$0x3] %v788_v24  ;;  %133 = vst [vmem:[#allocation0 + $0x130] sm:$0x3] %v789_v25  ;;  %v791_v27 = vld [vmem:[%s1540_s0 + $0x48] sm:$0x3] }
  0x13   :  { %138 = vst [vmem:[#allocation0 + $0x128] sm:$0x3] %v790_v26  ;;  %v792_v28 = vld [vmem:[%s1540_s0 + $0x46] sm:$0x3]  ;;  %v793_v29 = vld [vmem:[%s1540_s0 + $0x44] sm:$0x3] }
  0x14   :  { %143 = vst [vmem:[#allocation0 + $0x120] sm:$0x3] %v791_v27  ;;  %148 = vst [vmem:[#allocation0 + $0x118] sm:$0x3] %v792_v28  ;;  %v794_v30 = vld [vmem:[%s1540_s0 + $0x42] sm:$0x3] }
  0x15   :  { %153 = vst [vmem:[#allocation0 + $0x110] sm:$0x3] %v793_v29  ;;  %v795_v31 = vld [vmem:[%s1540_s0 + $0x40] sm:$0x3]  ;;  %v796_v32 = vld [vmem:[%s1540_s0 + $0x3e] sm:$0x3] }
  0x16   :  { %158 = vst [vmem:[#allocation0 + $0x108] sm:$0x3] %v794_v30  ;;  %163 = vst [vmem:[#allocation0 + $0x100] sm:$0x3] %v795_v31  ;;  %v797_v33 = vld [vmem:[%s1540_s0 + $0x3c] sm:$0x3] }
  0x17   :  { %168 = vst [vmem:[#allocation0 + $0xf8] sm:$0x3] %v796_v32  ;;  %v798_v34 = vld [vmem:[%s1540_s0 + $0x3a] sm:$0x3]  ;;  %v799_v35 = vld [vmem:[%s1540_s0 + $0x38] sm:$0x3] }
  0x18   :  { %173 = vst [vmem:[#allocation0 + $0xf0] sm:$0x3] %v797_v33  ;;  %178 = vst [vmem:[#allocation0 + $0xe8] sm:$0x3] %v798_v34  ;;  %v800_v36 = vld [vmem:[%s1540_s0 + $0x36] sm:$0x3] }
  0x19   :  { %183 = vst [vmem:[#allocation0 + $0xe0] sm:$0x3] %v799_v35  ;;  %v801_v37 = vld [vmem:[%s1540_s0 + $0x34] sm:$0x3]  ;;  %v802_v38 = vld [vmem:[%s1540_s0 + $0x32] sm:$0x3] }
  0x1a   :  { %188 = vst [vmem:[#allocation0 + $0xd8] sm:$0x3] %v800_v36  ;;  %193 = vst [vmem:[#allocation0 + $0xd0] sm:$0x3] %v801_v37  ;;  %v803_v39 = vld [vmem:[%s1540_s0 + $0x30] sm:$0x3] }
  0x1b   :  { %198 = vst [vmem:[#allocation0 + $0xc8] sm:$0x3] %v802_v38  ;;  %v804_v40 = vld [vmem:[%s1540_s0 + $0x2e] sm:$0x3]  ;;  %v805_v41 = vld [vmem:[%s1540_s0 + $0x2c] sm:$0x3] }
  0x1c   :  { %203 = vst [vmem:[#allocation0 + $0xc0] sm:$0x3] %v803_v39  ;;  %208 = vst [vmem:[#allocation0 + $0xb8] sm:$0x3] %v804_v40  ;;  %v806_v42 = vld [vmem:[%s1540_s0 + $0x2a] sm:$0x3] }
  0x1d   :  { %213 = vst [vmem:[#allocation0 + $0xb0] sm:$0x3] %v805_v41  ;;  %v807_v43 = vld [vmem:[%s1540_s0 + $0x28] sm:$0x3]  ;;  %v808_v44 = vld [vmem:[%s1540_s0 + $0x26] sm:$0x3] }
  0x1e   :  { %218 = vst [vmem:[#allocation0 + $0xa8] sm:$0x3] %v806_v42  ;;  %223 = vst [vmem:[#allocation0 + $0xa0] sm:$0x3] %v807_v43  ;;  %v809_v45 = vld [vmem:[%s1540_s0 + $0x24] sm:$0x3] }
  0x1f   :  { %228 = vst [vmem:[#allocation0 + $0x98] sm:$0x3] %v808_v44  ;;  %v810_v46 = vld [vmem:[%s1540_s0 + $0x22] sm:$0x3]  ;;  %v811_v47 = vld [vmem:[%s1540_s0 + $0x20] sm:$0x3] }
  0x20   :  { %233 = vst [vmem:[#allocation0 + $0x90] sm:$0x3] %v809_v45  ;;  %238 = vst [vmem:[#allocation0 + $0x88] sm:$0x3] %v810_v46  ;;  %v812_v48 = vld [vmem:[%s1540_s0 + $0x1e] sm:$0x3] }
  0x21   :  { %243 = vst [vmem:[#allocation0 + $0x80] sm:$0x3] %v811_v47  ;;  %v813_v49 = vld [vmem:[%s1540_s0 + $0x1c] sm:$0x3]  ;;  %v814_v50 = vld [vmem:[%s1540_s0 + $0x1a] sm:$0x3] }
  0x22   :  { %248 = vst [vmem:[#allocation0 + $0x78] sm:$0x3] %v812_v48  ;;  %253 = vst [vmem:[#allocation0 + $0x70] sm:$0x3] %v813_v49  ;;  %v815_v51 = vld [vmem:[%s1540_s0 + $0x18] sm:$0x3] }
  0x23   :  { %258 = vst [vmem:[#allocation0 + $0x68] sm:$0x3] %v814_v50  ;;  %v816_v52 = vld [vmem:[%s1540_s0 + $0x16] sm:$0x3]  ;;  %v817_v53 = vld [vmem:[%s1540_s0 + $0x14] sm:$0x3] }
  0x24   :  { %263 = vst [vmem:[#allocation0 + $0x60] sm:$0x3] %v815_v51  ;;  %268 = vst [vmem:[#allocation0 + $0x58] sm:$0x3] %v816_v52  ;;  %v818_v54 = vld [vmem:[%s1540_s0 + $0x12] sm:$0x3] }
  0x25   :  { %273 = vst [vmem:[#allocation0 + $0x50] sm:$0x3] %v817_v53  ;;  %v819_v55 = vld [vmem:[%s1540_s0 + $0x10] sm:$0x3]  ;;  %v820_v56 = vld [vmem:[%s1540_s0 + $0xe] sm:$0x3] }
  0x26   :  { %278 = vst [vmem:[#allocation0 + $0x48] sm:$0x3] %v818_v54  ;;  %283 = vst [vmem:[#allocation0 + $0x40] sm:$0x3] %v819_v55  ;;  %v821_v57 = vld [vmem:[%s1540_s0 + $0xc] sm:$0x3] }
  0x27   :  { %288 = vst [vmem:[#allocation0 + $0x38] sm:$0x3] %v820_v56  ;;  %v822_v58 = vld [vmem:[%s1540_s0 + $0xa] sm:$0x3]  ;;  %v823_v59 = vld [vmem:[%s1540_s0 + $0x8] sm:$0x3] }
  0x28   :  { %293 = vst [vmem:[#allocation0 + $0x30] sm:$0x3] %v821_v57  ;;  %298 = vst [vmem:[#allocation0 + $0x28] sm:$0x3] %v822_v58  ;;  %v824_v60 = vld [vmem:[%s1540_s0 + $0x6] sm:$0x3] }
  0x29   :  { %303 = vst [vmem:[#allocation0 + $0x20] sm:$0x3] %v823_v59  ;;  %v825_v61 = vld [vmem:[%s1540_s0 + $0x4] sm:$0x3]  ;;  %v826_v62 = vld [vmem:[%s1540_s0 + $0x2] sm:$0x3] }
  0x2a   :  { %308 = vst [vmem:[#allocation0 + $0x18] sm:$0x3] %v824_v60  ;;  %313 = vst [vmem:[#allocation0 + $0x10] sm:$0x3] %v825_v61  ;;  %v318_v63 = vld [vmem:[%s1540_s0] sm:$0x3] }
  0x2b   :  { %317 = vst [vmem:[#allocation0 + $0x8] sm:$0x3] %v826_v62  ;;  %v451_v0 = vld [vmem:[#allocation0 + $0xb0] sm:$0x3]   ;;  %v457_v1 = vld [vmem:[#allocation0 + $0xb8] sm:$0x3]  }
  0x2c   :  { %319 = vst [vmem:[#allocation0] sm:$0x3] %v318_v63  ;;  %v433_v2 = vld [vmem:[#allocation0 + $0x98] sm:$0x3]   ;;  %v439_v3 = vld [vmem:[#allocation0 + $0xa0] sm:$0x3]  }
  0x2d   :  { %v445_v4 = vld [vmem:[#allocation0 + $0xa8] sm:$0x3]   ;;  %870 = vst [vmem:[%s1541_s1 + $0x15] sm:$0x1] %v451_v0   ;;  %871 = vst [vmem:[%s1541_s1 + $0x54] sm:$0x2] %v451_v0  }
  0x2e   :  { %872 = vst [vmem:[%s1541_s1 + $0x1d] sm:$0x1] %v457_v1   ;;  %873 = vst [vmem:[%s1541_s1 + $0x5c] sm:$0x2] %v457_v1   ;;  %v415_v5 = vld [vmem:[#allocation0 + $0x80] sm:$0x3]  }
  0x2f   :  { %v421_v6 = vld [vmem:[#allocation0 + $0x88] sm:$0x3]   ;;  %v427_v7 = vld [vmem:[#allocation0 + $0x90] sm:$0x3]   ;;  %864 = vst [vmem:[%s1541_s1 + $0x1c] sm:$0x1] %v433_v2  }
  0x30   :  { %865 = vst [vmem:[%s1541_s1 + $0x5b] sm:$0x2] %v433_v2   ;;  %866 = vst [vmem:[%s1541_s1 + $0x5] sm:$0x1] %v439_v3   ;;  %v397_v8 = vld [vmem:[#allocation0 + $0x68] sm:$0x3]  }
  0x31   :  { %867 = vst [vmem:[%s1541_s1 + $0x44] sm:$0x2] %v439_v3   ;;  %868 = vst [vmem:[%s1541_s1 + $0xd] sm:$0x1] %v445_v4   ;;  %v403_v9 = vld [vmem:[#allocation0 + $0x70] sm:$0x3]  }
  0x32   :  { %869 = vst [vmem:[%s1541_s1 + $0x4c] sm:$0x2] %v445_v4   ;;  %v409_v10 = vld [vmem:[#allocation0 + $0x78] sm:$0x3]   ;;  %858 = vst [vmem:[%s1541_s1 + $0x4] sm:$0x1] %v415_v5  }
  0x33   :  { %859 = vst [vmem:[%s1541_s1 + $0x43] sm:$0x2] %v415_v5   ;;  %860 = vst [vmem:[%s1541_s1 + $0xc] sm:$0x1] %v421_v6   ;;  %v379_v11 = vld [vmem:[#allocation0 + $0x50] sm:$0x3]  }
  0x34   :  { %861 = vst [vmem:[%s1541_s1 + $0x4b] sm:$0x2] %v421_v6   ;;  %862 = vst [vmem:[%s1541_s1 + $0x14] sm:$0x1] %v427_v7   ;;  %v385_v12 = vld [vmem:[#allocation0 + $0x58] sm:$0x3]  }
  0x35   :  { %863 = vst [vmem:[%s1541_s1 + $0x53] sm:$0x2] %v427_v7   ;;  %v391_v13 = vld [vmem:[#allocation0 + $0x60] sm:$0x3]   ;;  %852 = vst [vmem:[%s1541_s1 + $0xb] sm:$0x1] %v397_v8  }
  0x36   :  { %853 = vst [vmem:[%s1541_s1 + $0x4a] sm:$0x2] %v397_v8   ;;  %854 = vst [vmem:[%s1541_s1 + $0x13] sm:$0x1] %v403_v9   ;;  %v361_v14 = vld [vmem:[#allocation0 + $0x38] sm:$0x3]  }
  0x37   :  { %855 = vst [vmem:[%s1541_s1 + $0x52] sm:$0x2] %v403_v9   ;;  %856 = vst [vmem:[%s1541_s1 + $0x1b] sm:$0x1] %v409_v10   ;;  %v367_v15 = vld [vmem:[#allocation0 + $0x40] sm:$0x3]  }
  0x38   :  { %857 = vst [vmem:[%s1541_s1 + $0x5a] sm:$0x2] %v409_v10   ;;  %v373_v16 = vld [vmem:[#allocation0 + $0x48] sm:$0x3]   ;;  %846 = vst [vmem:[%s1541_s1 + $0x12] sm:$0x1] %v379_v11  }
  0x39   :  { %847 = vst [vmem:[%s1541_s1 + $0x51] sm:$0x2] %v379_v11   ;;  %848 = vst [vmem:[%s1541_s1 + $0x1a] sm:$0x1] %v385_v12   ;;  %v343_v17 = vld [vmem:[#allocation0 + $0x20] sm:$0x3]  }
  0x3a   :  { %849 = vst [vmem:[%s1541_s1 + $0x59] sm:$0x2] %v385_v12   ;;  %850 = vst [vmem:[%s1541_s1 + $0x3] sm:$0x1] %v391_v13   ;;  %v349_v18 = vld [vmem:[#allocation0 + $0x28] sm:$0x3]  }
  0x3b   :  { %851 = vst [vmem:[%s1541_s1 + $0x42] sm:$0x2] %v391_v13   ;;  %v355_v19 = vld [vmem:[#allocation0 + $0x30] sm:$0x3]   ;;  %840 = vst [vmem:[%s1541_s1 + $0x19] sm:$0x1] %v361_v14  }
  0x3c   :  { %841 = vst [vmem:[%s1541_s1 + $0x58] sm:$0x2] %v361_v14   ;;  %842 = vst [vmem:[%s1541_s1 + $0x2] sm:$0x1] %v367_v15   ;;  %v325_v20 = vld [vmem:[#allocation0 + $0x8] sm:$0x3]  }
  0x3d   :  { %843 = vst [vmem:[%s1541_s1 + $0x41] sm:$0x2] %v367_v15   ;;  %844 = vst [vmem:[%s1541_s1 + $0xa] sm:$0x1] %v373_v16   ;;  %v331_v21 = vld [vmem:[#allocation0 + $0x10] sm:$0x3]  }
  0x3e   :  { %845 = vst [vmem:[%s1541_s1 + $0x49] sm:$0x2] %v373_v16   ;;  %v337_v22 = vld [vmem:[#allocation0 + $0x18] sm:$0x3]   ;;  %834 = vst [vmem:[%s1541_s1 + $0x1] sm:$0x1] %v343_v17  }
  0x3f   :  { %835 = vst [vmem:[%s1541_s1 + $0x40] sm:$0x2] %v343_v17   ;;  %836 = vst [vmem:[%s1541_s1 + $0x9] sm:$0x1] %v349_v18   ;;  %v320_v23 = vld [vmem:[#allocation0] sm:$0x3]  }
  0x40   :  { %837 = vst [vmem:[%s1541_s1 + $0x48] sm:$0x2] %v349_v18   ;;  %838 = vst [vmem:[%s1541_s1 + $0x11] sm:$0x1] %v355_v19   ;;  %v463_v24 = vld [vmem:[#allocation0 + $0xc0] sm:$0x3]  }
  0x41   :  { %839 = vst [vmem:[%s1541_s1 + $0x50] sm:$0x2] %v355_v19   ;;  %828 = vst [vmem:[%s1541_s1 + $0x8] sm:$0x1] %v325_v20   ;;  %v469_v25 = vld [vmem:[#allocation0 + $0xc8] sm:$0x3]  }
  0x42   :  { %829 = vst [vmem:[%s1541_s1 + $0x47] sm:$0x2] %v325_v20   ;;  %830 = vst [vmem:[%s1541_s1 + $0x10] sm:$0x1] %v331_v21   ;;  %v475_v26 = vld [vmem:[#allocation0 + $0xd0] sm:$0x3]  }
  0x43   :  { %831 = vst [vmem:[%s1541_s1 + $0x4f] sm:$0x2] %v331_v21   ;;  %832 = vst [vmem:[%s1541_s1 + $0x18] sm:$0x1] %v337_v22   ;;  %v481_v27 = vld [vmem:[#allocation0 + $0xd8] sm:$0x3]  }
  0x44   :  { %833 = vst [vmem:[%s1541_s1 + $0x57] sm:$0x2] %v337_v22   ;;  %321 = vst [vmem:[%s1541_s1] sm:$0x1] %v320_v23   ;;  %v487_v28 = vld [vmem:[#allocation0 + $0xe0] sm:$0x3]  }
  0x45   :  { %827 = vst [vmem:[%s1541_s1 + $0x3f] sm:$0x2] %v320_v23   ;;  %874 = vst [vmem:[%s1541_s1 + $0x6] sm:$0x1] %v463_v24   ;;  %v493_v29 = vld [vmem:[#allocation0 + $0xe8] sm:$0x3]  }
  0x46   :  { %875 = vst [vmem:[%s1541_s1 + $0x45] sm:$0x2] %v463_v24   ;;  %876 = vst [vmem:[%s1541_s1 + $0xe] sm:$0x1] %v469_v25   ;;  %v499_v30 = vld [vmem:[#allocation0 + $0xf0] sm:$0x3]  }
  0x47   :  { %877 = vst [vmem:[%s1541_s1 + $0x4d] sm:$0x2] %v469_v25   ;;  %878 = vst [vmem:[%s1541_s1 + $0x16] sm:$0x1] %v475_v26   ;;  %v505_v31 = vld [vmem:[#allocation0 + $0xf8] sm:$0x3]  }
  0x48   :  { %879 = vst [vmem:[%s1541_s1 + $0x55] sm:$0x2] %v475_v26   ;;  %880 = vst [vmem:[%s1541_s1 + $0x1e] sm:$0x1] %v481_v27   ;;  %v511_v32 = vld [vmem:[#allocation0 + $0x100] sm:$0x3]  }
  0x49   :  { %881 = vst [vmem:[%s1541_s1 + $0x5d] sm:$0x2] %v481_v27   ;;  %882 = vst [vmem:[%s1541_s1 + $0x7] sm:$0x1] %v487_v28   ;;  %v517_v33 = vld [vmem:[#allocation0 + $0x108] sm:$0x3]  }
  0x4a   :  { %883 = vst [vmem:[%s1541_s1 + $0x46] sm:$0x2] %v487_v28   ;;  %884 = vst [vmem:[%s1541_s1 + $0xf] sm:$0x1] %v493_v29   ;;  %v523_v34 = vld [vmem:[#allocation0 + $0x110] sm:$0x3]  }
  0x4b   :  { %885 = vst [vmem:[%s1541_s1 + $0x4e] sm:$0x2] %v493_v29   ;;  %886 = vst [vmem:[%s1541_s1 + $0x17] sm:$0x1] %v499_v30   ;;  %v529_v35 = vld [vmem:[#allocation0 + $0x118] sm:$0x3]  }
  0x4c   :  { %887 = vst [vmem:[%s1541_s1 + $0x56] sm:$0x2] %v499_v30   ;;  %888 = vst [vmem:[%s1541_s1 + $0x1f] sm:$0x1] %v505_v31   ;;  %v535_v36 = vld [vmem:[#allocation0 + $0x120] sm:$0x3]  }
  0x4d   :  { %889 = vst [vmem:[%s1541_s1 + $0x5e] sm:$0x2] %v505_v31   ;;  %890 = vst [vmem:[%s1541_s1 + $0x20] sm:$0x1] %v511_v32   ;;  %v541_v37 = vld [vmem:[#allocation0 + $0x128] sm:$0x3]  }
  0x4e   :  { %891 = vst [vmem:[%s1541_s1 + $0x5f] sm:$0x2] %v511_v32   ;;  %892 = vst [vmem:[%s1541_s1 + $0x28] sm:$0x1] %v517_v33   ;;  %v547_v38 = vld [vmem:[#allocation0 + $0x130] sm:$0x3]  }
  0x4f   :  { %893 = vst [vmem:[%s1541_s1 + $0x67] sm:$0x2] %v517_v33   ;;  %894 = vst [vmem:[%s1541_s1 + $0x30] sm:$0x1] %v523_v34   ;;  %v553_v39 = vld [vmem:[#allocation0 + $0x138] sm:$0x3]  }
  0x50   :  { %895 = vst [vmem:[%s1541_s1 + $0x6f] sm:$0x2] %v523_v34   ;;  %896 = vst [vmem:[%s1541_s1 + $0x38] sm:$0x1] %v529_v35   ;;  %v559_v40 = vld [vmem:[#allocation0 + $0x140] sm:$0x3]  }
  0x51   :  { %897 = vst [vmem:[%s1541_s1 + $0x77] sm:$0x2] %v529_v35   ;;  %898 = vst [vmem:[%s1541_s1 + $0x21] sm:$0x1] %v535_v36   ;;  %v565_v41 = vld [vmem:[#allocation0 + $0x148] sm:$0x3]  }
  0x52   :  { %899 = vst [vmem:[%s1541_s1 + $0x60] sm:$0x2] %v535_v36   ;;  %900 = vst [vmem:[%s1541_s1 + $0x29] sm:$0x1] %v541_v37   ;;  %v571_v42 = vld [vmem:[#allocation0 + $0x150] sm:$0x3]  }
  0x53   :  { %901 = vst [vmem:[%s1541_s1 + $0x68] sm:$0x2] %v541_v37   ;;  %902 = vst [vmem:[%s1541_s1 + $0x31] sm:$0x1] %v547_v38   ;;  %v577_v43 = vld [vmem:[#allocation0 + $0x158] sm:$0x3]  }
  0x54   :  { %903 = vst [vmem:[%s1541_s1 + $0x70] sm:$0x2] %v547_v38   ;;  %904 = vst [vmem:[%s1541_s1 + $0x39] sm:$0x1] %v553_v39   ;;  %v583_v44 = vld [vmem:[#allocation0 + $0x160] sm:$0x3]  }
  0x55   :  { %905 = vst [vmem:[%s1541_s1 + $0x78] sm:$0x2] %v553_v39   ;;  %906 = vst [vmem:[%s1541_s1 + $0x22] sm:$0x1] %v559_v40   ;;  %v589_v45 = vld [vmem:[#allocation0 + $0x168] sm:$0x3]  }
  0x56   :  { %907 = vst [vmem:[%s1541_s1 + $0x61] sm:$0x2] %v559_v40   ;;  %908 = vst [vmem:[%s1541_s1 + $0x2a] sm:$0x1] %v565_v41   ;;  %v595_v46 = vld [vmem:[#allocation0 + $0x170] sm:$0x3]  }
  0x57   :  { %909 = vst [vmem:[%s1541_s1 + $0x69] sm:$0x2] %v565_v41   ;;  %910 = vst [vmem:[%s1541_s1 + $0x32] sm:$0x1] %v571_v42   ;;  %v601_v47 = vld [vmem:[#allocation0 + $0x178] sm:$0x3]  }
  0x58   :  { %911 = vst [vmem:[%s1541_s1 + $0x71] sm:$0x2] %v571_v42   ;;  %912 = vst [vmem:[%s1541_s1 + $0x3a] sm:$0x1] %v577_v43   ;;  %v607_v48 = vld [vmem:[#allocation0 + $0x180] sm:$0x3]  }
  0x59   :  { %913 = vst [vmem:[%s1541_s1 + $0x79] sm:$0x2] %v577_v43   ;;  %914 = vst [vmem:[%s1541_s1 + $0x23] sm:$0x1] %v583_v44   ;;  %v613_v49 = vld [vmem:[#allocation0 + $0x188] sm:$0x3]  }
  0x5a   :  { %915 = vst [vmem:[%s1541_s1 + $0x62] sm:$0x2] %v583_v44   ;;  %916 = vst [vmem:[%s1541_s1 + $0x2b] sm:$0x1] %v589_v45   ;;  %v619_v50 = vld [vmem:[#allocation0 + $0x190] sm:$0x3]  }
  0x5b   :  { %917 = vst [vmem:[%s1541_s1 + $0x6a] sm:$0x2] %v589_v45   ;;  %918 = vst [vmem:[%s1541_s1 + $0x33] sm:$0x1] %v595_v46   ;;  %v625_v51 = vld [vmem:[#allocation0 + $0x198] sm:$0x3]  }
  0x5c   :  { %919 = vst [vmem:[%s1541_s1 + $0x72] sm:$0x2] %v595_v46   ;;  %920 = vst [vmem:[%s1541_s1 + $0x3b] sm:$0x1] %v601_v47   ;;  %v631_v52 = vld [vmem:[#allocation0 + $0x1a0] sm:$0x3]  }
  0x5d   :  { %921 = vst [vmem:[%s1541_s1 + $0x7a] sm:$0x2] %v601_v47   ;;  %922 = vst [vmem:[%s1541_s1 + $0x24] sm:$0x1] %v607_v48   ;;  %v637_v53 = vld [vmem:[#allocation0 + $0x1a8] sm:$0x3]  }
  0x5e   :  { %923 = vst [vmem:[%s1541_s1 + $0x63] sm:$0x2] %v607_v48   ;;  %924 = vst [vmem:[%s1541_s1 + $0x2c] sm:$0x1] %v613_v49   ;;  %v643_v54 = vld [vmem:[#allocation0 + $0x1b0] sm:$0x3]  }
  0x5f   :  { %925 = vst [vmem:[%s1541_s1 + $0x6b] sm:$0x2] %v613_v49   ;;  %926 = vst [vmem:[%s1541_s1 + $0x34] sm:$0x1] %v619_v50   ;;  %v649_v55 = vld [vmem:[#allocation0 + $0x1b8] sm:$0x3]  }
  0x60   :  { %927 = vst [vmem:[%s1541_s1 + $0x73] sm:$0x2] %v619_v50   ;;  %928 = vst [vmem:[%s1541_s1 + $0x3c] sm:$0x1] %v625_v51   ;;  %v655_v56 = vld [vmem:[#allocation0 + $0x1c0] sm:$0x3]  }
  0x61   :  { %929 = vst [vmem:[%s1541_s1 + $0x7b] sm:$0x2] %v625_v51   ;;  %930 = vst [vmem:[%s1541_s1 + $0x25] sm:$0x1] %v631_v52   ;;  %v661_v57 = vld [vmem:[#allocation0 + $0x1c8] sm:$0x3]  }
  0x62   :  { %931 = vst [vmem:[%s1541_s1 + $0x64] sm:$0x2] %v631_v52   ;;  %932 = vst [vmem:[%s1541_s1 + $0x2d] sm:$0x1] %v637_v53   ;;  %v667_v58 = vld [vmem:[#allocation0 + $0x1d0] sm:$0x3]  }
  0x63   :  { %933 = vst [vmem:[%s1541_s1 + $0x6c] sm:$0x2] %v637_v53   ;;  %934 = vst [vmem:[%s1541_s1 + $0x35] sm:$0x1] %v643_v54   ;;  %v673_v59 = vld [vmem:[#allocation0 + $0x1d8] sm:$0x3]  }
  0x64   :  { %935 = vst [vmem:[%s1541_s1 + $0x74] sm:$0x2] %v643_v54   ;;  %936 = vst [vmem:[%s1541_s1 + $0x3d] sm:$0x1] %v649_v55   ;;  %v679_v60 = vld [vmem:[#allocation0 + $0x1e0] sm:$0x3]  }
  0x65   :  { %937 = vst [vmem:[%s1541_s1 + $0x7c] sm:$0x2] %v649_v55   ;;  %938 = vst [vmem:[%s1541_s1 + $0x26] sm:$0x1] %v655_v56   ;;  %v685_v61 = vld [vmem:[#allocation0 + $0x1e8] sm:$0x3]  }
  0x66   :  { %939 = vst [vmem:[%s1541_s1 + $0x65] sm:$0x2] %v655_v56   ;;  %940 = vst [vmem:[%s1541_s1 + $0x2e] sm:$0x1] %v661_v57   ;;  %v691_v62 = vld [vmem:[#allocation0 + $0x1f0] sm:$0x3]  }
  0x67   :  { %941 = vst [vmem:[%s1541_s1 + $0x6d] sm:$0x2] %v661_v57   ;;  %942 = vst [vmem:[%s1541_s1 + $0x36] sm:$0x1] %v667_v58   ;;  %v697_v63 = vld [vmem:[#allocation0 + $0x1f8] sm:$0x3]  }
  0x68   :  { %943 = vst [vmem:[%s1541_s1 + $0x75] sm:$0x2] %v667_v58   ;;  %944 = vst [vmem:[%s1541_s1 + $0x3e] sm:$0x1] %v673_v59  }
  0x69   :  { %945 = vst [vmem:[%s1541_s1 + $0x7d] sm:$0x2] %v673_v59   ;;  %946 = vst [vmem:[%s1541_s1 + $0x27] sm:$0x1] %v679_v60  }
  0x6a   :  { %947 = vst [vmem:[%s1541_s1 + $0x66] sm:$0x2] %v679_v60   ;;  %948 = vst [vmem:[%s1541_s1 + $0x2f] sm:$0x1] %v685_v61  }
  0x6b   :  { %949 = vst [vmem:[%s1541_s1 + $0x6e] sm:$0x2] %v685_v61   ;;  %950 = vst [vmem:[%s1541_s1 + $0x37] sm:$0x1] %v691_v62  }
  0x6c   :  { %951 = vst [vmem:[%s1541_s1 + $0x76] sm:$0x2] %v691_v62   ;;  %952 = vst [vmem:[%s1541_s1 + $0x3f] sm:$0x1] %v697_v63  }
  0x6d   :  { %953 = vst [vmem:[%s1541_s1 + $0x7e] sm:$0x2] %v697_v63  }

// kernel: generator_forward.8
= control target key start
LH: loop header
LB: loop body
LE: loop exit
PB: predicated region body
PF: predicated region fallthrough
CT: control target
= control target key end

     0   :  { %s556_s12 = smov 0   ;;  %s558_s13 = smov 0   ;;  %s628_s0 = inlined_call_operand.vmem [shape: f32[32,512], index: 0, kind: input, shape index: {}]   ;;  %s629_s1 = inlined_call_operand.vmem [shape: f32[1,512], index: 1, kind: input, shape index: {}]   ;;  %s630_s2 = inlined_call_operand.vmem [shape: f32[1,512], index: 2, kind: input, shape index: {}]   ;;  %s631_s3 = inlined_call_operand.vmem [shape: bf16[32,512], index: 3, kind: output, shape index: {}]  }
   0x1   :  { %s560_s14 = smov 0  }
   0x2 LB: > { %s572_s15 = sadd.s32 4294967295, %s534_s14   ;;  %s575_s16 = sadd.s32 1, %s534_s14   ;;  %s534_s14 = sphi %s560_s14, %s635_s14   ;;  %s530_s13 = sphi %s558_s13, %s634_s13   ;;  %s526_s12 = sphi %s556_s12, %s633_s12  }
   0x3   : > { %s17_s17 = ssub.s32 %s534_s14, %s575_s16  ;;  %s20_s18 = sadd.s32 1, %s530_s13 }
   0x4   : > { %p18_p0 = scmp.eq.s32.totalorder %s17_s17, 0  ;;  %p27_p1 = scmp.ne.s32.totalorder %s530_s13, %s526_s12 }
   0x5   : > { %p28_p2 = scmp.eq.s32.totalorder %s534_s14, 0  ;;  %p109_p3 = scmp.eq.s32.totalorder %s572_s15, 3 }
   0x6   : > { %s585_s19 = scalar_select %p18_p0, %s530_s13, %s20_s18  }
   0x7   : > { %p29_p4 = por %p28_p2, %p27_p1  ;;  %p587_p5 = por %p109_p3, %p27_p1 }
   0x8   : > { %p457_p6 = scmp.ge.s32.totalorder %s534_s14, 4 }
   0xa   : > { %131 = sbr.rel (%p457_p6) target bundleno = 25 (0x19), region = 16 }
  0x11   : > { %134 = sbr.rel (!%p29_p4) target bundleno = 25 (0x19), region = 20  ;;  %s136_s21 = sand.u32 (%p29_p4), 1, %s530_s13  }
  0x12   : > { %s459_s22 = sshll.u32 (%p29_p4), %s534_s14, 3  ;;  %s458_s23 = sshll.u32 (%p29_p4), %s136_s21, 5 }
  0x13   : > { %s140_s26 = scalar_lea.vmem (%p29_p4), %s628_s0, %s459_s22  ;;  %s138_s27 = scalar_lea.vmem (%p29_p4), [#allocation2], %s458_s23 }
  0x14   : > { %v174_v0 = vld [vmem:[%s140_s26] sm:$0xff] (%p29_p4) }
  0x15   : > { %v176_v1 = vld [vmem:[%s140_s26 + $0x20] sm:$0xff] (%p29_p4)  ;;  %175 = vst [vmem:[%s138_s27] sm:$0xff] (%p29_p4), %v174_v0 }
  0x16   : > { %v178_v2 = vld [vmem:[%s140_s26 + $0x40] sm:$0xff] (%p29_p4)  ;;  %177 = vst [vmem:[%s138_s27 + $0x8] sm:$0xff] (%p29_p4), %v176_v1 }
  0x17   : > { %179 = vst [vmem:[%s138_s27 + $0x10] sm:$0xff] (%p29_p4), %v178_v2  ;;  %v180_v3 = vld [vmem:[%s140_s26 + $0x60] sm:$0xff] (%p29_p4) }
  0x18   : > { %181 = vst [vmem:[%s138_s27 + $0x18] sm:$0xff] %v180_v3 }
  0x19 PF: > { %p460_p7 = scmp.ge.s32.totalorder %s534_s14, 1  ;;  %p198_p8 = scmp.lt.s32.totalorder %s534_s14, 5 }
  0x1b   : > { %p199_p9 = pnand %p460_p7, %p198_p8 }
  0x1c   : > { %s205_s28 = sand.u32 (!%p199_p9), 1, %s526_s12   ;;  %p233_p10 = scmp.lt.s32.totalorder (!%p199_p9), %s572_s15, 3  ;;  %v277_v35 = vlaneseq (!%p199_p9) }
  0x1d   : > { %202 = sbr.rel (%p199_p9) target bundleno = 93 (0x5d), region = 66  ;;  %s461_s29 = sshll.u32 (!%p199_p9), %s205_s28, 5 }
  0x1e   : > { %s207_s30 = scalar_lea.vmem (!%p199_p9), [#allocation2], %s461_s29  ;;  %v278_v36 = vshrl.u32 (!%p199_p9), %v277_v35, 7  ;;  %s462_s11 = sshll.u32 (!%p199_p9), %s205_s28, 4 }
  0x1f   : > { %v239_v4 = vld [vmem:[%s207_s30] sm:$0xff] (!%p199_p9)  ;;  %v240_v5 = vld [vmem:[%s207_s30 + $0x8] sm:$0xff] (!%p199_p9)  ;;  %v241_v6 = vld [vmem:[%s207_s30 + $0x10] sm:$0xff] (!%p199_p9)  ;;  %s232_s14 = scalar_lea.vmem (!%p199_p9), [#allocation3], %s462_s11 }
  0x20   : > { %v242_v7 = vld [vmem:[%s207_s30 + $0x18] sm:$0xff] (!%p199_p9)  ;;  %v243_v8 = vadd.f32 (!%p199_p9), %v240_v5, %v239_v4  ;;  %v253_v9 = vmul.f32 (!%p199_p9), %v239_v4, %v239_v4  ;;  %v254_v10 = vmul.f32 (!%p199_p9), %v240_v5, %v240_v5  ;;  %v255_v11 = vmul.f32 (!%p199_p9), %v241_v6, %v241_v6 }
  0x21   : > { %v256_v13 = vmul.f32 (!%p199_p9), %v242_v7, %v242_v7  ;;  %v279_v38 = vsub.s32 (!%p199_p9), 0, %v278_v36 }
  0x22   : > { %v244_v12 = vadd.f32 (!%p199_p9), %v243_v8, %v241_v6  ;;  %v257_v14 = vadd.f32 (!%p199_p9), %v254_v10, %v253_v9 }
  0x24   : > { %v245_v15 = vadd.f32 %v244_v12, %v242_v7  ;;  %v258_v16 = vadd.f32 %v257_v14, %v255_v11  ;;  %s234_s4 = scalar_select %p233_p10, %s572_s15, 3 }
  0x25   : > { %s468_s17 = sshll.u32 (%p587_p5), %s572_s15, 2 }
  0x26   : > { %v246_v17 = vrot.slane %v245_v15, 4  ;;  %v259_v18 = vadd.f32 %v258_v16, %v256_v13  ;;  %s235_s7 = scalar_lea.vmem %s629_s1, %s234_s4  ;;  %s238_s10 = scalar_lea.vmem %s630_s2, %s234_s4 }
  0x27   : > { %v269_v37 = vld [vmem:[%s235_s7] sm:$0x1]  ;;  %s328_s21 = scalar_lea.vmem (%p587_p5), %s631_s3, %s468_s17 }
  0x28   : > { %v247_v19 = vadd.f32 %v246_v17, %v245_v15  ;;  %v260_v20 = vrot.slane %v259_v18, 4  ;;  %v273_v41 = vld [vmem:[%s238_s10] sm:$0x1] }
  0x2a   : > { %v248_v21 = vrot.slane %v247_v19, 2  ;;  %v261_v22 = vadd.f32 %v260_v20, %v259_v18 }
  0x2c   : > { %v249_v23 = vadd.f32 %v248_v21, %v247_v19  ;;  %v262_v24 = vrot.slane %v261_v22, 2 }
  0x2e   : > { %v250_v25 = vrot.slane %v249_v23, 1  ;;  %v263_v26 = vadd.f32 %v262_v24, %v261_v22 }
  0x30   : > { %v251_v27 = vadd.f32 %v250_v25, %v249_v23  ;;  %v264_v28 = vrot.slane %v263_v26, 1 }
  0x32   : > { %v252_v29 = vmul.f32 0.03125, %v251_v27  ;;  %v265_v30 = vadd.f32 %v264_v28, %v263_v26 }
  0x34   : > { %v266_v31 = vmul.f32 0.03125, %v265_v30  ;;  %v267_v32 = vmul.f32 %v252_v29, %v252_v29 }
  0x36   : > { %v268_v33 = vsub.f32 %v266_v31, %v267_v32 }
  0x38   : > { %v270_v34 = vadd.f32 1e-05, %v268_v33 }
  0x3a   : > { %510 = vrsqrt.f32 %v270_v34 }
  0x44   : > { %v511_v39 = vpop.eup %510 }
  0x45   : > { %v272_v40 = vmul.f32 %v511_v39, %v269_v37 }
  0x47   : > { %v274_v42 = vmul.f32 %v272_v40, %v252_v29  ;;  %v280_v43 = vrot.slane %v272_v40, %v279_v38 }
  0x49   : > { %v275_v44 = vsub.f32 %v273_v41, %v274_v42  ;;  %v282_v45 = vmul.f32 %v280_v43, %v239_v4  ;;  %v283_v46 = vmul.f32 %v280_v43, %v240_v5  ;;  %v284_v47 = vmul.f32 %v280_v43, %v241_v6 }
  0x4a   : > { %v285_v48 = vmul.f32 %v280_v43, %v242_v7 }
  0x4b   : > { %v290_v49 = vrot.slane %v275_v44, %v279_v38 }
  0x4d   : > { %v292_v50 = vadd.f32 %v290_v49, %v282_v45  ;;  %v293_v51 = vadd.f32 %v290_v49, %v283_v46  ;;  %v294_v52 = vadd.f32 %v290_v49, %v284_v47  ;;  %v295_v53 = vadd.f32 %v290_v49, %v285_v48  ;;  %326 = sbr.rel (!%p587_p5) target bundleno = 93 (0x5d), region = 74 }
  0x4f   : > { %v296_v54 = vmax.f32 %v292_v50, 0.0  ;;  %v297_v55 = vmax.f32 %v293_v51, 0.0  ;;  %v298_v56 = vmax.f32 %v294_v52, 0.0  ;;  %v299_v57 = vmax.f32 %v295_v53, 0.0 }
  0x51   : > { %v478_v58 = vpack.c.bf16 %v297_v55, %v296_v54  ;;  %v483_v59 = vpack.c.bf16 %v299_v57, %v298_v56 }
  0x53   : > { %479 = vst [vmem:[%s232_s14] sm:$0xff] %v478_v58   ;;  %485 = vst [vmem:[%s232_s14 + $0x8] sm:$0xff] %v483_v59  }
  0x5a   : > { %v344_v60 = vld [vmem:[%s232_s14] sm:$0xf]  ;;  %v346_v61 = vld [vmem:[%s232_s14 + $0x4] sm:$0xf]  ;;  %v348_v62 = vld [vmem:[%s232_s14 + $0x8] sm:$0xf] }
  0x5b   : > { %v350_v63 = vld [vmem:[%s232_s14 + $0xc] sm:$0xf]  ;;  %345 = vst [vmem:[%s328_s21] sm:$0xf] %v344_v60  ;;  %347 = vst [vmem:[%s328_s21 + $0x10] sm:$0xf] %v346_v61 }
  0x5c   : > { %349 = vst [vmem:[%s328_s21 + $0x20] sm:$0xf] %v348_v62  ;;  %351 = vst [vmem:[%s328_s21 + $0x30] sm:$0xf] %v350_v63 }
  0x5d PF: > { %p10_p11 = scmp.ge.s32.totalorder %s575_s16, 6   ;;  %s633_s12 = smov %s530_s13 }
  0x5e   : > { %s634_s13 = smov %s585_s19  ;;  %s635_s14 = smov %s575_s16 }
  0x5f   :  { %12 = sbr.rel (!%p10_p11) target bundleno = 2 (0x2), region = 152 }

// kernel: generator_forward.9
= control target key start
LH: loop header
LB: loop body
LE: loop exit
PB: predicated region body
PF: predicated region fallthrough
CT: control target
= control target key end

     0   :  { %s2512_s9 = smov 0   ;;  %s2514_s10 = smov 0   ;;  %s2717_s0 = inlined_call_operand.vmem [shape: bf16[4,32,2048], index: 0, kind: input, shape index: {}]   ;;  %s2718_s1 = inlined_call_operand.vmem [shape: bf16[4,2048,128], index: 1, kind: input, shape index: {}]   ;;  %s2719_s2 = inlined_call_operand.vmem [shape: f32[4,32,128], index: 2, kind: output, shape index: {}]  }
   0x1   :  { %s2516_s11 = smov 0  }
   0x2 LB: > { %s24_s12 = sadd.s32 1, %s2491_s10  ;;  %p1925_p0 = scmp.ge.s32.totalorder %s2495_s11, 1  ;;  %s2495_s11 = sphi %s2516_s11, %s12_s11   ;;  %s2491_s10 = sphi %s2514_s10, %s2721_s10   ;;  %s2487_s9 = sphi %s2512_s9, %s2720_s9  }
   0x3   : > { %p26_p1 = scmp.ge.s32.totalorder %s24_s12, 4  ;;  %p144_p2 = scmp.lt.s32.totalorder %s2495_s11, 5 }
   0x5   : > { %s2723_s12 = smov (%p26_p1, %s24_s12), 0  ;;  %p145_p3 = pnand %p1925_p0, %p144_p2 }
   0x6   : > { %p181_p4 = scmp.lt.s32.totalorder (!%p145_p3), %s2487_s9, 3 }
   0x7   : > { %148 = sbr.rel (%p145_p3) target bundleno = 377 (0x179), region = 28 }
   0xe   : > { %s2725_s9 = smov (!%p181_p4, %s2487_s9), 3 }
   0xf   : > { %s2095_s13 = sshll.u32 %s2725_s9, 10  ;;  %s2094_s17 = sshll.u32 %s2725_s9, 8 }
  0x10   : > { %s2536_s16 = scalar_lea.vmem %s2718_s1, %s2095_s13  ;;  %s2572_s20 = scalar_lea.vmem %s2717_s0, %s2094_s17 }
  0x11   : > { %v2345_v0 = vld [vmem:[%s2536_s16 + $0x40] sm:$0xff]   ;;  %v2349_v4 = vld [vmem:[%s2536_s16 + $0x48] sm:$0xff]   ;;  %v2353_v8 = vld [vmem:[%s2536_s16 + $0x50] sm:$0xff]   ;;  %s2096_s21 = sshll.u32 %s2725_s9, 5 }
  0x12   : > { %v2346_v1 = vld [vmem:[%s2536_s16 + $0xc0] sm:$0xff]   ;;  %2097 = vmatprep.subr.bf16.mxu0 %v2345_v0  ;;  %v2350_v5 = vld [vmem:[%s2536_s16 + $0xc8] sm:$0xff]   ;;  %v2354_v9 = vld [vmem:[%s2536_s16 + $0xd0] sm:$0xff]   ;;  %s204_s24 = scalar_lea.vmem %s2719_s2, %s2096_s21 }
  0x13   : > { %v2347_v2 = vld [vmem:[%s2536_s16] sm:$0xff]   ;;  %2125 = vmatprep.subr.bf16.mxu1 %v2346_v1  ;;  %v2351_v6 = vld [vmem:[%s2536_s16 + $0x8] sm:$0xff]   ;;  %v2355_v10 = vld [vmem:[%s2536_s16 + $0x10] sm:$0xff]  }
  0x14   : > { %v2348_v3 = vld [vmem:[%s2536_s16 + $0x80] sm:$0xff]   ;;  %2098 = vmatpush3.bf16.msra.mxu0 %v2347_v2  ;;  %v2352_v7 = vld [vmem:[%s2536_s16 + $0x88] sm:$0xff]   ;;  %v2356_v11 = vld [vmem:[%s2536_s16 + $0x90] sm:$0xff]  }
  0x15   : > { %2126 = vmatpush3.bf16.msra.mxu1 %v2348_v3  ;;  %2099 = vmatprep.subr.bf16.mxu0 %v2349_v4  ;;  %v2357_v12 = vld [vmem:[%s2536_s16 + $0x58] sm:$0xff]   ;;  %v2361_v16 = vld [vmem:[%s2536_s16 + $0x60] sm:$0xff]   ;;  %v2365_v20 = vld [vmem:[%s2536_s16 + $0x68] sm:$0xff]  }
  0x16   : > { %2127 = vmatprep.subr.bf16.mxu1 %v2350_v5  ;;  %v2358_v13 = vld [vmem:[%s2536_s16 + $0xd8] sm:$0xff]   ;;  %v2362_v17 = vld [vmem:[%s2536_s16 + $0xe0] sm:$0xff]   ;;  %v2366_v21 = vld [vmem:[%s2536_s16 + $0xe8] sm:$0xff]  }
  0x17   : > { %v2359_v14 = vld [vmem:[%s2536_s16 + $0x18] sm:$0xff]   ;;  %v2363_v18 = vld [vmem:[%s2536_s16 + $0x20] sm:$0xff]   ;;  %v2367_v22 = vld [vmem:[%s2536_s16 + $0x28] sm:$0xff]  }
  0x18   : > { %2100 = vmatpush3.bf16.msra.mxu0 %v2351_v6  ;;  %v2360_v15 = vld [vmem:[%s2536_s16 + $0x98] sm:$0xff]   ;;  %v2364_v19 = vld [vmem:[%s2536_s16 + $0xa0] sm:$0xff]   ;;  %v2368_v23 = vld [vmem:[%s2536_s16 + $0xa8] sm:$0xff]  }
  0x19   : > { %2128 = vmatpush3.bf16.msra.mxu1 %v2352_v7  ;;  %2101 = vmatprep.subr.bf16.mxu0 %v2353_v8  ;;  %v2369_v24 = vld [vmem:[%s2536_s16 + $0x70] sm:$0xff]   ;;  %v2373_v28 = vld [vmem:[%s2536_s16 + $0x78] sm:$0xff]   ;;  %v207_v32 = vld [vmem:[%s2572_s20] sm:$0xff] }
  0x1a   : > { %2129 = vmatprep.subr.bf16.mxu1 %v2354_v9  ;;  %v2370_v25 = vld [vmem:[%s2536_s16 + $0xf0] sm:$0xff]   ;;  %v2374_v29 = vld [vmem:[%s2536_s16 + $0xf8] sm:$0xff]   ;;  %v215_v33 = vld [vmem:[%s2572_s20 + $0x40] sm:$0xff] }
  0x1b   : > { %v2371_v26 = vld [vmem:[%s2536_s16 + $0x30] sm:$0xff]   ;;  %v2375_v30 = vld [vmem:[%s2536_s16 + $0x38] sm:$0xff]   ;;  %v208_v34 = vld [vmem:[%s2572_s20 + $0x8] sm:$0xff]  ;;  %v1932_v35 = vcombine.low %v207_v32, %v215_v33  ;;  %v1933_v36 = vcombine.high %v207_v32, %v215_v33 }
  0x1c   : > { %2102 = vmatpush3.bf16.msra.mxu0 %v2355_v10  ;;  %v2372_v27 = vld [vmem:[%s2536_s16 + $0xb0] sm:$0xff]   ;;  %v2376_v31 = vld [vmem:[%s2536_s16 + $0xb8] sm:$0xff]   ;;  %v216_v37 = vld [vmem:[%s2572_s20 + $0x48] sm:$0xff] }
  0x1d   : > { %2130 = vmatpush3.bf16.msra.mxu1 %v2356_v11  ;;  %2103 = vmatprep.subr.bf16.mxu0 %v2357_v12  ;;  %v1934_v38 = vcombine.low %v208_v34, %v216_v37  ;;  %v1935_v39 = vcombine.high %v208_v34, %v216_v37  ;;  %v2377_v40 = vld [vmem:[%s2536_s16 + $0x140] sm:$0xff]   ;;  %v2381_v44 = vld [vmem:[%s2536_s16 + $0x148] sm:$0xff]   ;;  %v2385_v48 = vld [vmem:[%s2536_s16 + $0x150] sm:$0xff]  }
  0x1e   : > { %2131 = vmatprep.subr.bf16.mxu1 %v2358_v13  ;;  %1455 = vmatprep.mubr.bf16.mxu0 %v1933_v36  ;;  %v2378_v41 = vld [vmem:[%s2536_s16 + $0x1c0] sm:$0xff]   ;;  %v2382_v45 = vld [vmem:[%s2536_s16 + $0x1c8] sm:$0xff]   ;;  %v2386_v49 = vld [vmem:[%s2536_s16 + $0x1d0] sm:$0xff]  }
  0x1f   : > { %1504 = vmatprep.mubr.bf16.mxu1 %v1935_v39  ;;  %v2379_v42 = vld [vmem:[%s2536_s16 + $0x100] sm:$0xff]   ;;  %v2383_v46 = vld [vmem:[%s2536_s16 + $0x108] sm:$0xff]   ;;  %v2387_v50 = vld [vmem:[%s2536_s16 + $0x110] sm:$0xff]  }
  0x20   : > { %2104 = vmatpush3.bf16.msra.mxu0 %v2359_v14  ;;  %v2380_v43 = vld [vmem:[%s2536_s16 + $0x180] sm:$0xff]   ;;  %v2384_v47 = vld [vmem:[%s2536_s16 + $0x188] sm:$0xff]   ;;  %v2388_v51 = vld [vmem:[%s2536_s16 + $0x190] sm:$0xff]  }
  0x21   : > { %2132 = vmatpush3.bf16.msra.mxu1 %v2360_v15  ;;  %2105 = vmatprep.subr.bf16.mxu0 %v2361_v16  ;;  %v2389_v52 = vld [vmem:[%s2536_s16 + $0x158] sm:$0xff]   ;;  %v2393_v56 = vld [vmem:[%s2536_s16 + $0x160] sm:$0xff]   ;;  %v2397_v60 = vld [vmem:[%s2536_s16 + $0x168] sm:$0xff]  }
  0x22   : > { %2133 = vmatprep.subr.bf16.mxu1 %v2362_v17  ;;  %v2390_v53 = vld [vmem:[%s2536_s16 + $0x1d8] sm:$0xff]   ;;  %v2394_v57 = vld [vmem:[%s2536_s16 + $0x1e0] sm:$0xff]   ;;  %v2398_v61 = vld [vmem:[%s2536_s16 + $0x1e8] sm:$0xff]  }
  0x23   : > { %v2391_v54 = vld [vmem:[%s2536_s16 + $0x118] sm:$0xff]   ;;  %v2395_v58 = vld [vmem:[%s2536_s16 + $0x120] sm:$0xff]   ;;  %v224_v1 = vld [vmem:[%s2572_s20 + $0x88] sm:$0xff] }
  0x24   : > { %2106 = vmatpush3.bf16.msra.mxu0 %v2363_v18  ;;  %v2392_v55 = vld [vmem:[%s2536_s16 + $0x198] sm:$0xff]   ;;  %v2396_v59 = vld [vmem:[%s2536_s16 + $0x1a0] sm:$0xff]   ;;  %v232_v2 = vld [vmem:[%s2572_s20 + $0xc8] sm:$0xff] }
  0x25   : > { %2134 = vmatpush3.bf16.msra.mxu1 %v2364_v19  ;;  %2107 = vmatprep.subr.bf16.mxu0 %v2365_v20  ;;  %v223_v62 = vld [vmem:[%s2572_s20 + $0x80] sm:$0xff]  ;;  %v1951_v4 = vcombine.high %v224_v1, %v232_v2  ;;  %v2399_v5 = vld [vmem:[%s2536_s16 + $0x128] sm:$0xff]   ;;  %v1950_v6 = vcombine.low %v224_v1, %v232_v2  ;;  %v2401_v8 = vld [vmem:[%s2536_s16 + $0x170] sm:$0xff]  }
  0x26   : > { %2135 = vmatprep.subr.bf16.mxu1 %v2366_v21  ;;  %v231_v63 = vld [vmem:[%s2572_s20 + $0xc0] sm:$0xff]  ;;  %v2400_v7 = vld [vmem:[%s2536_s16 + $0x1a8] sm:$0xff]   ;;  %v2402_v9 = vld [vmem:[%s2536_s16 + $0x1f0] sm:$0xff]  }
  0x27   : > { %v1949_v0 = vcombine.high %v223_v62, %v231_v63  ;;  %v1948_v3 = vcombine.low %v223_v62, %v231_v63  ;;  %v2403_v10 = vld [vmem:[%s2536_s16 + $0x130] sm:$0xff]   ;;  %v2405_v12 = vld [vmem:[%s2536_s16 + $0x178] sm:$0xff]   ;;  %v219_v1 = vld [vmem:[%s2572_s20 + $0x60] sm:$0xff] }
  0x28   : > { %2108 = vmatpush3.bf16.msra.mxu0 %v2367_v22  ;;  %v2404_v11 = vld [vmem:[%s2536_s16 + $0x1b0] sm:$0xff]   ;;  %v2406_v13 = vld [vmem:[%s2536_s16 + $0x1f8] sm:$0xff]  }
  0x29   : > { %2136 = vmatpush3.bf16.msra.mxu1 %v2368_v23  ;;  %2109 = vmatprep.subr.bf16.mxu0 %v2369_v24  ;;  %v2407_v14 = vld [vmem:[%s2536_s16 + $0x138] sm:$0xff]   ;;  %v209_v16 = vld [vmem:[%s2572_s20 + $0x10] sm:$0xff]  ;;  %v2409_v24 = vld [vmem:[%s2536_s16 + $0x240] sm:$0xff]  }
  0x2a   : > { %2137 = vmatprep.subr.bf16.mxu1 %v2370_v25  ;;  %v2408_v15 = vld [vmem:[%s2536_s16 + $0x1b8] sm:$0xff]   ;;  %v217_v17 = vld [vmem:[%s2572_s20 + $0x50] sm:$0xff]  ;;  %v2410_v25 = vld [vmem:[%s2536_s16 + $0x2c0] sm:$0xff]  }
  0x2b   : > { %v210_v18 = vld [vmem:[%s2572_s20 + $0x18] sm:$0xff]  ;;  %v1936_v20 = vcombine.low %v209_v16, %v217_v17  ;;  %v1937_v21 = vcombine.high %v209_v16, %v217_v17  ;;  %v225_v32 = vld [vmem:[%s2572_s20 + $0x90] sm:$0xff]  ;;  %v227_v16 = vld [vmem:[%s2572_s20 + $0xa0] sm:$0xff] }
  0x2c   : > { %2110 = vmatpush3.bf16.msra.mxu0 %v2371_v26  ;;  %v218_v19 = vld [vmem:[%s2572_s20 + $0x58] sm:$0xff]  ;;  %v2411_v26 = vld [vmem:[%s2536_s16 + $0x200] sm:$0xff]   ;;  %v233_v33 = vld [vmem:[%s2572_s20 + $0xd0] sm:$0xff] }
  0x2d   : > { %2138 = vmatpush3.bf16.msra.mxu1 %v2372_v27  ;;  %2111 = vmatprep.subr.bf16.mxu0 %v2373_v28  ;;  %v1938_v22 = vcombine.low %v210_v18, %v218_v19  ;;  %v1939_v23 = vcombine.high %v210_v18, %v218_v19  ;;  %v2412_v27 = vld [vmem:[%s2536_s16 + $0x280] sm:$0xff]   ;;  %v2413_v28 = vld [vmem:[%s2536_s16 + $0x248] sm:$0xff]   ;;  %v1953_v34 = vcombine.high %v225_v32, %v233_v33  ;;  %v2417_v36 = vld [vmem:[%s2536_s16 + $0x250] sm:$0xff]  }
  0x2e   : > { %2139 = vmatprep.subr.bf16.mxu1 %v2374_v29  ;;  %v2414_v29 = vld [vmem:[%s2536_s16 + $0x2c8] sm:$0xff]   ;;  %v2418_v37 = vld [vmem:[%s2536_s16 + $0x2d0] sm:$0xff]   ;;  %v234_v39 = vld [vmem:[%s2572_s20 + $0xd8] sm:$0xff] }
  0x2f   : > { %v2439_v62 = vld [vmem:[%s2536_s16 + $0x238] sm:$0xff]   ;;  %v235_v17 = vld [vmem:[%s2572_s20 + $0xe0] sm:$0xff] }
  0x30   : > { %2112 = vmatpush3.bf16.msra.mxu0 %v2375_v30  ;;  %v2415_v30 = vld [vmem:[%s2536_s16 + $0x208] sm:$0xff]   ;;  %v2440_v63 = vld [vmem:[%s2536_s16 + $0x2b8] sm:$0xff]   ;;  %v1957_v18 = vcombine.high %v227_v16, %v235_v17  ;;  %v1956_v19 = vcombine.low %v227_v16, %v235_v17 }
  0x31   : > { %2140 = vmatpush3.bf16.msra.mxu1 %v2376_v31  ;;  %2153 = vmatprep.subr.bf16.mxu0 %v2377_v40  ;;  %v2416_v31 = vld [vmem:[%s2536_s16 + $0x288] sm:$0xff]  }
  0x32   : > { %2181 = vmatprep.subr.bf16.mxu1 %v2378_v41  ;;  %v2419_v41 = vld [vmem:[%s2536_s16 + $0x210] sm:$0xff]  }
  0x33   : > { %1456 = vmatmul.mubr.bf16.vlgmr.msra.gmra.mrb[0].mxu0 %v1932_v35  ;;  %v1952_v35 = vcombine.low %v225_v32, %v233_v33  ;;  %v2457_v32 = vld [vmem:[%s2536_s16 + $0x360] sm:$0xff]  }
  0x34   : > { %1505 = vmatmul.mubr.bf16.vlgmr.msra.gmra.mrb[0].mxu1 %v1934_v38  ;;  %2154 = vmatpush3.bf16.msra.mxu0 %v2379_v42  ;;  %v226_v38 = vld [vmem:[%s2572_s20 + $0x98] sm:$0xff]  ;;  %v2458_v33 = vld [vmem:[%s2536_s16 + $0x3e0] sm:$0xff]  }
  0x35   : > { %2182 = vmatpush3.bf16.msra.mxu1 %v2380_v43  ;;  %2155 = vmatprep.subr.bf16.mxu0 %v2381_v44  ;;  %v1955_v40 = vcombine.high %v226_v38, %v234_v39  ;;  %v1954_v42 = vcombine.low %v226_v38, %v234_v39  ;;  %v2420_v43 = vld [vmem:[%s2536_s16 + $0x290] sm:$0xff]   ;;  %v2421_v44 = vld [vmem:[%s2536_s16 + $0x258] sm:$0xff]   ;;  %v2463_v38 = vld [vmem:[%s2536_s16 + $0x328] sm:$0xff]  }
  0x36   : > { %2183 = vmatprep.subr.bf16.mxu1 %v2382_v45  ;;  %1463 = vmatprep.mubr.bf16.mxu0 %v1949_v0  ;;  %v2422_v45 = vld [vmem:[%s2536_s16 + $0x2d8] sm:$0xff]   ;;  %v211_v0 = vld [vmem:[%s2572_s20 + $0x20] sm:$0xff]  ;;  %v2464_v39 = vld [vmem:[%s2536_s16 + $0x3a8] sm:$0xff]  }
  0x37   : > { %1512 = vmatprep.mubr.bf16.mxu1 %v1951_v4  ;;  %v1940_v2 = vcombine.low %v211_v0, %v219_v1  ;;  %v212_v4 = vld [vmem:[%s2572_s20 + $0x28] sm:$0xff] }
  0x38   : > { %2156 = vmatpush3.bf16.msra.mxu0 %v2383_v46  ;;  %v2423_v46 = vld [vmem:[%s2536_s16 + $0x218] sm:$0xff]  }
  0x39   : > { %2184 = vmatpush3.bf16.msra.mxu1 %v2384_v47  ;;  %2157 = vmatprep.subr.bf16.mxu0 %v2385_v48  ;;  %v2424_v47 = vld [vmem:[%s2536_s16 + $0x298] sm:$0xff]   ;;  %v2425_v48 = vld [vmem:[%s2536_s16 + $0x260] sm:$0xff]  }
  0x3a   : > { %2185 = vmatprep.subr.bf16.mxu1 %v2386_v49  ;;  %v2426_v49 = vld [vmem:[%s2536_s16 + $0x2e0] sm:$0xff]  }
  0x3b   : > { %1464 = vmatmul.mubr.bf16.gmra.mrb[4].mxu0 %v1948_v3  ;;  %v1941_v3 = vcombine.high %v211_v0, %v219_v1 }
  0x3c   : > { %2158 = vmatpush3.bf16.msra.mxu0 %v2387_v50  ;;  %1513 = vmatmul.mubr.bf16.gmra.mrb[4].mxu1 %v1950_v6  ;;  %v2427_v50 = vld [vmem:[%s2536_s16 + $0x220] sm:$0xff]  }
  0x3d   : > { %2186 = vmatpush3.bf16.msra.mxu1 %v2388_v51  ;;  %2159 = vmatprep.subr.bf16.mxu0 %v2389_v52  ;;  %v2428_v51 = vld [vmem:[%s2536_s16 + $0x2a0] sm:$0xff]   ;;  %v2429_v52 = vld [vmem:[%s2536_s16 + $0x268] sm:$0xff]  }
  0x3e   : > { %2187 = vmatprep.subr.bf16.mxu1 %v2390_v53  ;;  %1553 = vmatprep.mubr.bf16.mxu0 %v1937_v21  ;;  %v2430_v53 = vld [vmem:[%s2536_s16 + $0x2e8] sm:$0xff]   ;;  %v2450_v21 = vld [vmem:[%s2536_s16 + $0x3d0] sm:$0xff]  }
  0x3f   : > { %1602 = vmatprep.mubr.bf16.mxu1 %v1939_v23  ;;  %v236_v23 = vld [vmem:[%s2572_s20 + $0xe8] sm:$0xff] }
  0x40   : > { %2160 = vmatpush3.bf16.msra.mxu0 %v2391_v54  ;;  %v2431_v54 = vld [vmem:[%s2536_s16 + $0x228] sm:$0xff]  }
  0x41   : > { %2188 = vmatpush3.bf16.msra.mxu1 %v2392_v55  ;;  %2161 = vmatprep.subr.bf16.mxu0 %v2393_v56  ;;  %v2432_v55 = vld [vmem:[%s2536_s16 + $0x2a8] sm:$0xff]   ;;  %v2433_v56 = vld [vmem:[%s2536_s16 + $0x270] sm:$0xff]  }
  0x42   : > { %2189 = vmatprep.subr.bf16.mxu1 %v2394_v57  ;;  %v2434_v57 = vld [vmem:[%s2536_s16 + $0x2f0] sm:$0xff]  }
  0x44   : > { %2162 = vmatpush3.bf16.msra.mxu0 %v2395_v58  ;;  %v2435_v58 = vld [vmem:[%s2536_s16 + $0x230] sm:$0xff]  }
  0x45   : > { %2190 = vmatpush3.bf16.msra.mxu1 %v2396_v59  ;;  %2163 = vmatprep.subr.bf16.mxu0 %v2397_v60  ;;  %v2436_v59 = vld [vmem:[%s2536_s16 + $0x2b0] sm:$0xff]   ;;  %v2437_v60 = vld [vmem:[%s2536_s16 + $0x278] sm:$0xff]  }
  0x46   : > { %2191 = vmatprep.subr.bf16.mxu1 %v2398_v61  ;;  %v2438_v61 = vld [vmem:[%s2536_s16 + $0x2f8] sm:$0xff]  }
  0x48   : > { %2164 = vmatpush3.bf16.msra.mxu0 %v2399_v5  ;;  %v220_v5 = vld [vmem:[%s2572_s20 + $0x68] sm:$0xff] }
  0x49   : > { %2192 = vmatpush3.bf16.msra.mxu1 %v2400_v7  ;;  %2165 = vmatprep.subr.bf16.mxu0 %v2401_v8  ;;  %v1942_v6 = vcombine.low %v212_v4, %v220_v5  ;;  %v1943_v7 = vcombine.high %v212_v4, %v220_v5  ;;  %v2441_v8 = vld [vmem:[%s2536_s16 + $0x340] sm:$0xff]  }
  0x4a   : > { %2193 = vmatprep.subr.bf16.mxu1 %v2402_v9  ;;  %v2442_v9 = vld [vmem:[%s2536_s16 + $0x3c0] sm:$0xff]  }
  0x4c   : > { %2166 = vmatpush3.bf16.msra.mxu0 %v2403_v10  ;;  %v2443_v10 = vld [vmem:[%s2536_s16 + $0x300] sm:$0xff]  }
  0x4d   : > { %2194 = vmatpush3.bf16.msra.mxu1 %v2404_v11  ;;  %2167 = vmatprep.subr.bf16.mxu0 %v2405_v12  ;;  %v2444_v11 = vld [vmem:[%s2536_s16 + $0x380] sm:$0xff]   ;;  %v2445_v12 = vld [vmem:[%s2536_s16 + $0x348] sm:$0xff]  }
  0x4e   : > { %2195 = vmatprep.subr.bf16.mxu1 %v2406_v13  ;;  %v2446_v13 = vld [vmem:[%s2536_s16 + $0x3c8] sm:$0xff]  }
  0x50   : > { %2168 = vmatpush3.bf16.msra.mxu0 %v2407_v14  ;;  %v2447_v14 = vld [vmem:[%s2536_s16 + $0x308] sm:$0xff]  }
  0x51   : > { %2196 = vmatpush3.bf16.msra.mxu1 %v2408_v15  ;;  %2209 = vmatprep.subr.bf16.mxu0 %v2409_v24  ;;  %v2448_v15 = vld [vmem:[%s2536_s16 + $0x388] sm:$0xff]  }
  0x52   : > { %2237 = vmatprep.subr.bf16.mxu1 %v2410_v25  ;;  %v2451_v25 = vld [vmem:[%s2536_s16 + $0x310] sm:$0xff]  }
  0x53   : > { %1554 = vmatmul.mubr.bf16.vlgmr.msra.gmra.mrb[8].mxu0 %v1936_v20  ;;  %v2449_v20 = vld [vmem:[%s2536_s16 + $0x350] sm:$0xff]  }
  0x54   : > { %1603 = vmatmul.mubr.bf16.vlgmr.msra.gmra.mrb[8].mxu1 %v1938_v22  ;;  %2210 = vmatpush3.bf16.msra.mxu0 %v2411_v26  ;;  %v228_v22 = vld [vmem:[%s2572_s20 + $0xa8] sm:$0xff] }
  0x55   : > { %2238 = vmatpush3.bf16.msra.mxu1 %v2412_v27  ;;  %2211 = vmatprep.subr.bf16.mxu0 %v2413_v28  ;;  %v1959_v24 = vcombine.high %v228_v22, %v236_v23  ;;  %v1958_v26 = vcombine.low %v228_v22, %v236_v23  ;;  %v2452_v27 = vld [vmem:[%s2536_s16 + $0x390] sm:$0xff]   ;;  %v2453_v28 = vld [vmem:[%s2536_s16 + $0x358] sm:$0xff]  }
  0x56   : > { %2239 = vmatprep.subr.bf16.mxu1 %v2414_v29  ;;  %1561 = vmatprep.mubr.bf16.mxu0 %v1953_v34  ;;  %v2454_v29 = vld [vmem:[%s2536_s16 + $0x3d8] sm:$0xff]   ;;  %v2459_v34 = vld [vmem:[%s2536_s16 + $0x320] sm:$0xff]  }
  0x57   : > { %1610 = vmatprep.mubr.bf16.mxu1 %v1955_v40  ;;  %v2465_v40 = vld [vmem:[%s2536_s16 + $0x370] sm:$0xff]  }
  0x58   : > { %2212 = vmatpush3.bf16.msra.mxu0 %v2415_v30  ;;  %v2455_v30 = vld [vmem:[%s2536_s16 + $0x318] sm:$0xff]  }
  0x59   : > { %2240 = vmatpush3.bf16.msra.mxu1 %v2416_v31  ;;  %2213 = vmatprep.subr.bf16.mxu0 %v2417_v36  ;;  %v2456_v31 = vld [vmem:[%s2536_s16 + $0x398] sm:$0xff]   ;;  %v2461_v36 = vld [vmem:[%s2536_s16 + $0x368] sm:$0xff]  }
  0x5a   : > { %2241 = vmatprep.subr.bf16.mxu1 %v2418_v37  ;;  %v2462_v37 = vld [vmem:[%s2536_s16 + $0x3e8] sm:$0xff]  }
  0x5b   : > { %1562 = vmatmul.mubr.bf16.gmra.mrb[12].mxu0 %v1952_v35  ;;  %v2460_v35 = vld [vmem:[%s2536_s16 + $0x3a0] sm:$0xff]  }
  0x5c   : > { %2214 = vmatpush3.bf16.msra.mxu0 %v2419_v41  ;;  %1611 = vmatmul.mubr.bf16.gmra.mrb[12].mxu1 %v1954_v42  ;;  %v2466_v41 = vld [vmem:[%s2536_s16 + $0x3f0] sm:$0xff]  }
  0x5d   : > { %2242 = vmatpush3.bf16.msra.mxu1 %v2420_v43  ;;  %2215 = vmatprep.subr.bf16.mxu0 %v2421_v44  ;;  %v2467_v42 = vld [vmem:[%s2536_s16 + $0x330] sm:$0xff]   ;;  %v2469_v44 = vld [vmem:[%s2536_s16 + $0x378] sm:$0xff]  }
  0x5e   : > { %2243 = vmatprep.subr.bf16.mxu1 %v2422_v45  ;;  %1651 = vmatprep.mubr.bf16.mxu0 %v1941_v3  ;;  %v2468_v43 = vld [vmem:[%s2536_s16 + $0x3b0] sm:$0xff]   ;;  %v2470_v45 = vld [vmem:[%s2536_s16 + $0x3f8] sm:$0xff]  }
  0x5f   : > { %1700 = vmatprep.mubr.bf16.mxu1 %v1943_v7 }
  0x60   : > { %2216 = vmatpush3.bf16.msra.mxu0 %v2423_v46  ;;  %v2471_v46 = vld [vmem:[%s2536_s16 + $0x338] sm:$0xff]  }
  0x61   : > { %2244 = vmatpush3.bf16.msra.mxu1 %v2424_v47  ;;  %2217 = vmatprep.subr.bf16.mxu0 %v2425_v48  ;;  %v2472_v47 = vld [vmem:[%s2536_s16 + $0x3b8] sm:$0xff]   ;;  %v213_v48 = vld [vmem:[%s2572_s20 + $0x30] sm:$0xff] }
  0x62   : > { %2245 = vmatprep.subr.bf16.mxu1 %v2426_v49  ;;  %v221_v49 = vld [vmem:[%s2572_s20 + $0x70] sm:$0xff] }
  0x64   : > { %2218 = vmatpush3.bf16.msra.mxu0 %v2427_v50  ;;  %v214_v50 = vld [vmem:[%s2572_s20 + $0x38] sm:$0xff] }
  0x65   : > { %2246 = vmatpush3.bf16.msra.mxu1 %v2428_v51  ;;  %2219 = vmatprep.subr.bf16.mxu0 %v2429_v52  ;;  %v1944_v51 = vcombine.low %v213_v48, %v221_v49  ;;  %v1945_v52 = vcombine.high %v213_v48, %v221_v49 }
  0x66   : > { %2247 = vmatprep.subr.bf16.mxu1 %v2430_v53  ;;  %v222_v53 = vld [vmem:[%s2572_s20 + $0x78] sm:$0xff] }
  0x68   : > { %2220 = vmatpush3.bf16.msra.mxu0 %v2431_v54  ;;  %v229_v54 = vld [vmem:[%s2572_s20 + $0xb0] sm:$0xff] }
  0x69   : > { %2248 = vmatpush3.bf16.msra.mxu1 %v2432_v55  ;;  %2221 = vmatprep.subr.bf16.mxu0 %v2433_v56  ;;  %v237_v55 = vld [vmem:[%s2572_s20 + $0xf0] sm:$0xff]  ;;  %v1946_v56 = vcombine.low %v214_v50, %v222_v53 }
  0x6a   : > { %2249 = vmatprep.subr.bf16.mxu1 %v2434_v57  ;;  %v1947_v57 = vcombine.high %v214_v50, %v222_v53 }
  0x6c   : > { %2222 = vmatpush3.bf16.msra.mxu0 %v2435_v58  ;;  %v1961_v58 = vcombine.high %v229_v54, %v237_v55 }
  0x6d   : > { %2250 = vmatpush3.bf16.msra.mxu1 %v2436_v59  ;;  %2223 = vmatprep.subr.bf16.mxu0 %v2437_v60  ;;  %v230_v59 = vld [vmem:[%s2572_s20 + $0xb8] sm:$0xff] }
  0x6e   : > { %2251 = vmatprep.subr.bf16.mxu1 %v2438_v61  ;;  %v238_v60 = vld [vmem:[%s2572_s20 + $0xf8] sm:$0xff] }
  0x6f   : > { %v1963_v61 = vcombine.high %v230_v59, %v238_v60 }
  0x70   : > { %2224 = vmatpush3.bf16.msra.mxu0 %v2439_v62  ;;  %v1960_v62 = vcombine.low %v229_v54, %v237_v55 }
  0x71   : > { %2252 = vmatpush3.bf16.msra.mxu1 %v2440_v63  ;;  %2265 = vmatprep.subr.bf16.mxu0 %v2441_v8  ;;  %v1962_v63 = vcombine.low %v230_v59, %v238_v60 }
  0x72   : > { %2293 = vmatprep.subr.bf16.mxu1 %v2442_v9 }
  0x73   : > { %1652 = vmatmul.mubr.bf16.vlgmr.msra.gmra.mrb[16].mxu0 %v1940_v2 }
  0x74   : > { %1701 = vmatmul.mubr.bf16.vlgmr.msra.gmra.mrb[16].mxu1 %v1942_v6  ;;  %2266 = vmatpush3.bf16.msra.mxu0 %v2443_v10 }
  0x75   : > { %2294 = vmatpush3.bf16.msra.mxu1 %v2444_v11  ;;  %2267 = vmatprep.subr.bf16.mxu0 %v2445_v12 }
  0x76   : > { %2295 = vmatprep.subr.bf16.mxu1 %v2446_v13  ;;  %1659 = vmatprep.mubr.bf16.mxu0 %v1957_v18 }
  0x77   : > { %1708 = vmatprep.mubr.bf16.mxu1 %v1959_v24 }
  0x78   : > { %2268 = vmatpush3.bf16.msra.mxu0 %v2447_v14 }
  0x79   : > { %2296 = vmatpush3.bf16.msra.mxu1 %v2448_v15  ;;  %2269 = vmatprep.subr.bf16.mxu0 %v2449_v20 }
  0x7a   : > { %2297 = vmatprep.subr.bf16.mxu1 %v2450_v21 }
  0x7b   : > { %1660 = vmatmul.mubr.bf16.gmra.mrb[20].mxu0 %v1956_v19 }
  0x7c   : > { %2270 = vmatpush3.bf16.msra.mxu0 %v2451_v25  ;;  %1709 = vmatmul.mubr.bf16.gmra.mrb[20].mxu1 %v1958_v26 }
  0x7d   : > { %2298 = vmatpush3.bf16.msra.mxu1 %v2452_v27  ;;  %2271 = vmatprep.subr.bf16.mxu0 %v2453_v28 }
  0x7e   : > { %2299 = vmatprep.subr.bf16.mxu1 %v2454_v29  ;;  %1749 = vmatprep.mubr.bf16.mxu0 %v1945_v52 }
  0x7f   : > { %1798 = vmatprep.mubr.bf16.mxu1 %v1947_v57 }
  0x80   : > { %2272 = vmatpush3.bf16.msra.mxu0 %v2455_v30 }
  0x81   : > { %2300 = vmatpush3.bf16.msra.mxu1 %v2456_v31  ;;  %2273 = vmatprep.subr.bf16.mxu0 %v2457_v32 }
  0x82   : > { %2301 = vmatprep.subr.bf16.mxu1 %v2458_v33 }
  0x84   : > { %2274 = vmatpush3.bf16.msra.mxu0 %v2459_v34 }
  0x85   : > { %2302 = vmatpush3.bf16.msra.mxu1 %v2460_v35  ;;  %2275 = vmatprep.subr.bf16.mxu0 %v2461_v36 }
  0x86   : > { %2303 = vmatprep.subr.bf16.mxu1 %v2462_v37 }
  0x88   : > { %2276 = vmatpush3.bf16.msra.mxu0 %v2463_v38 }
  0x89   : > { %2304 = vmatpush3.bf16.msra.mxu1 %v2464_v39  ;;  %2277 = vmatprep.subr.bf16.mxu0 %v2465_v40 }
  0x8a   : > { %2305 = vmatprep.subr.bf16.mxu1 %v2466_v41 }
  0x8c   : > { %2278 = vmatpush3.bf16.msra.mxu0 %v2467_v42 }
  0x8d   : > { %2306 = vmatpush3.bf16.msra.mxu1 %v2468_v43  ;;  %2279 = vmatprep.subr.bf16.mxu0 %v2469_v44 }
  0x8e   : > { %2307 = vmatprep.subr.bf16.mxu1 %v2470_v45 }
  0x90   : > { %2280 = vmatpush3.bf16.msra.mxu0 %v2471_v46 }
  0x91   : > { %2308 = vmatpush3.bf16.msra.mxu1 %v2472_v47 }
  0x93   : > { %1750 = vmatmul.mubr.bf16.vlgmr.msra.gmra.mrb[24].mxu0 %v1944_v51 }
  0x94   : > { %1799 = vmatmul.mubr.bf16.vlgmr.msra.gmra.mrb[24].mxu1 %v1946_v56  ;;  %1757 = vmatprep.mubr.bf16.mxu0 %v1961_v58 }
  0x95   : > { %1806 = vmatprep.mubr.bf16.mxu1 %v1963_v61 }
  0x9b   : > { %1758 = vmatmul.mubr.bf16.gmra.mrb[28].mxu0 %v1960_v62 }
  0x9c   : > { %1807 = vmatmul.mubr.bf16.gmra.mrb[28].mxu1 %v1962_v63 }
 0x106   : > { %v2113_v0 = vpop.f32.mrb[0].mxu0 }
 0x107   : > { %v2141_v1 = vpop.f32.mrb[0].mxu1  ;;  %v2114_v2 = vpop.f32.mrb[1].mxu0 }
 0x108   : > { %v2115_v3 = vadd.f32 %v2114_v2, %v2113_v0  ;;  %v2142_v4 = vpop.f32.mrb[1].mxu1  ;;  %v2116_v5 = vpop.f32.mrb[2].mxu0 }
 0x109   : > { %v2143_v6 = vadd.f32 %v2142_v4, %v2141_v1  ;;  %v2144_v7 = vpop.f32.mrb[2].mxu1  ;;  %v2117_v8 = vpop.f32.mrb[3].mxu0 }
 0x10a   : > { %v2118_v9 = vadd.f32 %v2117_v8, %v2116_v5  ;;  %v2145_v10 = vpop.f32.mrb[3].mxu1 }
 0x10b   : > { %v1507_v11 = vadd.f32 %v2143_v6, %v2115_v3  ;;  %v2146_v12 = vadd.f32 %v2145_v10, %v2144_v7 }
 0x10d   : > { %v1510_v13 = vadd.f32 %v2146_v12, %v2118_v9 }
 0x10e   : > { %v2119_v14 = vpop.f32.mrb[4].mxu0 }
 0x10f   : > { %v2147_v15 = vpop.f32.mrb[4].mxu1  ;;  %v2120_v16 = vpop.f32.mrb[5].mxu0 }
 0x110   : > { %v2121_v17 = vadd.f32 %v2120_v16, %v2119_v14  ;;  %v2148_v18 = vpop.f32.mrb[5].mxu1  ;;  %v2122_v19 = vpop.f32.mrb[6].mxu0 }
 0x111   : > { %v2149_v20 = vadd.f32 %v2148_v18, %v2147_v15  ;;  %v2150_v21 = vpop.f32.mrb[6].mxu1  ;;  %v2123_v22 = vpop.f32.mrb[7].mxu0 }
 0x112   : > { %v2124_v23 = vadd.f32 %v2123_v22, %v2122_v19  ;;  %v2151_v24 = vpop.f32.mrb[7].mxu1 }
 0x113   : > { %v1515_v25 = vadd.f32 %v2149_v20, %v2121_v17  ;;  %v2152_v26 = vadd.f32 %v2151_v24, %v2150_v21 }
 0x115   : > { %v1518_v27 = vadd.f32 %v2152_v26, %v2124_v23 }
 0x126   : > { %v2169_v28 = vpop.f32.mrb[8].mxu0 }
 0x127   : > { %v2197_v29 = vpop.f32.mrb[8].mxu1  ;;  %v2170_v30 = vpop.f32.mrb[9].mxu0 }
 0x128   : > { %v2198_v31 = vpop.f32.mrb[9].mxu1  ;;  %v2171_v32 = vadd.f32 %v2170_v30, %v2169_v28  ;;  %v2172_v34 = vpop.f32.mrb[10].mxu0 }
 0x129   : > { %v2199_v33 = vadd.f32 %v2198_v31, %v2197_v29  ;;  %v2200_v35 = vpop.f32.mrb[10].mxu1  ;;  %v2173_v36 = vpop.f32.mrb[11].mxu0 }
 0x12a   : > { %v2201_v37 = vpop.f32.mrb[11].mxu1  ;;  %v1556_v38 = vadd.f32 %v2171_v32, %v1507_v11  ;;  %v2174_v39 = vadd.f32 %v2173_v36, %v2172_v34 }
 0x12b   : > { %v2202_v40 = vadd.f32 %v2201_v37, %v2200_v35 }
 0x12c   : > { %v1605_v41 = vadd.f32 %v2199_v33, %v1556_v38  ;;  %v1559_v42 = vadd.f32 %v2174_v39, %v1510_v13 }
 0x12e   : > { %v1608_v43 = vadd.f32 %v2202_v40, %v1559_v42  ;;  %v2175_v44 = vpop.f32.mrb[12].mxu0 }
 0x12f   : > { %v2176_v45 = vpop.f32.mrb[13].mxu0  ;;  %v2203_v50 = vpop.f32.mrb[12].mxu1 }
 0x130   : > { %v2177_v46 = vadd.f32 %v2176_v45, %v2175_v44  ;;  %v2178_v47 = vpop.f32.mrb[14].mxu0  ;;  %v2204_v52 = vpop.f32.mrb[13].mxu1 }
 0x131   : > { %v2179_v48 = vpop.f32.mrb[15].mxu0  ;;  %v2205_v54 = vadd.f32 %v2204_v52, %v2203_v50  ;;  %v2206_v55 = vpop.f32.mrb[14].mxu1 }
 0x132   : > { %v1564_v49 = vadd.f32 %v2177_v46, %v1515_v25  ;;  %v2180_v51 = vadd.f32 %v2179_v48, %v2178_v47  ;;  %v2207_v56 = vpop.f32.mrb[15].mxu1 }
 0x133   : > { %v2208_v58 = vadd.f32 %v2207_v56, %v2206_v55 }
 0x134   : > { %v1567_v53 = vadd.f32 %v2180_v51, %v1518_v27  ;;  %v1613_v57 = vadd.f32 %v2205_v54, %v1564_v49 }
 0x136   : > { %v1616_v59 = vadd.f32 %v2208_v58, %v1567_v53 }
 0x146   : > { %v2225_v60 = vpop.f32.mrb[16].mxu0 }
 0x147   : > { %v2253_v61 = vpop.f32.mrb[16].mxu1  ;;  %v2226_v62 = vpop.f32.mrb[17].mxu0 }
 0x148   : > { %v2227_v63 = vadd.f32 %v2226_v62, %v2225_v60  ;;  %v2254_v0 = vpop.f32.mrb[17].mxu1  ;;  %v2228_v1 = vpop.f32.mrb[18].mxu0 }
 0x149   : > { %v2255_v2 = vadd.f32 %v2254_v0, %v2253_v61  ;;  %v2256_v3 = vpop.f32.mrb[18].mxu1  ;;  %v2229_v4 = vpop.f32.mrb[19].mxu0 }
 0x14a   : > { %v1654_v5 = vadd.f32 %v2227_v63, %v1605_v41  ;;  %v2230_v6 = vadd.f32 %v2229_v4, %v2228_v1  ;;  %v2257_v7 = vpop.f32.mrb[19].mxu1 }
 0x14b   : > { %v2258_v8 = vadd.f32 %v2257_v7, %v2256_v3 }
 0x14c   : > { %v1703_v9 = vadd.f32 %v2255_v2, %v1654_v5  ;;  %v1657_v10 = vadd.f32 %v2230_v6, %v1608_v43 }
 0x14e   : > { %v1706_v11 = vadd.f32 %v2258_v8, %v1657_v10  ;;  %v2231_v12 = vpop.f32.mrb[20].mxu0 }
 0x14f   : > { %v2232_v13 = vpop.f32.mrb[21].mxu0  ;;  %v2259_v16 = vpop.f32.mrb[20].mxu1 }
 0x150   : > { %v2233_v14 = vadd.f32 %v2232_v13, %v2231_v12  ;;  %v2234_v15 = vpop.f32.mrb[22].mxu0  ;;  %v2260_v20 = vpop.f32.mrb[21].mxu1 }
 0x151   : > { %v2235_v17 = vpop.f32.mrb[23].mxu0  ;;  %v2261_v21 = vadd.f32 %v2260_v20, %v2259_v16  ;;  %v2262_v22 = vpop.f32.mrb[22].mxu1 }
 0x152   : > { %v1662_v18 = vadd.f32 %v2233_v14, %v1613_v57  ;;  %v2236_v19 = vadd.f32 %v2235_v17, %v2234_v15  ;;  %v2263_v24 = vpop.f32.mrb[23].mxu1 }
 0x153   : > { %v2264_v26 = vadd.f32 %v2263_v24, %v2262_v22 }
 0x154   : > { %v1665_v23 = vadd.f32 %v2236_v19, %v1616_v59  ;;  %v1711_v25 = vadd.f32 %v2261_v21, %v1662_v18 }
 0x156   : > { %v1714_v27 = vadd.f32 %v2264_v26, %v1665_v23 }
 0x166   : > { %v2281_v28 = vpop.f32.mrb[24].mxu0 }
 0x167   : > { %v2309_v29 = vpop.f32.mrb[24].mxu1  ;;  %v2282_v30 = vpop.f32.mrb[25].mxu0 }
 0x168   : > { %v2283_v31 = vadd.f32 %v2282_v30, %v2281_v28  ;;  %v2310_v32 = vpop.f32.mrb[25].mxu1  ;;  %v2284_v33 = vpop.f32.mrb[26].mxu0 }
 0x169   : > { %v2311_v34 = vadd.f32 %v2310_v32, %v2309_v29  ;;  %v2312_v35 = vpop.f32.mrb[26].mxu1  ;;  %v2285_v36 = vpop.f32.mrb[27].mxu0 }
 0x16a   : > { %v1752_v37 = vadd.f32 %v2283_v31, %v1703_v9  ;;  %v2286_v38 = vadd.f32 %v2285_v36, %v2284_v33  ;;  %v2313_v39 = vpop.f32.mrb[27].mxu1 }
 0x16b   : > { %v2314_v40 = vadd.f32 %v2313_v39, %v2312_v35 }
 0x16c   : > { %v1801_v41 = vadd.f32 %v2311_v34, %v1752_v37  ;;  %v1755_v42 = vadd.f32 %v2286_v38, %v1706_v11 }
 0x16e   : > { %1815 = vst [vmem:[%s204_s24] sm:$0xff] %v1801_v41  ;;  %v1804_v43 = vadd.f32 %v2314_v40, %v1755_v42  ;;  %v2287_v44 = vpop.f32.mrb[28].mxu0 }
 0x16f   : > { %v2315_v45 = vpop.f32.mrb[28].mxu1  ;;  %v2288_v46 = vpop.f32.mrb[29].mxu0 }
 0x170   : > { %1816 = vst [vmem:[%s204_s24 + $0x8] sm:$0xff] %v1804_v43  ;;  %v2289_v47 = vadd.f32 %v2288_v46, %v2287_v44  ;;  %v2316_v48 = vpop.f32.mrb[29].mxu1  ;;  %v2290_v49 = vpop.f32.mrb[30].mxu0 }
 0x171   : > { %v2317_v50 = vadd.f32 %v2316_v48, %v2315_v45  ;;  %v2318_v51 = vpop.f32.mrb[30].mxu1  ;;  %v2291_v52 = vpop.f32.mrb[31].mxu0 }
 0x172   : > { %v1760_v53 = vadd.f32 %v2289_v47, %v1711_v25  ;;  %v2292_v54 = vadd.f32 %v2291_v52, %v2290_v49  ;;  %v2319_v55 = vpop.f32.mrb[31].mxu1 }
 0x173   : > { %v2320_v56 = vadd.f32 %v2319_v55, %v2318_v51 }
 0x174   : > { %v1809_v57 = vadd.f32 %v2317_v50, %v1760_v53  ;;  %v1763_v58 = vadd.f32 %v2292_v54, %v1714_v27 }
 0x176   : > { %1817 = vst [vmem:[%s204_s24 + $0x10] sm:$0xff] %v1809_v57  ;;  %v1812_v59 = vadd.f32 %v2320_v56, %v1763_v58 }
 0x178   : > { %1818 = vst [vmem:[%s204_s24 + $0x18] sm:$0xff] %v1812_v59 }
 0x179 PF: > { %s12_s11 = sadd.s32 1, %s2495_s11   ;;  %s2720_s9 = smov %s2491_s10 }
 0x17a   : > { %p9_p5 = scmp.ge.s32.totalorder %s12_s11, 6   ;;  %s2721_s10 = smov %s2723_s12 }
 0x17c   :  { %11 = sbr.rel (!%p9_p5) target bundleno = 2 (0x2), region = 61 }

// kernel: generator_forward.10
= control target key start
LH: loop header
LB: loop body
LE: loop exit
PB: predicated region body
PF: predicated region fallthrough
CT: control target
= control target key end

     0   :  { %s512_s0 = inlined_call_operand.vmem [shape: f32[128,128], index: 0, kind: input, shape index: {}]   ;;  %s513_s1 = inlined_call_operand.vmem [shape: f32[1,128], index: 1, kind: input, shape index: {}]   ;;  %s514_s2 = inlined_call_operand.vmem [shape: f32[1,128], index: 2, kind: input, shape index: {}]   ;;  %s515_s3 = inlined_call_operand.vmem [shape: bf16[128,128], index: 3, kind: output, shape index: {}]  }
   0x1   :  { %v347_v0 = vld [vmem:[%s512_s0] sm:$0xff]  ;;  %v352_v1 = vld [vmem:[%s512_s0 + $0x8] sm:$0xff]  ;;  %v357_v2 = vld [vmem:[%s512_s0 + $0x10] sm:$0xff] }
   0x2   :  { %v362_v3 = vld [vmem:[%s512_s0 + $0x18] sm:$0xff]  ;;  %v30_v4 = vadd.f32 %v352_v1, %v347_v0  ;;  %v52_v5 = vmul.f32 %v347_v0, %v347_v0  ;;  %v53_v6 = vmul.f32 %v352_v1, %v352_v1  ;;  %v54_v7 = vmul.f32 %v357_v2, %v357_v2  ;;  %v375_v8 = vld [vmem:[%s512_s0 + $0x20] sm:$0xff]  ;;  %v383_v12 = vld [vmem:[%s512_s0 + $0x28] sm:$0xff] }
   0x3   :  { %v55_v10 = vmul.f32 %v362_v3, %v362_v3  ;;  %v56_v14 = vmul.f32 %v375_v8, %v375_v8  ;;  %v391_v16 = vld [vmem:[%s512_s0 + $0x30] sm:$0xff]  ;;  %v57_v18 = vmul.f32 %v383_v12, %v383_v12  ;;  %v399_v20 = vld [vmem:[%s512_s0 + $0x38] sm:$0xff]  ;;  %v407_v24 = vld [vmem:[%s512_s0 + $0x40] sm:$0xff] }
   0x4   :  { %v31_v9 = vadd.f32 %v30_v4, %v357_v2  ;;  %v68_v11 = vadd.f32 %v53_v6, %v52_v5  ;;  %v58_v22 = vmul.f32 %v391_v16, %v391_v16  ;;  %v59_v26 = vmul.f32 %v399_v20, %v399_v20  ;;  %v415_v28 = vld [vmem:[%s512_s0 + $0x48] sm:$0xff]  ;;  %v423_v32 = vld [vmem:[%s512_s0 + $0x50] sm:$0xff]  ;;  %v431_v36 = vld [vmem:[%s512_s0 + $0x58] sm:$0xff] }
   0x5   :  { %v60_v30 = vmul.f32 %v407_v24, %v407_v24  ;;  %v61_v34 = vmul.f32 %v415_v28, %v415_v28  ;;  %v62_v38 = vmul.f32 %v423_v32, %v423_v32  ;;  %v439_v40 = vld [vmem:[%s512_s0 + $0x60] sm:$0xff]  ;;  %v63_v42 = vmul.f32 %v431_v36, %v431_v36  ;;  %v27_v44 = vld [vmem:[%s512_s0 + $0x68] sm:$0xff]  ;;  %v453_v48 = vld [vmem:[%s512_s0 + $0x70] sm:$0xff] }
   0x6   :  { %v32_v13 = vadd.f32 %v31_v9, %v362_v3  ;;  %v69_v15 = vadd.f32 %v68_v11, %v54_v7  ;;  %v64_v46 = vmul.f32 %v439_v40, %v439_v40  ;;  %v65_v50 = vmul.f32 %v27_v44, %v27_v44  ;;  %v459_v52 = vld [vmem:[%s512_s0 + $0x78] sm:$0xff] }
   0x7   :  { %v66_v54 = vmul.f32 %v453_v48, %v453_v48  ;;  %v67_v57 = vmul.f32 %v459_v52, %v459_v52 }
   0x8   :  { %v33_v17 = vadd.f32 %v32_v13, %v375_v8  ;;  %v70_v19 = vadd.f32 %v69_v15, %v55_v10 }
   0xa   :  { %v34_v21 = vadd.f32 %v33_v17, %v383_v12  ;;  %v71_v23 = vadd.f32 %v70_v19, %v56_v14 }
   0xc   :  { %v35_v25 = vadd.f32 %v34_v21, %v391_v16  ;;  %v72_v27 = vadd.f32 %v71_v23, %v57_v18  ;;  %v100_v23 = vlaneseq }
   0xe   :  { %v36_v29 = vadd.f32 %v35_v25, %v399_v20  ;;  %v73_v31 = vadd.f32 %v72_v27, %v58_v22  ;;  %v101_v25 = vshrl.u32 %v100_v23, 7 }
  0x10   :  { %v37_v33 = vadd.f32 %v36_v29, %v407_v24  ;;  %v74_v35 = vadd.f32 %v73_v31, %v59_v26  ;;  %v92_v26 = vld [vmem:[%s513_s1] sm:$0x1]  ;;  %v102_v27 = vsub.s32 0, %v101_v25 }
  0x11   :  { %v96_v31 = vld [vmem:[%s514_s2] sm:$0x1] }
  0x12   :  { %v38_v37 = vadd.f32 %v37_v33, %v415_v28  ;;  %v75_v39 = vadd.f32 %v74_v35, %v60_v30 }
  0x14   :  { %v39_v41 = vadd.f32 %v38_v37, %v423_v32  ;;  %v76_v43 = vadd.f32 %v75_v39, %v61_v34 }
  0x16   :  { %v40_v45 = vadd.f32 %v39_v41, %v431_v36  ;;  %v77_v47 = vadd.f32 %v76_v43, %v62_v38 }
  0x18   :  { %v41_v49 = vadd.f32 %v40_v45, %v439_v40  ;;  %v78_v51 = vadd.f32 %v77_v47, %v63_v42 }
  0x1a   :  { %v42_v53 = vadd.f32 %v41_v49, %v27_v44  ;;  %v79_v55 = vadd.f32 %v78_v51, %v64_v46 }
  0x1c   :  { %v43_v56 = vadd.f32 %v42_v53, %v453_v48  ;;  %v80_v58 = vadd.f32 %v79_v55, %v65_v50 }
  0x1e   :  { %v44_v59 = vadd.f32 %v43_v56, %v459_v52  ;;  %v81_v60 = vadd.f32 %v80_v58, %v66_v54 }
  0x20   :  { %v45_v61 = vrot.slane %v44_v59, 4  ;;  %v82_v62 = vadd.f32 %v81_v60, %v67_v57 }
  0x22   :  { %v46_v63 = vadd.f32 %v45_v61, %v44_v59  ;;  %v83_v4 = vrot.slane %v82_v62, 4 }
  0x24   :  { %v47_v5 = vrot.slane %v46_v63, 2  ;;  %v84_v6 = vadd.f32 %v83_v4, %v82_v62 }
  0x26   :  { %v48_v7 = vadd.f32 %v47_v5, %v46_v63  ;;  %v85_v9 = vrot.slane %v84_v6, 2 }
  0x28   :  { %v49_v10 = vrot.slane %v48_v7, 1  ;;  %v86_v11 = vadd.f32 %v85_v9, %v84_v6 }
  0x2a   :  { %v50_v13 = vadd.f32 %v49_v10, %v48_v7  ;;  %v87_v14 = vrot.slane %v86_v11, 1 }
  0x2c   :  { %v51_v15 = vmul.f32 0.0078125, %v50_v13  ;;  %v88_v17 = vadd.f32 %v87_v14, %v86_v11 }
  0x2e   :  { %v90_v18 = vmul.f32 %v51_v15, %v51_v15  ;;  %v89_v19 = vmul.f32 0.0078125, %v88_v17 }
  0x30   :  { %v91_v21 = vsub.f32 %v89_v19, %v90_v18 }
  0x32   :  { %v93_v22 = vadd.f32 1e-05, %v91_v21 }
  0x34   :  { %322 = vrsqrt.f32 %v93_v22 }
  0x3e   :  { %v323_v29 = vpop.eup %322 }
  0x3f   :  { %v95_v30 = vmul.f32 %v323_v29, %v92_v26 }
  0x41   :  { %v97_v33 = vmul.f32 %v95_v30, %v51_v15  ;;  %v103_v34 = vrot.slane %v95_v30, %v102_v27 }
  0x43   :  { %v98_v35 = vsub.f32 %v96_v31, %v97_v33  ;;  %v105_v37 = vmul.f32 %v103_v34, %v347_v0  ;;  %v106_v38 = vmul.f32 %v103_v34, %v352_v1  ;;  %v107_v39 = vmul.f32 %v103_v34, %v357_v2 }
  0x44   :  { %v108_v41 = vmul.f32 %v103_v34, %v362_v3  ;;  %v109_v42 = vmul.f32 %v103_v34, %v375_v8  ;;  %v110_v43 = vmul.f32 %v103_v34, %v383_v12  ;;  %v111_v45 = vmul.f32 %v103_v34, %v391_v16 }
  0x45   :  { %v125_v46 = vrot.slane %v98_v35, %v102_v27  ;;  %v112_v47 = vmul.f32 %v103_v34, %v399_v20  ;;  %v113_v49 = vmul.f32 %v103_v34, %v407_v24  ;;  %v114_v50 = vmul.f32 %v103_v34, %v415_v28 }
  0x46   :  { %v115_v0 = vmul.f32 %v103_v34, %v423_v32  ;;  %v116_v1 = vmul.f32 %v103_v34, %v431_v36  ;;  %v117_v2 = vmul.f32 %v103_v34, %v439_v40  ;;  %v118_v3 = vmul.f32 %v103_v34, %v27_v44 }
  0x47   :  { %v127_v51 = vadd.f32 %v125_v46, %v105_v37  ;;  %v128_v8 = vadd.f32 %v125_v46, %v106_v38  ;;  %v129_v53 = vadd.f32 %v125_v46, %v107_v39  ;;  %v130_v12 = vadd.f32 %v125_v46, %v108_v41 }
  0x48   :  { %v131_v54 = vadd.f32 %v125_v46, %v109_v42  ;;  %v132_v16 = vadd.f32 %v125_v46, %v110_v43  ;;  %v133_v55 = vadd.f32 %v125_v46, %v111_v45  ;;  %v134_v56 = vadd.f32 %v125_v46, %v112_v47 }
  0x49   :  { %v143_v20 = vmax.f32 %v127_v51, 0.0  ;;  %v144_v57 = vmax.f32 %v128_v8, 0.0  ;;  %v145_v24 = vmax.f32 %v129_v53, 0.0  ;;  %v146_v58 = vmax.f32 %v130_v12, 0.0 }
  0x4a   :  { %v147_v28 = vmax.f32 %v131_v54, 0.0  ;;  %v148_v59 = vmax.f32 %v132_v16, 0.0  ;;  %v149_v32 = vmax.f32 %v133_v55, 0.0  ;;  %v150_v60 = vmax.f32 %v134_v56, 0.0 }
  0x4b   :  { %v278_v36 = vpack.c.bf16 %v144_v57, %v143_v20  ;;  %v283_v61 = vpack.c.bf16 %v146_v58, %v145_v24  ;;  %v135_v40 = vadd.f32 %v125_v46, %v113_v49  ;;  %v136_v44 = vadd.f32 %v125_v46, %v114_v50 }
  0x4c   :  { %v288_v62 = vpack.c.bf16 %v148_v59, %v147_v28  ;;  %v293_v63 = vpack.c.bf16 %v150_v60, %v149_v32  ;;  %v137_v4 = vadd.f32 %v125_v46, %v115_v0  ;;  %v138_v5 = vadd.f32 %v125_v46, %v116_v1 }
  0x4d   :  { %279 = vst [vmem:[%s515_s3] sm:$0xff] %v278_v36   ;;  %315 = vst [vmem:[%s515_s3 + $0x8] sm:$0xff] %v283_v61   ;;  %v151_v6 = vmax.f32 %v135_v40, 0.0  ;;  %v152_v7 = vmax.f32 %v136_v44, 0.0  ;;  %v139_v9 = vadd.f32 %v125_v46, %v117_v2  ;;  %v140_v10 = vadd.f32 %v125_v46, %v118_v3 }
  0x4e   :  { %316 = vst [vmem:[%s515_s3 + $0x10] sm:$0xff] %v288_v62   ;;  %317 = vst [vmem:[%s515_s3 + $0x18] sm:$0xff] %v293_v63   ;;  %v153_v11 = vmax.f32 %v137_v4, 0.0  ;;  %v154_v13 = vmax.f32 %v138_v5, 0.0  ;;  %v119_v14 = vmul.f32 %v103_v34, %v453_v48  ;;  %v120_v15 = vmul.f32 %v103_v34, %v459_v52 }
  0x4f   :  { %v298_v17 = vpack.c.bf16 %v152_v7, %v151_v6  ;;  %v155_v18 = vmax.f32 %v139_v9, 0.0  ;;  %v156_v19 = vmax.f32 %v140_v10, 0.0 }
  0x50   :  { %v303_v21 = vpack.c.bf16 %v154_v13, %v153_v11  ;;  %v141_v22 = vadd.f32 %v125_v46, %v119_v14  ;;  %v142_v23 = vadd.f32 %v125_v46, %v120_v15 }
  0x51   :  { %318 = vst [vmem:[%s515_s3 + $0x20] sm:$0xff] %v298_v17   ;;  %v308_v25 = vpack.c.bf16 %v156_v19, %v155_v18 }
  0x52   :  { %319 = vst [vmem:[%s515_s3 + $0x28] sm:$0xff] %v303_v21   ;;  %v157_v26 = vmax.f32 %v141_v22, 0.0  ;;  %v158_v27 = vmax.f32 %v142_v23, 0.0 }
  0x53   :  { %320 = vst [vmem:[%s515_s3 + $0x30] sm:$0xff] %v308_v25  }
  0x54   :  { %v313_v48 = vpack.c.bf16 %v158_v27, %v157_v26 }
  0x56   :  { %321 = vst [vmem:[%s515_s3 + $0x38] sm:$0xff] %v313_v48  }

// kernel: generator_forward.7
= control target key start
LH: loop header
LB: loop body
LE: loop exit
PB: predicated region body
PF: predicated region fallthrough
CT: control target
= control target key end

     0   :  { %7 = vsyncpa [#allocation3], 0  ;;  %s4771_s9 = smov [#allocation2]   ;;  %s5169_s0 = inlined_call_operand.vmem [shape: bf16[1,8,110], index: 0, kind: input, shape index: {}]   ;;  %s5170_s1 = inlined_call_operand.hbm [shape: bf16[1,110,8192], index: 1, kind: input, shape index: {}]   ;;  %s5171_s2 = inlined_call_operand.vmem [shape: f32[1,8,8192], index: 2, kind: output, shape index: {}]  }
   0x1   :  { %s15_s10 = sshll.u32 %s4771_s9, 4  ;;  %s4747_s13 = scalar_lea.hbm %s5170_s1, 57344  ;;  %s16_s10 = int_to_ptr.vmem [resolvable:$true] %s15_s10 }
   0x2   :  { %p4748_p0 = scmp.ne.s32.totalorder %s5170_s1, %s4747_s13  ;;  %p4751_p1 = scmp.lt.u32.totalorder %s4747_s13, %s5170_s1 }
   0x4   :  { %p4753_p2 = pnand %p4751_p1, %p4748_p0 }
   0x6   :  { %4756 = shalt.err (!%p4753_p2)
}
   0x7   :  { %s4757_s18 = scalar_lea.vmem %s16_s10, 57344  ;;  %p4762_p4 = scmp.lt.s32.totalorder %s16_s10, %s16_s10 }
   0x8   :  { %p4758_p3 = scmp.ne.s32.totalorder %s16_s10, %s4757_s18  ;;  %p4763_p5 = scmp.lt.s32.totalorder %s4757_s18, %s4757_s18 }
   0xa   :  { %p4764_p6 = por %p4763_p5, %p4762_p4 }
   0xc   :  { %p4765_p7 = pnand %p4764_p6, %p4758_p3 }
   0xe   :  { %4768 = shalt.err (!%p4765_p7)
}
   0xf   :  { %s4772_s19 = smov 4096   ;;  %s4773_s20 = smov 256  }
  0x10   :  { %21 = dma.hbm_to_vmem [thread:$0]  %s5170_s1, 57344, %s16_s10, [#allocation3], %s4772_s19, %s4772_s19, %s4773_s20  }
  0x11   :  { %4769 = dma.done.wait [#allocation3], 57344  }
  0x12   :  { %4770 = vsyncadd [#allocation3], 4294909952  ;;  %v4774_v0 = vmov 0   ;;  %v27_v1 = vld [vmem:[#allocation2] sm:$0xff]  ;;  %v28_v3 = vld [vmem:[#allocation2 + $0x8] sm:$0xff]  ;;  %vm2655_vm0 = vcmask 1046528  }
  0x13   :  { %2880 = vmatprep.mubr.bf16.mxu0 %v4774_v0  ;;  %2921 = vmatprep.mubr.bf16.mxu1 %v4774_v0  ;;  %v59_v2 = vld [vmem:[#allocation2 + $0x100] sm:$0xff]  ;;  %v60_v5 = vld [vmem:[#allocation2 + $0x108] sm:$0xff]  ;;  %v29_v57 = vld [vmem:[#allocation2 + $0x10] sm:$0xff]  ;;  %vm2651_vm1 = vcmask 900096  }
  0x14   :  { %v4230_v4 = vcombine.high %v27_v1, %v59_v2  ;;  %v4229_v6 = vcombine.low %v27_v1, %v59_v2  ;;  %v91_v7 = vld [vmem:[#allocation2 + $0x200] sm:$0xff]  ;;  %v4232_v9 = vcombine.high %v28_v3, %v60_v5  ;;  %v4231_v10 = vcombine.low %v28_v3, %v60_v5  ;;  %v92_v12 = vld [vmem:[#allocation2 + $0x208] sm:$0xff]  ;;  %v61_v58 = vld [vmem:[#allocation2 + $0x110] sm:$0xff] }
  0x15   :  { %v123_v8 = vld [vmem:[#allocation2 + $0x300] sm:$0xff]  ;;  %v124_v13 = vld [vmem:[#allocation2 + $0x308] sm:$0xff]  ;;  %v30_v59 = vld [vmem:[#allocation2 + $0x18] sm:$0xff]  ;;  %v4234_v62 = vcombine.high %v29_v57, %v61_v58 }
  0x16   :  { %v4294_v11 = vcombine.high %v91_v7, %v123_v8  ;;  %v155_v14 = vld [vmem:[#allocation2 + $0x400] sm:$0xff]  ;;  %2848 = vmatprep.subr.bf16.mxu0 %v4230_v4  ;;  %v4296_v15 = vcombine.high %v92_v12, %v124_v13  ;;  %v156_v17 = vld [vmem:[#allocation2 + $0x408] sm:$0xff]  ;;  %2889 = vmatprep.subr.bf16.mxu1 %v4232_v9  ;;  %v4293_v19 = vcombine.low %v91_v7, %v123_v8  ;;  %v62_v60 = vld [vmem:[#allocation2 + $0x118] sm:$0xff] }
  0x17   :  { %v187_v16 = vld [vmem:[#allocation2 + $0x500] sm:$0xff]  ;;  %v188_v18 = vld [vmem:[#allocation2 + $0x508] sm:$0xff]  ;;  %2849 = vmatpush1.bf16.msra.mxu0 %v4229_v6  ;;  %2890 = vmatpush1.bf16.msra.mxu1 %v4231_v10  ;;  %v4295_v20 = vcombine.low %v92_v12, %v124_v13  ;;  %v4236_v1 = vcombine.high %v30_v59, %v62_v60  ;;  %v93_v2 = vld [vmem:[#allocation2 + $0x210] sm:$0xff]  ;;  %v4233_v7 = vcombine.low %v29_v57, %v61_v58 }
  0x18   :  { %2850 = vmatprep.subr.bf16.mxu0 %v4294_v11  ;;  %v4358_v21 = vcombine.high %v155_v14, %v187_v16  ;;  %2891 = vmatprep.subr.bf16.mxu1 %v4296_v15  ;;  %v4360_v22 = vcombine.high %v156_v17, %v188_v18  ;;  %v219_v23 = vld [vmem:[#allocation2 + $0x600] sm:$0xff]  ;;  %v220_v25 = vld [vmem:[#allocation2 + $0x608] sm:$0xff]  ;;  %v4357_v27 = vcombine.low %v155_v14, %v187_v16  ;;  %v125_v3 = vld [vmem:[#allocation2 + $0x310] sm:$0xff] }
  0x19   :  { %v251_v24 = vld [vmem:[#allocation2 + $0x700] sm:$0xff]  ;;  %v252_v26 = vld [vmem:[#allocation2 + $0x708] sm:$0xff]  ;;  %v4359_v28 = vcombine.low %v156_v17, %v188_v18  ;;  %v94_v4 = vld [vmem:[#allocation2 + $0x218] sm:$0xff]  ;;  %v4235_v8 = vcombine.low %v30_v59, %v62_v60  ;;  %v4298_v9 = vcombine.high %v93_v2, %v125_v3  ;;  %v4297_v15 = vcombine.low %v93_v2, %v125_v3 }
  0x1a   :  { %v4422_v29 = vcombine.high %v219_v23, %v251_v24  ;;  %v4424_v30 = vcombine.high %v220_v25, %v252_v26  ;;  %v283_v31 = vld [vmem:[#allocation2 + $0x800] sm:$0xff]  ;;  %v284_v33 = vld [vmem:[#allocation2 + $0x808] sm:$0xff]  ;;  %v4421_v35 = vcombine.low %v219_v23, %v251_v24  ;;  %v4423_v36 = vcombine.low %v220_v25, %v252_v26  ;;  %v126_v5 = vld [vmem:[#allocation2 + $0x318] sm:$0xff] }
  0x1b   :  { %2851 = vmatpush1.bf16.msra.mxu0 %v4293_v19  ;;  %2892 = vmatpush1.bf16.msra.mxu1 %v4295_v20  ;;  %v315_v32 = vld [vmem:[#allocation2 + $0x900] sm:$0xff]  ;;  %v316_v34 = vld [vmem:[#allocation2 + $0x908] sm:$0xff]  ;;  %v4300_v10 = vcombine.high %v94_v4, %v126_v5  ;;  %v157_v11 = vld [vmem:[#allocation2 + $0x410] sm:$0xff]  ;;  %v4299_v16 = vcombine.low %v94_v4, %v126_v5 }
  0x1c   :  { %2852 = vmatprep.subr.bf16.mxu0 %v4358_v21  ;;  %2893 = vmatprep.subr.bf16.mxu1 %v4360_v22  ;;  %v4486_v37 = vcombine.high %v283_v31, %v315_v32  ;;  %v4488_v38 = vcombine.high %v284_v33, %v316_v34  ;;  %v347_v39 = vld [vmem:[#allocation2 + $0xa00] sm:$0xff]  ;;  %v348_v41 = vld [vmem:[#allocation2 + $0xa08] sm:$0xff]  ;;  %v4485_v43 = vcombine.low %v283_v31, %v315_v32  ;;  %v189_v12 = vld [vmem:[#allocation2 + $0x510] sm:$0xff] }
  0x1d   :  { %v379_v40 = vld [vmem:[#allocation2 + $0xb00] sm:$0xff]  ;;  %v380_v42 = vld [vmem:[#allocation2 + $0xb08] sm:$0xff]  ;;  %v4487_v44 = vcombine.low %v284_v33, %v316_v34  ;;  %v158_v13 = vld [vmem:[#allocation2 + $0x418] sm:$0xff]  ;;  %v4362_v17 = vcombine.high %v157_v11, %v189_v12  ;;  %v4361_v23 = vcombine.low %v157_v11, %v189_v12 }
  0x1e   :  { %v4550_v45 = vcombine.high %v347_v39, %v379_v40  ;;  %v4552_v46 = vcombine.high %v348_v41, %v380_v42  ;;  %v411_v47 = vld [vmem:[#allocation2 + $0xc00] sm:$0xff]  ;;  %v412_v49 = vld [vmem:[#allocation2 + $0xc08] sm:$0xff]  ;;  %v4549_v51 = vcombine.low %v347_v39, %v379_v40  ;;  %v4551_v52 = vcombine.low %v348_v41, %v380_v42  ;;  %v190_v14 = vld [vmem:[#allocation2 + $0x518] sm:$0xff] }
  0x1f   :  { %2853 = vmatpush1.bf16.msra.mxu0 %v4357_v27  ;;  %2894 = vmatpush1.bf16.msra.mxu1 %v4359_v28  ;;  %v443_v48 = vld [vmem:[#allocation2 + $0xd00] sm:$0x77]  ;;  %v444_v50 = vld [vmem:[#allocation2 + $0xd08] sm:$0x77]  ;;  %v4364_v18 = vcombine.high %v158_v13, %v190_v14  ;;  %v221_v19 = vld [vmem:[#allocation2 + $0x610] sm:$0xff]  ;;  %v4363_v24 = vcombine.low %v158_v13, %v190_v14 }
  0x20   :  { %2854 = vmatprep.subr.bf16.mxu0 %v4422_v29  ;;  %2895 = vmatprep.subr.bf16.mxu1 %v4424_v30  ;;  %v4614_v53 = vcombine.high %v411_v47, %v443_v48  ;;  %v4613_v54 = vcombine.low %v411_v47, %v443_v48  ;;  %v4616_v55 = vcombine.high %v412_v49, %v444_v50  ;;  %v4811_v6 = vld [vmem:[%s5169_s0] sm:$0xf]  ;;  %v253_v20 = vld [vmem:[#allocation2 + $0x710] sm:$0xff]  ;;  %v222_v21 = vld [vmem:[#allocation2 + $0x618] sm:$0xff] }
  0x21   :  { %v4615_v56 = vcombine.low %v412_v49, %v444_v50  ;;  %v254_v22 = vld [vmem:[#allocation2 + $0x718] sm:$0xff]  ;;  %v4426_v25 = vcombine.high %v221_v19, %v253_v20  ;;  %v285_v27 = vld [vmem:[#allocation2 + $0x810] sm:$0xff]  ;;  %v4425_v31 = vcombine.low %v221_v19, %v253_v20 }
  0x22   :  { %v2657_v61 = vsel %vm2655_vm0, %v4613_v54, 0  ;;  %v4428_v26 = vcombine.high %v222_v21, %v254_v22  ;;  %v317_v28 = vld [vmem:[#allocation2 + $0x910] sm:$0xff]  ;;  %v286_v29 = vld [vmem:[#allocation2 + $0x818] sm:$0xff]  ;;  %v4427_v32 = vcombine.low %v222_v21, %v254_v22  ;;  %v63_v54 = vld [vmem:[#allocation2 + $0x120] sm:$0xff] }
  0x23   :  { %2855 = vmatpush1.bf16.msra.mxu0 %v4421_v35  ;;  %2896 = vmatpush1.bf16.msra.mxu1 %v4423_v36  ;;  %v2663_v63 = vsel %vm2655_vm0, %v4615_v56, 0  ;;  %v318_v30 = vld [vmem:[#allocation2 + $0x918] sm:$0xff]  ;;  %v4490_v33 = vcombine.high %v285_v27, %v317_v28  ;;  %v349_v35 = vld [vmem:[#allocation2 + $0xa10] sm:$0xff]  ;;  %v4489_v39 = vcombine.low %v285_v27, %v317_v28  ;;  %v64_v56 = vld [vmem:[#allocation2 + $0x128] sm:$0xff] }
  0x24   :  { %2856 = vmatprep.subr.bf16.mxu0 %v4486_v37  ;;  %2897 = vmatprep.subr.bf16.mxu1 %v4488_v38  ;;  %v4492_v34 = vcombine.high %v286_v29, %v318_v30  ;;  %v381_v36 = vld [vmem:[#allocation2 + $0xb10] sm:$0xff]  ;;  %v350_v37 = vld [vmem:[#allocation2 + $0xa18] sm:$0xff]  ;;  %v4491_v40 = vcombine.low %v286_v29, %v318_v30 }
  0x25   :  { %v382_v38 = vld [vmem:[#allocation2 + $0xb18] sm:$0xff]  ;;  %v4554_v41 = vcombine.high %v349_v35, %v381_v36  ;;  %v4553_v47 = vcombine.low %v349_v35, %v381_v36 }
  0x26   :  { %v4556_v42 = vcombine.high %v350_v37, %v382_v38  ;;  %v4555_v48 = vcombine.low %v350_v37, %v382_v38 }
  0x27   :  { %2857 = vmatpush1.bf16.msra.mxu0 %v4485_v43  ;;  %2898 = vmatpush1.bf16.msra.mxu1 %v4487_v44  ;;  %v413_v43 = vld [vmem:[#allocation2 + $0xc10] sm:$0xff] }
  0x28   :  { %2858 = vmatprep.subr.bf16.mxu0 %v4550_v45  ;;  %2899 = vmatprep.subr.bf16.mxu1 %v4552_v46  ;;  %v445_v44 = vld [vmem:[#allocation2 + $0xd10] sm:$0x77]  ;;  %v414_v45 = vld [vmem:[#allocation2 + $0xc18] sm:$0xff] }
  0x29   :  { %v446_v46 = vld [vmem:[#allocation2 + $0xd18] sm:$0x77]  ;;  %v4618_v49 = vcombine.high %v413_v43, %v445_v44  ;;  %v4617_v50 = vcombine.low %v413_v43, %v445_v44 }
  0x2b   :  { %2859 = vmatpush1.bf16.msra.mxu0 %v4549_v51  ;;  %2900 = vmatpush1.bf16.msra.mxu1 %v4551_v52  ;;  %v4620_v51 = vcombine.high %v414_v45, %v446_v46  ;;  %v4619_v52 = vcombine.low %v414_v45, %v446_v46  ;;  %v2669_v57 = vsel %vm2655_vm0, %v4617_v50, 0  ;;  %v65_v50 = vld [vmem:[#allocation2 + $0x130] sm:$0xff] }
  0x2c   :  { %4677 = vmatprep.subr.msk.bf16.mxu0 %vm2655_vm0, %v4614_v53  ;;  %4679 = vmatprep.subr.msk.bf16.mxu1 %vm2655_vm0, %v4616_v55  ;;  %v31_v53 = vld [vmem:[#allocation2 + $0x20] sm:$0xff]  ;;  %v32_v55 = vld [vmem:[#allocation2 + $0x28] sm:$0xff] }
  0x2d   :  { %v4238_v58 = vcombine.high %v31_v53, %v63_v54  ;;  %v2675_v59 = vsel %vm2655_vm0, %v4619_v52, 0  ;;  %v4240_v60 = vcombine.high %v32_v55, %v64_v56  ;;  %v4237_v2 = vcombine.low %v31_v53, %v63_v54  ;;  %v66_v52 = vld [vmem:[#allocation2 + $0x138] sm:$0xff] }
  0x2e   :  { %v4239_v3 = vcombine.low %v32_v55, %v64_v56 }
  0x2f   :  { %2861 = vmatpush1.bf16.msra.mxu0 %v2657_v61  ;;  %2902 = vmatpush1.bf16.msra.mxu1 %v2663_v63  ;;  %v95_v61 = vld [vmem:[#allocation2 + $0x220] sm:$0xff]  ;;  %v96_v63 = vld [vmem:[#allocation2 + $0x228] sm:$0xff] }
  0x30   :  { %2930 = vmatprep.subr.bf16.mxu0 %v4234_v62  ;;  %2971 = vmatprep.subr.bf16.mxu1 %v4236_v1  ;;  %v127_v62 = vld [vmem:[#allocation2 + $0x320] sm:$0xff]  ;;  %v128_v1 = vld [vmem:[#allocation2 + $0x328] sm:$0xff] }
  0x31   :  { %v4302_v4 = vcombine.high %v95_v61, %v127_v62  ;;  %v4304_v5 = vcombine.high %v96_v63, %v128_v1  ;;  %v4301_v11 = vcombine.low %v95_v61, %v127_v62  ;;  %v4303_v12 = vcombine.low %v96_v63, %v128_v1 }
  0x32   :  { %4678 = vmatmul.mubr.msk.bf16.vlgmr.msra.gmra.mrb[0].mxu0 %vm2651_vm1, %v4811_v6  ;;  %4680 = vmatmul.mubr.msk.bf16.vlgmr.msra.gmra.mrb[0].mxu1 %vm2651_vm1, %v4811_v6 }
  0x33   :  { %2931 = vmatpush1.bf16.msra.mxu0 %v4233_v7  ;;  %2972 = vmatpush1.bf16.msra.mxu1 %v4235_v8  ;;  %v159_v7 = vld [vmem:[#allocation2 + $0x420] sm:$0xff] }
  0x34   :  { %2932 = vmatprep.subr.bf16.mxu0 %v4298_v9  ;;  %2973 = vmatprep.subr.bf16.mxu1 %v4300_v10  ;;  %v191_v8 = vld [vmem:[#allocation2 + $0x520] sm:$0xff]  ;;  %v160_v9 = vld [vmem:[#allocation2 + $0x428] sm:$0xff] }
  0x35   :  { %2962 = vmatprep.mubr.bf16.mxu0 %v4774_v0  ;;  %3003 = vmatprep.mubr.bf16.mxu1 %v4774_v0  ;;  %v192_v10 = vld [vmem:[#allocation2 + $0x528] sm:$0xff]  ;;  %v4366_v13 = vcombine.high %v159_v7, %v191_v8  ;;  %v4365_v19 = vcombine.low %v159_v7, %v191_v8 }
  0x36   :  { %v4368_v14 = vcombine.high %v160_v9, %v192_v10  ;;  %v4367_v20 = vcombine.low %v160_v9, %v192_v10 }
  0x37   :  { %2933 = vmatpush1.bf16.msra.mxu0 %v4297_v15  ;;  %2974 = vmatpush1.bf16.msra.mxu1 %v4299_v16  ;;  %v223_v15 = vld [vmem:[#allocation2 + $0x620] sm:$0xff] }
  0x38   :  { %2934 = vmatprep.subr.bf16.mxu0 %v4362_v17  ;;  %2975 = vmatprep.subr.bf16.mxu1 %v4364_v18  ;;  %v255_v16 = vld [vmem:[#allocation2 + $0x720] sm:$0xff]  ;;  %v224_v17 = vld [vmem:[#allocation2 + $0x628] sm:$0xff] }
  0x39   :  { %v256_v18 = vld [vmem:[#allocation2 + $0x728] sm:$0xff]  ;;  %v4430_v21 = vcombine.high %v223_v15, %v255_v16  ;;  %v4429_v27 = vcombine.low %v223_v15, %v255_v16 }
  0x3a   :  { %v4432_v22 = vcombine.high %v224_v17, %v256_v18  ;;  %v4431_v28 = vcombine.low %v224_v17, %v256_v18 }
  0x3b   :  { %2935 = vmatpush1.bf16.msra.mxu0 %v4361_v23  ;;  %2976 = vmatpush1.bf16.msra.mxu1 %v4363_v24  ;;  %v287_v23 = vld [vmem:[#allocation2 + $0x820] sm:$0xff] }
  0x3c   :  { %2936 = vmatprep.subr.bf16.mxu0 %v4426_v25  ;;  %2977 = vmatprep.subr.bf16.mxu1 %v4428_v26  ;;  %v319_v24 = vld [vmem:[#allocation2 + $0x920] sm:$0xff]  ;;  %v288_v25 = vld [vmem:[#allocation2 + $0x828] sm:$0xff] }
  0x3d   :  { %v320_v26 = vld [vmem:[#allocation2 + $0x928] sm:$0xff]  ;;  %v4494_v29 = vcombine.high %v287_v23, %v319_v24  ;;  %v4493_v35 = vcombine.low %v287_v23, %v319_v24 }
  0x3e   :  { %v4496_v30 = vcombine.high %v288_v25, %v320_v26  ;;  %v4495_v36 = vcombine.low %v288_v25, %v320_v26 }
  0x3f   :  { %2937 = vmatpush1.bf16.msra.mxu0 %v4425_v31  ;;  %2978 = vmatpush1.bf16.msra.mxu1 %v4427_v32  ;;  %v351_v31 = vld [vmem:[#allocation2 + $0xa20] sm:$0xff] }
  0x40   :  { %2938 = vmatprep.subr.bf16.mxu0 %v4490_v33  ;;  %2979 = vmatprep.subr.bf16.mxu1 %v4492_v34  ;;  %v383_v32 = vld [vmem:[#allocation2 + $0xb20] sm:$0xff]  ;;  %v352_v33 = vld [vmem:[#allocation2 + $0xa28] sm:$0xff] }
  0x41   :  { %v384_v34 = vld [vmem:[#allocation2 + $0xb28] sm:$0xff]  ;;  %v4558_v37 = vcombine.high %v351_v31, %v383_v32  ;;  %v4557_v43 = vcombine.low %v351_v31, %v383_v32 }
  0x42   :  { %v4560_v38 = vcombine.high %v352_v33, %v384_v34  ;;  %v4559_v44 = vcombine.low %v352_v33, %v384_v34 }
  0x43   :  { %2939 = vmatpush1.bf16.msra.mxu0 %v4489_v39  ;;  %2980 = vmatpush1.bf16.msra.mxu1 %v4491_v40  ;;  %v415_v39 = vld [vmem:[#allocation2 + $0xc20] sm:$0xff] }
  0x44   :  { %2940 = vmatprep.subr.bf16.mxu0 %v4554_v41  ;;  %2981 = vmatprep.subr.bf16.mxu1 %v4556_v42  ;;  %v447_v40 = vld [vmem:[#allocation2 + $0xd20] sm:$0x77]  ;;  %v416_v41 = vld [vmem:[#allocation2 + $0xc28] sm:$0xff] }
  0x45   :  { %v448_v42 = vld [vmem:[#allocation2 + $0xd28] sm:$0x77]  ;;  %v4622_v45 = vcombine.high %v415_v39, %v447_v40  ;;  %v4621_v46 = vcombine.low %v415_v39, %v447_v40 }
  0x47   :  { %2941 = vmatpush1.bf16.msra.mxu0 %v4553_v47  ;;  %2982 = vmatpush1.bf16.msra.mxu1 %v4555_v48  ;;  %v4624_v47 = vcombine.high %v416_v41, %v448_v42  ;;  %v4623_v48 = vcombine.low %v416_v41, %v448_v42  ;;  %v2681_v53 = vsel %vm2655_vm0, %v4621_v46, 0  ;;  %v67_v46 = vld [vmem:[#allocation2 + $0x140] sm:$0xff] }
  0x48   :  { %4681 = vmatprep.subr.msk.bf16.mxu0 %vm2655_vm0, %v4618_v49  ;;  %4683 = vmatprep.subr.msk.bf16.mxu1 %vm2655_vm0, %v4620_v51  ;;  %v33_v49 = vld [vmem:[#allocation2 + $0x30] sm:$0xff]  ;;  %v34_v51 = vld [vmem:[#allocation2 + $0x38] sm:$0xff] }
  0x49   :  { %v4242_v54 = vcombine.high %v33_v49, %v65_v50  ;;  %v2687_v55 = vsel %vm2655_vm0, %v4623_v48, 0  ;;  %v4244_v56 = vcombine.high %v34_v51, %v66_v52  ;;  %v4241_v61 = vcombine.low %v33_v49, %v65_v50  ;;  %v68_v48 = vld [vmem:[#allocation2 + $0x148] sm:$0xff] }
  0x4a   :  { %v4243_v62 = vcombine.low %v34_v51, %v66_v52 }
  0x4b   :  { %2943 = vmatpush1.bf16.msra.mxu0 %v2669_v57  ;;  %2984 = vmatpush1.bf16.msra.mxu1 %v2675_v59  ;;  %v97_v57 = vld [vmem:[#allocation2 + $0x230] sm:$0xff]  ;;  %v98_v59 = vld [vmem:[#allocation2 + $0x238] sm:$0xff] }
  0x4c   :  { %3012 = vmatprep.subr.bf16.mxu0 %v4238_v58  ;;  %3053 = vmatprep.subr.bf16.mxu1 %v4240_v60  ;;  %v129_v58 = vld [vmem:[#allocation2 + $0x330] sm:$0xff]  ;;  %v130_v60 = vld [vmem:[#allocation2 + $0x338] sm:$0xff] }
  0x4d   :  { %v4306_v63 = vcombine.high %v97_v57, %v129_v58  ;;  %v4308_v1 = vcombine.high %v98_v59, %v130_v60  ;;  %v4305_v7 = vcombine.low %v97_v57, %v129_v58  ;;  %v4307_v8 = vcombine.low %v98_v59, %v130_v60 }
  0x4e   :  { %4682 = vmatmul.mubr.msk.bf16.vlgmr.msra.gmra.mrb[4].mxu0 %vm2651_vm1, %v4811_v6  ;;  %4684 = vmatmul.mubr.msk.bf16.vlgmr.msra.gmra.mrb[4].mxu1 %vm2651_vm1, %v4811_v6 }
  0x4f   :  { %3013 = vmatpush1.bf16.msra.mxu0 %v4237_v2  ;;  %3054 = vmatpush1.bf16.msra.mxu1 %v4239_v3  ;;  %v161_v2 = vld [vmem:[#allocation2 + $0x430] sm:$0xff] }
  0x50   :  { %3014 = vmatprep.subr.bf16.mxu0 %v4302_v4  ;;  %3055 = vmatprep.subr.bf16.mxu1 %v4304_v5  ;;  %v193_v3 = vld [vmem:[#allocation2 + $0x530] sm:$0xff]  ;;  %v162_v4 = vld [vmem:[#allocation2 + $0x438] sm:$0xff] }
  0x51   :  { %3044 = vmatprep.mubr.bf16.mxu0 %v4774_v0  ;;  %3085 = vmatprep.mubr.bf16.mxu1 %v4774_v0  ;;  %v194_v5 = vld [vmem:[#allocation2 + $0x538] sm:$0xff]  ;;  %v4370_v9 = vcombine.high %v161_v2, %v193_v3  ;;  %v4369_v15 = vcombine.low %v161_v2, %v193_v3 }
  0x52   :  { %v4372_v10 = vcombine.high %v162_v4, %v194_v5  ;;  %v4371_v16 = vcombine.low %v162_v4, %v194_v5 }
  0x53   :  { %3015 = vmatpush1.bf16.msra.mxu0 %v4301_v11  ;;  %3056 = vmatpush1.bf16.msra.mxu1 %v4303_v12  ;;  %v225_v11 = vld [vmem:[#allocation2 + $0x630] sm:$0xff] }
  0x54   :  { %3016 = vmatprep.subr.bf16.mxu0 %v4366_v13  ;;  %3057 = vmatprep.subr.bf16.mxu1 %v4368_v14  ;;  %v257_v12 = vld [vmem:[#allocation2 + $0x730] sm:$0xff]  ;;  %v226_v13 = vld [vmem:[#allocation2 + $0x638] sm:$0xff] }
  0x55   :  { %v258_v14 = vld [vmem:[#allocation2 + $0x738] sm:$0xff]  ;;  %v4434_v17 = vcombine.high %v225_v11, %v257_v12  ;;  %v4433_v23 = vcombine.low %v225_v11, %v257_v12 }
  0x56   :  { %v4436_v18 = vcombine.high %v226_v13, %v258_v14  ;;  %v4435_v24 = vcombine.low %v226_v13, %v258_v14 }
  0x57   :  { %3017 = vmatpush1.bf16.msra.mxu0 %v4365_v19  ;;  %3058 = vmatpush1.bf16.msra.mxu1 %v4367_v20  ;;  %v289_v19 = vld [vmem:[#allocation2 + $0x830] sm:$0xff] }
  0x58   :  { %3018 = vmatprep.subr.bf16.mxu0 %v4430_v21  ;;  %3059 = vmatprep.subr.bf16.mxu1 %v4432_v22  ;;  %v321_v20 = vld [vmem:[#allocation2 + $0x930] sm:$0xff]  ;;  %v290_v21 = vld [vmem:[#allocation2 + $0x838] sm:$0xff] }
  0x59   :  { %v322_v22 = vld [vmem:[#allocation2 + $0x938] sm:$0xff]  ;;  %v4498_v25 = vcombine.high %v289_v19, %v321_v20  ;;  %v4497_v31 = vcombine.low %v289_v19, %v321_v20 }
  0x5a   :  { %v4500_v26 = vcombine.high %v290_v21, %v322_v22  ;;  %v4499_v32 = vcombine.low %v290_v21, %v322_v22 }
  0x5b   :  { %3019 = vmatpush1.bf16.msra.mxu0 %v4429_v27  ;;  %3060 = vmatpush1.bf16.msra.mxu1 %v4431_v28  ;;  %v353_v27 = vld [vmem:[#allocation2 + $0xa30] sm:$0xff] }
  0x5c   :  { %3020 = vmatprep.subr.bf16.mxu0 %v4494_v29  ;;  %3061 = vmatprep.subr.bf16.mxu1 %v4496_v30  ;;  %v385_v28 = vld [vmem:[#allocation2 + $0xb30] sm:$0xff]  ;;  %v354_v29 = vld [vmem:[#allocation2 + $0xa38] sm:$0xff] }
  0x5d   :  { %v386_v30 = vld [vmem:[#allocation2 + $0xb38] sm:$0xff]  ;;  %v4562_v33 = vcombine.high %v353_v27, %v385_v28  ;;  %v4561_v39 = vcombine.low %v353_v27, %v385_v28 }
  0x5e   :  { %v4564_v34 = vcombine.high %v354_v29, %v386_v30  ;;  %v4563_v40 = vcombine.low %v354_v29, %v386_v30 }
  0x5f   :  { %3021 = vmatpush1.bf16.msra.mxu0 %v4493_v35  ;;  %3062 = vmatpush1.bf16.msra.mxu1 %v4495_v36  ;;  %v417_v35 = vld [vmem:[#allocation2 + $0xc30] sm:$0xff] }
  0x60   :  { %3022 = vmatprep.subr.bf16.mxu0 %v4558_v37  ;;  %3063 = vmatprep.subr.bf16.mxu1 %v4560_v38  ;;  %v449_v36 = vld [vmem:[#allocation2 + $0xd30] sm:$0x77]  ;;  %v418_v37 = vld [vmem:[#allocation2 + $0xc38] sm:$0xff] }
  0x61   :  { %v450_v38 = vld [vmem:[#allocation2 + $0xd38] sm:$0x77]  ;;  %v4626_v41 = vcombine.high %v417_v35, %v449_v36  ;;  %v4625_v42 = vcombine.low %v417_v35, %v449_v36 }
  0x63   :  { %3023 = vmatpush1.bf16.msra.mxu0 %v4557_v43  ;;  %3064 = vmatpush1.bf16.msra.mxu1 %v4559_v44  ;;  %v4628_v43 = vcombine.high %v418_v37, %v450_v38  ;;  %v4627_v44 = vcombine.low %v418_v37, %v450_v38  ;;  %v2693_v49 = vsel %vm2655_vm0, %v4625_v42, 0  ;;  %v69_v42 = vld [vmem:[#allocation2 + $0x150] sm:$0xff] }
  0x64   :  { %4685 = vmatprep.subr.msk.bf16.mxu0 %vm2655_vm0, %v4622_v45  ;;  %4687 = vmatprep.subr.msk.bf16.mxu1 %vm2655_vm0, %v4624_v47  ;;  %v35_v45 = vld [vmem:[#allocation2 + $0x40] sm:$0xff]  ;;  %v36_v47 = vld [vmem:[#allocation2 + $0x48] sm:$0xff] }
  0x65   :  { %v4246_v50 = vcombine.high %v35_v45, %v67_v46  ;;  %v2699_v51 = vsel %vm2655_vm0, %v4627_v44, 0  ;;  %v4248_v52 = vcombine.high %v36_v47, %v68_v48  ;;  %v4245_v57 = vcombine.low %v35_v45, %v67_v46  ;;  %v70_v44 = vld [vmem:[#allocation2 + $0x158] sm:$0xff] }
  0x66   :  { %v4247_v58 = vcombine.low %v36_v47, %v68_v48 }
  0x67   :  { %3025 = vmatpush1.bf16.msra.mxu0 %v2681_v53  ;;  %3066 = vmatpush1.bf16.msra.mxu1 %v2687_v55  ;;  %v99_v53 = vld [vmem:[#allocation2 + $0x240] sm:$0xff]  ;;  %v100_v55 = vld [vmem:[#allocation2 + $0x248] sm:$0xff] }
  0x68   :  { %3094 = vmatprep.subr.bf16.mxu0 %v4242_v54  ;;  %3135 = vmatprep.subr.bf16.mxu1 %v4244_v56  ;;  %v131_v54 = vld [vmem:[#allocation2 + $0x340] sm:$0xff]  ;;  %v132_v56 = vld [vmem:[#allocation2 + $0x348] sm:$0xff] }
  0x69   :  { %v4310_v59 = vcombine.high %v99_v53, %v131_v54  ;;  %v4312_v60 = vcombine.high %v100_v55, %v132_v56  ;;  %v4309_v2 = vcombine.low %v99_v53, %v131_v54  ;;  %v4311_v3 = vcombine.low %v100_v55, %v132_v56 }
  0x6a   :  { %4686 = vmatmul.mubr.msk.bf16.vlgmr.msra.gmra.mrb[8].mxu0 %vm2651_vm1, %v4811_v6  ;;  %4688 = vmatmul.mubr.msk.bf16.vlgmr.msra.gmra.mrb[8].mxu1 %vm2651_vm1, %v4811_v6 }
  0x6b   :  { %3095 = vmatpush1.bf16.msra.mxu0 %v4241_v61  ;;  %3136 = vmatpush1.bf16.msra.mxu1 %v4243_v62  ;;  %v163_v61 = vld [vmem:[#allocation2 + $0x440] sm:$0xff] }
  0x6c   :  { %3096 = vmatprep.subr.bf16.mxu0 %v4306_v63  ;;  %3137 = vmatprep.subr.bf16.mxu1 %v4308_v1  ;;  %v195_v62 = vld [vmem:[#allocation2 + $0x540] sm:$0xff]  ;;  %v164_v63 = vld [vmem:[#allocation2 + $0x448] sm:$0xff] }
  0x6d   :  { %3126 = vmatprep.mubr.bf16.mxu0 %v4774_v0  ;;  %3167 = vmatprep.mubr.bf16.mxu1 %v4774_v0  ;;  %v196_v1 = vld [vmem:[#allocation2 + $0x548] sm:$0xff]  ;;  %v4374_v4 = vcombine.high %v163_v61, %v195_v62  ;;  %v4373_v11 = vcombine.low %v163_v61, %v195_v62 }
  0x6e   :  { %v4376_v5 = vcombine.high %v164_v63, %v196_v1  ;;  %v4375_v12 = vcombine.low %v164_v63, %v196_v1 }
  0x6f   :  { %3097 = vmatpush1.bf16.msra.mxu0 %v4305_v7  ;;  %3138 = vmatpush1.bf16.msra.mxu1 %v4307_v8  ;;  %v227_v7 = vld [vmem:[#allocation2 + $0x640] sm:$0xff] }
  0x70   :  { %3098 = vmatprep.subr.bf16.mxu0 %v4370_v9  ;;  %3139 = vmatprep.subr.bf16.mxu1 %v4372_v10  ;;  %v259_v8 = vld [vmem:[#allocation2 + $0x740] sm:$0xff]  ;;  %v228_v9 = vld [vmem:[#allocation2 + $0x648] sm:$0xff] }
  0x71   :  { %v260_v10 = vld [vmem:[#allocation2 + $0x748] sm:$0xff]  ;;  %v4438_v13 = vcombine.high %v227_v7, %v259_v8  ;;  %v4437_v19 = vcombine.low %v227_v7, %v259_v8 }
  0x72   :  { %v4440_v14 = vcombine.high %v228_v9, %v260_v10  ;;  %v4439_v20 = vcombine.low %v228_v9, %v260_v10 }
  0x73   :  { %3099 = vmatpush1.bf16.msra.mxu0 %v4369_v15  ;;  %3140 = vmatpush1.bf16.msra.mxu1 %v4371_v16  ;;  %v291_v15 = vld [vmem:[#allocation2 + $0x840] sm:$0xff] }
  0x74   :  { %3100 = vmatprep.subr.bf16.mxu0 %v4434_v17  ;;  %3141 = vmatprep.subr.bf16.mxu1 %v4436_v18  ;;  %v323_v16 = vld [vmem:[#allocation2 + $0x940] sm:$0xff]  ;;  %v292_v17 = vld [vmem:[#allocation2 + $0x848] sm:$0xff] }
  0x75   :  { %v324_v18 = vld [vmem:[#allocation2 + $0x948] sm:$0xff]  ;;  %v4502_v21 = vcombine.high %v291_v15, %v323_v16  ;;  %v4501_v27 = vcombine.low %v291_v15, %v323_v16 }
  0x76   :  { %v4504_v22 = vcombine.high %v292_v17, %v324_v18  ;;  %v4503_v28 = vcombine.low %v292_v17, %v324_v18 }
  0x77   :  { %3101 = vmatpush1.bf16.msra.mxu0 %v4433_v23  ;;  %3142 = vmatpush1.bf16.msra.mxu1 %v4435_v24  ;;  %v355_v23 = vld [vmem:[#allocation2 + $0xa40] sm:$0xff] }
  0x78   :  { %3102 = vmatprep.subr.bf16.mxu0 %v4498_v25  ;;  %3143 = vmatprep.subr.bf16.mxu1 %v4500_v26  ;;  %v387_v24 = vld [vmem:[#allocation2 + $0xb40] sm:$0xff]  ;;  %v356_v25 = vld [vmem:[#allocation2 + $0xa48] sm:$0xff] }
  0x79   :  { %v388_v26 = vld [vmem:[#allocation2 + $0xb48] sm:$0xff]  ;;  %v4566_v29 = vcombine.high %v355_v23, %v387_v24  ;;  %v4565_v35 = vcombine.low %v355_v23, %v387_v24 }
  0x7a   :  { %v4568_v30 = vcombine.high %v356_v25, %v388_v26  ;;  %v4567_v36 = vcombine.low %v356_v25, %v388_v26 }
  0x7b   :  { %3103 = vmatpush1.bf16.msra.mxu0 %v4497_v31  ;;  %3144 = vmatpush1.bf16.msra.mxu1 %v4499_v32  ;;  %v419_v31 = vld [vmem:[#allocation2 + $0xc40] sm:$0xff] }
  0x7c   :  { %3104 = vmatprep.subr.bf16.mxu0 %v4562_v33  ;;  %3145 = vmatprep.subr.bf16.mxu1 %v4564_v34  ;;  %v451_v32 = vld [vmem:[#allocation2 + $0xd40] sm:$0x77]  ;;  %v420_v33 = vld [vmem:[#allocation2 + $0xc48] sm:$0xff] }
  0x7d   :  { %v452_v34 = vld [vmem:[#allocation2 + $0xd48] sm:$0x77]  ;;  %v4630_v37 = vcombine.high %v419_v31, %v451_v32  ;;  %v4629_v38 = vcombine.low %v419_v31, %v451_v32 }
  0x7f   :  { %3105 = vmatpush1.bf16.msra.mxu0 %v4561_v39  ;;  %3146 = vmatpush1.bf16.msra.mxu1 %v4563_v40  ;;  %v4632_v39 = vcombine.high %v420_v33, %v452_v34  ;;  %v4631_v40 = vcombine.low %v420_v33, %v452_v34  ;;  %v2705_v45 = vsel %vm2655_vm0, %v4629_v38, 0  ;;  %v71_v38 = vld [vmem:[#allocation2 + $0x160] sm:$0xff] }
  0x80   :  { %4689 = vmatprep.subr.msk.bf16.mxu0 %vm2655_vm0, %v4626_v41  ;;  %4691 = vmatprep.subr.msk.bf16.mxu1 %vm2655_vm0, %v4628_v43  ;;  %v37_v41 = vld [vmem:[#allocation2 + $0x50] sm:$0xff]  ;;  %v38_v43 = vld [vmem:[#allocation2 + $0x58] sm:$0xff] }
  0x81   :  { %v4250_v46 = vcombine.high %v37_v41, %v69_v42  ;;  %v2711_v47 = vsel %vm2655_vm0, %v4631_v40, 0  ;;  %v4252_v48 = vcombine.high %v38_v43, %v70_v44  ;;  %v4249_v53 = vcombine.low %v37_v41, %v69_v42  ;;  %v72_v40 = vld [vmem:[#allocation2 + $0x168] sm:$0xff] }
  0x82   :  { %v4251_v54 = vcombine.low %v38_v43, %v70_v44 }
  0x83   :  { %3107 = vmatpush1.bf16.msra.mxu0 %v2693_v49  ;;  %3148 = vmatpush1.bf16.msra.mxu1 %v2699_v51  ;;  %v101_v49 = vld [vmem:[#allocation2 + $0x250] sm:$0xff]  ;;  %v102_v51 = vld [vmem:[#allocation2 + $0x258] sm:$0xff] }
  0x84   :  { %3176 = vmatprep.subr.bf16.mxu0 %v4246_v50  ;;  %3217 = vmatprep.subr.bf16.mxu1 %v4248_v52  ;;  %v133_v50 = vld [vmem:[#allocation2 + $0x350] sm:$0xff]  ;;  %v134_v52 = vld [vmem:[#allocation2 + $0x358] sm:$0xff] }
  0x85   :  { %v4314_v55 = vcombine.high %v101_v49, %v133_v50  ;;  %v4316_v56 = vcombine.high %v102_v51, %v134_v52  ;;  %v4313_v61 = vcombine.low %v101_v49, %v133_v50  ;;  %v4315_v62 = vcombine.low %v102_v51, %v134_v52 }
  0x86   :  { %4690 = vmatmul.mubr.msk.bf16.vlgmr.msra.gmra.mrb[12].mxu0 %vm2651_vm1, %v4811_v6  ;;  %4692 = vmatmul.mubr.msk.bf16.vlgmr.msra.gmra.mrb[12].mxu1 %vm2651_vm1, %v4811_v6 }
  0x87   :  { %3177 = vmatpush1.bf16.msra.mxu0 %v4245_v57  ;;  %3218 = vmatpush1.bf16.msra.mxu1 %v4247_v58  ;;  %v165_v57 = vld [vmem:[#allocation2 + $0x450] sm:$0xff] }
  0x88   :  { %3178 = vmatprep.subr.bf16.mxu0 %v4310_v59  ;;  %3219 = vmatprep.subr.bf16.mxu1 %v4312_v60  ;;  %v197_v58 = vld [vmem:[#allocation2 + $0x550] sm:$0xff]  ;;  %v166_v59 = vld [vmem:[#allocation2 + $0x458] sm:$0xff] }
  0x89   :  { %3208 = vmatprep.mubr.bf16.mxu0 %v4774_v0  ;;  %3249 = vmatprep.mubr.bf16.mxu1 %v4774_v0  ;;  %v198_v60 = vld [vmem:[#allocation2 + $0x558] sm:$0xff]  ;;  %v4378_v63 = vcombine.high %v165_v57, %v197_v58  ;;  %v4377_v7 = vcombine.low %v165_v57, %v197_v58 }
  0x8a   :  { %v4380_v1 = vcombine.high %v166_v59, %v198_v60  ;;  %v4379_v8 = vcombine.low %v166_v59, %v198_v60 }
  0x8b   :  { %3179 = vmatpush1.bf16.msra.mxu0 %v4309_v2  ;;  %3220 = vmatpush1.bf16.msra.mxu1 %v4311_v3  ;;  %v229_v2 = vld [vmem:[#allocation2 + $0x650] sm:$0xff] }
  0x8c   :  { %3180 = vmatprep.subr.bf16.mxu0 %v4374_v4  ;;  %3221 = vmatprep.subr.bf16.mxu1 %v4376_v5  ;;  %v261_v3 = vld [vmem:[#allocation2 + $0x750] sm:$0xff]  ;;  %v230_v4 = vld [vmem:[#allocation2 + $0x658] sm:$0xff] }
  0x8d   :  { %v262_v5 = vld [vmem:[#allocation2 + $0x758] sm:$0xff]  ;;  %v4442_v9 = vcombine.high %v229_v2, %v261_v3  ;;  %v4441_v15 = vcombine.low %v229_v2, %v261_v3 }
  0x8e   :  { %v4444_v10 = vcombine.high %v230_v4, %v262_v5  ;;  %v4443_v16 = vcombine.low %v230_v4, %v262_v5  ;;  %v295_v5 = vld [vmem:[#allocation2 + $0x860] sm:$0xff] }
  0x8f   :  { %3181 = vmatpush1.bf16.msra.mxu0 %v4373_v11  ;;  %3222 = vmatpush1.bf16.msra.mxu1 %v4375_v12  ;;  %v293_v11 = vld [vmem:[#allocation2 + $0x850] sm:$0xff] }
  0x90   :  { %3182 = vmatprep.subr.bf16.mxu0 %v4438_v13  ;;  %3223 = vmatprep.subr.bf16.mxu1 %v4440_v14  ;;  %v325_v12 = vld [vmem:[#allocation2 + $0x950] sm:$0xff]  ;;  %v294_v13 = vld [vmem:[#allocation2 + $0x858] sm:$0xff] }
  0x91   :  { %v326_v14 = vld [vmem:[#allocation2 + $0x958] sm:$0xff]  ;;  %v4506_v17 = vcombine.high %v293_v11, %v325_v12  ;;  %v4505_v23 = vcombine.low %v293_v11, %v325_v12 }
  0x92   :  { %v4508_v18 = vcombine.high %v294_v13, %v326_v14  ;;  %v4507_v24 = vcombine.low %v294_v13, %v326_v14  ;;  %v359_v14 = vld [vmem:[#allocation2 + $0xa60] sm:$0xff] }
  0x93   :  { %3183 = vmatpush1.bf16.msra.mxu0 %v4437_v19  ;;  %3224 = vmatpush1.bf16.msra.mxu1 %v4439_v20  ;;  %v357_v19 = vld [vmem:[#allocation2 + $0xa50] sm:$0xff] }
  0x94   :  { %3184 = vmatprep.subr.bf16.mxu0 %v4502_v21  ;;  %3225 = vmatprep.subr.bf16.mxu1 %v4504_v22  ;;  %v389_v20 = vld [vmem:[#allocation2 + $0xb50] sm:$0xff]  ;;  %v358_v21 = vld [vmem:[#allocation2 + $0xa58] sm:$0xff] }
  0x95   :  { %v390_v22 = vld [vmem:[#allocation2 + $0xb58] sm:$0xff]  ;;  %v4570_v25 = vcombine.high %v357_v19, %v389_v20  ;;  %v4569_v31 = vcombine.low %v357_v19, %v389_v20 }
  0x96   :  { %v4572_v26 = vcombine.high %v358_v21, %v390_v22  ;;  %v4571_v32 = vcombine.low %v358_v21, %v390_v22  ;;  %v423_v22 = vld [vmem:[#allocation2 + $0xc60] sm:$0xff] }
  0x97   :  { %3185 = vmatpush1.bf16.msra.mxu0 %v4501_v27  ;;  %3226 = vmatpush1.bf16.msra.mxu1 %v4503_v28  ;;  %v421_v27 = vld [vmem:[#allocation2 + $0xc50] sm:$0xff] }
  0x98   :  { %3186 = vmatprep.subr.bf16.mxu0 %v4566_v29  ;;  %3227 = vmatprep.subr.bf16.mxu1 %v4568_v30  ;;  %v453_v28 = vld [vmem:[#allocation2 + $0xd50] sm:$0x77]  ;;  %v422_v29 = vld [vmem:[#allocation2 + $0xc58] sm:$0xff] }
  0x99   :  { %v454_v30 = vld [vmem:[#allocation2 + $0xd58] sm:$0x77]  ;;  %v4634_v33 = vcombine.high %v421_v27, %v453_v28  ;;  %v4633_v34 = vcombine.low %v421_v27, %v453_v28 }
  0x9b   :  { %3187 = vmatpush1.bf16.msra.mxu0 %v4565_v35  ;;  %3228 = vmatpush1.bf16.msra.mxu1 %v4567_v36  ;;  %v4636_v35 = vcombine.high %v422_v29, %v454_v30  ;;  %v4635_v36 = vcombine.low %v422_v29, %v454_v30  ;;  %v2717_v41 = vsel %vm2655_vm0, %v4633_v34, 0  ;;  %v42_v34 = vld [vmem:[#allocation2 + $0x78] sm:$0xff] }
  0x9c   :  { %4693 = vmatprep.subr.msk.bf16.mxu0 %vm2655_vm0, %v4630_v37  ;;  %4695 = vmatprep.subr.msk.bf16.mxu1 %vm2655_vm0, %v4632_v39  ;;  %v39_v37 = vld [vmem:[#allocation2 + $0x60] sm:$0xff]  ;;  %v40_v39 = vld [vmem:[#allocation2 + $0x68] sm:$0xff] }
  0x9d   :  { %v4254_v42 = vcombine.high %v39_v37, %v71_v38  ;;  %v2723_v43 = vsel %vm2655_vm0, %v4635_v36, 0  ;;  %v4256_v44 = vcombine.high %v40_v39, %v72_v40  ;;  %v4253_v49 = vcombine.low %v39_v37, %v71_v38 }
  0x9e   :  { %v4255_v50 = vcombine.low %v40_v39, %v72_v40  ;;  %v105_v40 = vld [vmem:[#allocation2 + $0x270] sm:$0xff] }
  0x9f   :  { %3189 = vmatpush1.bf16.msra.mxu0 %v2705_v45  ;;  %3230 = vmatpush1.bf16.msra.mxu1 %v2711_v47  ;;  %v103_v45 = vld [vmem:[#allocation2 + $0x260] sm:$0xff]  ;;  %v104_v47 = vld [vmem:[#allocation2 + $0x268] sm:$0xff] }
  0xa0   :  { %3258 = vmatprep.subr.bf16.mxu0 %v4250_v46  ;;  %3299 = vmatprep.subr.bf16.mxu1 %v4252_v48  ;;  %v135_v46 = vld [vmem:[#allocation2 + $0x360] sm:$0xff]  ;;  %v136_v48 = vld [vmem:[#allocation2 + $0x368] sm:$0xff] }
  0xa1   :  { %v4318_v51 = vcombine.high %v103_v45, %v135_v46  ;;  %v4320_v52 = vcombine.high %v104_v47, %v136_v48  ;;  %v4317_v57 = vcombine.low %v103_v45, %v135_v46  ;;  %v4319_v58 = vcombine.low %v104_v47, %v136_v48  ;;  %v169_v48 = vld [vmem:[#allocation2 + $0x470] sm:$0xff] }
  0xa2   :  { %4694 = vmatmul.mubr.msk.bf16.vlgmr.msra.gmra.mrb[16].mxu0 %vm2651_vm1, %v4811_v6  ;;  %4696 = vmatmul.mubr.msk.bf16.vlgmr.msra.gmra.mrb[16].mxu1 %vm2651_vm1, %v4811_v6 }
  0xa3   :  { %3259 = vmatpush1.bf16.msra.mxu0 %v4249_v53  ;;  %3300 = vmatpush1.bf16.msra.mxu1 %v4251_v54  ;;  %v167_v53 = vld [vmem:[#allocation2 + $0x460] sm:$0xff] }
  0xa4   :  { %3260 = vmatprep.subr.bf16.mxu0 %v4314_v55  ;;  %3301 = vmatprep.subr.bf16.mxu1 %v4316_v56  ;;  %v199_v54 = vld [vmem:[#allocation2 + $0x560] sm:$0xff]  ;;  %v168_v55 = vld [vmem:[#allocation2 + $0x468] sm:$0xff] }
  0xa5   :  { %3290 = vmatprep.mubr.bf16.mxu0 %v4774_v0  ;;  %3331 = vmatprep.mubr.bf16.mxu1 %v4774_v0  ;;  %v200_v56 = vld [vmem:[#allocation2 + $0x568] sm:$0xff]  ;;  %v4382_v59 = vcombine.high %v167_v53, %v199_v54  ;;  %v4381_v2 = vcombine.low %v167_v53, %v199_v54 }
  0xa6   :  { %v4384_v60 = vcombine.high %v168_v55, %v200_v56 }
  0xa7   :  { %3261 = vmatpush1.bf16.msra.mxu0 %v4313_v61  ;;  %3302 = vmatpush1.bf16.msra.mxu1 %v4315_v62  ;;  %v231_v61 = vld [vmem:[#allocation2 + $0x660] sm:$0xff] }
  0xa8   :  { %3262 = vmatprep.subr.bf16.mxu0 %v4378_v63  ;;  %3303 = vmatprep.subr.bf16.mxu1 %v4380_v1  ;;  %v263_v62 = vld [vmem:[#allocation2 + $0x760] sm:$0xff]  ;;  %v232_v63 = vld [vmem:[#allocation2 + $0x668] sm:$0xff] }
  0xa9   :  { %v264_v1 = vld [vmem:[#allocation2 + $0x768] sm:$0xff]  ;;  %v4446_v3 = vcombine.high %v231_v61, %v263_v62 }
  0xaa   :  { %v4448_v4 = vcombine.high %v232_v63, %v264_v1  ;;  %v4447_v11 = vcombine.low %v232_v63, %v264_v1 }
  0xab   :  { %3263 = vmatpush1.bf16.msra.mxu0 %v4377_v7  ;;  %3304 = vmatpush1.bf16.msra.mxu1 %v4379_v8  ;;  %v327_v7 = vld [vmem:[#allocation2 + $0x960] sm:$0xff]  ;;  %v296_v8 = vld [vmem:[#allocation2 + $0x868] sm:$0xff] }
  0xac   :  { %3264 = vmatprep.subr.bf16.mxu0 %v4442_v9  ;;  %3305 = vmatprep.subr.bf16.mxu1 %v4444_v10  ;;  %v328_v9 = vld [vmem:[#allocation2 + $0x968] sm:$0xff]  ;;  %v4445_v10 = vcombine.low %v231_v61, %v263_v62  ;;  %v4510_v12 = vcombine.high %v295_v5, %v327_v7 }
  0xad   :  { %v4512_v13 = vcombine.high %v296_v8, %v328_v9  ;;  %v4511_v19 = vcombine.low %v296_v8, %v328_v9 }
  0xaf   :  { %3265 = vmatpush1.bf16.msra.mxu0 %v4441_v15  ;;  %3306 = vmatpush1.bf16.msra.mxu1 %v4443_v16  ;;  %v391_v15 = vld [vmem:[#allocation2 + $0xb60] sm:$0xff]  ;;  %v360_v16 = vld [vmem:[#allocation2 + $0xa68] sm:$0xff] }
  0xb0   :  { %3266 = vmatprep.subr.bf16.mxu0 %v4506_v17  ;;  %3307 = vmatprep.subr.bf16.mxu1 %v4508_v18  ;;  %v392_v17 = vld [vmem:[#allocation2 + $0xb68] sm:$0xff]  ;;  %v4509_v18 = vcombine.low %v295_v5, %v327_v7  ;;  %v4574_v20 = vcombine.high %v359_v14, %v391_v15 }
  0xb1   :  { %v4576_v21 = vcombine.high %v360_v16, %v392_v17  ;;  %v4575_v27 = vcombine.low %v360_v16, %v392_v17 }
  0xb3   :  { %3267 = vmatpush1.bf16.msra.mxu0 %v4505_v23  ;;  %3308 = vmatpush1.bf16.msra.mxu1 %v4507_v24  ;;  %v455_v23 = vld [vmem:[#allocation2 + $0xd60] sm:$0x77]  ;;  %v424_v24 = vld [vmem:[#allocation2 + $0xc68] sm:$0xff] }
  0xb4   :  { %3268 = vmatprep.subr.bf16.mxu0 %v4570_v25  ;;  %3309 = vmatprep.subr.bf16.mxu1 %v4572_v26  ;;  %v456_v25 = vld [vmem:[#allocation2 + $0xd68] sm:$0x77]  ;;  %v4573_v26 = vcombine.low %v359_v14, %v391_v15  ;;  %v4638_v28 = vcombine.high %v423_v22, %v455_v23  ;;  %v4637_v29 = vcombine.low %v423_v22, %v455_v23 }
  0xb5   :  { %v4640_v30 = vcombine.high %v424_v24, %v456_v25 }
  0xb6   :  { %v2729_v36 = vsel %vm2655_vm0, %v4637_v29, 0  ;;  %v75_v29 = vld [vmem:[#allocation2 + $0x180] sm:$0xff] }
  0xb7   :  { %3269 = vmatpush1.bf16.msra.mxu0 %v4569_v31  ;;  %3310 = vmatpush1.bf16.msra.mxu1 %v4571_v32  ;;  %v4639_v31 = vcombine.low %v424_v24, %v456_v25  ;;  %v41_v32 = vld [vmem:[#allocation2 + $0x70] sm:$0xff] }
  0xb8   :  { %4697 = vmatprep.subr.msk.bf16.mxu0 %vm2655_vm0, %v4634_v33  ;;  %4699 = vmatprep.subr.msk.bf16.mxu1 %vm2655_vm0, %v4636_v35  ;;  %v73_v33 = vld [vmem:[#allocation2 + $0x170] sm:$0xff]  ;;  %v74_v35 = vld [vmem:[#allocation2 + $0x178] sm:$0xff] }
  0xb9   :  { %v4258_v37 = vcombine.high %v41_v32, %v73_v33  ;;  %v2735_v38 = vsel %vm2655_vm0, %v4639_v31, 0  ;;  %v4260_v39 = vcombine.high %v42_v34, %v74_v35  ;;  %v4259_v45 = vcombine.low %v42_v34, %v74_v35  ;;  %v76_v31 = vld [vmem:[#allocation2 + $0x188] sm:$0xff] }
  0xbb   :  { %3271 = vmatpush1.bf16.msra.mxu0 %v2717_v41  ;;  %3312 = vmatpush1.bf16.msra.mxu1 %v2723_v43  ;;  %v137_v41 = vld [vmem:[#allocation2 + $0x370] sm:$0xff]  ;;  %v138_v43 = vld [vmem:[#allocation2 + $0x378] sm:$0xff] }
  0xbc   :  { %3340 = vmatprep.subr.bf16.mxu0 %v4254_v42  ;;  %3381 = vmatprep.subr.bf16.mxu1 %v4256_v44  ;;  %v106_v42 = vld [vmem:[#allocation2 + $0x278] sm:$0xff]  ;;  %v4257_v44 = vcombine.low %v41_v32, %v73_v33  ;;  %v4322_v46 = vcombine.high %v105_v40, %v137_v41  ;;  %v4321_v53 = vcombine.low %v105_v40, %v137_v41 }
  0xbd   :  { %v4324_v47 = vcombine.high %v106_v42, %v138_v43  ;;  %v4323_v54 = vcombine.low %v106_v42, %v138_v43 }
  0xbe   :  { %4698 = vmatmul.mubr.msk.bf16.vlgmr.msra.gmra.mrb[20].mxu0 %vm2651_vm1, %v4811_v6  ;;  %4700 = vmatmul.mubr.msk.bf16.vlgmr.msra.gmra.mrb[20].mxu1 %vm2651_vm1, %v4811_v6  ;;  %v4383_v6 = vcombine.low %v168_v55, %v200_v56 }
  0xbf   :  { %3341 = vmatpush1.bf16.msra.mxu0 %v4253_v49  ;;  %3382 = vmatpush1.bf16.msra.mxu1 %v4255_v50  ;;  %v201_v49 = vld [vmem:[#allocation2 + $0x570] sm:$0xff]  ;;  %v4876_v50 = vld [vmem:[%s5169_s0] sm:$0xf] }
  0xc0   :  { %3342 = vmatprep.subr.bf16.mxu0 %v4318_v51  ;;  %3383 = vmatprep.subr.bf16.mxu1 %v4320_v52  ;;  %v170_v51 = vld [vmem:[#allocation2 + $0x478] sm:$0xff]  ;;  %v4386_v55 = vcombine.high %v169_v48, %v201_v49  ;;  %v4385_v61 = vcombine.low %v169_v48, %v201_v49 }
  0xc1   :  { %3372 = vmatprep.mubr.bf16.mxu0 %v4774_v0  ;;  %3413 = vmatprep.mubr.bf16.mxu1 %v4774_v0  ;;  %v202_v52 = vld [vmem:[#allocation2 + $0x578] sm:$0xff] }
  0xc2   :  { %v4388_v56 = vcombine.high %v170_v51, %v202_v52  ;;  %v4387_v62 = vcombine.low %v170_v51, %v202_v52 }
  0xc3   :  { %3343 = vmatpush1.bf16.msra.mxu0 %v4317_v57  ;;  %3384 = vmatpush1.bf16.msra.mxu1 %v4319_v58  ;;  %v233_v57 = vld [vmem:[#allocation2 + $0x670] sm:$0xff] }
  0xc4   :  { %3344 = vmatprep.subr.bf16.mxu0 %v4382_v59  ;;  %3385 = vmatprep.subr.bf16.mxu1 %v4384_v60  ;;  %v265_v58 = vld [vmem:[#allocation2 + $0x770] sm:$0xff]  ;;  %v234_v59 = vld [vmem:[#allocation2 + $0x678] sm:$0xff] }
  0xc5   :  { %v266_v60 = vld [vmem:[#allocation2 + $0x778] sm:$0xff]  ;;  %v4450_v63 = vcombine.high %v233_v57, %v265_v58  ;;  %v4449_v5 = vcombine.low %v233_v57, %v265_v58 }
  0xc6   :  { %v4452_v1 = vcombine.high %v234_v59, %v266_v60  ;;  %v4451_v7 = vcombine.low %v234_v59, %v266_v60 }
  0xc7   :  { %3345 = vmatpush1.bf16.msra.mxu0 %v4381_v2  ;;  %3386 = vmatpush1.bf16.msra.mxu1 %v4383_v6  ;;  %v297_v2 = vld [vmem:[#allocation2 + $0x870] sm:$0xff] }
  0xc8   :  { %3346 = vmatprep.subr.bf16.mxu0 %v4446_v3  ;;  %3387 = vmatprep.subr.bf16.mxu1 %v4448_v4  ;;  %v329_v6 = vld [vmem:[#allocation2 + $0x970] sm:$0xff]  ;;  %v298_v3 = vld [vmem:[#allocation2 + $0x878] sm:$0xff] }
  0xc9   :  { %v330_v4 = vld [vmem:[#allocation2 + $0x978] sm:$0xff]  ;;  %v4514_v8 = vcombine.high %v297_v2, %v329_v6  ;;  %v4513_v14 = vcombine.low %v297_v2, %v329_v6 }
  0xca   :  { %v4516_v9 = vcombine.high %v298_v3, %v330_v4  ;;  %v4515_v15 = vcombine.low %v298_v3, %v330_v4 }
  0xcb   :  { %3347 = vmatpush1.bf16.msra.mxu0 %v4445_v10  ;;  %3388 = vmatpush1.bf16.msra.mxu1 %v4447_v11  ;;  %v361_v10 = vld [vmem:[#allocation2 + $0xa70] sm:$0xff] }
  0xcc   :  { %3348 = vmatprep.subr.bf16.mxu0 %v4510_v12  ;;  %3389 = vmatprep.subr.bf16.mxu1 %v4512_v13  ;;  %v393_v11 = vld [vmem:[#allocation2 + $0xb70] sm:$0xff]  ;;  %v362_v12 = vld [vmem:[#allocation2 + $0xa78] sm:$0xff] }
  0xcd   :  { %v394_v13 = vld [vmem:[#allocation2 + $0xb78] sm:$0xff]  ;;  %v4578_v16 = vcombine.high %v361_v10, %v393_v11  ;;  %v4577_v22 = vcombine.low %v361_v10, %v393_v11 }
  0xce   :  { %v4580_v17 = vcombine.high %v362_v12, %v394_v13  ;;  %v4579_v23 = vcombine.low %v362_v12, %v394_v13 }
  0xcf   :  { %3349 = vmatpush1.bf16.msra.mxu0 %v4509_v18  ;;  %3390 = vmatpush1.bf16.msra.mxu1 %v4511_v19  ;;  %v425_v18 = vld [vmem:[#allocation2 + $0xc70] sm:$0xff] }
  0xd0   :  { %3350 = vmatprep.subr.bf16.mxu0 %v4574_v20  ;;  %3391 = vmatprep.subr.bf16.mxu1 %v4576_v21  ;;  %v457_v19 = vld [vmem:[#allocation2 + $0xd70] sm:$0x77]  ;;  %v426_v20 = vld [vmem:[#allocation2 + $0xc78] sm:$0xff] }
  0xd1   :  { %v458_v21 = vld [vmem:[#allocation2 + $0xd78] sm:$0x77]  ;;  %v4642_v24 = vcombine.high %v425_v18, %v457_v19  ;;  %v4641_v25 = vcombine.low %v425_v18, %v457_v19  ;;  %v428_v19 = vld [vmem:[#allocation2 + $0xc88] sm:$0xff] }
  0xd3   :  { %3351 = vmatpush1.bf16.msra.mxu0 %v4573_v26  ;;  %3392 = vmatpush1.bf16.msra.mxu1 %v4575_v27  ;;  %v4644_v26 = vcombine.high %v426_v20, %v458_v21  ;;  %v4643_v27 = vcombine.low %v426_v20, %v458_v21  ;;  %v2741_v32 = vsel %vm2655_vm0, %v4641_v25, 0  ;;  %v460_v20 = vld [vmem:[#allocation2 + $0xd88] sm:$0x77] }
  0xd4   :  { %4701 = vmatprep.subr.msk.bf16.mxu0 %vm2655_vm0, %v4638_v28  ;;  %4703 = vmatprep.subr.msk.bf16.mxu1 %vm2655_vm0, %v4640_v30  ;;  %v43_v28 = vld [vmem:[#allocation2 + $0x80] sm:$0xff]  ;;  %v44_v30 = vld [vmem:[#allocation2 + $0x88] sm:$0xff] }
  0xd5   :  { %v4262_v33 = vcombine.high %v43_v28, %v75_v29  ;;  %v2747_v34 = vsel %vm2655_vm0, %v4643_v27, 0  ;;  %v4264_v35 = vcombine.high %v44_v30, %v76_v31  ;;  %v4261_v40 = vcombine.low %v43_v28, %v75_v29 }
  0xd6   :  { %v4263_v41 = vcombine.low %v44_v30, %v76_v31  ;;  %v4648_v30 = vcombine.high %v428_v19, %v460_v20  ;;  %v4647_v31 = vcombine.low %v428_v19, %v460_v20  ;;  %v429_v19 = vld [vmem:[#allocation2 + $0xc90] sm:$0xff] }
  0xd7   :  { %3353 = vmatpush1.bf16.msra.mxu0 %v2729_v36  ;;  %3394 = vmatpush1.bf16.msra.mxu1 %v2735_v38  ;;  %v107_v36 = vld [vmem:[#allocation2 + $0x280] sm:$0xff]  ;;  %v108_v38 = vld [vmem:[#allocation2 + $0x288] sm:$0xff]  ;;  %v461_v20 = vld [vmem:[#allocation2 + $0xd90] sm:$0x77] }
  0xd8   :  { %3422 = vmatprep.subr.bf16.mxu0 %v4258_v37  ;;  %3463 = vmatprep.subr.bf16.mxu1 %v4260_v39  ;;  %v139_v37 = vld [vmem:[#allocation2 + $0x380] sm:$0xff]  ;;  %v140_v39 = vld [vmem:[#allocation2 + $0x388] sm:$0xff] }
  0xd9   :  { %v4326_v42 = vcombine.high %v107_v36, %v139_v37  ;;  %v4328_v43 = vcombine.high %v108_v38, %v140_v39  ;;  %v4325_v48 = vcombine.low %v107_v36, %v139_v37  ;;  %v4327_v49 = vcombine.low %v108_v38, %v140_v39 }
  0xda   :  { %4702 = vmatmul.mubr.msk.bf16.vlgmr.msra.gmra.mrb[24].mxu0 %vm2651_vm1, %v4876_v50  ;;  %4704 = vmatmul.mubr.msk.bf16.vlgmr.msra.gmra.mrb[24].mxu1 %vm2651_vm1, %v4876_v50  ;;  %v2759_v38 = vsel %vm2655_vm0, %v4647_v31, 0  ;;  %v4650_v31 = vcombine.high %v429_v19, %v461_v20 }
  0xdb   :  { %3423 = vmatpush1.bf16.msra.mxu0 %v4257_v44  ;;  %3464 = vmatpush1.bf16.msra.mxu1 %v4259_v45  ;;  %v171_v44 = vld [vmem:[#allocation2 + $0x480] sm:$0xff] }
  0xdc   :  { %3424 = vmatprep.subr.bf16.mxu0 %v4322_v46  ;;  %3465 = vmatprep.subr.bf16.mxu1 %v4324_v47  ;;  %v203_v45 = vld [vmem:[#allocation2 + $0x580] sm:$0xff]  ;;  %v172_v46 = vld [vmem:[#allocation2 + $0x488] sm:$0xff] }
  0xdd   :  { %3454 = vmatprep.mubr.bf16.mxu0 %v4774_v0  ;;  %3495 = vmatprep.mubr.bf16.mxu1 %v4774_v0  ;;  %v204_v47 = vld [vmem:[#allocation2 + $0x588] sm:$0xff]  ;;  %v4390_v51 = vcombine.high %v171_v44, %v203_v45  ;;  %v4389_v57 = vcombine.low %v171_v44, %v203_v45 }
  0xde   :  { %v4392_v52 = vcombine.high %v172_v46, %v204_v47  ;;  %v4391_v58 = vcombine.low %v172_v46, %v204_v47 }
  0xdf   :  { %3425 = vmatpush1.bf16.msra.mxu0 %v4321_v53  ;;  %3466 = vmatpush1.bf16.msra.mxu1 %v4323_v54  ;;  %v235_v53 = vld [vmem:[#allocation2 + $0x680] sm:$0xff] }
  0xe0   :  { %3426 = vmatprep.subr.bf16.mxu0 %v4386_v55  ;;  %3467 = vmatprep.subr.bf16.mxu1 %v4388_v56  ;;  %v267_v54 = vld [vmem:[#allocation2 + $0x780] sm:$0xff]  ;;  %v236_v55 = vld [vmem:[#allocation2 + $0x688] sm:$0xff] }
  0xe1   :  { %v268_v56 = vld [vmem:[#allocation2 + $0x788] sm:$0xff]  ;;  %v4454_v59 = vcombine.high %v235_v53, %v267_v54  ;;  %v4453_v2 = vcombine.low %v235_v53, %v267_v54 }
  0xe2   :  { %v4456_v60 = vcombine.high %v236_v55, %v268_v56  ;;  %v4455_v6 = vcombine.low %v236_v55, %v268_v56 }
  0xe3   :  { %3427 = vmatpush1.bf16.msra.mxu0 %v4385_v61  ;;  %3468 = vmatpush1.bf16.msra.mxu1 %v4387_v62  ;;  %v299_v61 = vld [vmem:[#allocation2 + $0x880] sm:$0xff] }
  0xe4   :  { %3428 = vmatprep.subr.bf16.mxu0 %v4450_v63  ;;  %3469 = vmatprep.subr.bf16.mxu1 %v4452_v1  ;;  %v331_v62 = vld [vmem:[#allocation2 + $0x980] sm:$0xff]  ;;  %v300_v63 = vld [vmem:[#allocation2 + $0x888] sm:$0xff] }
  0xe5   :  { %v332_v1 = vld [vmem:[#allocation2 + $0x988] sm:$0xff]  ;;  %v4518_v3 = vcombine.high %v299_v61, %v331_v62  ;;  %v4517_v10 = vcombine.low %v299_v61, %v331_v62 }
  0xe6   :  { %v4520_v4 = vcombine.high %v300_v63, %v332_v1  ;;  %v4519_v11 = vcombine.low %v300_v63, %v332_v1 }
  0xe7   :  { %3429 = vmatpush1.bf16.msra.mxu0 %v4449_v5  ;;  %3470 = vmatpush1.bf16.msra.mxu1 %v4451_v7  ;;  %v363_v5 = vld [vmem:[#allocation2 + $0xa80] sm:$0xff] }
  0xe8   :  { %3430 = vmatprep.subr.bf16.mxu0 %v4514_v8  ;;  %3471 = vmatprep.subr.bf16.mxu1 %v4516_v9  ;;  %v395_v7 = vld [vmem:[#allocation2 + $0xb80] sm:$0xff]  ;;  %v364_v8 = vld [vmem:[#allocation2 + $0xa88] sm:$0xff] }
  0xe9   :  { %v396_v9 = vld [vmem:[#allocation2 + $0xb88] sm:$0xff]  ;;  %v4582_v12 = vcombine.high %v363_v5, %v395_v7 }
  0xeb   :  { %3431 = vmatpush1.bf16.msra.mxu0 %v4513_v14  ;;  %3472 = vmatpush1.bf16.msra.mxu1 %v4515_v15  ;;  %v4584_v14 = vcombine.high %v364_v8, %v396_v9  ;;  %v427_v15 = vld [vmem:[#allocation2 + $0xc80] sm:$0xff] }
  0xec   :  { %3432 = vmatprep.subr.bf16.mxu0 %v4578_v16  ;;  %3473 = vmatprep.subr.bf16.mxu1 %v4580_v17  ;;  %v459_v16 = vld [vmem:[#allocation2 + $0xd80] sm:$0x77] }
  0xed   :  { %v4646_v27 = vcombine.high %v427_v15, %v459_v16  ;;  %v4645_v28 = vcombine.low %v427_v15, %v459_v16 }
  0xef   :  { %3433 = vmatpush1.bf16.msra.mxu0 %v4577_v22  ;;  %3474 = vmatpush1.bf16.msra.mxu1 %v4579_v23  ;;  %v4581_v23 = vcombine.low %v363_v5, %v395_v7  ;;  %v2753_v36 = vsel %vm2655_vm0, %v4645_v28, 0 }
  0xf0   :  { %4705 = vmatprep.subr.msk.bf16.mxu0 %vm2655_vm0, %v4642_v24  ;;  %4707 = vmatprep.subr.msk.bf16.mxu1 %vm2655_vm0, %v4644_v26  ;;  %v4583_v26 = vcombine.low %v364_v8, %v396_v9 }
  0xf3   :  { %3435 = vmatpush1.bf16.msra.mxu0 %v2741_v32  ;;  %3476 = vmatpush1.bf16.msra.mxu1 %v2747_v34  ;;  %v45_v32 = vld [vmem:[#allocation2 + $0x90] sm:$0xff]  ;;  %v46_v34 = vld [vmem:[#allocation2 + $0x98] sm:$0xff] }
  0xf4   :  { %3504 = vmatprep.subr.bf16.mxu0 %v4262_v33  ;;  %3545 = vmatprep.subr.bf16.mxu1 %v4264_v35  ;;  %v77_v33 = vld [vmem:[#allocation2 + $0x190] sm:$0xff]  ;;  %v78_v35 = vld [vmem:[#allocation2 + $0x198] sm:$0xff] }
  0xf5   :  { %v4266_v37 = vcombine.high %v45_v32, %v77_v33  ;;  %v4268_v39 = vcombine.high %v46_v34, %v78_v35  ;;  %v4265_v44 = vcombine.low %v45_v32, %v77_v33  ;;  %v4267_v45 = vcombine.low %v46_v34, %v78_v35 }
  0xf6   :  { %4706 = vmatmul.mubr.msk.bf16.vlgmr.msra.gmra.mrb[28].mxu0 %vm2651_vm1, %v4876_v50  ;;  %4708 = vmatmul.mubr.msk.bf16.vlgmr.msra.gmra.mrb[28].mxu1 %vm2651_vm1, %v4876_v50  ;;  %v4649_v32 = vcombine.low %v429_v19, %v461_v20 }
  0xf7   :  { %3505 = vmatpush1.bf16.msra.mxu0 %v4261_v40  ;;  %3546 = vmatpush1.bf16.msra.mxu1 %v4263_v41  ;;  %v109_v40 = vld [vmem:[#allocation2 + $0x290] sm:$0xff] }
  0xf8   :  { %3506 = vmatprep.subr.bf16.mxu0 %v4326_v42  ;;  %3547 = vmatprep.subr.bf16.mxu1 %v4328_v43  ;;  %v141_v41 = vld [vmem:[#allocation2 + $0x390] sm:$0xff]  ;;  %v110_v42 = vld [vmem:[#allocation2 + $0x298] sm:$0xff] }
  0xf9   :  { %3536 = vmatprep.mubr.bf16.mxu0 %v4774_v0  ;;  %3577 = vmatprep.mubr.bf16.mxu1 %v4774_v0  ;;  %v142_v43 = vld [vmem:[#allocation2 + $0x398] sm:$0xff]  ;;  %v4330_v46 = vcombine.high %v109_v40, %v141_v41  ;;  %v4329_v53 = vcombine.low %v109_v40, %v141_v41  ;;  %v2765_v40 = vsel %vm2655_vm0, %v4649_v32, 0 }
  0xfa   :  { %v4332_v47 = vcombine.high %v110_v42, %v142_v43  ;;  %v4331_v54 = vcombine.low %v110_v42, %v142_v43 }
  0xfb   :  { %3507 = vmatpush1.bf16.msra.mxu0 %v4325_v48  ;;  %3548 = vmatpush1.bf16.msra.mxu1 %v4327_v49  ;;  %v173_v48 = vld [vmem:[#allocation2 + $0x490] sm:$0xff] }
  0xfc   :  { %3508 = vmatprep.subr.bf16.mxu0 %v4390_v51  ;;  %3549 = vmatprep.subr.bf16.mxu1 %v4392_v52  ;;  %v205_v49 = vld [vmem:[#allocation2 + $0x590] sm:$0xff]  ;;  %v174_v51 = vld [vmem:[#allocation2 + $0x498] sm:$0xff] }
  0xfd   :  { %v206_v52 = vld [vmem:[#allocation2 + $0x598] sm:$0xff]  ;;  %v4394_v55 = vcombine.high %v173_v48, %v205_v49  ;;  %v4393_v61 = vcombine.low %v173_v48, %v205_v49 }
  0xfe   :  { %v4396_v56 = vcombine.high %v174_v51, %v206_v52  ;;  %v4395_v62 = vcombine.low %v174_v51, %v206_v52 }
  0xff   :  { %3509 = vmatpush1.bf16.msra.mxu0 %v4389_v57  ;;  %3550 = vmatpush1.bf16.msra.mxu1 %v4391_v58  ;;  %v237_v57 = vld [vmem:[#allocation2 + $0x690] sm:$0xff] }
 0x100   :  { %3510 = vmatprep.subr.bf16.mxu0 %v4454_v59  ;;  %3551 = vmatprep.subr.bf16.mxu1 %v4456_v60  ;;  %v269_v58 = vld [vmem:[#allocation2 + $0x790] sm:$0xff]  ;;  %v238_v59 = vld [vmem:[#allocation2 + $0x698] sm:$0xff] }
 0x101   :  { %v270_v60 = vld [vmem:[#allocation2 + $0x798] sm:$0xff]  ;;  %v4458_v63 = vcombine.high %v237_v57, %v269_v58  ;;  %v4457_v5 = vcombine.low %v237_v57, %v269_v58 }
 0x102   :  { %v4460_v1 = vcombine.high %v238_v59, %v270_v60  ;;  %v4459_v7 = vcombine.low %v238_v59, %v270_v60 }
 0x103   :  { %3511 = vmatpush1.bf16.msra.mxu0 %v4453_v2  ;;  %3552 = vmatpush1.bf16.msra.mxu1 %v4455_v6  ;;  %v301_v2 = vld [vmem:[#allocation2 + $0x890] sm:$0xff] }
 0x104   :  { %3512 = vmatprep.subr.bf16.mxu0 %v4518_v3  ;;  %3553 = vmatprep.subr.bf16.mxu1 %v4520_v4  ;;  %v333_v6 = vld [vmem:[#allocation2 + $0x990] sm:$0xff]  ;;  %v302_v3 = vld [vmem:[#allocation2 + $0x898] sm:$0xff] }
 0x105   :  { %v2882_v13 = vpop.f32.mrb[0].mxu0  ;;  %v2923_v17 = vpop.f32.mrb[0].mxu1  ;;  %v334_v4 = vld [vmem:[#allocation2 + $0x998] sm:$0xff]  ;;  %v4522_v8 = vcombine.high %v301_v2, %v333_v6 }
 0x106   :  { %4160 = vst [vmem:[%s5171_s2] sm:$0xff] %v2882_v13  ;;  %v2884_v18 = vpop.f32.mrb[1].mxu0  ;;  %4162 = vst [vmem:[%s5171_s2 + $0x10] sm:$0xff] %v2923_v17  ;;  %v2925_v21 = vpop.f32.mrb[1].mxu1  ;;  %v4524_v9 = vcombine.high %v302_v3, %v334_v4  ;;  %v398_v13 = vld [vmem:[#allocation2 + $0xb98] sm:$0xff]  ;;  %v4523_v15 = vcombine.low %v302_v3, %v334_v4 }
 0x107   :  { %4161 = vst [vmem:[%s5171_s2 + $0x8] sm:$0xff] %v2884_v18  ;;  %v2886_v22 = vpop.f32.mrb[2].mxu0  ;;  %3513 = vmatpush1.bf16.msra.mxu0 %v4517_v10  ;;  %4163 = vst [vmem:[%s5171_s2 + $0x18] sm:$0xff] %v2925_v21  ;;  %v2927_v24 = vpop.f32.mrb[2].mxu1  ;;  %3554 = vmatpush1.bf16.msra.mxu1 %v4519_v11  ;;  %v365_v10 = vld [vmem:[#allocation2 + $0xa90] sm:$0xff] }
 0x108   :  { %v2887_v25 = vpop.f32.mrb[3].mxu0  ;;  %3514 = vmatprep.subr.bf16.mxu0 %v4582_v12  ;;  %v2928_v29 = vpop.f32.mrb[3].mxu1  ;;  %3555 = vmatprep.subr.bf16.mxu1 %v4584_v14  ;;  %v397_v11 = vld [vmem:[#allocation2 + $0xb90] sm:$0xff]  ;;  %v366_v12 = vld [vmem:[#allocation2 + $0xa98] sm:$0xff]  ;;  %v4521_v14 = vcombine.low %v301_v2, %v333_v6 }
 0x109   :  { %v4586_v16 = vcombine.high %v365_v10, %v397_v11  ;;  %v4588_v18 = vcombine.high %v366_v12, %v398_v13  ;;  %v462_v24 = vld [vmem:[#allocation2 + $0xd98] sm:$0x77] }
 0x10b   :  { %3515 = vmatpush1.bf16.msra.mxu0 %v4581_v23  ;;  %3556 = vmatpush1.bf16.msra.mxu1 %v4583_v26  ;;  %v430_v23 = vld [vmem:[#allocation2 + $0xc98] sm:$0xff] }
 0x10c   :  { %4709 = vmatprep.subr.msk.bf16.mxu0 %vm2655_vm0, %v4646_v27  ;;  %4711 = vmatprep.subr.msk.bf16.mxu1 %vm2655_vm0, %v4648_v30  ;;  %v4585_v27 = vcombine.low %v365_v10, %v397_v11  ;;  %v4587_v30 = vcombine.low %v366_v12, %v398_v13  ;;  %v4652_v34 = vcombine.high %v430_v23, %v462_v24 }
 0x10d   :  { %v4651_v35 = vcombine.low %v430_v23, %v462_v24  ;;  %v431_v23 = vld [vmem:[#allocation2 + $0xca0] sm:$0xff] }
 0x10e   :  { %v463_v24 = vld [vmem:[#allocation2 + $0xda0] sm:$0x77] }
 0x10f   :  { %3517 = vmatpush1.bf16.msra.mxu0 %v2753_v36  ;;  %3558 = vmatpush1.bf16.msra.mxu1 %v2759_v38  ;;  %v47_v36 = vld [vmem:[#allocation2 + $0xa0] sm:$0xff]  ;;  %v48_v38 = vld [vmem:[#allocation2 + $0xa8] sm:$0xff]  ;;  %v2771_v42 = vsel %vm2655_vm0, %v4651_v35, 0  ;;  %v4654_v35 = vcombine.high %v431_v23, %v463_v24 }
 0x110   :  { %3586 = vmatprep.subr.bf16.mxu0 %v4266_v37  ;;  %3627 = vmatprep.subr.bf16.mxu1 %v4268_v39  ;;  %v79_v37 = vld [vmem:[#allocation2 + $0x1a0] sm:$0xff]  ;;  %v80_v39 = vld [vmem:[#allocation2 + $0x1a8] sm:$0xff] }
 0x111   :  { %v4270_v41 = vcombine.high %v47_v36, %v79_v37  ;;  %v4272_v43 = vcombine.high %v48_v38, %v80_v39  ;;  %v4269_v48 = vcombine.low %v47_v36, %v79_v37  ;;  %v4271_v49 = vcombine.low %v48_v38, %v80_v39 }
 0x112   :  { %4710 = vmatmul.mubr.msk.bf16.vlgmr.msra.gmra.mrb[32].mxu0 %vm2651_vm1, %v4876_v50  ;;  %4712 = vmatmul.mubr.msk.bf16.vlgmr.msra.gmra.mrb[32].mxu1 %vm2651_vm1, %v4876_v50  ;;  %v4653_v36 = vcombine.low %v431_v23, %v463_v24 }
 0x113   :  { %3587 = vmatpush1.bf16.msra.mxu0 %v4265_v44  ;;  %3628 = vmatpush1.bf16.msra.mxu1 %v4267_v45  ;;  %v111_v44 = vld [vmem:[#allocation2 + $0x2a0] sm:$0xff] }
 0x114   :  { %3588 = vmatprep.subr.bf16.mxu0 %v4330_v46  ;;  %3629 = vmatprep.subr.bf16.mxu1 %v4332_v47  ;;  %v143_v45 = vld [vmem:[#allocation2 + $0x3a0] sm:$0xff]  ;;  %v112_v46 = vld [vmem:[#allocation2 + $0x2a8] sm:$0xff] }
 0x115   :  { %3618 = vmatprep.mubr.bf16.mxu0 %v4774_v0  ;;  %3659 = vmatprep.mubr.bf16.mxu1 %v4774_v0  ;;  %v144_v47 = vld [vmem:[#allocation2 + $0x3a8] sm:$0xff]  ;;  %v4334_v51 = vcombine.high %v111_v44, %v143_v45  ;;  %v4333_v57 = vcombine.low %v111_v44, %v143_v45  ;;  %v2777_v44 = vsel %vm2655_vm0, %v4653_v36, 0 }
 0x116   :  { %v4336_v52 = vcombine.high %v112_v46, %v144_v47  ;;  %v4335_v58 = vcombine.low %v112_v46, %v144_v47 }
 0x117   :  { %3589 = vmatpush1.bf16.msra.mxu0 %v4329_v53  ;;  %3630 = vmatpush1.bf16.msra.mxu1 %v4331_v54  ;;  %v175_v53 = vld [vmem:[#allocation2 + $0x4a0] sm:$0xff] }
 0x118   :  { %3590 = vmatprep.subr.bf16.mxu0 %v4394_v55  ;;  %3631 = vmatprep.subr.bf16.mxu1 %v4396_v56  ;;  %v207_v54 = vld [vmem:[#allocation2 + $0x5a0] sm:$0xff]  ;;  %v176_v55 = vld [vmem:[#allocation2 + $0x4a8] sm:$0xff] }
 0x119   :  { %v208_v56 = vld [vmem:[#allocation2 + $0x5a8] sm:$0xff]  ;;  %v4398_v59 = vcombine.high %v175_v53, %v207_v54  ;;  %v4397_v2 = vcombine.low %v175_v53, %v207_v54 }
 0x11a   :  { %v4400_v60 = vcombine.high %v176_v55, %v208_v56  ;;  %v4399_v6 = vcombine.low %v176_v55, %v208_v56 }
 0x11b   :  { %3591 = vmatpush1.bf16.msra.mxu0 %v4393_v61  ;;  %3632 = vmatpush1.bf16.msra.mxu1 %v4395_v62  ;;  %v239_v61 = vld [vmem:[#allocation2 + $0x6a0] sm:$0xff] }
 0x11c   :  { %3592 = vmatprep.subr.bf16.mxu0 %v4458_v63  ;;  %3633 = vmatprep.subr.bf16.mxu1 %v4460_v1  ;;  %v271_v62 = vld [vmem:[#allocation2 + $0x7a0] sm:$0xff]  ;;  %v240_v63 = vld [vmem:[#allocation2 + $0x6a8] sm:$0xff] }
 0x11d   :  { %v272_v1 = vld [vmem:[#allocation2 + $0x7a8] sm:$0xff]  ;;  %v4462_v3 = vcombine.high %v239_v61, %v271_v62  ;;  %v4461_v10 = vcombine.low %v239_v61, %v271_v62 }
 0x11e   :  { %v4464_v4 = vcombine.high %v240_v63, %v272_v1  ;;  %v4463_v11 = vcombine.low %v240_v63, %v272_v1 }
 0x11f   :  { %3593 = vmatpush1.bf16.msra.mxu0 %v4457_v5  ;;  %3634 = vmatpush1.bf16.msra.mxu1 %v4459_v7  ;;  %v303_v5 = vld [vmem:[#allocation2 + $0x8a0] sm:$0xff] }
 0x120   :  { %3594 = vmatprep.subr.bf16.mxu0 %v4522_v8  ;;  %3635 = vmatprep.subr.bf16.mxu1 %v4524_v9  ;;  %v335_v7 = vld [vmem:[#allocation2 + $0x9a0] sm:$0xff]  ;;  %v304_v8 = vld [vmem:[#allocation2 + $0x8a8] sm:$0xff] }
 0x121   :  { %v2964_v17 = vpop.f32.mrb[4].mxu0  ;;  %v3005_v21 = vpop.f32.mrb[4].mxu1  ;;  %v336_v9 = vld [vmem:[#allocation2 + $0x9a8] sm:$0xff]  ;;  %v4526_v12 = vcombine.high %v303_v5, %v335_v7 }
 0x122   :  { %4164 = vst [vmem:[%s5171_s2 + $0x20] sm:$0xff] %v2964_v17  ;;  %v2966_v22 = vpop.f32.mrb[5].mxu0  ;;  %4166 = vst [vmem:[%s5171_s2 + $0x30] sm:$0xff] %v3005_v21  ;;  %v3007_v25 = vpop.f32.mrb[5].mxu1  ;;  %v4528_v13 = vcombine.high %v304_v8, %v336_v9  ;;  %v400_v17 = vld [vmem:[#allocation2 + $0xba8] sm:$0xff]  ;;  %v4527_v19 = vcombine.low %v304_v8, %v336_v9 }
 0x123   :  { %4165 = vst [vmem:[%s5171_s2 + $0x28] sm:$0xff] %v2966_v22  ;;  %v2968_v26 = vpop.f32.mrb[6].mxu0  ;;  %3595 = vmatpush1.bf16.msra.mxu0 %v4521_v14  ;;  %4167 = vst [vmem:[%s5171_s2 + $0x38] sm:$0xff] %v3007_v25  ;;  %v3009_v28 = vpop.f32.mrb[6].mxu1  ;;  %3636 = vmatpush1.bf16.msra.mxu1 %v4523_v15  ;;  %v367_v14 = vld [vmem:[#allocation2 + $0xaa0] sm:$0xff] }
 0x124   :  { %v2969_v29 = vpop.f32.mrb[7].mxu0  ;;  %3596 = vmatprep.subr.bf16.mxu0 %v4586_v16  ;;  %v3010_v33 = vpop.f32.mrb[7].mxu1  ;;  %3637 = vmatprep.subr.bf16.mxu1 %v4588_v18  ;;  %v399_v15 = vld [vmem:[#allocation2 + $0xba0] sm:$0xff]  ;;  %v368_v16 = vld [vmem:[#allocation2 + $0xaa8] sm:$0xff]  ;;  %v4525_v18 = vcombine.low %v303_v5, %v335_v7 }
 0x125   :  { %v4590_v20 = vcombine.high %v367_v14, %v399_v15  ;;  %v4592_v22 = vcombine.high %v368_v16, %v400_v17  ;;  %v464_v28 = vld [vmem:[#allocation2 + $0xda8] sm:$0x77] }
 0x127   :  { %3597 = vmatpush1.bf16.msra.mxu0 %v4585_v27  ;;  %3638 = vmatpush1.bf16.msra.mxu1 %v4587_v30  ;;  %v432_v27 = vld [vmem:[#allocation2 + $0xca8] sm:$0xff] }
 0x128   :  { %4713 = vmatprep.subr.msk.bf16.mxu0 %vm2655_vm0, %v4650_v31  ;;  %4715 = vmatprep.subr.msk.bf16.mxu1 %vm2655_vm0, %v4652_v34  ;;  %v4589_v31 = vcombine.low %v367_v14, %v399_v15  ;;  %v4591_v34 = vcombine.low %v368_v16, %v400_v17  ;;  %v4656_v38 = vcombine.high %v432_v27, %v464_v28 }
 0x129   :  { %v4655_v39 = vcombine.low %v432_v27, %v464_v28  ;;  %v433_v27 = vld [vmem:[#allocation2 + $0xcb0] sm:$0xff] }
 0x12a   :  { %v465_v28 = vld [vmem:[#allocation2 + $0xdb0] sm:$0x77] }
 0x12b   :  { %3599 = vmatpush1.bf16.msra.mxu0 %v2765_v40  ;;  %3640 = vmatpush1.bf16.msra.mxu1 %v2771_v42  ;;  %v49_v40 = vld [vmem:[#allocation2 + $0xb0] sm:$0xff]  ;;  %v50_v42 = vld [vmem:[#allocation2 + $0xb8] sm:$0xff]  ;;  %v2783_v46 = vsel %vm2655_vm0, %v4655_v39, 0  ;;  %v4658_v39 = vcombine.high %v433_v27, %v465_v28 }
 0x12c   :  { %3668 = vmatprep.subr.bf16.mxu0 %v4270_v41  ;;  %3709 = vmatprep.subr.bf16.mxu1 %v4272_v43  ;;  %v81_v41 = vld [vmem:[#allocation2 + $0x1b0] sm:$0xff]  ;;  %v82_v43 = vld [vmem:[#allocation2 + $0x1b8] sm:$0xff] }
 0x12d   :  { %v4274_v45 = vcombine.high %v49_v40, %v81_v41  ;;  %v4276_v47 = vcombine.high %v50_v42, %v82_v43  ;;  %v4273_v53 = vcombine.low %v49_v40, %v81_v41  ;;  %v4275_v54 = vcombine.low %v50_v42, %v82_v43 }
 0x12e   :  { %4714 = vmatmul.mubr.msk.bf16.vlgmr.msra.gmra.mrb[36].mxu0 %vm2651_vm1, %v4876_v50  ;;  %4716 = vmatmul.mubr.msk.bf16.vlgmr.msra.gmra.mrb[36].mxu1 %vm2651_vm1, %v4876_v50  ;;  %v4657_v40 = vcombine.low %v433_v27, %v465_v28 }
 0x12f   :  { %3669 = vmatpush1.bf16.msra.mxu0 %v4269_v48  ;;  %3710 = vmatpush1.bf16.msra.mxu1 %v4271_v49  ;;  %v113_v48 = vld [vmem:[#allocation2 + $0x2b0] sm:$0xff] }
 0x130   :  { %3670 = vmatprep.subr.bf16.mxu0 %v4334_v51  ;;  %3711 = vmatprep.subr.bf16.mxu1 %v4336_v52  ;;  %v145_v49 = vld [vmem:[#allocation2 + $0x3b0] sm:$0xff]  ;;  %v114_v51 = vld [vmem:[#allocation2 + $0x2b8] sm:$0xff] }
 0x131   :  { %3700 = vmatprep.mubr.bf16.mxu0 %v4774_v0  ;;  %3741 = vmatprep.mubr.bf16.mxu1 %v4774_v0  ;;  %v146_v52 = vld [vmem:[#allocation2 + $0x3b8] sm:$0xff]  ;;  %v4338_v55 = vcombine.high %v113_v48, %v145_v49  ;;  %v4337_v61 = vcombine.low %v113_v48, %v145_v49  ;;  %v2789_v48 = vsel %vm2655_vm0, %v4657_v40, 0 }
 0x132   :  { %v4340_v56 = vcombine.high %v114_v51, %v146_v52  ;;  %v4339_v62 = vcombine.low %v114_v51, %v146_v52 }
 0x133   :  { %3671 = vmatpush1.bf16.msra.mxu0 %v4333_v57  ;;  %3712 = vmatpush1.bf16.msra.mxu1 %v4335_v58  ;;  %v177_v57 = vld [vmem:[#allocation2 + $0x4b0] sm:$0xff] }
 0x134   :  { %3672 = vmatprep.subr.bf16.mxu0 %v4398_v59  ;;  %3713 = vmatprep.subr.bf16.mxu1 %v4400_v60  ;;  %v209_v58 = vld [vmem:[#allocation2 + $0x5b0] sm:$0xff]  ;;  %v178_v59 = vld [vmem:[#allocation2 + $0x4b8] sm:$0xff] }
 0x135   :  { %v210_v60 = vld [vmem:[#allocation2 + $0x5b8] sm:$0xff]  ;;  %v4402_v63 = vcombine.high %v177_v57, %v209_v58  ;;  %v4401_v5 = vcombine.low %v177_v57, %v209_v58 }
 0x136   :  { %v4404_v1 = vcombine.high %v178_v59, %v210_v60  ;;  %v4403_v7 = vcombine.low %v178_v59, %v210_v60 }
 0x137   :  { %3673 = vmatpush1.bf16.msra.mxu0 %v4397_v2  ;;  %3714 = vmatpush1.bf16.msra.mxu1 %v4399_v6  ;;  %v241_v2 = vld [vmem:[#allocation2 + $0x6b0] sm:$0xff] }
 0x138   :  { %3674 = vmatprep.subr.bf16.mxu0 %v4462_v3  ;;  %3715 = vmatprep.subr.bf16.mxu1 %v4464_v4  ;;  %v273_v6 = vld [vmem:[#allocation2 + $0x7b0] sm:$0xff]  ;;  %v242_v3 = vld [vmem:[#allocation2 + $0x6b8] sm:$0xff] }
 0x139   :  { %v274_v4 = vld [vmem:[#allocation2 + $0x7b8] sm:$0xff]  ;;  %v4466_v8 = vcombine.high %v241_v2, %v273_v6  ;;  %v4465_v14 = vcombine.low %v241_v2, %v273_v6 }
 0x13a   :  { %v4468_v9 = vcombine.high %v242_v3, %v274_v4  ;;  %v4467_v15 = vcombine.low %v242_v3, %v274_v4 }
 0x13b   :  { %3675 = vmatpush1.bf16.msra.mxu0 %v4461_v10  ;;  %3716 = vmatpush1.bf16.msra.mxu1 %v4463_v11  ;;  %v305_v10 = vld [vmem:[#allocation2 + $0x8b0] sm:$0xff] }
 0x13c   :  { %3676 = vmatprep.subr.bf16.mxu0 %v4526_v12  ;;  %3717 = vmatprep.subr.bf16.mxu1 %v4528_v13  ;;  %v337_v11 = vld [vmem:[#allocation2 + $0x9b0] sm:$0xff]  ;;  %v306_v12 = vld [vmem:[#allocation2 + $0x8b8] sm:$0xff] }
 0x13d   :  { %v3046_v21 = vpop.f32.mrb[8].mxu0  ;;  %v3087_v25 = vpop.f32.mrb[8].mxu1  ;;  %v338_v13 = vld [vmem:[#allocation2 + $0x9b8] sm:$0xff]  ;;  %v4530_v16 = vcombine.high %v305_v10, %v337_v11 }
 0x13e   :  { %4168 = vst [vmem:[%s5171_s2 + $0x40] sm:$0xff] %v3046_v21  ;;  %v3048_v26 = vpop.f32.mrb[9].mxu0  ;;  %4170 = vst [vmem:[%s5171_s2 + $0x50] sm:$0xff] %v3087_v25  ;;  %v3089_v29 = vpop.f32.mrb[9].mxu1  ;;  %v4532_v17 = vcombine.high %v306_v12, %v338_v13  ;;  %v402_v21 = vld [vmem:[#allocation2 + $0xbb8] sm:$0xff]  ;;  %v4531_v23 = vcombine.low %v306_v12, %v338_v13  ;;  %v307_v13 = vld [vmem:[#allocation2 + $0x8c0] sm:$0xff] }
 0x13f   :  { %4169 = vst [vmem:[%s5171_s2 + $0x48] sm:$0xff] %v3048_v26  ;;  %v3050_v30 = vpop.f32.mrb[10].mxu0  ;;  %3677 = vmatpush1.bf16.msra.mxu0 %v4525_v18  ;;  %4171 = vst [vmem:[%s5171_s2 + $0x58] sm:$0xff] %v3089_v29  ;;  %v3091_v32 = vpop.f32.mrb[10].mxu1  ;;  %3718 = vmatpush1.bf16.msra.mxu1 %v4527_v19  ;;  %v369_v18 = vld [vmem:[#allocation2 + $0xab0] sm:$0xff] }
 0x140   :  { %v3051_v33 = vpop.f32.mrb[11].mxu0  ;;  %3678 = vmatprep.subr.bf16.mxu0 %v4590_v20  ;;  %v3092_v37 = vpop.f32.mrb[11].mxu1  ;;  %3719 = vmatprep.subr.bf16.mxu1 %v4592_v22  ;;  %v401_v19 = vld [vmem:[#allocation2 + $0xbb0] sm:$0xff]  ;;  %v370_v20 = vld [vmem:[#allocation2 + $0xab8] sm:$0xff]  ;;  %v4529_v22 = vcombine.low %v305_v10, %v337_v11 }
 0x141   :  { %v4594_v24 = vcombine.high %v369_v18, %v401_v19  ;;  %v4596_v26 = vcombine.high %v370_v20, %v402_v21  ;;  %v466_v32 = vld [vmem:[#allocation2 + $0xdb8] sm:$0x77] }
 0x143   :  { %3679 = vmatpush1.bf16.msra.mxu0 %v4589_v31  ;;  %3720 = vmatpush1.bf16.msra.mxu1 %v4591_v34  ;;  %v434_v31 = vld [vmem:[#allocation2 + $0xcb8] sm:$0xff] }
 0x144   :  { %4717 = vmatprep.subr.msk.bf16.mxu0 %vm2655_vm0, %v4654_v35  ;;  %4719 = vmatprep.subr.msk.bf16.mxu1 %vm2655_vm0, %v4656_v38  ;;  %v4593_v35 = vcombine.low %v369_v18, %v401_v19  ;;  %v4595_v38 = vcombine.low %v370_v20, %v402_v21  ;;  %v4660_v42 = vcombine.high %v434_v31, %v466_v32  ;;  %v371_v21 = vld [vmem:[#allocation2 + $0xac0] sm:$0xff] }
 0x145   :  { %v4659_v43 = vcombine.low %v434_v31, %v466_v32  ;;  %v467_v31 = vld [vmem:[#allocation2 + $0xdc0] sm:$0x77] }
 0x147   :  { %3681 = vmatpush1.bf16.msra.mxu0 %v2777_v44  ;;  %3722 = vmatpush1.bf16.msra.mxu1 %v2783_v46  ;;  %v51_v44 = vld [vmem:[#allocation2 + $0xc0] sm:$0xff]  ;;  %v52_v46 = vld [vmem:[#allocation2 + $0xc8] sm:$0xff]  ;;  %v2795_v51 = vsel %vm2655_vm0, %v4659_v43, 0 }
 0x148   :  { %3750 = vmatprep.subr.bf16.mxu0 %v4274_v45  ;;  %3791 = vmatprep.subr.bf16.mxu1 %v4276_v47  ;;  %v83_v45 = vld [vmem:[#allocation2 + $0x1c0] sm:$0xff]  ;;  %v84_v47 = vld [vmem:[#allocation2 + $0x1c8] sm:$0xff] }
 0x149   :  { %v4278_v49 = vcombine.high %v51_v44, %v83_v45  ;;  %v4280_v52 = vcombine.high %v52_v46, %v84_v47  ;;  %v4277_v57 = vcombine.low %v51_v44, %v83_v45  ;;  %v4279_v58 = vcombine.low %v52_v46, %v84_v47  ;;  %v53_v47 = vld [vmem:[#allocation2 + $0xd0] sm:$0xff] }
 0x14a   :  { %4718 = vmatmul.mubr.msk.bf16.vlgmr.msra.gmra.mrb[40].mxu0 %vm2651_vm1, %v4876_v50  ;;  %4720 = vmatmul.mubr.msk.bf16.vlgmr.msra.gmra.mrb[40].mxu1 %vm2651_vm1, %v4876_v50 }
 0x14b   :  { %3751 = vmatpush1.bf16.msra.mxu0 %v4273_v53  ;;  %3792 = vmatpush1.bf16.msra.mxu1 %v4275_v54  ;;  %v115_v53 = vld [vmem:[#allocation2 + $0x2c0] sm:$0xff] }
 0x14c   :  { %3752 = vmatprep.subr.bf16.mxu0 %v4338_v55  ;;  %3793 = vmatprep.subr.bf16.mxu1 %v4340_v56  ;;  %v147_v54 = vld [vmem:[#allocation2 + $0x3c0] sm:$0xff]  ;;  %v116_v55 = vld [vmem:[#allocation2 + $0x2c8] sm:$0xff] }
 0x14d   :  { %3782 = vmatprep.mubr.bf16.mxu0 %v4774_v0  ;;  %3823 = vmatprep.mubr.bf16.mxu1 %v4774_v0  ;;  %v148_v56 = vld [vmem:[#allocation2 + $0x3c8] sm:$0xff]  ;;  %v4342_v59 = vcombine.high %v115_v53, %v147_v54  ;;  %v4341_v2 = vcombine.low %v115_v53, %v147_v54 }
 0x14e   :  { %v4344_v60 = vcombine.high %v116_v55, %v148_v56  ;;  %v4343_v6 = vcombine.low %v116_v55, %v148_v56  ;;  %v117_v56 = vld [vmem:[#allocation2 + $0x2d0] sm:$0xff] }
 0x14f   :  { %3753 = vmatpush1.bf16.msra.mxu0 %v4337_v61  ;;  %3794 = vmatpush1.bf16.msra.mxu1 %v4339_v62  ;;  %v179_v61 = vld [vmem:[#allocation2 + $0x4c0] sm:$0xff] }
 0x150   :  { %3754 = vmatprep.subr.bf16.mxu0 %v4402_v63  ;;  %3795 = vmatprep.subr.bf16.mxu1 %v4404_v1  ;;  %v211_v62 = vld [vmem:[#allocation2 + $0x5c0] sm:$0xff]  ;;  %v180_v63 = vld [vmem:[#allocation2 + $0x4c8] sm:$0xff] }
 0x151   :  { %v212_v1 = vld [vmem:[#allocation2 + $0x5c8] sm:$0xff]  ;;  %v4406_v3 = vcombine.high %v179_v61, %v211_v62  ;;  %v4405_v10 = vcombine.low %v179_v61, %v211_v62 }
 0x152   :  { %v4408_v4 = vcombine.high %v180_v63, %v212_v1 }
 0x153   :  { %3755 = vmatpush1.bf16.msra.mxu0 %v4401_v5  ;;  %3796 = vmatpush1.bf16.msra.mxu1 %v4403_v7  ;;  %v243_v5 = vld [vmem:[#allocation2 + $0x6c0] sm:$0xff] }
 0x154   :  { %3756 = vmatprep.subr.bf16.mxu0 %v4466_v8  ;;  %3797 = vmatprep.subr.bf16.mxu1 %v4468_v9  ;;  %v275_v7 = vld [vmem:[#allocation2 + $0x7c0] sm:$0xff]  ;;  %v244_v8 = vld [vmem:[#allocation2 + $0x6c8] sm:$0xff] }
 0x155   :  { %v276_v9 = vld [vmem:[#allocation2 + $0x7c8] sm:$0xff]  ;;  %v4470_v11 = vcombine.high %v243_v5, %v275_v7 }
 0x156   :  { %v4472_v12 = vcombine.high %v244_v8, %v276_v9  ;;  %v4471_v18 = vcombine.low %v244_v8, %v276_v9 }
 0x157   :  { %3757 = vmatpush1.bf16.msra.mxu0 %v4465_v14  ;;  %3798 = vmatpush1.bf16.msra.mxu1 %v4467_v15  ;;  %v339_v14 = vld [vmem:[#allocation2 + $0x9c0] sm:$0xff]  ;;  %v308_v15 = vld [vmem:[#allocation2 + $0x8c8] sm:$0xff] }
 0x158   :  { %3758 = vmatprep.subr.bf16.mxu0 %v4530_v16  ;;  %3799 = vmatprep.subr.bf16.mxu1 %v4532_v17  ;;  %v340_v16 = vld [vmem:[#allocation2 + $0x9c8] sm:$0xff]  ;;  %v4469_v17 = vcombine.low %v243_v5, %v275_v7  ;;  %v4534_v19 = vcombine.high %v307_v13, %v339_v14 }
 0x159   :  { %v3128_v25 = vpop.f32.mrb[12].mxu0  ;;  %v3169_v29 = vpop.f32.mrb[12].mxu1  ;;  %v4536_v20 = vcombine.high %v308_v15, %v340_v16 }
 0x15a   :  { %4172 = vst [vmem:[%s5171_s2 + $0x60] sm:$0xff] %v3128_v25  ;;  %v3130_v30 = vpop.f32.mrb[13].mxu0  ;;  %4174 = vst [vmem:[%s5171_s2 + $0x70] sm:$0xff] %v3169_v29  ;;  %v3171_v33 = vpop.f32.mrb[13].mxu1  ;;  %v4533_v25 = vcombine.low %v307_v13, %v339_v14 }
 0x15b   :  { %4173 = vst [vmem:[%s5171_s2 + $0x68] sm:$0xff] %v3130_v30  ;;  %v3132_v34 = vpop.f32.mrb[14].mxu0  ;;  %3759 = vmatpush1.bf16.msra.mxu0 %v4529_v22  ;;  %4175 = vst [vmem:[%s5171_s2 + $0x78] sm:$0xff] %v3171_v33  ;;  %v3173_v36 = vpop.f32.mrb[14].mxu1  ;;  %3800 = vmatpush1.bf16.msra.mxu1 %v4531_v23  ;;  %v403_v22 = vld [vmem:[#allocation2 + $0xbc0] sm:$0xff]  ;;  %v372_v23 = vld [vmem:[#allocation2 + $0xac8] sm:$0xff] }
 0x15c   :  { %v3133_v37 = vpop.f32.mrb[15].mxu0  ;;  %3760 = vmatprep.subr.bf16.mxu0 %v4594_v24  ;;  %v3174_v41 = vpop.f32.mrb[15].mxu1  ;;  %3801 = vmatprep.subr.bf16.mxu1 %v4596_v26  ;;  %v404_v24 = vld [vmem:[#allocation2 + $0xbc8] sm:$0xff]  ;;  %v4535_v26 = vcombine.low %v308_v15, %v340_v16  ;;  %v4598_v27 = vcombine.high %v371_v21, %v403_v22  ;;  %v435_v30 = vld [vmem:[#allocation2 + $0xcc0] sm:$0xff] }
 0x15d   :  { %v4600_v29 = vcombine.high %v372_v23, %v404_v24  ;;  %v436_v34 = vld [vmem:[#allocation2 + $0xcc8] sm:$0xff]  ;;  %v4599_v41 = vcombine.low %v372_v23, %v404_v24  ;;  %v4661_v43 = vcombine.low %v435_v30, %v467_v31 }
 0x15f   :  { %3761 = vmatpush1.bf16.msra.mxu0 %v4593_v35  ;;  %3802 = vmatpush1.bf16.msra.mxu1 %v4595_v38  ;;  %v468_v35 = vld [vmem:[#allocation2 + $0xdc8] sm:$0x77]  ;;  %v4597_v38 = vcombine.low %v371_v21, %v403_v22 }
 0x160   :  { %4721 = vmatprep.subr.msk.bf16.mxu0 %vm2655_vm0, %v4658_v39  ;;  %4723 = vmatprep.subr.msk.bf16.mxu1 %vm2655_vm0, %v4660_v42  ;;  %v4662_v42 = vcombine.high %v435_v30, %v467_v31  ;;  %v4664_v45 = vcombine.high %v436_v34, %v468_v35  ;;  %v4663_v46 = vcombine.low %v436_v34, %v468_v35  ;;  %v437_v34 = vld [vmem:[#allocation2 + $0xcd0] sm:$0xff] }
 0x161   :  { %v469_v35 = vld [vmem:[#allocation2 + $0xdd0] sm:$0x77] }
 0x162   :  { %v2807_v54 = vsel %vm2655_vm0, %v4663_v46, 0  ;;  %v4666_v46 = vcombine.high %v437_v34, %v469_v35 }
 0x163   :  { %3763 = vmatpush1.bf16.msra.mxu0 %v2789_v48  ;;  %3804 = vmatpush1.bf16.msra.mxu1 %v2795_v51  ;;  %v85_v48 = vld [vmem:[#allocation2 + $0x1d0] sm:$0xff]  ;;  %v86_v51 = vld [vmem:[#allocation2 + $0x1d8] sm:$0xff] }
 0x164   :  { %3832 = vmatprep.subr.bf16.mxu0 %v4278_v49  ;;  %3873 = vmatprep.subr.bf16.mxu1 %v4280_v52  ;;  %v54_v49 = vld [vmem:[#allocation2 + $0xd8] sm:$0xff]  ;;  %v2801_v52 = vsel %vm2655_vm0, %v4661_v43, 0  ;;  %v4282_v53 = vcombine.high %v53_v47, %v85_v48 }
 0x165   :  { %v4284_v55 = vcombine.high %v54_v49, %v86_v51  ;;  %v4283_v61 = vcombine.low %v54_v49, %v86_v51 }
 0x166   :  { %4722 = vmatmul.mubr.msk.bf16.vlgmr.msra.gmra.mrb[44].mxu0 %vm2651_vm1, %v4876_v50  ;;  %4724 = vmatmul.mubr.msk.bf16.vlgmr.msra.gmra.mrb[44].mxu1 %vm2651_vm1, %v4876_v50  ;;  %v4407_v50 = vcombine.low %v180_v63, %v212_v1  ;;  %v181_v1 = vld [vmem:[#allocation2 + $0x4d0] sm:$0xff] }
 0x167   :  { %3833 = vmatpush1.bf16.msra.mxu0 %v4277_v57  ;;  %3874 = vmatpush1.bf16.msra.mxu1 %v4279_v58  ;;  %v149_v57 = vld [vmem:[#allocation2 + $0x3d0] sm:$0xff]  ;;  %v118_v58 = vld [vmem:[#allocation2 + $0x2d8] sm:$0xff] }
 0x168   :  { %3834 = vmatprep.subr.bf16.mxu0 %v4342_v59  ;;  %3875 = vmatprep.subr.bf16.mxu1 %v4344_v60  ;;  %v150_v59 = vld [vmem:[#allocation2 + $0x3d8] sm:$0xff]  ;;  %v4281_v60 = vcombine.low %v53_v47, %v85_v48  ;;  %v4346_v62 = vcombine.high %v117_v56, %v149_v57  ;;  %v4345_v5 = vcombine.low %v117_v56, %v149_v57 }
 0x169   :  { %3864 = vmatprep.mubr.bf16.mxu0 %v4774_v0  ;;  %3905 = vmatprep.mubr.bf16.mxu1 %v4774_v0  ;;  %v4348_v63 = vcombine.high %v118_v58, %v150_v59  ;;  %v4347_v7 = vcombine.low %v118_v58, %v150_v59  ;;  %v4665_v47 = vcombine.low %v437_v34, %v469_v35 }
 0x16b   :  { %3835 = vmatpush1.bf16.msra.mxu0 %v4341_v2  ;;  %3876 = vmatpush1.bf16.msra.mxu1 %v4343_v6  ;;  %v213_v2 = vld [vmem:[#allocation2 + $0x5d0] sm:$0xff]  ;;  %v5001_v6 = vld [vmem:[%s5169_s0] sm:$0xf]  ;;  %v2813_v56 = vsel %vm2655_vm0, %v4665_v47, 0 }
 0x16c   :  { %3836 = vmatprep.subr.bf16.mxu0 %v4406_v3  ;;  %3877 = vmatprep.subr.bf16.mxu1 %v4408_v4  ;;  %v182_v3 = vld [vmem:[#allocation2 + $0x4d8] sm:$0xff]  ;;  %v4410_v8 = vcombine.high %v181_v1, %v213_v2  ;;  %v4409_v13 = vcombine.low %v181_v1, %v213_v2 }
 0x16d   :  { %v214_v4 = vld [vmem:[#allocation2 + $0x5d8] sm:$0xff] }
 0x16e   :  { %v4412_v9 = vcombine.high %v182_v3, %v214_v4  ;;  %v4411_v14 = vcombine.low %v182_v3, %v214_v4 }
 0x16f   :  { %3837 = vmatpush1.bf16.msra.mxu0 %v4405_v10  ;;  %3878 = vmatpush1.bf16.msra.mxu1 %v4407_v50  ;;  %v245_v10 = vld [vmem:[#allocation2 + $0x6d0] sm:$0xff] }
 0x170   :  { %3838 = vmatprep.subr.bf16.mxu0 %v4470_v11  ;;  %3879 = vmatprep.subr.bf16.mxu1 %v4472_v12  ;;  %v277_v50 = vld [vmem:[#allocation2 + $0x7d0] sm:$0xff]  ;;  %v246_v11 = vld [vmem:[#allocation2 + $0x6d8] sm:$0xff] }
 0x171   :  { %v278_v12 = vld [vmem:[#allocation2 + $0x7d8] sm:$0xff]  ;;  %v4474_v15 = vcombine.high %v245_v10, %v277_v50  ;;  %v4473_v21 = vcombine.low %v245_v10, %v277_v50 }
 0x172   :  { %v4476_v16 = vcombine.high %v246_v11, %v278_v12  ;;  %v4475_v22 = vcombine.low %v246_v11, %v278_v12 }
 0x173   :  { %3839 = vmatpush1.bf16.msra.mxu0 %v4469_v17  ;;  %3880 = vmatpush1.bf16.msra.mxu1 %v4471_v18  ;;  %v309_v17 = vld [vmem:[#allocation2 + $0x8d0] sm:$0xff] }
 0x174   :  { %3840 = vmatprep.subr.bf16.mxu0 %v4534_v19  ;;  %3881 = vmatprep.subr.bf16.mxu1 %v4536_v20  ;;  %v341_v18 = vld [vmem:[#allocation2 + $0x9d0] sm:$0xff]  ;;  %v310_v19 = vld [vmem:[#allocation2 + $0x8d8] sm:$0xff] }
 0x175   :  { %v3210_v28 = vpop.f32.mrb[16].mxu0  ;;  %v3251_v32 = vpop.f32.mrb[16].mxu1  ;;  %v342_v20 = vld [vmem:[#allocation2 + $0x9d8] sm:$0xff]  ;;  %v4538_v23 = vcombine.high %v309_v17, %v341_v18 }
 0x176   :  { %4176 = vst [vmem:[%s5171_s2 + $0x80] sm:$0xff] %v3210_v28  ;;  %v3212_v33 = vpop.f32.mrb[17].mxu0  ;;  %4178 = vst [vmem:[%s5171_s2 + $0x90] sm:$0xff] %v3251_v32  ;;  %v3253_v36 = vpop.f32.mrb[17].mxu1  ;;  %v4540_v24 = vcombine.high %v310_v19, %v342_v20  ;;  %v406_v28 = vld [vmem:[#allocation2 + $0xbd8] sm:$0xff]  ;;  %v4539_v30 = vcombine.low %v310_v19, %v342_v20 }
 0x177   :  { %4177 = vst [vmem:[%s5171_s2 + $0x88] sm:$0xff] %v3212_v33  ;;  %v3214_v37 = vpop.f32.mrb[18].mxu0  ;;  %3841 = vmatpush1.bf16.msra.mxu0 %v4533_v25  ;;  %4179 = vst [vmem:[%s5171_s2 + $0x98] sm:$0xff] %v3253_v36  ;;  %v3255_v39 = vpop.f32.mrb[18].mxu1  ;;  %3882 = vmatpush1.bf16.msra.mxu1 %v4535_v26  ;;  %v373_v25 = vld [vmem:[#allocation2 + $0xad0] sm:$0xff] }
 0x178   :  { %v3215_v40 = vpop.f32.mrb[19].mxu0  ;;  %3842 = vmatprep.subr.bf16.mxu0 %v4598_v27  ;;  %v3256_v44 = vpop.f32.mrb[19].mxu1  ;;  %3883 = vmatprep.subr.bf16.mxu1 %v4600_v29  ;;  %v405_v26 = vld [vmem:[#allocation2 + $0xbd0] sm:$0xff]  ;;  %v374_v27 = vld [vmem:[#allocation2 + $0xad8] sm:$0xff]  ;;  %v4537_v29 = vcombine.low %v309_v17, %v341_v18 }
 0x179   :  { %v4602_v31 = vcombine.high %v373_v25, %v405_v26  ;;  %v4604_v33 = vcombine.high %v374_v27, %v406_v28  ;;  %v470_v39 = vld [vmem:[#allocation2 + $0xdd8] sm:$0x77] }
 0x17b   :  { %3843 = vmatpush1.bf16.msra.mxu0 %v4597_v38  ;;  %3884 = vmatpush1.bf16.msra.mxu1 %v4599_v41  ;;  %v438_v38 = vld [vmem:[#allocation2 + $0xcd8] sm:$0xff] }
 0x17c   :  { %4725 = vmatprep.subr.msk.bf16.mxu0 %vm2655_vm0, %v4662_v42  ;;  %4727 = vmatprep.subr.msk.bf16.mxu1 %vm2655_vm0, %v4664_v45  ;;  %v4601_v42 = vcombine.low %v373_v25, %v405_v26  ;;  %v4603_v45 = vcombine.low %v374_v27, %v406_v28  ;;  %v4668_v49 = vcombine.high %v438_v38, %v470_v39 }
 0x17d   :  { %v4667_v51 = vcombine.low %v438_v38, %v470_v39  ;;  %v439_v38 = vld [vmem:[#allocation2 + $0xce0] sm:$0xff] }
 0x17e   :  { %v471_v39 = vld [vmem:[#allocation2 + $0xde0] sm:$0x77] }
 0x17f   :  { %3845 = vmatpush1.bf16.msra.mxu0 %v2801_v52  ;;  %3886 = vmatpush1.bf16.msra.mxu1 %v2807_v54  ;;  %v55_v52 = vld [vmem:[#allocation2 + $0xe0] sm:$0xff]  ;;  %v56_v54 = vld [vmem:[#allocation2 + $0xe8] sm:$0xff]  ;;  %v2819_v58 = vsel %vm2655_vm0, %v4667_v51, 0  ;;  %v4670_v51 = vcombine.high %v439_v38, %v471_v39 }
 0x180   :  { %3914 = vmatprep.subr.bf16.mxu0 %v4282_v53  ;;  %3955 = vmatprep.subr.bf16.mxu1 %v4284_v55  ;;  %v87_v53 = vld [vmem:[#allocation2 + $0x1e0] sm:$0xff]  ;;  %v88_v55 = vld [vmem:[#allocation2 + $0x1e8] sm:$0xff] }
 0x181   :  { %v4286_v57 = vcombine.high %v55_v52, %v87_v53  ;;  %v4288_v59 = vcombine.high %v56_v54, %v88_v55  ;;  %v4285_v1 = vcombine.low %v55_v52, %v87_v53  ;;  %v4287_v2 = vcombine.low %v56_v54, %v88_v55 }
 0x182   :  { %4726 = vmatmul.mubr.msk.bf16.vlgmr.msra.gmra.mrb[48].mxu0 %vm2651_vm1, %v5001_v6  ;;  %4728 = vmatmul.mubr.msk.bf16.vlgmr.msra.gmra.mrb[48].mxu1 %vm2651_vm1, %v5001_v6  ;;  %v4669_v52 = vcombine.low %v439_v38, %v471_v39 }
 0x183   :  { %3915 = vmatpush1.bf16.msra.mxu0 %v4281_v60  ;;  %3956 = vmatpush1.bf16.msra.mxu1 %v4283_v61  ;;  %v119_v60 = vld [vmem:[#allocation2 + $0x2e0] sm:$0xff] }
 0x184   :  { %3916 = vmatprep.subr.bf16.mxu0 %v4346_v62  ;;  %3957 = vmatprep.subr.bf16.mxu1 %v4348_v63  ;;  %v151_v61 = vld [vmem:[#allocation2 + $0x3e0] sm:$0xff]  ;;  %v120_v62 = vld [vmem:[#allocation2 + $0x2e8] sm:$0xff] }
 0x185   :  { %3946 = vmatprep.mubr.bf16.mxu0 %v4774_v0  ;;  %3987 = vmatprep.mubr.bf16.mxu1 %v4774_v0  ;;  %v152_v63 = vld [vmem:[#allocation2 + $0x3e8] sm:$0xff]  ;;  %v4350_v3 = vcombine.high %v119_v60, %v151_v61  ;;  %v4349_v10 = vcombine.low %v119_v60, %v151_v61  ;;  %v2825_v60 = vsel %vm2655_vm0, %v4669_v52, 0 }
 0x186   :  { %v4352_v4 = vcombine.high %v120_v62, %v152_v63  ;;  %v4351_v50 = vcombine.low %v120_v62, %v152_v63 }
 0x187   :  { %3917 = vmatpush1.bf16.msra.mxu0 %v4345_v5  ;;  %3958 = vmatpush1.bf16.msra.mxu1 %v4347_v7  ;;  %v183_v5 = vld [vmem:[#allocation2 + $0x4e0] sm:$0xff] }
 0x188   :  { %3918 = vmatprep.subr.bf16.mxu0 %v4410_v8  ;;  %3959 = vmatprep.subr.bf16.mxu1 %v4412_v9  ;;  %v215_v7 = vld [vmem:[#allocation2 + $0x5e0] sm:$0xff]  ;;  %v184_v8 = vld [vmem:[#allocation2 + $0x4e8] sm:$0xff] }
 0x189   :  { %v216_v9 = vld [vmem:[#allocation2 + $0x5e8] sm:$0xff]  ;;  %v4414_v11 = vcombine.high %v183_v5, %v215_v7  ;;  %v4413_v17 = vcombine.low %v183_v5, %v215_v7 }
 0x18a   :  { %v4416_v12 = vcombine.high %v184_v8, %v216_v9  ;;  %v4415_v18 = vcombine.low %v184_v8, %v216_v9 }
 0x18b   :  { %3919 = vmatpush1.bf16.msra.mxu0 %v4409_v13  ;;  %3960 = vmatpush1.bf16.msra.mxu1 %v4411_v14  ;;  %v247_v13 = vld [vmem:[#allocation2 + $0x6e0] sm:$0xff] }
 0x18c   :  { %3920 = vmatprep.subr.bf16.mxu0 %v4474_v15  ;;  %3961 = vmatprep.subr.bf16.mxu1 %v4476_v16  ;;  %v279_v14 = vld [vmem:[#allocation2 + $0x7e0] sm:$0xff]  ;;  %v248_v15 = vld [vmem:[#allocation2 + $0x6e8] sm:$0xff] }
 0x18d   :  { %v280_v16 = vld [vmem:[#allocation2 + $0x7e8] sm:$0xff]  ;;  %v4478_v19 = vcombine.high %v247_v13, %v279_v14  ;;  %v4477_v25 = vcombine.low %v247_v13, %v279_v14 }
 0x18e   :  { %v4480_v20 = vcombine.high %v248_v15, %v280_v16  ;;  %v4479_v26 = vcombine.low %v248_v15, %v280_v16 }
 0x18f   :  { %3921 = vmatpush1.bf16.msra.mxu0 %v4473_v21  ;;  %3962 = vmatpush1.bf16.msra.mxu1 %v4475_v22  ;;  %v311_v21 = vld [vmem:[#allocation2 + $0x8e0] sm:$0xff] }
 0x190   :  { %3922 = vmatprep.subr.bf16.mxu0 %v4538_v23  ;;  %3963 = vmatprep.subr.bf16.mxu1 %v4540_v24  ;;  %v343_v22 = vld [vmem:[#allocation2 + $0x9e0] sm:$0xff]  ;;  %v312_v23 = vld [vmem:[#allocation2 + $0x8e8] sm:$0xff] }
 0x191   :  { %v3292_v32 = vpop.f32.mrb[20].mxu0  ;;  %v3333_v36 = vpop.f32.mrb[20].mxu1  ;;  %v344_v24 = vld [vmem:[#allocation2 + $0x9e8] sm:$0xff]  ;;  %v4542_v27 = vcombine.high %v311_v21, %v343_v22 }
 0x192   :  { %4180 = vst [vmem:[%s5171_s2 + $0xa0] sm:$0xff] %v3292_v32  ;;  %v3294_v37 = vpop.f32.mrb[21].mxu0  ;;  %4182 = vst [vmem:[%s5171_s2 + $0xb0] sm:$0xff] %v3333_v36  ;;  %v3335_v40 = vpop.f32.mrb[21].mxu1  ;;  %v4544_v28 = vcombine.high %v312_v23, %v344_v24  ;;  %v408_v32 = vld [vmem:[#allocation2 + $0xbe8] sm:$0xff]  ;;  %v4543_v34 = vcombine.low %v312_v23, %v344_v24 }
 0x193   :  { %4181 = vst [vmem:[%s5171_s2 + $0xa8] sm:$0xff] %v3294_v37  ;;  %v3296_v41 = vpop.f32.mrb[22].mxu0  ;;  %3923 = vmatpush1.bf16.msra.mxu0 %v4537_v29  ;;  %4183 = vst [vmem:[%s5171_s2 + $0xb8] sm:$0xff] %v3335_v40  ;;  %v3337_v43 = vpop.f32.mrb[22].mxu1  ;;  %3964 = vmatpush1.bf16.msra.mxu1 %v4539_v30  ;;  %v375_v29 = vld [vmem:[#allocation2 + $0xae0] sm:$0xff] }
 0x194   :  { %v3297_v44 = vpop.f32.mrb[23].mxu0  ;;  %3924 = vmatprep.subr.bf16.mxu0 %v4602_v31  ;;  %v3338_v48 = vpop.f32.mrb[23].mxu1  ;;  %3965 = vmatprep.subr.bf16.mxu1 %v4604_v33  ;;  %v407_v30 = vld [vmem:[#allocation2 + $0xbe0] sm:$0xff]  ;;  %v376_v31 = vld [vmem:[#allocation2 + $0xae8] sm:$0xff]  ;;  %v4541_v33 = vcombine.low %v311_v21, %v343_v22 }
 0x195   :  { %v4606_v35 = vcombine.high %v375_v29, %v407_v30  ;;  %v4608_v37 = vcombine.high %v376_v31, %v408_v32  ;;  %v472_v43 = vld [vmem:[#allocation2 + $0xde8] sm:$0x77] }
 0x197   :  { %3925 = vmatpush1.bf16.msra.mxu0 %v4601_v42  ;;  %3966 = vmatpush1.bf16.msra.mxu1 %v4603_v45  ;;  %v440_v42 = vld [vmem:[#allocation2 + $0xce8] sm:$0xff] }
 0x198   :  { %4729 = vmatprep.subr.msk.bf16.mxu0 %vm2655_vm0, %v4666_v46  ;;  %4731 = vmatprep.subr.msk.bf16.mxu1 %vm2655_vm0, %v4668_v49  ;;  %v4605_v46 = vcombine.low %v375_v29, %v407_v30  ;;  %v4607_v49 = vcombine.low %v376_v31, %v408_v32  ;;  %v4672_v54 = vcombine.high %v440_v42, %v472_v43  ;;  %v377_v32 = vld [vmem:[#allocation2 + $0xaf0] sm:$0xff] }
 0x199   :  { %v4671_v55 = vcombine.low %v440_v42, %v472_v43  ;;  %v473_v42 = vld [vmem:[#allocation2 + $0xdf0] sm:$0x77] }
 0x19b   :  { %3927 = vmatpush1.bf16.msra.mxu0 %v2813_v56  ;;  %3968 = vmatpush1.bf16.msra.mxu1 %v2819_v58  ;;  %v57_v56 = vld [vmem:[#allocation2 + $0xf0] sm:$0xff]  ;;  %v58_v58 = vld [vmem:[#allocation2 + $0xf8] sm:$0xff]  ;;  %v2831_v62 = vsel %vm2655_vm0, %v4671_v55, 0 }
 0x19c   :  { %3996 = vmatprep.subr.bf16.mxu0 %v4286_v57  ;;  %4037 = vmatprep.subr.bf16.mxu1 %v4288_v59  ;;  %v89_v57 = vld [vmem:[#allocation2 + $0x1f0] sm:$0xff]  ;;  %v90_v59 = vld [vmem:[#allocation2 + $0x1f8] sm:$0xff] }
 0x19d   :  { %v4290_v61 = vcombine.high %v57_v56, %v89_v57  ;;  %v4292_v63 = vcombine.high %v58_v58, %v90_v59  ;;  %v4289_v5 = vcombine.low %v57_v56, %v89_v57  ;;  %v4291_v7 = vcombine.low %v58_v58, %v90_v59 }
 0x19e   :  { %4730 = vmatmul.mubr.msk.bf16.vlgmr.msra.gmra.mrb[52].mxu0 %vm2651_vm1, %v5001_v6  ;;  %4732 = vmatmul.mubr.msk.bf16.vlgmr.msra.gmra.mrb[52].mxu1 %vm2651_vm1, %v5001_v6 }
 0x19f   :  { %3997 = vmatpush1.bf16.msra.mxu0 %v4285_v1  ;;  %4038 = vmatpush1.bf16.msra.mxu1 %v4287_v2  ;;  %v121_v1 = vld [vmem:[#allocation2 + $0x2f0] sm:$0xff] }
 0x1a0   :  { %3998 = vmatprep.subr.bf16.mxu0 %v4350_v3  ;;  %4039 = vmatprep.subr.bf16.mxu1 %v4352_v4  ;;  %v153_v2 = vld [vmem:[#allocation2 + $0x3f0] sm:$0xff]  ;;  %v122_v3 = vld [vmem:[#allocation2 + $0x2f8] sm:$0xff] }
 0x1a1   :  { %4028 = vmatprep.mubr.bf16.mxu0 %v4774_v0  ;;  %4069 = vmatprep.mubr.bf16.mxu1 %v4774_v0  ;;  %v154_v4 = vld [vmem:[#allocation2 + $0x3f8] sm:$0xff]  ;;  %v4354_v8 = vcombine.high %v121_v1, %v153_v2  ;;  %v4353_v13 = vcombine.low %v121_v1, %v153_v2 }
 0x1a2   :  { %v4356_v9 = vcombine.high %v122_v3, %v154_v4  ;;  %v4355_v14 = vcombine.low %v122_v3, %v154_v4 }
 0x1a3   :  { %3999 = vmatpush1.bf16.msra.mxu0 %v4349_v10  ;;  %4040 = vmatpush1.bf16.msra.mxu1 %v4351_v50  ;;  %v185_v10 = vld [vmem:[#allocation2 + $0x4f0] sm:$0xff] }
 0x1a4   :  { %4000 = vmatprep.subr.bf16.mxu0 %v4414_v11  ;;  %4041 = vmatprep.subr.bf16.mxu1 %v4416_v12  ;;  %v217_v50 = vld [vmem:[#allocation2 + $0x5f0] sm:$0xff]  ;;  %v186_v11 = vld [vmem:[#allocation2 + $0x4f8] sm:$0xff] }
 0x1a5   :  { %v218_v12 = vld [vmem:[#allocation2 + $0x5f8] sm:$0xff]  ;;  %v4418_v15 = vcombine.high %v185_v10, %v217_v50  ;;  %v4417_v21 = vcombine.low %v185_v10, %v217_v50 }
 0x1a6   :  { %v4420_v16 = vcombine.high %v186_v11, %v218_v12  ;;  %v4419_v22 = vcombine.low %v186_v11, %v218_v12 }
 0x1a7   :  { %4001 = vmatpush1.bf16.msra.mxu0 %v4413_v17  ;;  %4042 = vmatpush1.bf16.msra.mxu1 %v4415_v18  ;;  %v249_v17 = vld [vmem:[#allocation2 + $0x6f0] sm:$0xff] }
 0x1a8   :  { %4002 = vmatprep.subr.bf16.mxu0 %v4478_v19  ;;  %4043 = vmatprep.subr.bf16.mxu1 %v4480_v20  ;;  %v281_v18 = vld [vmem:[#allocation2 + $0x7f0] sm:$0xff]  ;;  %v250_v19 = vld [vmem:[#allocation2 + $0x6f8] sm:$0xff] }
 0x1a9   :  { %v282_v20 = vld [vmem:[#allocation2 + $0x7f8] sm:$0xff]  ;;  %v4482_v23 = vcombine.high %v249_v17, %v281_v18  ;;  %v4481_v29 = vcombine.low %v249_v17, %v281_v18 }
 0x1aa   :  { %v4484_v24 = vcombine.high %v250_v19, %v282_v20  ;;  %v4483_v30 = vcombine.low %v250_v19, %v282_v20 }
 0x1ab   :  { %4003 = vmatpush1.bf16.msra.mxu0 %v4477_v25  ;;  %4044 = vmatpush1.bf16.msra.mxu1 %v4479_v26  ;;  %v313_v25 = vld [vmem:[#allocation2 + $0x8f0] sm:$0xff] }
 0x1ac   :  { %4004 = vmatprep.subr.bf16.mxu0 %v4542_v27  ;;  %4045 = vmatprep.subr.bf16.mxu1 %v4544_v28  ;;  %v345_v26 = vld [vmem:[#allocation2 + $0x9f0] sm:$0xff]  ;;  %v314_v27 = vld [vmem:[#allocation2 + $0x8f8] sm:$0xff] }
 0x1ad   :  { %v3374_v36 = vpop.f32.mrb[24].mxu0  ;;  %v3415_v40 = vpop.f32.mrb[24].mxu1  ;;  %v346_v28 = vld [vmem:[#allocation2 + $0x9f8] sm:$0xff]  ;;  %v4546_v31 = vcombine.high %v313_v25, %v345_v26 }
 0x1ae   :  { %4184 = vst [vmem:[%s5171_s2 + $0xc0] sm:$0xff] %v3374_v36  ;;  %v3376_v41 = vpop.f32.mrb[25].mxu0  ;;  %4186 = vst [vmem:[%s5171_s2 + $0xd0] sm:$0xff] %v3415_v40  ;;  %v3417_v44 = vpop.f32.mrb[25].mxu1  ;;  %v4545_v36 = vcombine.low %v313_v25, %v345_v26 }
 0x1af   :  { %4185 = vst [vmem:[%s5171_s2 + $0xc8] sm:$0xff] %v3376_v41  ;;  %v3378_v45 = vpop.f32.mrb[26].mxu0  ;;  %4005 = vmatpush1.bf16.msra.mxu0 %v4541_v33  ;;  %4187 = vst [vmem:[%s5171_s2 + $0xd8] sm:$0xff] %v3417_v44  ;;  %v3419_v47 = vpop.f32.mrb[26].mxu1  ;;  %4046 = vmatpush1.bf16.msra.mxu1 %v4543_v34  ;;  %v409_v33 = vld [vmem:[#allocation2 + $0xbf0] sm:$0xff]  ;;  %v378_v34 = vld [vmem:[#allocation2 + $0xaf8] sm:$0xff] }
 0x1b0   :  { %v3379_v48 = vpop.f32.mrb[27].mxu0  ;;  %4006 = vmatprep.subr.bf16.mxu0 %v4606_v35  ;;  %v3420_v53 = vpop.f32.mrb[27].mxu1  ;;  %4047 = vmatprep.subr.bf16.mxu1 %v4608_v37  ;;  %v410_v35 = vld [vmem:[#allocation2 + $0xbf8] sm:$0xff]  ;;  %v4547_v37 = vcombine.low %v314_v27, %v346_v28  ;;  %v4610_v38 = vcombine.high %v377_v32, %v409_v33  ;;  %v441_v41 = vld [vmem:[#allocation2 + $0xcf0] sm:$0xff] }
 0x1b1   :  { %v4612_v40 = vcombine.high %v378_v34, %v410_v35  ;;  %v442_v45 = vld [vmem:[#allocation2 + $0xcf8] sm:$0xff]  ;;  %v4611_v53 = vcombine.low %v378_v34, %v410_v35  ;;  %v4673_v55 = vcombine.low %v441_v41, %v473_v42 }
 0x1b3   :  { %4007 = vmatpush1.bf16.msra.mxu0 %v4605_v46  ;;  %4048 = vmatpush1.bf16.msra.mxu1 %v4607_v49  ;;  %v474_v46 = vld [vmem:[#allocation2 + $0xdf8] sm:$0x77]  ;;  %v4609_v49 = vcombine.low %v377_v32, %v409_v33  ;;  %v2837_v59 = vsel %vm2655_vm0, %v4673_v55, 0 }
 0x1b4   :  { %4733 = vmatprep.subr.msk.bf16.mxu0 %vm2655_vm0, %v4670_v51  ;;  %4735 = vmatprep.subr.msk.bf16.mxu1 %vm2655_vm0, %v4672_v54  ;;  %v4674_v54 = vcombine.high %v441_v41, %v473_v42  ;;  %v4676_v57 = vcombine.high %v442_v45, %v474_v46  ;;  %v4675_v58 = vcombine.low %v442_v45, %v474_v46 }
 0x1b7   :  { %4009 = vmatpush1.bf16.msra.mxu0 %v2825_v60  ;;  %4050 = vmatpush1.bf16.msra.mxu1 %v2831_v62  ;;  %v2843_v60 = vsel %vm2655_vm0, %v4675_v58, 0 }
 0x1b8   :  { %4078 = vmatprep.subr.bf16.mxu0 %v4290_v61  ;;  %4119 = vmatprep.subr.bf16.mxu1 %v4292_v63 }
 0x1ba   :  { %4734 = vmatmul.mubr.msk.bf16.vlgmr.msra.gmra.mrb[56].mxu0 %vm2651_vm1, %v5001_v6  ;;  %4736 = vmatmul.mubr.msk.bf16.vlgmr.msra.gmra.mrb[56].mxu1 %vm2651_vm1, %v5001_v6 }
 0x1bb   :  { %4079 = vmatpush1.bf16.msra.mxu0 %v4289_v5  ;;  %4120 = vmatpush1.bf16.msra.mxu1 %v4291_v7 }
 0x1bc   :  { %4080 = vmatprep.subr.bf16.mxu0 %v4354_v8  ;;  %4121 = vmatprep.subr.bf16.mxu1 %v4356_v9 }
 0x1bd   :  { %4110 = vmatprep.mubr.bf16.mxu0 %v4774_v0  ;;  %4151 = vmatprep.mubr.bf16.mxu1 %v4774_v0  ;;  %v4548_v0 = vcombine.high %v314_v27, %v346_v28 }
 0x1bf   :  { %4081 = vmatpush1.bf16.msra.mxu0 %v4353_v13  ;;  %4122 = vmatpush1.bf16.msra.mxu1 %v4355_v14 }
 0x1c0   :  { %4082 = vmatprep.subr.bf16.mxu0 %v4418_v15  ;;  %4123 = vmatprep.subr.bf16.mxu1 %v4420_v16 }
 0x1c3   :  { %4083 = vmatpush1.bf16.msra.mxu0 %v4417_v21  ;;  %4124 = vmatpush1.bf16.msra.mxu1 %v4419_v22 }
 0x1c4   :  { %4084 = vmatprep.subr.bf16.mxu0 %v4482_v23  ;;  %4125 = vmatprep.subr.bf16.mxu1 %v4484_v24 }
 0x1c7   :  { %4085 = vmatpush1.bf16.msra.mxu0 %v4481_v29  ;;  %4126 = vmatpush1.bf16.msra.mxu1 %v4483_v30 }
 0x1c8   :  { %4086 = vmatprep.subr.bf16.mxu0 %v4546_v31  ;;  %4127 = vmatprep.subr.bf16.mxu1 %v4548_v0 }
 0x1c9   :  { %v3456_v39 = vpop.f32.mrb[28].mxu0  ;;  %v3497_v43 = vpop.f32.mrb[28].mxu1 }
 0x1ca   :  { %4188 = vst [vmem:[%s5171_s2 + $0xe0] sm:$0xff] %v3456_v39  ;;  %v3458_v44 = vpop.f32.mrb[29].mxu0  ;;  %4190 = vst [vmem:[%s5171_s2 + $0xf0] sm:$0xff] %v3497_v43  ;;  %v3499_v47 = vpop.f32.mrb[29].mxu1 }
 0x1cb   :  { %4189 = vst [vmem:[%s5171_s2 + $0xe8] sm:$0xff] %v3458_v44  ;;  %v3460_v48 = vpop.f32.mrb[30].mxu0  ;;  %4087 = vmatpush1.bf16.msra.mxu0 %v4545_v36  ;;  %4191 = vst [vmem:[%s5171_s2 + $0xf8] sm:$0xff] %v3499_v47  ;;  %v3501_v51 = vpop.f32.mrb[30].mxu1  ;;  %4128 = vmatpush1.bf16.msra.mxu1 %v4547_v37 }
 0x1cc   :  { %v3461_v52 = vpop.f32.mrb[31].mxu0  ;;  %4088 = vmatprep.subr.bf16.mxu0 %v4610_v38  ;;  %v3502_v56 = vpop.f32.mrb[31].mxu1  ;;  %4129 = vmatprep.subr.bf16.mxu1 %v4612_v40 }
 0x1cf   :  { %4089 = vmatpush1.bf16.msra.mxu0 %v4609_v49  ;;  %4130 = vmatpush1.bf16.msra.mxu1 %v4611_v53 }
 0x1d0   :  { %4737 = vmatprep.subr.msk.bf16.mxu0 %vm2655_vm0, %v4674_v54  ;;  %4739 = vmatprep.subr.msk.bf16.mxu1 %vm2655_vm0, %v4676_v57 }
 0x1d3   :  { %4091 = vmatpush1.bf16.msra.mxu0 %v2837_v59  ;;  %4132 = vmatpush1.bf16.msra.mxu1 %v2843_v60 }
 0x1d6   :  { %4738 = vmatmul.mubr.msk.bf16.vlgmr.msra.gmra.mrb[60].mxu0 %vm2651_vm1, %v5001_v6  ;;  %4740 = vmatmul.mubr.msk.bf16.vlgmr.msra.gmra.mrb[60].mxu1 %vm2651_vm1, %v5001_v6 }
 0x1e5   :  { %v3538_v61 = vpop.f32.mrb[32].mxu0  ;;  %v3579_v62 = vpop.f32.mrb[32].mxu1 }
 0x1e6   :  { %4192 = vst [vmem:[%s5171_s2 + $0x100] sm:$0xff] %v3538_v61  ;;  %v3540_v63 = vpop.f32.mrb[33].mxu0  ;;  %4194 = vst [vmem:[%s5171_s2 + $0x110] sm:$0xff] %v3579_v62  ;;  %v3581_v1 = vpop.f32.mrb[33].mxu1 }
 0x1e7   :  { %4193 = vst [vmem:[%s5171_s2 + $0x108] sm:$0xff] %v3540_v63  ;;  %v3542_v2 = vpop.f32.mrb[34].mxu0  ;;  %4195 = vst [vmem:[%s5171_s2 + $0x118] sm:$0xff] %v3581_v1  ;;  %v3583_v6 = vpop.f32.mrb[34].mxu1 }
 0x1e8   :  { %v3543_v3 = vpop.f32.mrb[35].mxu0  ;;  %v3584_v4 = vpop.f32.mrb[35].mxu1 }
 0x201   :  { %v3620_v5 = vpop.f32.mrb[36].mxu0  ;;  %v3661_v7 = vpop.f32.mrb[36].mxu1 }
 0x202   :  { %4196 = vst [vmem:[%s5171_s2 + $0x120] sm:$0xff] %v3620_v5  ;;  %v3622_v8 = vpop.f32.mrb[37].mxu0  ;;  %4198 = vst [vmem:[%s5171_s2 + $0x130] sm:$0xff] %v3661_v7  ;;  %v3663_v9 = vpop.f32.mrb[37].mxu1 }
 0x203   :  { %4197 = vst [vmem:[%s5171_s2 + $0x128] sm:$0xff] %v3622_v8  ;;  %v3624_v10 = vpop.f32.mrb[38].mxu0  ;;  %4199 = vst [vmem:[%s5171_s2 + $0x138] sm:$0xff] %v3663_v9  ;;  %v3665_v50 = vpop.f32.mrb[38].mxu1 }
 0x204   :  { %v3625_v11 = vpop.f32.mrb[39].mxu0  ;;  %v3666_v12 = vpop.f32.mrb[39].mxu1 }
 0x21d   :  { %v3702_v13 = vpop.f32.mrb[40].mxu0  ;;  %v3743_v14 = vpop.f32.mrb[40].mxu1 }
 0x21e   :  { %4200 = vst [vmem:[%s5171_s2 + $0x140] sm:$0xff] %v3702_v13  ;;  %v3704_v15 = vpop.f32.mrb[41].mxu0  ;;  %4202 = vst [vmem:[%s5171_s2 + $0x150] sm:$0xff] %v3743_v14  ;;  %v3745_v16 = vpop.f32.mrb[41].mxu1 }
 0x21f   :  { %4201 = vst [vmem:[%s5171_s2 + $0x148] sm:$0xff] %v3704_v15  ;;  %v3706_v17 = vpop.f32.mrb[42].mxu0  ;;  %4203 = vst [vmem:[%s5171_s2 + $0x158] sm:$0xff] %v3745_v16  ;;  %v3747_v18 = vpop.f32.mrb[42].mxu1 }
 0x220   :  { %v3707_v19 = vpop.f32.mrb[43].mxu0  ;;  %v3748_v20 = vpop.f32.mrb[43].mxu1 }
 0x239   :  { %v3784_v21 = vpop.f32.mrb[44].mxu0  ;;  %v3825_v22 = vpop.f32.mrb[44].mxu1 }
 0x23a   :  { %4204 = vst [vmem:[%s5171_s2 + $0x160] sm:$0xff] %v3784_v21  ;;  %v3786_v23 = vpop.f32.mrb[45].mxu0  ;;  %4206 = vst [vmem:[%s5171_s2 + $0x170] sm:$0xff] %v3825_v22  ;;  %v3827_v24 = vpop.f32.mrb[45].mxu1 }
 0x23b   :  { %4205 = vst [vmem:[%s5171_s2 + $0x168] sm:$0xff] %v3786_v23  ;;  %v3788_v25 = vpop.f32.mrb[46].mxu0  ;;  %4207 = vst [vmem:[%s5171_s2 + $0x178] sm:$0xff] %v3827_v24  ;;  %v3829_v26 = vpop.f32.mrb[46].mxu1 }
 0x23c   :  { %v3789_v27 = vpop.f32.mrb[47].mxu0  ;;  %v3830_v28 = vpop.f32.mrb[47].mxu1 }
 0x255   :  { %v3866_v29 = vpop.f32.mrb[48].mxu0  ;;  %v3907_v30 = vpop.f32.mrb[48].mxu1 }
 0x256   :  { %4208 = vst [vmem:[%s5171_s2 + $0x180] sm:$0xff] %v3866_v29  ;;  %v3868_v31 = vpop.f32.mrb[49].mxu0  ;;  %4210 = vst [vmem:[%s5171_s2 + $0x190] sm:$0xff] %v3907_v30  ;;  %v3909_v0 = vpop.f32.mrb[49].mxu1 }
 0x257   :  { %4209 = vst [vmem:[%s5171_s2 + $0x188] sm:$0xff] %v3868_v31  ;;  %v3870_v32 = vpop.f32.mrb[50].mxu0  ;;  %4211 = vst [vmem:[%s5171_s2 + $0x198] sm:$0xff] %v3909_v0  ;;  %v3911_v33 = vpop.f32.mrb[50].mxu1 }
 0x258   :  { %v3871_v34 = vpop.f32.mrb[51].mxu0  ;;  %v3912_v35 = vpop.f32.mrb[51].mxu1 }
 0x271   :  { %v3948_v36 = vpop.f32.mrb[52].mxu0  ;;  %v3989_v37 = vpop.f32.mrb[52].mxu1 }
 0x272   :  { %4212 = vst [vmem:[%s5171_s2 + $0x1a0] sm:$0xff] %v3948_v36  ;;  %v3950_v38 = vpop.f32.mrb[53].mxu0  ;;  %4214 = vst [vmem:[%s5171_s2 + $0x1b0] sm:$0xff] %v3989_v37  ;;  %v3991_v39 = vpop.f32.mrb[53].mxu1 }
 0x273   :  { %4213 = vst [vmem:[%s5171_s2 + $0x1a8] sm:$0xff] %v3950_v38  ;;  %v3952_v40 = vpop.f32.mrb[54].mxu0  ;;  %4215 = vst [vmem:[%s5171_s2 + $0x1b8] sm:$0xff] %v3991_v39  ;;  %v3993_v41 = vpop.f32.mrb[54].mxu1 }
 0x274   :  { %v3953_v42 = vpop.f32.mrb[55].mxu0  ;;  %v3994_v43 = vpop.f32.mrb[55].mxu1 }
 0x28d   :  { %v4030_v44 = vpop.f32.mrb[56].mxu0  ;;  %v4071_v45 = vpop.f32.mrb[56].mxu1 }
 0x28e   :  { %4216 = vst [vmem:[%s5171_s2 + $0x1c0] sm:$0xff] %v4030_v44  ;;  %v4032_v46 = vpop.f32.mrb[57].mxu0  ;;  %4218 = vst [vmem:[%s5171_s2 + $0x1d0] sm:$0xff] %v4071_v45  ;;  %v4073_v47 = vpop.f32.mrb[57].mxu1 }
 0x28f   :  { %4217 = vst [vmem:[%s5171_s2 + $0x1c8] sm:$0xff] %v4032_v46  ;;  %v4034_v48 = vpop.f32.mrb[58].mxu0  ;;  %4219 = vst [vmem:[%s5171_s2 + $0x1d8] sm:$0xff] %v4073_v47  ;;  %v4075_v49 = vpop.f32.mrb[58].mxu1 }
 0x290   :  { %v4035_v51 = vpop.f32.mrb[59].mxu0  ;;  %v4076_v52 = vpop.f32.mrb[59].mxu1 }
 0x2a9   :  { %v4112_v53 = vpop.f32.mrb[60].mxu0  ;;  %v4153_v54 = vpop.f32.mrb[60].mxu1 }
 0x2aa   :  { %4220 = vst [vmem:[%s5171_s2 + $0x1e0] sm:$0xff] %v4112_v53  ;;  %v4114_v55 = vpop.f32.mrb[61].mxu0  ;;  %4222 = vst [vmem:[%s5171_s2 + $0x1f0] sm:$0xff] %v4153_v54  ;;  %v4155_v56 = vpop.f32.mrb[61].mxu1 }
 0x2ab   :  { %4221 = vst [vmem:[%s5171_s2 + $0x1e8] sm:$0xff] %v4114_v55  ;;  %v4116_v57 = vpop.f32.mrb[62].mxu0  ;;  %4223 = vst [vmem:[%s5171_s2 + $0x1f8] sm:$0xff] %v4155_v56  ;;  %v4157_v58 = vpop.f32.mrb[62].mxu1 }
 0x2ac   :  { %v4117_v59 = vpop.f32.mrb[63].mxu0  ;;  %v4158_v60 = vpop.f32.mrb[63].mxu1 }
 0x2ad   :  { %4228 = vsyncpa [#allocation3], 1 }

// kernel: generator_forward.11
= control target key start
LH: loop header
LB: loop body
LE: loop exit
PB: predicated region body
PF: predicated region fallthrough
CT: control target
= control target key end

     0   :  { %s1319_s9 = smov 0   ;;  %s1321_s10 = smov 0   ;;  %s1465_s0 = inlined_call_operand.vmem [shape: bf16[4,128,512], index: 0, kind: input, shape index: {}]   ;;  %s1466_s1 = inlined_call_operand.vmem [shape: bf16[4,512,64], index: 1, kind: input, shape index: {}]   ;;  %s1467_s2 = inlined_call_operand.vmem [shape: f32[4,128,64], index: 2, kind: output, shape index: {}]  }
   0x1   :  { %s1323_s11 = smov 0  }
   0x2 LB: > { %s24_s12 = sadd.s32 1, %s1298_s10  ;;  %p972_p0 = scmp.ge.s32.totalorder %s1302_s11, 1  ;;  %s1302_s11 = sphi %s1323_s11, %s12_s11   ;;  %s1298_s10 = sphi %s1321_s10, %s1469_s10   ;;  %s1294_s9 = sphi %s1319_s9, %s1468_s9  }
   0x3   : > { %p26_p1 = scmp.ge.s32.totalorder %s24_s12, 4  ;;  %p144_p2 = scmp.lt.s32.totalorder %s1302_s11, 5 }
   0x5   : > { %s1471_s12 = smov (%p26_p1, %s24_s12), 0  ;;  %p145_p3 = pnand %p972_p0, %p144_p2 }
   0x6   : > { %p181_p4 = scmp.lt.s32.totalorder (!%p145_p3), %s1294_s9, 3  ;;  %vm849_vm0 = vcmask (!%p145_p3), 523264  }
   0x7   : > { %148 = sbr.rel (%p145_p3) target bundleno = 328 (0x148), region = 28 }
   0xe   : > { %s1473_s9 = smov (!%p181_p4, %s1294_s9), 3 }
   0xf   : > { %s1045_s13 = sshll.u32 %s1473_s9, 8  ;;  %s1047_s20 = sshll.u32 %s1473_s9, 7 }
  0x10   : > { %s1345_s16 = scalar_lea.vmem %s1466_s1, %s1045_s13  ;;  %s1382_s19 = scalar_lea.vmem %s1465_s0, %s1045_s13 }
  0x11   : > { %v1200_v0 = vld [vmem:[%s1345_s16 + $0x40] sm:$0xff]   ;;  %v1204_v4 = vld [vmem:[%s1345_s16 + $0x48] sm:$0xff]   ;;  %v1208_v8 = vld [vmem:[%s1345_s16 + $0x50] sm:$0xff]   ;;  %s1422_s23 = scalar_lea.vmem %s1467_s2, %s1047_s20 }
  0x12   : > { %v1201_v1 = vld [vmem:[%s1345_s16 + $0xc0] sm:$0xff]   ;;  %1048 = vmatprep.subr.bf16.mxu0 %v1200_v0  ;;  %v1205_v5 = vld [vmem:[%s1345_s16 + $0xc8] sm:$0xff]   ;;  %v1209_v9 = vld [vmem:[%s1345_s16 + $0xd0] sm:$0xff]  }
  0x13   : > { %v1202_v2 = vld [vmem:[%s1345_s16] sm:$0xff]   ;;  %1112 = vmatprep.subr.bf16.mxu1 %v1201_v1  ;;  %v1206_v6 = vld [vmem:[%s1345_s16 + $0x8] sm:$0xff]   ;;  %v1210_v10 = vld [vmem:[%s1345_s16 + $0x10] sm:$0xff]  }
  0x14   : > { %v1203_v3 = vld [vmem:[%s1345_s16 + $0x80] sm:$0xff]   ;;  %1049 = vmatpush3.bf16.msra.mxu0 %v1202_v2  ;;  %v1207_v7 = vld [vmem:[%s1345_s16 + $0x88] sm:$0xff]   ;;  %v1211_v11 = vld [vmem:[%s1345_s16 + $0x90] sm:$0xff]  }
  0x15   : > { %1113 = vmatpush3.bf16.msra.mxu1 %v1203_v3  ;;  %1050 = vmatprep.subr.bf16.mxu0 %v1204_v4  ;;  %v1212_v12 = vld [vmem:[%s1345_s16 + $0x58] sm:$0xff]   ;;  %v1216_v16 = vld [vmem:[%s1345_s16 + $0x60] sm:$0xff]   ;;  %v1220_v20 = vld [vmem:[%s1345_s16 + $0x68] sm:$0xff]  }
  0x16   : > { %1114 = vmatprep.subr.bf16.mxu1 %v1205_v5  ;;  %v1213_v13 = vld [vmem:[%s1345_s16 + $0xd8] sm:$0xff]   ;;  %v1217_v17 = vld [vmem:[%s1345_s16 + $0xe0] sm:$0xff]   ;;  %v1221_v21 = vld [vmem:[%s1345_s16 + $0xe8] sm:$0xff]  }
  0x17   : > { %v1214_v14 = vld [vmem:[%s1345_s16 + $0x18] sm:$0xff]   ;;  %v1218_v18 = vld [vmem:[%s1345_s16 + $0x20] sm:$0xff]   ;;  %v1222_v22 = vld [vmem:[%s1345_s16 + $0x28] sm:$0xff]  }
  0x18   : > { %1051 = vmatpush3.bf16.msra.mxu0 %v1206_v6  ;;  %v1215_v15 = vld [vmem:[%s1345_s16 + $0x98] sm:$0xff]   ;;  %v1219_v19 = vld [vmem:[%s1345_s16 + $0xa0] sm:$0xff]   ;;  %v1223_v23 = vld [vmem:[%s1345_s16 + $0xa8] sm:$0xff]  }
  0x19   : > { %1115 = vmatpush3.bf16.msra.mxu1 %v1207_v7  ;;  %1052 = vmatprep.subr.bf16.mxu0 %v1208_v8  ;;  %v1224_v24 = vld [vmem:[%s1345_s16 + $0x70] sm:$0xff]   ;;  %v1228_v28 = vld [vmem:[%s1345_s16 + $0x78] sm:$0xff]  }
  0x1a   : > { %1116 = vmatprep.subr.bf16.mxu1 %v1209_v9  ;;  %v1225_v25 = vld [vmem:[%s1345_s16 + $0xf0] sm:$0xff]   ;;  %v1229_v29 = vld [vmem:[%s1345_s16 + $0xf8] sm:$0xff]  }
  0x1b   : > { %v1226_v26 = vld [vmem:[%s1345_s16 + $0x30] sm:$0xff]   ;;  %v1230_v30 = vld [vmem:[%s1345_s16 + $0x38] sm:$0xff]  }
  0x1c   : > { %1053 = vmatpush3.bf16.msra.mxu0 %v1210_v10  ;;  %v1227_v27 = vld [vmem:[%s1345_s16 + $0xb0] sm:$0xff]   ;;  %v1231_v31 = vld [vmem:[%s1345_s16 + $0xb8] sm:$0xff]  }
  0x1d   : > { %1117 = vmatpush3.bf16.msra.mxu1 %v1211_v11  ;;  %1054 = vmatprep.subr.bf16.mxu0 %v1212_v12  ;;  %v1232_v32 = vld [vmem:[%s1382_s19] ss:$16 sps:$4 sm:$0xff]   ;;  %v1234_v33 = vld [vmem:[%s1382_s19 + $0x4] ss:$16 sps:$4 sm:$0xff]   ;;  %v1235_v34 = vld [vmem:[%s1382_s19 + $0x8] ss:$16 sps:$4 sm:$0xff]  }
  0x1e   : > { %1118 = vmatprep.subr.bf16.mxu1 %v1213_v13  ;;  %v1237_v35 = vld [vmem:[%s1382_s19 + $0xc] ss:$16 sps:$4 sm:$0xff]   ;;  %687 = vmatprep.mubr.bf16.mxu0 %v1234_v33  ;;  %v1238_v36 = vld [vmem:[%s1382_s19 + $0x24] ss:$16 sps:$4 sm:$0xff]   ;;  %v1242_v38 = vld [vmem:[%s1382_s19 + $0x20] ss:$16 sps:$4 sm:$0xff]  }
  0x1f   : > { %784 = vmatprep.mubr.bf16.mxu1 %v1237_v35  ;;  %v1240_v37 = vld [vmem:[%s1382_s19 + $0x2c] ss:$16 sps:$4 sm:$0xff]   ;;  %v1243_v39 = vld [vmem:[%s1382_s19 + $0x28] ss:$16 sps:$4 sm:$0xff]   ;;  %v1244_v40 = vld [vmem:[%s1382_s19 + $0x44] ss:$16 sps:$4 sm:$0xff]  }
  0x20   : > { %1055 = vmatpush3.bf16.msra.mxu0 %v1214_v14  ;;  %v1246_v41 = vld [vmem:[%s1382_s19 + $0x4c] ss:$16 sps:$4 sm:$0xff]   ;;  %v1248_v42 = vld [vmem:[%s1382_s19 + $0x40] ss:$16 sps:$4 sm:$0xff]   ;;  %v1249_v43 = vld [vmem:[%s1382_s19 + $0x48] ss:$16 sps:$4 sm:$0xff]  }
  0x21   : > { %1119 = vmatpush3.bf16.msra.mxu1 %v1215_v15  ;;  %1056 = vmatprep.subr.bf16.mxu0 %v1216_v16  ;;  %v1250_v44 = vld [vmem:[%s1382_s19 + $0x64] ss:$16 sps:$4 sm:$0xff]   ;;  %v1252_v45 = vld [vmem:[%s1382_s19 + $0x6c] ss:$16 sps:$4 sm:$0xff]   ;;  %v1254_v46 = vld [vmem:[%s1382_s19 + $0x60] ss:$16 sps:$4 sm:$0xff]  }
  0x22   : > { %1120 = vmatprep.subr.bf16.mxu1 %v1217_v17  ;;  %v1255_v47 = vld [vmem:[%s1382_s19 + $0x68] ss:$16 sps:$4 sm:$0xff]   ;;  %v1256_v48 = vld [vmem:[%s1382_s19 + $0x84] ss:$16 sps:$4 sm:$0xff]   ;;  %v1258_v49 = vld [vmem:[%s1382_s19 + $0x8c] ss:$16 sps:$4 sm:$0xff]  }
  0x23   : > { %v1260_v50 = vld [vmem:[%s1382_s19 + $0x80] ss:$16 sps:$4 sm:$0xff]   ;;  %v1261_v51 = vld [vmem:[%s1382_s19 + $0x88] ss:$16 sps:$4 sm:$0xff]   ;;  %v1262_v52 = vld [vmem:[%s1382_s19 + $0xa4] ss:$16 sps:$4 sm:$0xff]  }
  0x24   : > { %1057 = vmatpush3.bf16.msra.mxu0 %v1218_v18  ;;  %v1264_v53 = vld [vmem:[%s1382_s19 + $0xac] ss:$16 sps:$4 sm:$0xff]   ;;  %v1266_v54 = vld [vmem:[%s1382_s19 + $0xa0] ss:$16 sps:$4 sm:$0xff]   ;;  %v1267_v55 = vld [vmem:[%s1382_s19 + $0xa8] ss:$16 sps:$4 sm:$0xff]  }
  0x25   : > { %1121 = vmatpush3.bf16.msra.mxu1 %v1219_v19  ;;  %1058 = vmatprep.subr.bf16.mxu0 %v1220_v20  ;;  %v1268_v56 = vld [vmem:[%s1382_s19 + $0xc4] ss:$16 sps:$4 sm:$0xff]   ;;  %v1270_v57 = vld [vmem:[%s1382_s19 + $0xcc] ss:$16 sps:$4 sm:$0xff]   ;;  %v1272_v58 = vld [vmem:[%s1382_s19 + $0xc0] ss:$16 sps:$4 sm:$0xff]  }
  0x26   : > { %1122 = vmatprep.subr.bf16.mxu1 %v1221_v21  ;;  %v1273_v59 = vld [vmem:[%s1382_s19 + $0xc8] ss:$16 sps:$4 sm:$0xff]   ;;  %v1274_v60 = vld [vmem:[%s1382_s19 + $0xe4] ss:$16 sps:$4 sm:$0xff]   ;;  %v1276_v61 = vld [vmem:[%s1382_s19 + $0xec] ss:$16 sps:$4 sm:$0xff]  }
  0x27   : > { %v1278_v62 = vld [vmem:[%s1382_s19 + $0xe0] ss:$16 sps:$4 sm:$0xff]   ;;  %v1279_v63 = vld [vmem:[%s1382_s19 + $0xe8] ss:$16 sps:$4 sm:$0xff]  }
  0x28   : > { %1059 = vmatpush3.bf16.msra.mxu0 %v1222_v22 }
  0x29   : > { %1123 = vmatpush3.bf16.msra.mxu1 %v1223_v23  ;;  %1060 = vmatprep.subr.bf16.mxu0 %v1224_v24 }
  0x2a   : > { %1124 = vmatprep.subr.bf16.mxu1 %v1225_v25 }
  0x2c   : > { %1061 = vmatpush3.bf16.msra.mxu0 %v1226_v26 }
  0x2d   : > { %1125 = vmatpush3.bf16.msra.mxu1 %v1227_v27  ;;  %1062 = vmatprep.subr.bf16.mxu0 %v1228_v28 }
  0x2e   : > { %1126 = vmatprep.subr.bf16.mxu1 %v1229_v29 }
  0x30   : > { %1063 = vmatpush3.bf16.msra.mxu0 %v1230_v30 }
  0x31   : > { %1127 = vmatpush3.bf16.msra.mxu1 %v1231_v31 }
  0x33   : > { %688 = vmatmul.mubr.bf16.vlgmr.msra.gmra.mrb[0].mxu0 %v1232_v32 }
  0x34   : > { %785 = vmatmul.mubr.bf16.vlgmr.msra.gmra.mrb[0].mxu1 %v1235_v34  ;;  %695 = vmatprep.mubr.bf16.mxu0 %v1238_v36 }
  0x35   : > { %792 = vmatprep.mubr.bf16.mxu1 %v1240_v37 }
  0x3b   : > { %696 = vmatmul.mubr.bf16.gmra.mrb[4].mxu0 %v1242_v38 }
  0x3c   : > { %793 = vmatmul.mubr.bf16.gmra.mrb[4].mxu1 %v1243_v39  ;;  %703 = vmatprep.mubr.bf16.mxu0 %v1244_v40 }
  0x3d   : > { %800 = vmatprep.mubr.bf16.mxu1 %v1246_v41 }
  0x43   : > { %704 = vmatmul.mubr.bf16.gmra.mrb[8].mxu0 %v1248_v42 }
  0x44   : > { %801 = vmatmul.mubr.bf16.gmra.mrb[8].mxu1 %v1249_v43  ;;  %711 = vmatprep.mubr.bf16.mxu0 %v1250_v44 }
  0x45   : > { %808 = vmatprep.mubr.bf16.mxu1 %v1252_v45 }
  0x4b   : > { %712 = vmatmul.mubr.bf16.gmra.mrb[12].mxu0 %v1254_v46 }
  0x4c   : > { %809 = vmatmul.mubr.bf16.gmra.mrb[12].mxu1 %v1255_v47  ;;  %719 = vmatprep.mubr.bf16.mxu0 %v1256_v48 }
  0x4d   : > { %816 = vmatprep.mubr.bf16.mxu1 %v1258_v49 }
  0x53   : > { %720 = vmatmul.mubr.bf16.gmra.mrb[16].mxu0 %v1260_v50 }
  0x54   : > { %817 = vmatmul.mubr.bf16.gmra.mrb[16].mxu1 %v1261_v51  ;;  %727 = vmatprep.mubr.bf16.mxu0 %v1262_v52 }
  0x55   : > { %824 = vmatprep.mubr.bf16.mxu1 %v1264_v53 }
  0x5b   : > { %728 = vmatmul.mubr.bf16.gmra.mrb[20].mxu0 %v1266_v54 }
  0x5c   : > { %825 = vmatmul.mubr.bf16.gmra.mrb[20].mxu1 %v1267_v55  ;;  %735 = vmatprep.mubr.bf16.mxu0 %v1268_v56 }
  0x5d   : > { %832 = vmatprep.mubr.bf16.mxu1 %v1270_v57 }
  0x63   : > { %736 = vmatmul.mubr.bf16.gmra.mrb[24].mxu0 %v1272_v58 }
  0x64   : > { %833 = vmatmul.mubr.bf16.gmra.mrb[24].mxu1 %v1273_v59  ;;  %743 = vmatprep.mubr.bf16.mxu0 %v1274_v60 }
  0x65   : > { %840 = vmatprep.mubr.bf16.mxu1 %v1276_v61 }
  0x6b   : > { %744 = vmatmul.mubr.bf16.gmra.mrb[28].mxu0 %v1278_v62 }
  0x6c   : > { %841 = vmatmul.mubr.bf16.gmra.mrb[28].mxu1 %v1279_v63 }
 0x106   : > { %v1064_v0 = vpop.f32.mrb[0].mxu0 }
 0x107   : > { %v1128_v1 = vpop.f32.mrb[0].mxu1  ;;  %v1065_v2 = vpop.f32.mrb[1].mxu0 }
 0x108   : > { %v1066_v3 = vadd.f32 %v1065_v2, %v1064_v0  ;;  %v1129_v4 = vpop.f32.mrb[1].mxu1  ;;  %v1067_v5 = vpop.f32.mrb[2].mxu0 }
 0x109   : > { %v1130_v6 = vadd.f32 %v1129_v4, %v1128_v1  ;;  %v1131_v7 = vpop.f32.mrb[2].mxu1  ;;  %v1068_v8 = vpop.f32.mrb[3].mxu0 }
 0x10a   : > { %v1069_v9 = vadd.f32 %v1068_v8, %v1067_v5  ;;  %v1132_v10 = vpop.f32.mrb[3].mxu1 }
 0x10b   : > { %v787_v11 = vadd.f32 %v1130_v6, %v1066_v3  ;;  %v1133_v12 = vadd.f32 %v1132_v10, %v1131_v7 }
 0x10d   : > { %850 = vst.msk [vmem:[%s1422_s23] sm:$0xff] %vm849_vm0, %v787_v11  ;;  %v790_v13 = vadd.f32 %v1133_v12, %v1069_v9 }
 0x10e   : > { %v1070_v14 = vpop.f32.mrb[4].mxu0 }
 0x10f   : > { %851 = vst.msk [vmem:[%s1422_s23 + $0x8] sm:$0xff] %vm849_vm0, %v790_v13  ;;  %v1134_v15 = vpop.f32.mrb[4].mxu1  ;;  %v1071_v16 = vpop.f32.mrb[5].mxu0 }
 0x110   : > { %v1072_v17 = vadd.f32 %v1071_v16, %v1070_v14  ;;  %v1135_v18 = vpop.f32.mrb[5].mxu1  ;;  %v1073_v19 = vpop.f32.mrb[6].mxu0 }
 0x111   : > { %v1136_v20 = vadd.f32 %v1135_v18, %v1134_v15  ;;  %v1137_v21 = vpop.f32.mrb[6].mxu1  ;;  %v1074_v22 = vpop.f32.mrb[7].mxu0 }
 0x112   : > { %v1075_v23 = vadd.f32 %v1074_v22, %v1073_v19  ;;  %v1138_v24 = vpop.f32.mrb[7].mxu1 }
 0x113   : > { %v795_v25 = vadd.f32 %v1136_v20, %v1072_v17  ;;  %v1139_v26 = vadd.f32 %v1138_v24, %v1137_v21 }
 0x115   : > { %852 = vst.msk [vmem:[%s1422_s23 + $0x10] sm:$0xff] %vm849_vm0, %v795_v25  ;;  %v798_v27 = vadd.f32 %v1139_v26, %v1075_v23 }
 0x116   : > { %v1076_v28 = vpop.f32.mrb[8].mxu0 }
 0x117   : > { %853 = vst.msk [vmem:[%s1422_s23 + $0x18] sm:$0xff] %vm849_vm0, %v798_v27  ;;  %v1140_v29 = vpop.f32.mrb[8].mxu1  ;;  %v1077_v30 = vpop.f32.mrb[9].mxu0 }
 0x118   : > { %v1078_v31 = vadd.f32 %v1077_v30, %v1076_v28  ;;  %v1141_v32 = vpop.f32.mrb[9].mxu1  ;;  %v1079_v33 = vpop.f32.mrb[10].mxu0 }
 0x119   : > { %v1142_v34 = vadd.f32 %v1141_v32, %v1140_v29  ;;  %v1143_v35 = vpop.f32.mrb[10].mxu1  ;;  %v1080_v36 = vpop.f32.mrb[11].mxu0 }
 0x11a   : > { %v1081_v37 = vadd.f32 %v1080_v36, %v1079_v33  ;;  %v1144_v38 = vpop.f32.mrb[11].mxu1 }
 0x11b   : > { %v803_v39 = vadd.f32 %v1142_v34, %v1078_v31  ;;  %v1145_v40 = vadd.f32 %v1144_v38, %v1143_v35 }
 0x11d   : > { %854 = vst.msk [vmem:[%s1422_s23 + $0x20] sm:$0xff] %vm849_vm0, %v803_v39  ;;  %v806_v41 = vadd.f32 %v1145_v40, %v1081_v37 }
 0x11e   : > { %v1082_v42 = vpop.f32.mrb[12].mxu0 }
 0x11f   : > { %855 = vst.msk [vmem:[%s1422_s23 + $0x28] sm:$0xff] %vm849_vm0, %v806_v41  ;;  %v1146_v43 = vpop.f32.mrb[12].mxu1  ;;  %v1083_v44 = vpop.f32.mrb[13].mxu0 }
 0x120   : > { %v1084_v45 = vadd.f32 %v1083_v44, %v1082_v42  ;;  %v1147_v46 = vpop.f32.mrb[13].mxu1  ;;  %v1085_v47 = vpop.f32.mrb[14].mxu0 }
 0x121   : > { %v1148_v48 = vadd.f32 %v1147_v46, %v1146_v43  ;;  %v1149_v49 = vpop.f32.mrb[14].mxu1  ;;  %v1086_v50 = vpop.f32.mrb[15].mxu0 }
 0x122   : > { %v1087_v51 = vadd.f32 %v1086_v50, %v1085_v47  ;;  %v1150_v52 = vpop.f32.mrb[15].mxu1 }
 0x123   : > { %v811_v53 = vadd.f32 %v1148_v48, %v1084_v45  ;;  %v1151_v54 = vadd.f32 %v1150_v52, %v1149_v49 }
 0x125   : > { %856 = vst.msk [vmem:[%s1422_s23 + $0x30] sm:$0xff] %vm849_vm0, %v811_v53  ;;  %v814_v55 = vadd.f32 %v1151_v54, %v1087_v51 }
 0x126   : > { %v1088_v56 = vpop.f32.mrb[16].mxu0 }
 0x127   : > { %857 = vst.msk [vmem:[%s1422_s23 + $0x38] sm:$0xff] %vm849_vm0, %v814_v55  ;;  %v1152_v57 = vpop.f32.mrb[16].mxu1  ;;  %v1089_v58 = vpop.f32.mrb[17].mxu0 }
 0x128   : > { %v1090_v59 = vadd.f32 %v1089_v58, %v1088_v56  ;;  %v1153_v60 = vpop.f32.mrb[17].mxu1  ;;  %v1091_v61 = vpop.f32.mrb[18].mxu0 }
 0x129   : > { %v1154_v62 = vadd.f32 %v1153_v60, %v1152_v57  ;;  %v1155_v63 = vpop.f32.mrb[18].mxu1  ;;  %v1092_v0 = vpop.f32.mrb[19].mxu0 }
 0x12a   : > { %v1093_v1 = vadd.f32 %v1092_v0, %v1091_v61  ;;  %v1156_v2 = vpop.f32.mrb[19].mxu1 }
 0x12b   : > { %v819_v3 = vadd.f32 %v1154_v62, %v1090_v59  ;;  %v1157_v4 = vadd.f32 %v1156_v2, %v1155_v63 }
 0x12d   : > { %858 = vst.msk [vmem:[%s1422_s23 + $0x40] sm:$0xff] %vm849_vm0, %v819_v3  ;;  %v822_v5 = vadd.f32 %v1157_v4, %v1093_v1 }
 0x12e   : > { %v1094_v6 = vpop.f32.mrb[20].mxu0 }
 0x12f   : > { %859 = vst.msk [vmem:[%s1422_s23 + $0x48] sm:$0xff] %vm849_vm0, %v822_v5  ;;  %v1158_v7 = vpop.f32.mrb[20].mxu1  ;;  %v1095_v8 = vpop.f32.mrb[21].mxu0 }
 0x130   : > { %v1096_v9 = vadd.f32 %v1095_v8, %v1094_v6  ;;  %v1159_v10 = vpop.f32.mrb[21].mxu1  ;;  %v1097_v11 = vpop.f32.mrb[22].mxu0 }
 0x131   : > { %v1160_v12 = vadd.f32 %v1159_v10, %v1158_v7  ;;  %v1161_v13 = vpop.f32.mrb[22].mxu1  ;;  %v1098_v14 = vpop.f32.mrb[23].mxu0 }
 0x132   : > { %v1099_v15 = vadd.f32 %v1098_v14, %v1097_v11  ;;  %v1162_v16 = vpop.f32.mrb[23].mxu1 }
 0x133   : > { %v827_v17 = vadd.f32 %v1160_v12, %v1096_v9  ;;  %v1163_v18 = vadd.f32 %v1162_v16, %v1161_v13 }
 0x135   : > { %860 = vst.msk [vmem:[%s1422_s23 + $0x50] sm:$0xff] %vm849_vm0, %v827_v17  ;;  %v830_v19 = vadd.f32 %v1163_v18, %v1099_v15 }
 0x136   : > { %v1100_v20 = vpop.f32.mrb[24].mxu0 }
 0x137   : > { %861 = vst.msk [vmem:[%s1422_s23 + $0x58] sm:$0xff] %vm849_vm0, %v830_v19  ;;  %v1164_v21 = vpop.f32.mrb[24].mxu1  ;;  %v1101_v22 = vpop.f32.mrb[25].mxu0 }
 0x138   : > { %v1102_v23 = vadd.f32 %v1101_v22, %v1100_v20  ;;  %v1165_v24 = vpop.f32.mrb[25].mxu1  ;;  %v1103_v25 = vpop.f32.mrb[26].mxu0 }
 0x139   : > { %v1166_v26 = vadd.f32 %v1165_v24, %v1164_v21  ;;  %v1167_v27 = vpop.f32.mrb[26].mxu1  ;;  %v1104_v28 = vpop.f32.mrb[27].mxu0 }
 0x13a   : > { %v1105_v29 = vadd.f32 %v1104_v28, %v1103_v25  ;;  %v1168_v30 = vpop.f32.mrb[27].mxu1 }
 0x13b   : > { %v835_v31 = vadd.f32 %v1166_v26, %v1102_v23  ;;  %v1169_v32 = vadd.f32 %v1168_v30, %v1167_v27 }
 0x13d   : > { %862 = vst.msk [vmem:[%s1422_s23 + $0x60] sm:$0xff] %vm849_vm0, %v835_v31  ;;  %v838_v33 = vadd.f32 %v1169_v32, %v1105_v29 }
 0x13e   : > { %v1106_v34 = vpop.f32.mrb[28].mxu0 }
 0x13f   : > { %863 = vst.msk [vmem:[%s1422_s23 + $0x68] sm:$0xff] %vm849_vm0, %v838_v33  ;;  %v1170_v35 = vpop.f32.mrb[28].mxu1  ;;  %v1107_v36 = vpop.f32.mrb[29].mxu0 }
 0x140   : > { %v1108_v37 = vadd.f32 %v1107_v36, %v1106_v34  ;;  %v1171_v38 = vpop.f32.mrb[29].mxu1  ;;  %v1109_v39 = vpop.f32.mrb[30].mxu0 }
 0x141   : > { %v1172_v40 = vadd.f32 %v1171_v38, %v1170_v35  ;;  %v1173_v41 = vpop.f32.mrb[30].mxu1  ;;  %v1110_v42 = vpop.f32.mrb[31].mxu0 }
 0x142   : > { %v1111_v43 = vadd.f32 %v1110_v42, %v1109_v39  ;;  %v1174_v44 = vpop.f32.mrb[31].mxu1 }
 0x143   : > { %v843_v45 = vadd.f32 %v1172_v40, %v1108_v37  ;;  %v1175_v46 = vadd.f32 %v1174_v44, %v1173_v41 }
 0x145   : > { %864 = vst.msk [vmem:[%s1422_s23 + $0x70] sm:$0xff] %vm849_vm0, %v843_v45  ;;  %v846_v47 = vadd.f32 %v1175_v46, %v1111_v43 }
 0x147   : > { %865 = vst.msk [vmem:[%s1422_s23 + $0x78] sm:$0xff] %vm849_vm0, %v846_v47 }
 0x148 PF: > { %s12_s11 = sadd.s32 1, %s1302_s11   ;;  %s1468_s9 = smov %s1298_s10 }
 0x149   : > { %p9_p5 = scmp.ge.s32.totalorder %s12_s11, 6   ;;  %s1469_s10 = smov %s1471_s12 }
 0x14b   :  { %11 = sbr.rel (!%p9_p5) target bundleno = 2 (0x2), region = 61 }

// kernel: generator_forward.12
= control target key start
LH: loop header
LB: loop body
LE: loop exit
PB: predicated region body
PF: predicated region fallthrough
CT: control target
= control target key end

     0   :  { %vm78_vm0 = vcmask 523264   ;;  %vm880_vm1 = vcmask 519168   ;;  %s2197_s0 = inlined_call_operand.vmem [shape: f32[512,64], index: 0, kind: input, shape index: {}]   ;;  %s2198_s1 = inlined_call_operand.vmem [shape: f32[1,64], index: 1, kind: input, shape index: {}]   ;;  %s2199_s2 = inlined_call_operand.vmem [shape: f32[1,64], index: 2, kind: input, shape index: {}]   ;;  %s2200_s3 = inlined_call_operand.vmem [shape: bf16[512,64], index: 3, kind: output, shape index: {}]  }
   0x1   :  { %v1102_v0 = vld [vmem:[%s2197_s0] sm:$0xff]  ;;  %v1107_v1 = vld [vmem:[%s2197_s0 + $0x8] sm:$0xff]  ;;  %v1112_v2 = vld [vmem:[%s2197_s0 + $0x10] sm:$0xff] }
   0x2   :  { %v1117_v3 = vld [vmem:[%s2197_s0 + $0x18] sm:$0xff]  ;;  %v79_v4 = vsel %vm78_vm0, %v1102_v0, 0.0  ;;  %v80_v5 = vsel %vm78_vm0, %v1107_v1, 0.0  ;;  %v82_v6 = vsel %vm78_vm0, %v1112_v2, 0.0  ;;  %v1128_v7 = vld [vmem:[%s2197_s0 + $0x20] sm:$0xff]  ;;  %v1135_v10 = vld [vmem:[%s2197_s0 + $0x28] sm:$0xff]  ;;  %v213_v55 = vmul.f32 %v1102_v0, %v1102_v0 }
   0x3   :  { %v81_v8 = vadd.f32 %v80_v5, %v79_v4  ;;  %v84_v9 = vsel %vm78_vm0, %v1117_v3, 0.0  ;;  %v86_v12 = vsel %vm78_vm0, %v1128_v7, 0.0  ;;  %v1142_v13 = vld [vmem:[%s2197_s0 + $0x30] sm:$0xff]  ;;  %v88_v15 = vsel %vm78_vm0, %v1135_v10, 0.0  ;;  %v1149_v16 = vld [vmem:[%s2197_s0 + $0x38] sm:$0xff]  ;;  %v1156_v19 = vld [vmem:[%s2197_s0 + $0x40] sm:$0xff] }
   0x4   :  { %v90_v18 = vsel %vm78_vm0, %v1142_v13, 0.0  ;;  %v92_v21 = vsel %vm78_vm0, %v1149_v16, 0.0  ;;  %v1163_v22 = vld [vmem:[%s2197_s0 + $0x48] sm:$0xff]  ;;  %v94_v24 = vsel %vm78_vm0, %v1156_v19, 0.0  ;;  %v1170_v25 = vld [vmem:[%s2197_s0 + $0x50] sm:$0xff]  ;;  %v1177_v28 = vld [vmem:[%s2197_s0 + $0x58] sm:$0xff]  ;;  %v214_v56 = vmul.f32 %v1107_v1, %v1107_v1 }
   0x5   :  { %v83_v11 = vadd.f32 %v82_v6, %v81_v8  ;;  %v96_v27 = vsel %vm78_vm0, %v1163_v22, 0.0  ;;  %v98_v30 = vsel %vm78_vm0, %v1170_v25, 0.0  ;;  %v1184_v31 = vld [vmem:[%s2197_s0 + $0x60] sm:$0xff]  ;;  %v100_v33 = vsel %vm78_vm0, %v1177_v28, 0.0  ;;  %v1191_v34 = vld [vmem:[%s2197_s0 + $0x68] sm:$0xff]  ;;  %v1198_v37 = vld [vmem:[%s2197_s0 + $0x70] sm:$0xff] }
   0x6   :  { %v102_v36 = vsel %vm78_vm0, %v1184_v31, 0.0  ;;  %v104_v39 = vsel %vm78_vm0, %v1191_v34, 0.0  ;;  %v1205_v40 = vld [vmem:[%s2197_s0 + $0x78] sm:$0xff]  ;;  %v106_v42 = vsel %vm78_vm0, %v1198_v37, 0.0  ;;  %v1212_v43 = vld [vmem:[%s2197_s0 + $0x80] sm:$0xff]  ;;  %v1219_v46 = vld [vmem:[%s2197_s0 + $0x88] sm:$0xff]  ;;  %v215_v59 = vmul.f32 %v1112_v2, %v1112_v2 }
   0x7   :  { %v85_v14 = vadd.f32 %v84_v9, %v83_v11  ;;  %v108_v45 = vsel %vm78_vm0, %v1205_v40, 0.0  ;;  %v110_v48 = vsel %vm78_vm0, %v1212_v43, 0.0  ;;  %v1226_v49 = vld [vmem:[%s2197_s0 + $0x90] sm:$0xff]  ;;  %v112_v51 = vsel %vm78_vm0, %v1219_v46, 0.0  ;;  %v1233_v52 = vld [vmem:[%s2197_s0 + $0x98] sm:$0xff]  ;;  %v1244_v57 = vld [vmem:[%s2197_s0 + $0xa0] sm:$0xff] }
   0x8   :  { %v114_v54 = vsel %vm78_vm0, %v1226_v49, 0.0  ;;  %v116_v60 = vsel %vm78_vm0, %v1233_v52, 0.0  ;;  %v216_v61 = vmul.f32 %v1117_v3, %v1117_v3  ;;  %v1255_v62 = vld [vmem:[%s2197_s0 + $0xa8] sm:$0xff]  ;;  %v118_v4 = vsel %vm78_vm0, %v1244_v57, 0.0  ;;  %v1266_v9 = vld [vmem:[%s2197_s0 + $0xb0] sm:$0xff] }
   0x9   :  { %v87_v17 = vadd.f32 %v86_v12, %v85_v14  ;;  %v217_v5 = vmul.f32 %v1128_v7, %v1128_v7  ;;  %v277_v6 = vsel %vm78_vm0, %v213_v55, 0.0  ;;  %v278_v8 = vsel %vm78_vm0, %v214_v56, 0.0  ;;  %v1317_v55 = vld [vmem:[%s2197_s0 + $0xd8] sm:$0xff] }
   0xa   :  { %v279_v12 = vadd.f32 %v278_v8, %v277_v6  ;;  %v280_v14 = vsel %vm78_vm0, %v215_v59, 0.0  ;;  %v132_v6 = vsel %vm78_vm0, %v1317_v55, 0.0  ;;  %v224_v8 = vmul.f32 %v1177_v28, %v1177_v28 }
   0xb   :  { %v89_v20 = vadd.f32 %v88_v15, %v87_v17  ;;  %v120_v15 = vsel %vm78_vm0, %v1255_v62, 0.0  ;;  %v218_v17 = vmul.f32 %v1135_v10, %v1135_v10 }
   0xd   :  { %v91_v23 = vadd.f32 %v90_v18, %v89_v20  ;;  %v282_v18 = vsel %vm78_vm0, %v216_v61, 0.0  ;;  %v1277_v20 = vld [vmem:[%s2197_s0 + $0xb8] sm:$0xff] }
   0xf   :  { %v93_v26 = vadd.f32 %v92_v21, %v91_v23  ;;  %v281_v23 = vadd.f32 %v280_v14, %v279_v12  ;;  %v1337_v12 = vld [vmem:[%s2197_s0 + $0xe8] sm:$0xff] }
  0x10   :  { %2227 = vst [vmem:[#allocation3_spill] sm:$0xff] %v1337_v12 }
  0x11   :  { %v95_v29 = vadd.f32 %v94_v24, %v93_v26  ;;  %v122_v24 = vsel %vm78_vm0, %v1266_v9, 0.0  ;;  %v219_v26 = vmul.f32 %v1142_v13, %v1142_v13 }
  0x13   :  { %v97_v32 = vadd.f32 %v96_v27, %v95_v29  ;;  %v284_v27 = vsel %vm78_vm0, %v217_v5, 0.0  ;;  %v1287_v29 = vld [vmem:[%s2197_s0 + $0xc0] sm:$0xff] }
  0x15   :  { %v99_v35 = vadd.f32 %v98_v30, %v97_v32  ;;  %v283_v32 = vadd.f32 %v282_v18, %v281_v23  ;;  %v225_v18 = vmul.f32 %v1184_v31, %v1184_v31  ;;  %v1347_v23 = vld [vmem:[%s2197_s0 + $0xf0] sm:$0xff] }
  0x16   :  { %2228 = vst [vmem:[#allocation4_spill] sm:$0xff] %v1347_v23 }
  0x17   :  { %v101_v38 = vadd.f32 %v100_v33, %v99_v35  ;;  %v124_v33 = vsel %vm78_vm0, %v1277_v20, 0.0  ;;  %v220_v35 = vmul.f32 %v1149_v16, %v1149_v16 }
  0x19   :  { %v103_v41 = vadd.f32 %v102_v36, %v101_v38  ;;  %v286_v36 = vsel %vm78_vm0, %v218_v17, 0.0  ;;  %v1297_v38 = vld [vmem:[%s2197_s0 + $0xc8] sm:$0xff] }
  0x1b   :  { %v105_v44 = vadd.f32 %v104_v39, %v103_v41  ;;  %v285_v41 = vadd.f32 %v284_v27, %v283_v32  ;;  %v136_v27 = vsel %vm78_vm0, %v1337_v12, 0.0  ;;  %v298_v32 = vsel %vm78_vm0, %v224_v8, 0.0 }
  0x1d   :  { %v107_v47 = vadd.f32 %v106_v42, %v105_v44  ;;  %v126_v42 = vsel %vm78_vm0, %v1287_v29, 0.0  ;;  %v221_v44 = vmul.f32 %v1156_v19, %v1156_v19 }
  0x1f   :  { %v109_v50 = vadd.f32 %v108_v45, %v107_v47  ;;  %v288_v45 = vsel %vm78_vm0, %v219_v26, 0.0  ;;  %v1307_v47 = vld [vmem:[%s2197_s0 + $0xd0] sm:$0xff]  ;;  %v292_v61 = vsel %vm78_vm0, %v221_v44, 0.0  ;;  %v1367_v44 = vld [vmem:[%s2197_s0 + $0x100] sm:$0xff] }
  0x20   :  { %v130_v59 = vsel %vm78_vm0, %v1307_v47, 0.0  ;;  %2230 = vst [vmem:[#allocation6_spill] sm:$0xff] %v1367_v44 }
  0x21   :  { %v111_v53 = vadd.f32 %v110_v48, %v109_v50  ;;  %v287_v50 = vadd.f32 %v286_v36, %v285_v41  ;;  %v227_v41 = vmul.f32 %v1198_v37, %v1198_v37 }
  0x23   :  { %v113_v58 = vadd.f32 %v112_v51, %v111_v53  ;;  %v128_v51 = vsel %vm78_vm0, %v1297_v38, 0.0  ;;  %v222_v53 = vmul.f32 %v1163_v22, %v1163_v22 }
  0x25   :  { %v115_v63 = vadd.f32 %v114_v54, %v113_v58  ;;  %v290_v54 = vsel %vm78_vm0, %v220_v35, 0.0  ;;  %v289_v58 = vadd.f32 %v288_v45, %v287_v50 }
  0x27   :  { %v117_v11 = vadd.f32 %v116_v60, %v115_v63  ;;  %v223_v60 = vmul.f32 %v1170_v25, %v1170_v25  ;;  %v1327_v63 = vld [vmem:[%s2197_s0 + $0xe0] sm:$0xff]  ;;  %v291_v5 = vadd.f32 %v290_v54, %v289_v58  ;;  %v1377_v54 = vld [vmem:[%s2197_s0 + $0x108] sm:$0xff] }
  0x28   :  { %2226 = vst [vmem:[#allocation2_spill] sm:$0xff] %v1327_v63  ;;  %v134_v17 = vsel %vm78_vm0, %v1327_v63, 0.0  ;;  %2231 = vst [vmem:[#allocation7_spill] sm:$0xff] %v1377_v54  ;;  %v144_v8 = vsel %vm78_vm0, %v1377_v54, 0.0 }
  0x29   :  { %v119_v21 = vadd.f32 %v118_v4, %v117_v11  ;;  %v294_v11 = vsel %vm78_vm0, %v222_v53, 0.0 }
  0x2b   :  { %v121_v30 = vadd.f32 %v120_v15, %v119_v21  ;;  %v293_v15 = vadd.f32 %v292_v61, %v291_v5  ;;  %v296_v21 = vsel %vm78_vm0, %v223_v60, 0.0  ;;  %v229_v60 = vmul.f32 %v1212_v43, %v1212_v43 }
  0x2c   :  { %v304_v61 = vsel %vm78_vm0, %v227_v41, 0.0  ;;  %v1417_v41 = vld [vmem:[%s2197_s0 + $0x128] sm:$0xff] }
  0x2d   :  { %v123_v39 = vadd.f32 %v122_v24, %v121_v30  ;;  %v295_v26 = vadd.f32 %v294_v11, %v293_v15  ;;  %v226_v30 = vmul.f32 %v1191_v34, %v1191_v34  ;;  %v230_v11 = vmul.f32 %v1219_v46, %v1219_v46  ;;  %v1397_v15 = vld [vmem:[%s2197_s0 + $0x118] sm:$0xff]  ;;  %2235 = vst [vmem:[#allocation11_spill] sm:$0xff] %v1417_v41 }
  0x2e   :  { %2233 = vst [vmem:[#allocation9_spill] sm:$0xff] %v1397_v15 }
  0x2f   :  { %v125_v48 = vadd.f32 %v124_v33, %v123_v39  ;;  %v1357_v33 = vld [vmem:[%s2197_s0 + $0xf8] sm:$0xff]  ;;  %v297_v36 = vadd.f32 %v296_v21, %v295_v26  ;;  %v138_v39 = vsel %vm78_vm0, %v1347_v23, 0.0  ;;  %v302_v53 = vsel %vm78_vm0, %v226_v30, 0.0 }
  0x30   :  { %2229 = vst [vmem:[#allocation5_spill] sm:$0xff] %v1357_v33  ;;  %v140_v50 = vsel %vm78_vm0, %v1357_v33, 0.0  ;;  %v308_v26 = vsel %vm78_vm0, %v229_v60, 0.0  ;;  %v234_v60 = vmul.f32 %v1255_v62, %v1255_v62 }
  0x31   :  { %v127_v56 = vadd.f32 %v126_v42, %v125_v48  ;;  %v300_v42 = vsel %vm78_vm0, %v225_v18, 0.0  ;;  %v299_v48 = vadd.f32 %v298_v32, %v297_v36  ;;  %v232_v36 = vmul.f32 %v1233_v52, %v1233_v52 }
  0x33   :  { %v129_v4 = vadd.f32 %v128_v51, %v127_v56  ;;  %v228_v51 = vmul.f32 %v1205_v40, %v1205_v40  ;;  %v301_v58 = vadd.f32 %v300_v42, %v299_v48 }
  0x35   :  { %v131_v14 = vadd.f32 %v130_v59, %v129_v4  ;;  %v142_v59 = vsel %vm78_vm0, %v1367_v44, 0.0  ;;  %v1387_v4 = vld [vmem:[%s2197_s0 + $0x110] sm:$0xff] }
  0x36   :  { %2232 = vst [vmem:[#allocation8_spill] sm:$0xff] %v1387_v4  ;;  %v146_v21 = vsel %vm78_vm0, %v1387_v4, 0.0 }
  0x37   :  { %v133_v24 = vadd.f32 %v132_v6, %v131_v14  ;;  %v303_v6 = vadd.f32 %v302_v53, %v301_v58  ;;  %v306_v14 = vsel %vm78_vm0, %v228_v51, 0.0  ;;  %v1427_v53 = vld [vmem:[%s2197_s0 + $0x130] sm:$0xff] }
  0x39   :  { %v135_v35 = vadd.f32 %v134_v17, %v133_v24  ;;  %v305_v18 = vadd.f32 %v304_v61, %v303_v6  ;;  %v231_v24 = vmul.f32 %v1226_v49, %v1226_v49  ;;  %v314_v61 = vsel %vm78_vm0, %v232_v36, 0.0 }
  0x3b   :  { %v137_v45 = vadd.f32 %v136_v27, %v135_v35  ;;  %v1407_v27 = vld [vmem:[%s2197_s0 + $0x120] sm:$0xff]  ;;  %v307_v32 = vadd.f32 %v306_v14, %v305_v18  ;;  %v148_v35 = vsel %vm78_vm0, %v1397_v15, 0.0  ;;  %v312_v51 = vsel %vm78_vm0, %v231_v24, 0.0 }
  0x3c   :  { %2234 = vst [vmem:[#allocation10_spill] sm:$0xff] %v1407_v27  ;;  %v150_v48 = vsel %vm78_vm0, %v1407_v27, 0.0  ;;  %v235_v14 = vmul.f32 %v1266_v9, %v1266_v9  ;;  %v1447_v18 = vld [vmem:[%s2197_s0 + $0x140] sm:$0xff] }
  0x3d   :  { %v139_v56 = vadd.f32 %v138_v39, %v137_v45  ;;  %v310_v39 = vsel %vm78_vm0, %v230_v11, 0.0  ;;  %v309_v45 = vadd.f32 %v308_v26, %v307_v32  ;;  %v154_v11 = vsel %vm78_vm0, %v1427_v53, 0.0 }
  0x3e   :  { %v318_v32 = vsel %vm78_vm0, %v234_v60, 0.0 }
  0x3f   :  { %v141_v5 = vadd.f32 %v140_v50, %v139_v56  ;;  %v233_v50 = vmul.f32 %v1244_v57, %v1244_v57  ;;  %v311_v58 = vadd.f32 %v310_v39, %v309_v45  ;;  %v237_v45 = vmul.f32 %v1287_v29, %v1287_v29 }
  0x41   :  { %v143_v17 = vadd.f32 %v142_v59, %v141_v5  ;;  %v152_v59 = vsel %vm78_vm0, %v1417_v41, 0.0  ;;  %v1437_v5 = vld [vmem:[%s2197_s0 + $0x138] sm:$0xff] }
  0x42   :  { %v156_v26 = vsel %vm78_vm0, %v1437_v5, 0.0 }
  0x43   :  { %v145_v30 = vadd.f32 %v144_v8, %v143_v17  ;;  %v313_v8 = vadd.f32 %v312_v51, %v311_v58  ;;  %v316_v17 = vsel %vm78_vm0, %v233_v50, 0.0  ;;  %v1467_v50 = vld [vmem:[%s2197_s0 + $0x150] sm:$0xff] }
  0x45   :  { %v147_v42 = vadd.f32 %v146_v21, %v145_v30  ;;  %v315_v24 = vadd.f32 %v314_v61, %v313_v8  ;;  %v236_v30 = vmul.f32 %v1277_v20, %v1277_v20  ;;  %v1477_v61 = vld [vmem:[%s2197_s0 + $0x158] sm:$0xff] }
  0x46   :  { %2236 = vst [vmem:[#allocation12_spill] sm:$0xff] %v1477_v61 }
  0x47   :  { %v149_v56 = vadd.f32 %v148_v35, %v147_v42  ;;  %v1457_v35 = vld [vmem:[%s2197_s0 + $0x148] sm:$0xff]  ;;  %v317_v39 = vadd.f32 %v316_v17, %v315_v24  ;;  %v158_v42 = vsel %vm78_vm0, %v1447_v18, 0.0  ;;  %v322_v60 = vsel %vm78_vm0, %v236_v30, 0.0 }
  0x48   :  { %v160_v58 = vsel %vm78_vm0, %v1457_v35, 0.0  ;;  %v324_v17 = vsel %vm78_vm0, %v237_v45, 0.0  ;;  %v164_v30 = vsel %vm78_vm0, %v1477_v61, 0.0 }
  0x49   :  { %v151_v6 = vadd.f32 %v150_v48, %v149_v56  ;;  %v320_v48 = vsel %vm78_vm0, %v235_v14, 0.0  ;;  %v319_v56 = vadd.f32 %v318_v32, %v317_v39  ;;  %v239_v14 = vmul.f32 %v1307_v47, %v1307_v47  ;;  %v1497_v39 = vld [vmem:[%s2197_s0 + $0x168] sm:$0xff] }
  0x4a   :  { %v240_v32 = vmul.f32 %v1317_v55, %v1317_v55  ;;  %2237 = vst [vmem:[#allocation13_spill] sm:$0xff] %v1497_v39 }
  0x4b   :  { %v153_v21 = vadd.f32 %v152_v59, %v151_v6  ;;  %v238_v59 = vmul.f32 %v1297_v38, %v1297_v38  ;;  %v321_v8 = vadd.f32 %v320_v48, %v319_v56  ;;  %v328_v56 = vsel %vm78_vm0, %v239_v14, 0.0 }
  0x4d   :  { %v155_v36 = vadd.f32 %v154_v11, %v153_v21  ;;  %v162_v11 = vsel %vm78_vm0, %v1467_v50, 0.0  ;;  %v1487_v21 = vld [vmem:[%s2197_s0 + $0x160] sm:$0xff] }
  0x4e   :  { %v166_v48 = vsel %vm78_vm0, %v1487_v21, 0.0 }
  0x4f   :  { %v157_v51 = vadd.f32 %v156_v26, %v155_v36  ;;  %v323_v26 = vadd.f32 %v322_v60, %v321_v8  ;;  %v326_v36 = vsel %vm78_vm0, %v238_v59, 0.0  ;;  %v242_v8 = vmul.f32 %v1337_v12, %v1337_v12 }
  0x51   :  { %v159_v6 = vadd.f32 %v158_v42, %v157_v51  ;;  %v325_v45 = vadd.f32 %v324_v17, %v323_v26  ;;  %v241_v51 = vmul.f32 %v1327_v63, %v1327_v63  ;;  %v1517_v17 = vld [vmem:[%s2197_s0 + $0x178] sm:$0xff] }
  0x52   :  { %2238 = vst [vmem:[#allocation14_spill] sm:$0xff] %v1517_v17  ;;  %v172_v12 = vsel %vm78_vm0, %v1517_v17, 0.0 }
  0x53   :  { %v161_v24 = vadd.f32 %v160_v58, %v159_v6  ;;  %v1507_v58 = vld [vmem:[%s2197_s0 + $0x170] sm:$0xff]  ;;  %v327_v60 = vadd.f32 %v326_v36, %v325_v45  ;;  %v168_v6 = vsel %vm78_vm0, %v1497_v39, 0.0  ;;  %v332_v36 = vsel %vm78_vm0, %v241_v51, 0.0 }
  0x54   :  { %v170_v26 = vsel %vm78_vm0, %v1507_v58, 0.0 }
  0x55   :  { %v163_v42 = vadd.f32 %v162_v11, %v161_v24  ;;  %v330_v11 = vsel %vm78_vm0, %v240_v32, 0.0  ;;  %v329_v24 = vadd.f32 %v328_v56, %v327_v60  ;;  %v334_v56 = vsel %vm78_vm0, %v242_v8, 0.0 }
  0x57   :  { %v165_v59 = vadd.f32 %v164_v30, %v163_v42  ;;  %v243_v30 = vmul.f32 %v1347_v23, %v1347_v23  ;;  %v1527_v42 = vld [vmem:[%s2197_s0 + $0x180] sm:$0xff]  ;;  %v331_v45 = vadd.f32 %v330_v11, %v329_v24 }
  0x58   :  { %v174_v23 = vsel %vm78_vm0, %v1527_v42, 0.0 }
  0x59   :  { %v167_v14 = vadd.f32 %v166_v48, %v165_v59  ;;  %v244_v48 = vmul.f32 %v1357_v33, %v1357_v33  ;;  %v1537_v59 = vld [vmem:[%s2197_s0 + $0x188] sm:$0xff]  ;;  %v333_v60 = vadd.f32 %v332_v36, %v331_v45  ;;  %v336_v11 = vsel %vm78_vm0, %v243_v30, 0.0 }
  0x5a   :  { %2239 = vst [vmem:[#allocation15_spill] sm:$0xff] %v1537_v59  ;;  %v176_v33 = vsel %vm78_vm0, %v1537_v59, 0.0 }
  0x5b   :  { %v169_v32 = vadd.f32 %v168_v6, %v167_v14  ;;  %v245_v6 = vmul.f32 %v1367_v44, %v1367_v44  ;;  %v1547_v14 = vld [vmem:[%s2197_s0 + $0x190] sm:$0xff]  ;;  %v335_v24 = vadd.f32 %v334_v56, %v333_v60  ;;  %v338_v36 = vsel %vm78_vm0, %v244_v48, 0.0 }
  0x5c   :  { %v178_v44 = vsel %vm78_vm0, %v1547_v14, 0.0 }
  0x5d   :  { %v171_v51 = vadd.f32 %v170_v26, %v169_v32  ;;  %v246_v26 = vmul.f32 %v1377_v54, %v1377_v54  ;;  %v1557_v32 = vld [vmem:[%s2197_s0 + $0x198] sm:$0xff]  ;;  %v337_v45 = vadd.f32 %v336_v11, %v335_v24  ;;  %v340_v56 = vsel %vm78_vm0, %v245_v6, 0.0 }
  0x5e   :  { %2240 = vst [vmem:[#allocation16_spill] sm:$0xff] %v1557_v32  ;;  %v180_v54 = vsel %vm78_vm0, %v1557_v32, 0.0 }
  0x5f   :  { %v173_v8 = vadd.f32 %v172_v12, %v171_v51  ;;  %v247_v12 = vmul.f32 %v1387_v4, %v1387_v4  ;;  %v1567_v51 = vld [vmem:[%s2197_s0 + $0x1a0] sm:$0xff]  ;;  %v339_v60 = vadd.f32 %v338_v36, %v337_v45  ;;  %v342_v11 = vsel %vm78_vm0, %v246_v26, 0.0 }
  0x60   :  { %2241 = vst [vmem:[#allocation17_spill] sm:$0xff] %v1567_v51  ;;  %v182_v4 = vsel %vm78_vm0, %v1567_v51, 0.0 }
  0x61   :  { %v175_v30 = vadd.f32 %v174_v23, %v173_v8  ;;  %v248_v23 = vmul.f32 %v1397_v15, %v1397_v15  ;;  %v1577_v8 = vld [vmem:[%s2197_s0 + $0x1a8] sm:$0xff]  ;;  %v341_v24 = vadd.f32 %v340_v56, %v339_v60  ;;  %v344_v36 = vsel %vm78_vm0, %v247_v12, 0.0 }
  0x62   :  { %2242 = vst [vmem:[#allocation18_spill] sm:$0xff] %v1577_v8  ;;  %v184_v15 = vsel %vm78_vm0, %v1577_v8, 0.0 }
  0x63   :  { %v177_v48 = vadd.f32 %v176_v33, %v175_v30  ;;  %v249_v33 = vmul.f32 %v1407_v27, %v1407_v27  ;;  %v1587_v30 = vld [vmem:[%s2197_s0 + $0x1b0] sm:$0xff]  ;;  %v343_v45 = vadd.f32 %v342_v11, %v341_v24  ;;  %v346_v56 = vsel %vm78_vm0, %v248_v23, 0.0 }
  0x64   :  { %2243 = vst [vmem:[#allocation19_spill] sm:$0xff] %v1587_v30  ;;  %v186_v27 = vsel %vm78_vm0, %v1587_v30, 0.0 }
  0x65   :  { %v179_v6 = vadd.f32 %v178_v44, %v177_v48  ;;  %v250_v44 = vmul.f32 %v1417_v41, %v1417_v41  ;;  %v1597_v48 = vld [vmem:[%s2197_s0 + $0x1b8] sm:$0xff]  ;;  %v345_v60 = vadd.f32 %v344_v36, %v343_v45  ;;  %v348_v11 = vsel %vm78_vm0, %v249_v33, 0.0 }
  0x66   :  { %v188_v23 = vsel %vm78_vm0, %v1597_v48, 0.0  ;;  %v252_v41 = vmul.f32 %v1437_v5, %v1437_v5  ;;  %v253_v33 = vmul.f32 %v1447_v18, %v1447_v18 }
  0x67   :  { %v181_v26 = vadd.f32 %v180_v54, %v179_v6  ;;  %v251_v54 = vmul.f32 %v1427_v53, %v1427_v53  ;;  %v347_v24 = vadd.f32 %v346_v56, %v345_v60  ;;  %v350_v63 = vsel %vm78_vm0, %v250_v44, 0.0 }
  0x68   :  { %v254_v44 = vmul.f32 %v1457_v35, %v1457_v35  ;;  %v354_v60 = vsel %vm78_vm0, %v252_v41, 0.0 }
  0x69   :  { %v183_v12 = vadd.f32 %v182_v4, %v181_v26  ;;  %v1612_v4 = vld [vmem:[%s2197_s0 + $0x1c0] sm:$0xff]  ;;  %v349_v26 = vadd.f32 %v348_v11, %v347_v24 }
  0x6a   :  { %v358_v41 = vsel %vm78_vm0, %v254_v44, 0.0 }
  0x6b   :  { %v185_v6 = vadd.f32 %v184_v15, %v183_v12  ;;  %v352_v15 = vsel %vm78_vm0, %v251_v54, 0.0  ;;  %v351_v56 = vadd.f32 %v350_v63, %v349_v26  ;;  %v190_v12 = vsel %vm78_vm0, %v1612_v4, 0.0  ;;  %v1638_v26 = vld [vmem:[%s2197_s0 + $0x1d0] sm:$0xff] }
  0x6c   :  { %v356_v54 = vsel %vm78_vm0, %v253_v33, 0.0  ;;  %2245 = vst [vmem:[#allocation21_spill] sm:$0xff] %v1638_v26 }
  0x6d   :  { %v187_v36 = vadd.f32 %v186_v27, %v185_v6  ;;  %v1625_v27 = vld [vmem:[%s2197_s0 + $0x1c8] sm:$0xff]  ;;  %v353_v11 = vadd.f32 %v352_v15, %v351_v56  ;;  %v255_v6 = vmul.f32 %v1467_v50, %v1467_v50  ;;  %v257_v56 = vmul.f32 %v1487_v21, %v1487_v21 }
  0x6e   :  { %2244 = vst [vmem:[#allocation20_spill] sm:$0xff] %v1625_v27 }
  0x6f   :  { %v189_v45 = vadd.f32 %v188_v23, %v187_v36  ;;  %v355_v24 = vadd.f32 %v354_v60, %v353_v11  ;;  %v192_v23 = vsel %vm78_vm0, %v1625_v27, 0.0  ;;  %v256_v36 = vmul.f32 %v1477_v61, %v1477_v61  ;;  %v1651_v61 = vld [vmem:[%s2197_s0 + $0x1d8] sm:$0xff] }
  0x70   :  { %v360_v33 = vsel %vm78_vm0, %v255_v6, 0.0  ;;  %v194_v60 = vsel %vm78_vm0, %v1638_v26, 0.0  ;;  %v258_v11 = vmul.f32 %v1497_v39, %v1497_v39  ;;  %2246 = vst [vmem:[#allocation22_spill] sm:$0xff] %v1651_v61  ;;  %v364_v6 = vsel %vm78_vm0, %v257_v56, 0.0  ;;  %v1664_v39 = vld [vmem:[%s2197_s0 + $0x1e0] sm:$0xff] }
  0x71   :  { %v191_v63 = vadd.f32 %v190_v12, %v189_v45  ;;  %v357_v15 = vadd.f32 %v356_v54, %v355_v24  ;;  %v362_v44 = vsel %vm78_vm0, %v256_v36, 0.0  ;;  %v259_v24 = vmul.f32 %v1507_v58, %v1507_v58  ;;  %2247 = vst [vmem:[#allocation23_spill] sm:$0xff] %v1664_v39 }
  0x72   :  { %v366_v36 = vsel %vm78_vm0, %v258_v11, 0.0 }
  0x73   :  { %v193_v45 = vadd.f32 %v192_v23, %v191_v63  ;;  %v359_v12 = vadd.f32 %v358_v41, %v357_v15  ;;  %v196_v41 = vsel %vm78_vm0, %v1651_v61, 0.0  ;;  %v260_v15 = vmul.f32 %v1517_v17, %v1517_v17  ;;  %v1677_v17 = vld [vmem:[%s2197_s0 + $0x1e8] sm:$0xff] }
  0x74   :  { %v368_v56 = vsel %vm78_vm0, %v259_v24, 0.0  ;;  %2248 = vst [vmem:[#allocation24_spill] sm:$0xff] %v1677_v17 }
  0x75   :  { %v361_v54 = vadd.f32 %v360_v33, %v359_v12  ;;  %v195_v63 = vadd.f32 %v194_v60, %v193_v45  ;;  %v261_v12 = vmul.f32 %v1527_v42, %v1527_v42  ;;  %v370_v11 = vsel %vm78_vm0, %v260_v15, 0.0 }
  0x77   :  { %v363_v23 = vadd.f32 %v362_v44, %v361_v54  ;;  %v197_v45 = vadd.f32 %v196_v41, %v195_v63  ;;  %v198_v44 = vsel %vm78_vm0, %v1664_v39, 0.0  ;;  %v262_v54 = vmul.f32 %v1537_v59, %v1537_v59  ;;  %v1690_v59 = vld [vmem:[%s2197_s0 + $0x1f0] sm:$0xff] }
  0x78   :  { %v372_v24 = vsel %vm78_vm0, %v261_v12, 0.0  ;;  %2249 = vst [vmem:[#allocation25_spill] sm:$0xff] %v1690_v59 }
  0x79   :  { %v365_v33 = vadd.f32 %v364_v6, %v363_v23  ;;  %v263_v23 = vmul.f32 %v1547_v14, %v1547_v14  ;;  %v199_v63 = vadd.f32 %v198_v44, %v197_v45  ;;  %v374_v15 = vsel %vm78_vm0, %v262_v54, 0.0 }
  0x7b   :  { %v367_v60 = vadd.f32 %v366_v36, %v365_v33  ;;  %v200_v36 = vsel %vm78_vm0, %v1677_v17, 0.0  ;;  %v264_v33 = vmul.f32 %v1557_v32, %v1557_v32  ;;  %v376_v12 = vsel %vm78_vm0, %v263_v23, 0.0  ;;  %v1703_v32 = vld [vmem:[%s2197_s0 + $0x1f8] sm:$0xff] }
  0x7c   :  { %v201_v45 = vadd.f32 %v200_v36, %v199_v63  ;;  %2250 = vst [vmem:[#allocation26_spill] sm:$0xff] %v1703_v32 }
  0x7d   :  { %v369_v6 = vadd.f32 %v368_v56, %v367_v60  ;;  %v265_v60 = vmul.f32 %v1567_v51, %v1567_v51  ;;  %v378_v54 = vsel %vm78_vm0, %v264_v33, 0.0  ;;  %v269_v51 = vmul.f32 %v1612_v4, %v1612_v4 }
  0x7f   :  { %v371_v41 = vadd.f32 %v370_v11, %v369_v6  ;;  %v202_v11 = vsel %vm78_vm0, %v1690_v59, 0.0  ;;  %v266_v6 = vmul.f32 %v1577_v8, %v1577_v8  ;;  %v380_v23 = vsel %vm78_vm0, %v265_v60, 0.0 }
  0x80   :  { %v203_v63 = vadd.f32 %v202_v11, %v201_v45  ;;  %v270_v60 = vmul.f32 %v1625_v27, %v1625_v27 }
  0x81   :  { %v373_v56 = vadd.f32 %v372_v24, %v371_v41  ;;  %v267_v41 = vmul.f32 %v1587_v30, %v1587_v30  ;;  %v382_v33 = vsel %vm78_vm0, %v266_v6, 0.0 }
  0x83   :  { %v375_v44 = vadd.f32 %v374_v15, %v373_v56  ;;  %v204_v15 = vsel %vm78_vm0, %v1703_v32, 0.0  ;;  %v268_v56 = vmul.f32 %v1597_v48, %v1597_v48 }
  0x85   :  { %v377_v24 = vadd.f32 %v376_v12, %v375_v44  ;;  %v384_v12 = vsel %vm78_vm0, %v267_v41, 0.0  ;;  %v205_v44 = vadd.f32 %v204_v15, %v203_v63  ;;  %v386_v45 = vsel %vm78_vm0, %v268_v56, 0.0 }
  0x86   :  { %v390_v41 = vsel %vm78_vm0, %v270_v60, 0.0 }
  0x87   :  { %v379_v36 = vadd.f32 %v378_v54, %v377_v24  ;;  %v271_v54 = vmul.f32 %v1638_v26, %v1638_v26  ;;  %v388_v24 = vsel %vm78_vm0, %v269_v51, 0.0  ;;  %v206_v6 = vrot.slane %v205_v44, 4 }
  0x89   :  { %v381_v8 = vadd.f32 %v380_v23, %v379_v36  ;;  %v272_v36 = vmul.f32 %v1651_v61, %v1651_v61  ;;  %v392_v15 = vsel %vm78_vm0, %v271_v54, 0.0  ;;  %v207_v56 = vadd.f32 %v206_v6, %v205_v44 }
  0x8b   :  { %v383_v30 = vadd.f32 %v382_v33, %v381_v8  ;;  %v273_v8 = vmul.f32 %v1664_v39, %v1664_v39  ;;  %v274_v33 = vmul.f32 %v1677_v17, %v1677_v17  ;;  %v394_v51 = vsel %vm78_vm0, %v272_v36, 0.0 }
  0x8c   :  { %v208_v60 = vrot.slane %v207_v56, 2 }
  0x8d   :  { %v385_v11 = vadd.f32 %v384_v12, %v383_v30  ;;  %v398_v54 = vsel %vm78_vm0, %v274_v33, 0.0 }
  0x8f   :  { %v387_v23 = vadd.f32 %v386_v45, %v385_v11  ;;  %v275_v45 = vmul.f32 %v1690_v59, %v1690_v59  ;;  %v396_v11 = vsel %vm78_vm0, %v273_v8, 0.0 }
  0x91   :  { %v389_v63 = vadd.f32 %v388_v24, %v387_v23  ;;  %v276_v23 = vmul.f32 %v1703_v32, %v1703_v32  ;;  %v400_v6 = vsel %vm78_vm0, %v275_v45, 0.0 }
  0x93   :  { %v391_v30 = vadd.f32 %v390_v41, %v389_v63  ;;  %v209_v41 = vadd.f32 %v208_v60, %v207_v56  ;;  %v402_v36 = vsel %vm78_vm0, %v276_v23, 0.0  ;;  %v421_v56 = vlaneseq  ;;  %v413_v60 = vld [vmem:[%s2198_s1] sm:$0x1] }
  0x95   :  { %v393_v12 = vadd.f32 %v392_v15, %v391_v30  ;;  %v210_v30 = vrot.slane %v209_v41, 1  ;;  %v422_v45 = vshrl.u32 %v421_v56, 7 }
  0x97   :  { %v395_v24 = vadd.f32 %v394_v51, %v393_v12  ;;  %v211_v39 = vadd.f32 %v210_v30, %v209_v41  ;;  %v423_v23 = vsub.s32 0, %v422_v45 }
  0x99   :  { %v397_v44 = vadd.f32 %v396_v11, %v395_v24  ;;  %v212_v51 = vmul.f32 0.001953125, %v211_v39 }
  0x9b   :  { %v399_v63 = vadd.f32 %v398_v54, %v397_v44  ;;  %v411_v27 = vmul.f32 %v212_v51, %v212_v51 }
  0x9d   :  { %v401_v15 = vadd.f32 %v400_v6, %v399_v63 }
  0x9f   :  { %v403_v17 = vadd.f32 %v402_v36, %v401_v15 }
  0xa1   :  { %v404_v59 = vrot.slane %v403_v17, 4 }
  0xa3   :  { %v405_v8 = vadd.f32 %v404_v59, %v403_v17 }
  0xa5   :  { %v406_v61 = vrot.slane %v405_v8, 2 }
  0xa7   :  { %v407_v12 = vadd.f32 %v406_v61, %v405_v8  ;;  %v417_v61 = vld [vmem:[%s2199_s2] sm:$0x1] }
  0xa9   :  { %v408_v26 = vrot.slane %v407_v12, 1 }
  0xab   :  { %v409_v32 = vadd.f32 %v408_v26, %v407_v12 }
  0xad   :  { %v410_v33 = vmul.f32 0.001953125, %v409_v32 }
  0xaf   :  { %v412_v11 = vsub.f32 %v410_v33, %v411_v27 }
  0xb1   :  { %v414_v24 = vadd.f32 1e-05, %v412_v11 }
  0xb3   :  { %1077 = vrsqrt.f32 %v414_v24 }
  0xbd   :  { %v1078_v54 = vpop.eup %1077 }
  0xbe   :  { %v416_v44 = vmul.f32 %v1078_v54, %v413_v60 }
  0xc0   :  { %v418_v39 = vmul.f32 %v416_v44, %v212_v51  ;;  %v1745_v17 = vrot.slane %v416_v44, %v423_v23 }
  0xc2   :  { %v419_v59 = vsub.f32 %v417_v61, %v418_v39  ;;  %v426_v32 = vmul.f32 %v1745_v17, %v1102_v0  ;;  %v427_v27 = vmul.f32 %v1745_v17, %v1107_v1  ;;  %v428_v26 = vmul.f32 %v1745_v17, %v1112_v2 }
  0xc3   :  { %v429_v6 = vmul.f32 %v1745_v17, %v1117_v3  ;;  %v430_v41 = vmul.f32 %v1745_v17, %v1128_v7  ;;  %v431_v63 = vmul.f32 %v1745_v17, %v1135_v10  ;;  %v432_v36 = vmul.f32 %v1745_v17, %v1142_v13 }
  0xc4   :  { %v1761_v15 = vrot.slane %v419_v59, %v423_v23  ;;  %v433_v0 = vmul.f32 %v1745_v17, %v1149_v16  ;;  %v434_v1 = vmul.f32 %v1745_v17, %v1156_v19  ;;  %v435_v2 = vmul.f32 %v1745_v17, %v1163_v22 }
  0xc5   :  { %v436_v3 = vmul.f32 %v1745_v17, %v1170_v25  ;;  %v437_v7 = vmul.f32 %v1745_v17, %v1177_v28  ;;  %v438_v10 = vmul.f32 %v1745_v17, %v1184_v31  ;;  %v439_v13 = vmul.f32 %v1745_v17, %v1191_v34 }
  0xc6   :  { %v496_v16 = vadd.f32 %v1761_v15, %v426_v32  ;;  %v497_v30 = vadd.f32 %v1761_v15, %v427_v27  ;;  %v498_v19 = vadd.f32 %v1761_v15, %v428_v26  ;;  %v499_v22 = vadd.f32 %v1761_v15, %v429_v6 }
  0xc7   :  { %v500_v8 = vadd.f32 %v1761_v15, %v430_v41  ;;  %v501_v25 = vadd.f32 %v1761_v15, %v431_v63  ;;  %v502_v28 = vadd.f32 %v1761_v15, %v432_v36  ;;  %v503_v51 = vadd.f32 %v1761_v15, %v433_v0 }
  0xc8   :  { %v560_v31 = vmax.f32 %v496_v16, 0.0  ;;  %v561_v12 = vmax.f32 %v497_v30, 0.0  ;;  %v562_v33 = vmax.f32 %v498_v19, 0.0  ;;  %v563_v34 = vmax.f32 %v499_v22, 0.0 }
  0xc9   :  { %v564_v11 = vmax.f32 %v500_v8, 0.0  ;;  %v565_v24 = vmax.f32 %v501_v25, 0.0  ;;  %v566_v56 = vmax.f32 %v502_v28, 0.0  ;;  %v567_v45 = vmax.f32 %v503_v51, 0.0 }
  0xca   :  { %v1013_v60 = vpack.c.bf16 %v560_v31, %v560_v31  ;;  %v1014_v23 = vpack.c.bf16 %v561_v12, %v561_v12  ;;  %v1015_v54 = vpack.c.bf16 %v562_v33, %v562_v33  ;;  %v1016_v44 = vpack.c.bf16 %v563_v34, %v563_v34 }
  0xcb   :  { %v1017_v61 = vpack.c.bf16 %v564_v11, %v564_v11  ;;  %v1018_v39 = vpack.c.bf16 %v565_v24, %v565_v24  ;;  %v1019_v59 = vpack.c.bf16 %v566_v56, %v566_v56  ;;  %v1020_v32 = vpack.c.bf16 %v567_v45, %v567_v45 }
  0xcc   :  { %881 = vst.msk [vmem:[%s2200_s3] sm:$0xf] %vm880_vm1, %v1013_v60  ;;  %882 = vst.msk [vmem:[%s2200_s3 + $0x4] sm:$0xf] %vm880_vm1, %v1014_v23  ;;  %v504_v27 = vadd.f32 %v1761_v15, %v434_v1  ;;  %v505_v26 = vadd.f32 %v1761_v15, %v435_v2  ;;  %v506_v6 = vadd.f32 %v1761_v15, %v436_v3 }
  0xcd   :  { %883 = vst.msk [vmem:[%s2200_s3 + $0x8] sm:$0xf] %vm880_vm1, %v1015_v54  ;;  %884 = vst.msk [vmem:[%s2200_s3 + $0xc] sm:$0xf] %vm880_vm1, %v1016_v44  ;;  %v507_v41 = vadd.f32 %v1761_v15, %v437_v7  ;;  %v508_v63 = vadd.f32 %v1761_v15, %v438_v10  ;;  %v509_v36 = vadd.f32 %v1761_v15, %v439_v13 }
  0xce   :  { %885 = vst.msk [vmem:[%s2200_s3 + $0x10] sm:$0xf] %vm880_vm1, %v1017_v61  ;;  %886 = vst.msk [vmem:[%s2200_s3 + $0x14] sm:$0xf] %vm880_vm1, %v1018_v39  ;;  %v440_v0 = vmul.f32 %v1745_v17, %v1198_v37  ;;  %v441_v1 = vmul.f32 %v1745_v17, %v1205_v40  ;;  %v568_v2 = vmax.f32 %v504_v27, 0.0  ;;  %v569_v3 = vmax.f32 %v505_v26, 0.0 }
  0xcf   :  { %887 = vst.msk [vmem:[%s2200_s3 + $0x18] sm:$0xf] %vm880_vm1, %v1019_v59  ;;  %888 = vst.msk [vmem:[%s2200_s3 + $0x1c] sm:$0xf] %vm880_vm1, %v1020_v32  ;;  %v570_v7 = vmax.f32 %v506_v6, 0.0  ;;  %v571_v16 = vmax.f32 %v507_v41, 0.0  ;;  %v442_v40 = vmul.f32 %v1745_v17, %v1212_v43  ;;  %v443_v33 = vmul.f32 %v1745_v17, %v1219_v46 }
  0xd0   :  { %v572_v30 = vmax.f32 %v508_v63, 0.0  ;;  %v573_v19 = vmax.f32 %v509_v36, 0.0  ;;  %v510_v22 = vadd.f32 %v1761_v15, %v440_v0  ;;  %v511_v8 = vadd.f32 %v1761_v15, %v441_v1 }
  0xd1   :  { %v1021_v25 = vpack.c.bf16 %v568_v2, %v568_v2  ;;  %v1022_v10 = vpack.c.bf16 %v569_v3, %v569_v3  ;;  %v1023_v28 = vpack.c.bf16 %v570_v7, %v570_v7  ;;  %v1024_v13 = vpack.c.bf16 %v571_v16, %v571_v16 }
  0xd2   :  { %v1025_v51 = vpack.c.bf16 %v572_v30, %v572_v30  ;;  %v1026_v31 = vpack.c.bf16 %v573_v19, %v573_v19  ;;  %v574_v37 = vmax.f32 %v510_v22, 0.0  ;;  %v575_v12 = vmax.f32 %v511_v8, 0.0  ;;  %v2251_v22 = vld [vmem:[#allocation2_spill] sm:$0xff]  ;;  %v2252_v8 = vld [vmem:[#allocation3_spill] sm:$0xff] }
  0xd3   :  { %889 = vst.msk [vmem:[%s2200_s3 + $0x20] sm:$0xf] %vm880_vm1, %v1021_v25  ;;  %890 = vst.msk [vmem:[%s2200_s3 + $0x24] sm:$0xf] %vm880_vm1, %v1022_v10  ;;  %v444_v34 = vmul.f32 %v1745_v17, %v1226_v49  ;;  %v445_v11 = vmul.f32 %v1745_v17, %v1233_v52  ;;  %v446_v46 = vmul.f32 %v1745_v17, %v1244_v57 }
  0xd4   :  { %891 = vst.msk [vmem:[%s2200_s3 + $0x28] sm:$0xf] %vm880_vm1, %v1023_v28  ;;  %892 = vst.msk [vmem:[%s2200_s3 + $0x2c] sm:$0xf] %vm880_vm1, %v1024_v13  ;;  %v1027_v43 = vpack.c.bf16 %v574_v37, %v574_v37  ;;  %v1028_v24 = vpack.c.bf16 %v575_v12, %v575_v12  ;;  %v447_v49 = vmul.f32 %v1745_v17, %v1255_v62  ;;  %v2254_v12 = vld [vmem:[#allocation5_spill] sm:$0xff] }
  0xd5   :  { %893 = vst.msk [vmem:[%s2200_s3 + $0x30] sm:$0xf] %vm880_vm1, %v1025_v51  ;;  %894 = vst.msk [vmem:[%s2200_s3 + $0x34] sm:$0xf] %vm880_vm1, %v1026_v31  ;;  %v512_v52 = vadd.f32 %v1761_v15, %v442_v40  ;;  %v513_v56 = vadd.f32 %v1761_v15, %v443_v33  ;;  %v514_v45 = vadd.f32 %v1761_v15, %v444_v34  ;;  %v2253_v31 = vld [vmem:[#allocation4_spill] sm:$0xff] }
  0xd6   :  { %v515_v60 = vadd.f32 %v1761_v15, %v445_v11  ;;  %895 = vst.msk [vmem:[%s2200_s3 + $0x38] sm:$0xf] %vm880_vm1, %v1027_v43  ;;  %896 = vst.msk [vmem:[%s2200_s3 + $0x3c] sm:$0xf] %vm880_vm1, %v1028_v24  ;;  %v516_v57 = vadd.f32 %v1761_v15, %v446_v46  ;;  %v517_v62 = vadd.f32 %v1761_v15, %v447_v49 }
  0xd7   :  { %v448_v23 = vmul.f32 %v1745_v17, %v1266_v9  ;;  %v449_v54 = vmul.f32 %v1745_v17, %v1277_v20  ;;  %v576_v44 = vmax.f32 %v512_v52, 0.0  ;;  %v577_v61 = vmax.f32 %v513_v56, 0.0 }
  0xd8   :  { %v578_v39 = vmax.f32 %v514_v45, 0.0  ;;  %v579_v59 = vmax.f32 %v515_v60, 0.0  ;;  %v580_v32 = vmax.f32 %v516_v57, 0.0  ;;  %v581_v27 = vmax.f32 %v517_v62, 0.0 }
  0xd9   :  { %v518_v26 = vadd.f32 %v1761_v15, %v448_v23  ;;  %v519_v6 = vadd.f32 %v1761_v15, %v449_v54  ;;  %v1029_v41 = vpack.c.bf16 %v576_v44, %v576_v44  ;;  %v1030_v63 = vpack.c.bf16 %v577_v61, %v577_v61  ;;  %v2255_v61 = vld [vmem:[#allocation6_spill] sm:$0xff] }
  0xda   :  { %v1031_v36 = vpack.c.bf16 %v578_v39, %v578_v39  ;;  %v1032_v0 = vpack.c.bf16 %v579_v59, %v579_v59  ;;  %v1033_v1 = vpack.c.bf16 %v580_v32, %v580_v32  ;;  %v1034_v2 = vpack.c.bf16 %v581_v27, %v581_v27  ;;  %v2256_v59 = vld [vmem:[#allocation7_spill] sm:$0xff]  ;;  %v2257_v27 = vld [vmem:[#allocation8_spill] sm:$0xff] }
  0xdb   :  { %v582_v9 = vmax.f32 %v518_v26, 0.0  ;;  %v583_v3 = vmax.f32 %v519_v6, 0.0  ;;  %897 = vst.msk [vmem:[%s2200_s3 + $0x40] sm:$0xf] %vm880_vm1, %v1029_v41  ;;  %898 = vst.msk [vmem:[%s2200_s3 + $0x44] sm:$0xf] %vm880_vm1, %v1030_v63  ;;  %v450_v20 = vmul.f32 %v1745_v17, %v1287_v29  ;;  %v451_v7 = vmul.f32 %v1745_v17, %v1297_v38 }
  0xdc   :  { %899 = vst.msk [vmem:[%s2200_s3 + $0x48] sm:$0xf] %vm880_vm1, %v1031_v36  ;;  %900 = vst.msk [vmem:[%s2200_s3 + $0x4c] sm:$0xf] %vm880_vm1, %v1032_v0  ;;  %v452_v16 = vmul.f32 %v1745_v17, %v1307_v47  ;;  %v453_v30 = vmul.f32 %v1745_v17, %v1317_v55  ;;  %v454_v38 = vmul.f32 %v1745_v17, %v2251_v22  ;;  %v2258_v6 = vld [vmem:[#allocation9_spill] sm:$0xff]  ;;  %v2259_v0 = vld [vmem:[#allocation10_spill] sm:$0xff] }
  0xdd   :  { %901 = vst.msk [vmem:[%s2200_s3 + $0x50] sm:$0xf] %vm880_vm1, %v1033_v1  ;;  %902 = vst.msk [vmem:[%s2200_s3 + $0x54] sm:$0xf] %vm880_vm1, %v1034_v2  ;;  %v1035_v29 = vpack.c.bf16 %v582_v9, %v582_v9  ;;  %v1036_v19 = vpack.c.bf16 %v583_v3, %v583_v3  ;;  %v455_v47 = vmul.f32 %v1745_v17, %v2252_v8  ;;  %v2260_v2 = vld [vmem:[#allocation11_spill] sm:$0xff] }
  0xde   :  { %v520_v55 = vadd.f32 %v1761_v15, %v450_v20  ;;  %v521_v25 = vadd.f32 %v1761_v15, %v451_v7  ;;  %v522_v10 = vadd.f32 %v1761_v15, %v452_v16  ;;  %v523_v28 = vadd.f32 %v1761_v15, %v453_v30 }
  0xdf   :  { %903 = vst.msk [vmem:[%s2200_s3 + $0x58] sm:$0xf] %vm880_vm1, %v1035_v29  ;;  %904 = vst.msk [vmem:[%s2200_s3 + $0x5c] sm:$0xf] %vm880_vm1, %v1036_v19  ;;  %v524_v13 = vadd.f32 %v1761_v15, %v454_v38  ;;  %v525_v51 = vadd.f32 %v1761_v15, %v455_v47  ;;  %v456_v37 = vmul.f32 %v1745_v17, %v2253_v31 }
  0xe0   :  { %v457_v40 = vmul.f32 %v1745_v17, %v2254_v12  ;;  %v584_v33 = vmax.f32 %v520_v55, 0.0  ;;  %v585_v34 = vmax.f32 %v521_v25, 0.0  ;;  %v586_v11 = vmax.f32 %v522_v10, 0.0 }
  0xe1   :  { %v587_v43 = vmax.f32 %v523_v28, 0.0  ;;  %v588_v24 = vmax.f32 %v524_v13, 0.0  ;;  %v589_v46 = vmax.f32 %v525_v51, 0.0  ;;  %v526_v49 = vadd.f32 %v1761_v15, %v456_v37 }
  0xe2   :  { %v527_v52 = vadd.f32 %v1761_v15, %v457_v40  ;;  %v1037_v56 = vpack.c.bf16 %v584_v33, %v584_v33  ;;  %v1038_v45 = vpack.c.bf16 %v585_v34, %v585_v34  ;;  %v1039_v60 = vpack.c.bf16 %v586_v11, %v586_v11 }
  0xe3   :  { %v1040_v57 = vpack.c.bf16 %v587_v43, %v587_v43  ;;  %v1041_v62 = vpack.c.bf16 %v588_v24, %v588_v24  ;;  %v1042_v23 = vpack.c.bf16 %v589_v46, %v589_v46  ;;  %v590_v54 = vmax.f32 %v526_v49, 0.0  ;;  %v2261_v24 = vld [vmem:[#allocation12_spill] sm:$0xff] }
  0xe4   :  { %v591_v44 = vmax.f32 %v527_v52, 0.0  ;;  %905 = vst.msk [vmem:[%s2200_s3 + $0x60] sm:$0xf] %vm880_vm1, %v1037_v56  ;;  %906 = vst.msk [vmem:[%s2200_s3 + $0x64] sm:$0xf] %vm880_vm1, %v1038_v45  ;;  %v458_v39 = vmul.f32 %v1745_v17, %v2255_v61  ;;  %v459_v32 = vmul.f32 %v1745_v17, %v2256_v59  ;;  %v460_v26 = vmul.f32 %v1745_v17, %v2257_v27  ;;  %v2262_v52 = vld [vmem:[#allocation13_spill] sm:$0xff] }
  0xe5   :  { %907 = vst.msk [vmem:[%s2200_s3 + $0x68] sm:$0xf] %vm880_vm1, %v1039_v60  ;;  %908 = vst.msk [vmem:[%s2200_s3 + $0x6c] sm:$0xf] %vm880_vm1, %v1040_v57  ;;  %v461_v41 = vmul.f32 %v1745_v17, %v2258_v6  ;;  %v1043_v63 = vpack.c.bf16 %v590_v54, %v590_v54  ;;  %v462_v1 = vmul.f32 %v1745_v17, %v2259_v0  ;;  %v2263_v54 = vld [vmem:[#allocation14_spill] sm:$0xff] }
  0xe6   :  { %909 = vst.msk [vmem:[%s2200_s3 + $0x70] sm:$0xf] %vm880_vm1, %v1041_v62  ;;  %910 = vst.msk [vmem:[%s2200_s3 + $0x74] sm:$0xf] %vm880_vm1, %v1042_v23  ;;  %v1044_v36 = vpack.c.bf16 %v591_v44, %v591_v44  ;;  %v463_v9 = vmul.f32 %v1745_v17, %v2260_v2  ;;  %v528_v3 = vadd.f32 %v1761_v15, %v458_v39 }
  0xe7   :  { %v529_v20 = vadd.f32 %v1761_v15, %v459_v32  ;;  %v530_v7 = vadd.f32 %v1761_v15, %v460_v26  ;;  %v531_v16 = vadd.f32 %v1761_v15, %v461_v41  ;;  %911 = vst.msk [vmem:[%s2200_s3 + $0x78] sm:$0xf] %vm880_vm1, %v1043_v63  ;;  %v532_v30 = vadd.f32 %v1761_v15, %v462_v1 }
  0xe8   :  { %912 = vst.msk [vmem:[%s2200_s3 + $0x7c] sm:$0xf] %vm880_vm1, %v1044_v36  ;;  %v533_v29 = vadd.f32 %v1761_v15, %v463_v9  ;;  %v464_v19 = vmul.f32 %v1745_v17, %v1427_v53  ;;  %v465_v22 = vmul.f32 %v1745_v17, %v1437_v5  ;;  %v592_v38 = vmax.f32 %v528_v3, 0.0 }
  0xe9   :  { %v593_v8 = vmax.f32 %v529_v20, 0.0  ;;  %v594_v47 = vmax.f32 %v530_v7, 0.0  ;;  %v595_v55 = vmax.f32 %v531_v16, 0.0  ;;  %v596_v25 = vmax.f32 %v532_v30, 0.0  ;;  %v2264_v7 = vld [vmem:[#allocation15_spill] sm:$0xff] }
  0xea   :  { %v597_v10 = vmax.f32 %v533_v29, 0.0  ;;  %v534_v28 = vadd.f32 %v1761_v15, %v464_v19  ;;  %v535_v13 = vadd.f32 %v1761_v15, %v465_v22  ;;  %v1045_v51 = vpack.c.bf16 %v592_v38, %v592_v38  ;;  %v2265_v29 = vld [vmem:[#allocation16_spill] sm:$0xff]  ;;  %v2266_v38 = vld [vmem:[#allocation17_spill] sm:$0xff] }
  0xeb   :  { %v1046_v31 = vpack.c.bf16 %v593_v8, %v593_v8  ;;  %v1047_v37 = vpack.c.bf16 %v594_v47, %v594_v47  ;;  %v1048_v12 = vpack.c.bf16 %v595_v55, %v595_v55  ;;  %v1049_v40 = vpack.c.bf16 %v596_v25, %v596_v25  ;;  %v2267_v47 = vld [vmem:[#allocation18_spill] sm:$0xff] }
  0xec   :  { %v1050_v33 = vpack.c.bf16 %v597_v10, %v597_v10  ;;  %v598_v53 = vmax.f32 %v534_v28, 0.0  ;;  %v599_v34 = vmax.f32 %v535_v13, 0.0  ;;  %913 = vst.msk [vmem:[%s2200_s3 + $0x80] sm:$0xf] %vm880_vm1, %v1045_v51  ;;  %v466_v5 = vmul.f32 %v1745_v17, %v1447_v18 }
  0xed   :  { %914 = vst.msk [vmem:[%s2200_s3 + $0x84] sm:$0xf] %vm880_vm1, %v1046_v31  ;;  %915 = vst.msk [vmem:[%s2200_s3 + $0x88] sm:$0xf] %vm880_vm1, %v1047_v37  ;;  %v467_v11 = vmul.f32 %v1745_v17, %v1457_v35  ;;  %v468_v43 = vmul.f32 %v1745_v17, %v1467_v50  ;;  %v469_v46 = vmul.f32 %v1745_v17, %v2261_v24  ;;  %v2268_v31 = vld [vmem:[#allocation19_spill] sm:$0xff] }
  0xee   :  { %916 = vst.msk [vmem:[%s2200_s3 + $0x8c] sm:$0xf] %vm880_vm1, %v1048_v12  ;;  %917 = vst.msk [vmem:[%s2200_s3 + $0x90] sm:$0xf] %vm880_vm1, %v1049_v40  ;;  %v1051_v18 = vpack.c.bf16 %v598_v53, %v598_v53  ;;  %v1052_v49 = vpack.c.bf16 %v599_v34, %v599_v34  ;;  %v470_v35 = vmul.f32 %v1745_v17, %v1487_v21 }
  0xef   :  { %918 = vst.msk [vmem:[%s2200_s3 + $0x94] sm:$0xf] %vm880_vm1, %v1050_v33  ;;  %v471_v50 = vmul.f32 %v1745_v17, %v2262_v52  ;;  %v536_v56 = vadd.f32 %v1761_v15, %v466_v5  ;;  %v537_v45 = vadd.f32 %v1761_v15, %v467_v11  ;;  %v538_v60 = vadd.f32 %v1761_v15, %v468_v43 }
  0xf0   :  { %v539_v57 = vadd.f32 %v1761_v15, %v469_v46  ;;  %919 = vst.msk [vmem:[%s2200_s3 + $0x98] sm:$0xf] %vm880_vm1, %v1051_v18  ;;  %920 = vst.msk [vmem:[%s2200_s3 + $0x9c] sm:$0xf] %vm880_vm1, %v1052_v49  ;;  %v540_v21 = vadd.f32 %v1761_v15, %v470_v35  ;;  %v472_v23 = vmul.f32 %v1745_v17, %v1507_v58 }
  0xf1   :  { %v541_v62 = vadd.f32 %v1761_v15, %v471_v50  ;;  %v473_v44 = vmul.f32 %v1745_v17, %v2263_v54  ;;  %v600_v61 = vmax.f32 %v536_v56, 0.0  ;;  %v601_v39 = vmax.f32 %v537_v45, 0.0 }
  0xf2   :  { %v602_v59 = vmax.f32 %v538_v60, 0.0  ;;  %v603_v32 = vmax.f32 %v539_v57, 0.0  ;;  %v604_v27 = vmax.f32 %v540_v21, 0.0  ;;  %v542_v6 = vadd.f32 %v1761_v15, %v472_v23  ;;  %v2269_v60 = vld [vmem:[#allocation20_spill] sm:$0xff]  ;;  %v2270_v21 = vld [vmem:[#allocation21_spill] sm:$0xff]  ;;  %v2271_v23 = vld [vmem:[#allocation22_spill] sm:$0xff] }
  0xf3   :  { %v605_v26 = vmax.f32 %v541_v62, 0.0  ;;  %v543_v41 = vadd.f32 %v1761_v15, %v473_v44  ;;  %v1053_v63 = vpack.c.bf16 %v600_v61, %v600_v61  ;;  %v1054_v36 = vpack.c.bf16 %v601_v39, %v601_v39  ;;  %v2272_v61 = vld [vmem:[#allocation23_spill] sm:$0xff] }
  0xf4   :  { %v1055_v0 = vpack.c.bf16 %v602_v59, %v602_v59  ;;  %v1056_v1 = vpack.c.bf16 %v603_v32, %v603_v32  ;;  %v1057_v2 = vpack.c.bf16 %v604_v27, %v604_v27  ;;  %v606_v58 = vmax.f32 %v542_v6, 0.0  ;;  %v2273_v59 = vld [vmem:[#allocation24_spill] sm:$0xff] }
  0xf5   :  { %v1058_v9 = vpack.c.bf16 %v605_v26, %v605_v26  ;;  %v607_v3 = vmax.f32 %v543_v41, 0.0  ;;  %921 = vst.msk [vmem:[%s2200_s3 + $0xa0] sm:$0xf] %vm880_vm1, %v1053_v63  ;;  %922 = vst.msk [vmem:[%s2200_s3 + $0xa4] sm:$0xf] %vm880_vm1, %v1054_v36  ;;  %v474_v20 = vmul.f32 %v1745_v17, %v1527_v42  ;;  %v475_v16 = vmul.f32 %v1745_v17, %v2264_v7 }
  0xf6   :  { %923 = vst.msk [vmem:[%s2200_s3 + $0xa8] sm:$0xf] %vm880_vm1, %v1055_v0  ;;  %924 = vst.msk [vmem:[%s2200_s3 + $0xac] sm:$0xf] %vm880_vm1, %v1056_v1  ;;  %v476_v30 = vmul.f32 %v1745_v17, %v1547_v14  ;;  %v477_v19 = vmul.f32 %v1745_v17, %v2265_v29  ;;  %v1059_v42 = vpack.c.bf16 %v606_v58, %v606_v58  ;;  %v2274_v0 = vld [vmem:[#allocation25_spill] sm:$0xff] }
  0xf7   :  { %925 = vst.msk [vmem:[%s2200_s3 + $0xb0] sm:$0xf] %vm880_vm1, %v1057_v2  ;;  %926 = vst.msk [vmem:[%s2200_s3 + $0xb4] sm:$0xf] %vm880_vm1, %v1058_v9  ;;  %v1060_v22 = vpack.c.bf16 %v607_v3, %v607_v3  ;;  %v478_v8 = vmul.f32 %v1745_v17, %v2266_v38  ;;  %v479_v14 = vmul.f32 %v1745_v17, %v2267_v47  ;;  %v2275_v2 = vld [vmem:[#allocation26_spill] sm:$0xff] }
  0xf8   :  { %v544_v55 = vadd.f32 %v1761_v15, %v474_v20  ;;  %v545_v25 = vadd.f32 %v1761_v15, %v475_v16  ;;  %v546_v10 = vadd.f32 %v1761_v15, %v476_v30  ;;  %v547_v28 = vadd.f32 %v1761_v15, %v477_v19  ;;  %927 = vst.msk [vmem:[%s2200_s3 + $0xb8] sm:$0xf] %vm880_vm1, %v1059_v42 }
  0xf9   :  { %928 = vst.msk [vmem:[%s2200_s3 + $0xbc] sm:$0xf] %vm880_vm1, %v1060_v22  ;;  %v548_v13 = vadd.f32 %v1761_v15, %v478_v8  ;;  %v549_v51 = vadd.f32 %v1761_v15, %v479_v14  ;;  %v480_v37 = vmul.f32 %v1745_v17, %v2268_v31  ;;  %v481_v12 = vmul.f32 %v1745_v17, %v1597_v48 }
  0xfa   :  { %v608_v40 = vmax.f32 %v544_v55, 0.0  ;;  %v609_v33 = vmax.f32 %v545_v25, 0.0  ;;  %v610_v53 = vmax.f32 %v546_v10, 0.0  ;;  %v611_v34 = vmax.f32 %v547_v28, 0.0 }
  0xfb   :  { %v612_v5 = vmax.f32 %v548_v13, 0.0  ;;  %v613_v11 = vmax.f32 %v549_v51, 0.0  ;;  %v550_v43 = vadd.f32 %v1761_v15, %v480_v37  ;;  %v551_v24 = vadd.f32 %v1761_v15, %v481_v12 }
  0xfc   :  { %v1061_v46 = vpack.c.bf16 %v608_v40, %v608_v40  ;;  %v1062_v18 = vpack.c.bf16 %v609_v33, %v609_v33  ;;  %v1063_v49 = vpack.c.bf16 %v610_v53, %v610_v53  ;;  %v1064_v35 = vpack.c.bf16 %v611_v34, %v611_v34 }
  0xfd   :  { %v1065_v52 = vpack.c.bf16 %v612_v5, %v612_v5  ;;  %v1066_v50 = vpack.c.bf16 %v613_v11, %v613_v11  ;;  %v614_v56 = vmax.f32 %v550_v43, 0.0  ;;  %v615_v45 = vmax.f32 %v551_v24, 0.0 }
  0xfe   :  { %929 = vst.msk [vmem:[%s2200_s3 + $0xc0] sm:$0xf] %vm880_vm1, %v1061_v46  ;;  %930 = vst.msk [vmem:[%s2200_s3 + $0xc4] sm:$0xf] %vm880_vm1, %v1062_v18  ;;  %v482_v48 = vmul.f32 %v1745_v17, %v1612_v4  ;;  %v483_v57 = vmul.f32 %v1745_v17, %v2269_v60  ;;  %v484_v62 = vmul.f32 %v1745_v17, %v2270_v21 }
  0xff   :  { %931 = vst.msk [vmem:[%s2200_s3 + $0xc8] sm:$0xf] %vm880_vm1, %v1063_v49  ;;  %932 = vst.msk [vmem:[%s2200_s3 + $0xcc] sm:$0xf] %vm880_vm1, %v1064_v35  ;;  %v485_v54 = vmul.f32 %v1745_v17, %v2271_v23  ;;  %v1067_v4 = vpack.c.bf16 %v614_v56, %v614_v56  ;;  %v1068_v44 = vpack.c.bf16 %v615_v45, %v615_v45 }
 0x100   :  { %933 = vst.msk [vmem:[%s2200_s3 + $0xd0] sm:$0xf] %vm880_vm1, %v1065_v52  ;;  %934 = vst.msk [vmem:[%s2200_s3 + $0xd4] sm:$0xf] %vm880_vm1, %v1066_v50  ;;  %v486_v39 = vmul.f32 %v1745_v17, %v2272_v61  ;;  %v487_v32 = vmul.f32 %v1745_v17, %v2273_v59  ;;  %v552_v27 = vadd.f32 %v1761_v15, %v482_v48 }
 0x101   :  { %v553_v26 = vadd.f32 %v1761_v15, %v483_v57  ;;  %v554_v6 = vadd.f32 %v1761_v15, %v484_v62  ;;  %v555_v41 = vadd.f32 %v1761_v15, %v485_v54  ;;  %935 = vst.msk [vmem:[%s2200_s3 + $0xd8] sm:$0xf] %vm880_vm1, %v1067_v4  ;;  %936 = vst.msk [vmem:[%s2200_s3 + $0xdc] sm:$0xf] %vm880_vm1, %v1068_v44 }
 0x102   :  { %v556_v63 = vadd.f32 %v1761_v15, %v486_v39  ;;  %v557_v36 = vadd.f32 %v1761_v15, %v487_v32  ;;  %v488_v1 = vmul.f32 %v1745_v17, %v2274_v0  ;;  %v489_v9 = vmul.f32 %v1745_v17, %v2275_v2 }
 0x103   :  { %v616_v58 = vmax.f32 %v552_v27, 0.0  ;;  %v617_v3 = vmax.f32 %v553_v26, 0.0  ;;  %v618_v20 = vmax.f32 %v554_v6, 0.0  ;;  %v619_v7 = vmax.f32 %v555_v41, 0.0 }
 0x104   :  { %v620_v16 = vmax.f32 %v556_v63, 0.0  ;;  %v621_v30 = vmax.f32 %v557_v36, 0.0  ;;  %v558_v29 = vadd.f32 %v1761_v15, %v488_v1  ;;  %v559_v19 = vadd.f32 %v1761_v15, %v489_v9 }
 0x105   :  { %v1069_v42 = vpack.c.bf16 %v616_v58, %v616_v58  ;;  %v1070_v22 = vpack.c.bf16 %v617_v3, %v617_v3  ;;  %v1071_v38 = vpack.c.bf16 %v618_v20, %v618_v20  ;;  %v1072_v8 = vpack.c.bf16 %v619_v7, %v619_v7 }
 0x106   :  { %v1073_v47 = vpack.c.bf16 %v620_v16, %v620_v16  ;;  %v1074_v14 = vpack.c.bf16 %v621_v30, %v621_v30  ;;  %v622_v55 = vmax.f32 %v558_v29, 0.0  ;;  %v623_v25 = vmax.f32 %v559_v19, 0.0 }
 0x107   :  { %937 = vst.msk [vmem:[%s2200_s3 + $0xe0] sm:$0xf] %vm880_vm1, %v1069_v42  ;;  %938 = vst.msk [vmem:[%s2200_s3 + $0xe4] sm:$0xf] %vm880_vm1, %v1070_v22 }
 0x108   :  { %939 = vst.msk [vmem:[%s2200_s3 + $0xe8] sm:$0xf] %vm880_vm1, %v1071_v38  ;;  %940 = vst.msk [vmem:[%s2200_s3 + $0xec] sm:$0xf] %vm880_vm1, %v1072_v8  ;;  %v1075_v17 = vpack.c.bf16 %v622_v55, %v622_v55  ;;  %v1076_v15 = vpack.c.bf16 %v623_v25, %v623_v25 }
 0x109   :  { %941 = vst.msk [vmem:[%s2200_s3 + $0xf0] sm:$0xf] %vm880_vm1, %v1073_v47  ;;  %942 = vst.msk [vmem:[%s2200_s3 + $0xf4] sm:$0xf] %vm880_vm1, %v1074_v14 }
 0x10a   :  { %943 = vst.msk [vmem:[%s2200_s3 + $0xf8] sm:$0xf] %vm880_vm1, %v1075_v17  ;;  %944 = vst.msk [vmem:[%s2200_s3 + $0xfc] sm:$0xf] %vm880_vm1, %v1076_v15 }

// kernel: generator_forward.13
= control target key start
LH: loop header
LB: loop body
LE: loop exit
PB: predicated region body
PF: predicated region fallthrough
CT: control target
= control target key end

     0   :  { %s1274_s9 = smov 0   ;;  %s1276_s10 = smov 0   ;;  %s1449_s0 = inlined_call_operand.vmem [shape: bf16[4,512,256], index: 0, kind: input, shape index: {}]   ;;  %s1450_s1 = inlined_call_operand.vmem [shape: bf16[4,256,1], index: 1, kind: input, shape index: {}]   ;;  %s1451_s2 = inlined_call_operand.vmem [shape: f32[4,512,1], index: 2, kind: output, shape index: {}]  }
   0x1   :  { %s1278_s11 = smov 0   ;;  %s1280_s12 = smov 0  }
   0x2   :  { %s1282_s13 = smov 0  }
   0x3 LB: > { %s21_s14 = sadd.s32 1, %s1249_s11  ;;  %s24_s15 = sadd.s32 1, %s1253_s12  ;;  %s1257_s13 = sphi %s1282_s13, %s12_s13   ;;  %s1253_s12 = sphi %s1280_s12, %s1455_s12   ;;  %s1249_s11 = sphi %s1278_s11, %s1454_s11   ;;  %s1245_s10 = sphi %s1276_s10, %s1453_s10   ;;  %s1241_s9 = sphi %s1274_s9, %s1452_s9  }
   0x4   : > { %p22_p0 = scmp.ge.s32.totalorder %s21_s14, 2  ;;  %p862_p1 = scmp.ge.s32.totalorder %s1257_s13, 1 }
   0x5   : > { %p144_p2 = scmp.lt.s32.totalorder %s1257_s13, 9 }
   0x6   : > { %s1457_s14 = smov (%p22_p0, %s21_s14), 0  ;;  %s1459_s15 = smov (!%p22_p0, %s24_s15), %s1253_s12 }
   0x7   : > { %p145_p3 = pnand %p862_p1, %p144_p2  ;;  %p26_p4 = scmp.ge.s32.totalorder %s1459_s15, 4 }
   0x8   : > { %p181_p5 = scmp.lt.s32.totalorder (!%p145_p3), %s1245_s10, 3  ;;  %s863_s16 = sshll.u32 (!%p145_p3), %s1241_s9, 5  ;;  %vm720_vm0 = vcmask (!%p145_p3), 7168  }
   0x9   : > { %s1461_s15 = smov (%p26_p4, %s1459_s15), 0  ;;  %148 = sbr.rel (%p145_p3) target bundleno = 339 (0x153), region = 28 }
   0xa   : > { %p183_p6 = scmp.lt.s32.totalorder (!%p145_p3), %s863_s16, 63 }
  0x10   : > { %s1463_s10 = smov (!%p181_p5, %s1245_s10), 3  ;;  %s1465_s16 = smov (!%p183_p6, %s863_s16), 63 }
  0x11   : > { %s865_s17 = sshll.u32 %s1463_s10, 7  ;;  %s870_s18 = sshll.u32 %s1463_s10, 6 }
  0x12   : > { %s1307_s21 = scalar_lea.vmem %s1450_s1, %s865_s17  ;;  %s1310_s22 = sadd.s32 %s870_s18, %s1465_s16 }
  0x13   : > { %v1091_v0 = vld [vmem:[%s1307_s21 + $0x40] sm:$0xff]   ;;  %v1093_v2 = vld [vmem:[%s1307_s21 + $0x48] sm:$0xff]   ;;  %v1095_v4 = vld [vmem:[%s1307_s21 + $0x50] sm:$0xff]   ;;  %s864_s23 = sshll.u32 %s1465_s16, 1  ;;  %s871_s29 = sshll.u32 %s1310_s22, 3 }
  0x14   : > { %v1092_v1 = vld [vmem:[%s1307_s21] sm:$0xff]   ;;  %923 = vmatprep.subr.bf16.mxu0 %v1091_v0  ;;  %1035 = vmatprep.subr.bf16.mxu1 %v1091_v0  ;;  %v1094_v3 = vld [vmem:[%s1307_s21 + $0x8] sm:$0xff]   ;;  %v1096_v5 = vld [vmem:[%s1307_s21 + $0x10] sm:$0xff]   ;;  %s187_s24 = sadd.s32 %s865_s17, %s864_s23  ;;  %s1368_s4 = scalar_lea.vmem %s1451_s2, %s871_s29 }
  0x15   : > { %924 = vmatpush3.bf16.msra.mxu0 %v1092_v1  ;;  %1043 = vmatpush3.bf16.msra.mxu1 %v1092_v1  ;;  %v1097_v6 = vld [vmem:[%s1307_s21 + $0x58] sm:$0xff]   ;;  %s866_s25 = sshll.u32 %s187_s24, 2  ;;  %v1099_v8 = vld [vmem:[%s1307_s21 + $0x60] sm:$0xff]   ;;  %v1101_v10 = vld [vmem:[%s1307_s21 + $0x68] sm:$0xff]  }
  0x16   : > { %925 = vmatprep.subr.bf16.mxu0 %v1093_v2  ;;  %1036 = vmatprep.subr.bf16.mxu1 %v1093_v2  ;;  %v1098_v7 = vld [vmem:[%s1307_s21 + $0x18] sm:$0xff]   ;;  %s1323_s28 = scalar_lea.vmem %s1449_s0, %s866_s25  ;;  %v1100_v9 = vld [vmem:[%s1307_s21 + $0x20] sm:$0xff]   ;;  %v1102_v13 = vld [vmem:[%s1307_s21 + $0x28] sm:$0xff]  }
  0x17   : > { %v1109_v11 = vld [vmem:[%s1323_s28 + $0x4] ss:$8 sps:$4 sm:$0xff]   ;;  %v1103_v14 = vld [vmem:[%s1307_s21 + $0x70] sm:$0xff]   ;;  %v1105_v16 = vld [vmem:[%s1307_s21 + $0x78] sm:$0xff]  }
  0x18   : > { %v1112_v12 = vld [vmem:[%s1323_s28 + $0x84] ss:$8 sps:$4 sm:$0xff]   ;;  %559 = vmatprep.mubr.bf16.mxu0 %v1109_v11  ;;  %v1104_v15 = vld [vmem:[%s1307_s21 + $0x30] sm:$0xff]   ;;  %v1106_v17 = vld [vmem:[%s1307_s21 + $0x38] sm:$0xff]  }
  0x19   : > { %926 = vmatpush3.bf16.msra.mxu0 %v1094_v3  ;;  %1044 = vmatpush3.bf16.msra.mxu1 %v1094_v3  ;;  %v1107_v18 = vld [vmem:[%s1323_s28] ss:$8 sps:$4 sm:$0xff]   ;;  %v1113_v20 = vld [vmem:[%s1323_s28 + $0x14] ss:$8 sps:$4 sm:$0xff]   ;;  %v1117_v22 = vld [vmem:[%s1323_s28 + $0x10] ss:$8 sps:$4 sm:$0xff]  }
  0x1a   : > { %927 = vmatprep.subr.bf16.mxu0 %v1095_v4  ;;  %1037 = vmatprep.subr.bf16.mxu1 %v1095_v4  ;;  %v1110_v19 = vld [vmem:[%s1323_s28 + $0x80] ss:$8 sps:$4 sm:$0xff]   ;;  %v1115_v21 = vld [vmem:[%s1323_s28 + $0x94] ss:$8 sps:$4 sm:$0xff]   ;;  %v1118_v23 = vld [vmem:[%s1323_s28 + $0x90] ss:$8 sps:$4 sm:$0xff]  }
  0x1b   : > { %623 = vmatprep.mubr.bf16.mxu1 %v1112_v12  ;;  %v1119_v24 = vld [vmem:[%s1323_s28 + $0x24] ss:$8 sps:$4 sm:$0xff]   ;;  %v1123_v26 = vld [vmem:[%s1323_s28 + $0x20] ss:$8 sps:$4 sm:$0xff]   ;;  %v1125_v28 = vld [vmem:[%s1323_s28 + $0x34] ss:$8 sps:$4 sm:$0xff]  }
  0x1c   : > { %v1121_v25 = vld [vmem:[%s1323_s28 + $0xa4] ss:$8 sps:$4 sm:$0xff]   ;;  %v1124_v27 = vld [vmem:[%s1323_s28 + $0xa0] ss:$8 sps:$4 sm:$0xff]   ;;  %v1127_v29 = vld [vmem:[%s1323_s28 + $0xb4] ss:$8 sps:$4 sm:$0xff]  }
  0x1d   : > { %928 = vmatpush3.bf16.msra.mxu0 %v1096_v5  ;;  %1045 = vmatpush3.bf16.msra.mxu1 %v1096_v5  ;;  %v1129_v30 = vld [vmem:[%s1323_s28 + $0x30] ss:$8 sps:$4 sm:$0xff]   ;;  %v1131_v32 = vld [vmem:[%s1323_s28 + $0x44] ss:$8 sps:$4 sm:$0xff]   ;;  %v1135_v34 = vld [vmem:[%s1323_s28 + $0x40] ss:$8 sps:$4 sm:$0xff]  }
  0x1e   : > { %929 = vmatprep.subr.bf16.mxu0 %v1097_v6  ;;  %1038 = vmatprep.subr.bf16.mxu1 %v1097_v6  ;;  %v1130_v31 = vld [vmem:[%s1323_s28 + $0xb0] ss:$8 sps:$4 sm:$0xff]   ;;  %v1133_v33 = vld [vmem:[%s1323_s28 + $0xc4] ss:$8 sps:$4 sm:$0xff]   ;;  %v1136_v35 = vld [vmem:[%s1323_s28 + $0xc0] ss:$8 sps:$4 sm:$0xff]  }
  0x1f   : > { %v1137_v36 = vld [vmem:[%s1323_s28 + $0x54] ss:$8 sps:$4 sm:$0xff]   ;;  %v1141_v38 = vld [vmem:[%s1323_s28 + $0x50] ss:$8 sps:$4 sm:$0xff]   ;;  %v1143_v40 = vld [vmem:[%s1323_s28 + $0x64] ss:$8 sps:$4 sm:$0xff]  }
  0x20   : > { %v1139_v37 = vld [vmem:[%s1323_s28 + $0xd4] ss:$8 sps:$4 sm:$0xff]   ;;  %v1142_v39 = vld [vmem:[%s1323_s28 + $0xd0] ss:$8 sps:$4 sm:$0xff]   ;;  %v1145_v41 = vld [vmem:[%s1323_s28 + $0xe4] ss:$8 sps:$4 sm:$0xff]  }
  0x21   : > { %930 = vmatpush3.bf16.msra.mxu0 %v1098_v7  ;;  %1046 = vmatpush3.bf16.msra.mxu1 %v1098_v7  ;;  %v1147_v42 = vld [vmem:[%s1323_s28 + $0x60] ss:$8 sps:$4 sm:$0xff]   ;;  %v1149_v44 = vld [vmem:[%s1323_s28 + $0x74] ss:$8 sps:$4 sm:$0xff]   ;;  %v1153_v46 = vld [vmem:[%s1323_s28 + $0x70] ss:$8 sps:$4 sm:$0xff]  }
  0x22   : > { %931 = vmatprep.subr.bf16.mxu0 %v1099_v8  ;;  %1039 = vmatprep.subr.bf16.mxu1 %v1099_v8  ;;  %v1148_v43 = vld [vmem:[%s1323_s28 + $0xe0] ss:$8 sps:$4 sm:$0xff]   ;;  %v1151_v45 = vld [vmem:[%s1323_s28 + $0xf4] ss:$8 sps:$4 sm:$0xff]   ;;  %v1154_v47 = vld [vmem:[%s1323_s28 + $0xf0] ss:$8 sps:$4 sm:$0xff]  }
  0x25   : > { %932 = vmatpush3.bf16.msra.mxu0 %v1100_v9  ;;  %1047 = vmatpush3.bf16.msra.mxu1 %v1100_v9 }
  0x26   : > { %933 = vmatprep.subr.bf16.mxu0 %v1101_v10  ;;  %1040 = vmatprep.subr.bf16.mxu1 %v1101_v10 }
  0x29   : > { %934 = vmatpush3.bf16.msra.mxu0 %v1102_v13  ;;  %1048 = vmatpush3.bf16.msra.mxu1 %v1102_v13 }
  0x2a   : > { %935 = vmatprep.subr.bf16.mxu0 %v1103_v14  ;;  %1041 = vmatprep.subr.bf16.mxu1 %v1103_v14 }
  0x2d   : > { %936 = vmatpush3.bf16.msra.mxu0 %v1104_v15  ;;  %1049 = vmatpush3.bf16.msra.mxu1 %v1104_v15 }
  0x2e   : > { %937 = vmatprep.subr.bf16.mxu0 %v1105_v16  ;;  %1042 = vmatprep.subr.bf16.mxu1 %v1105_v16 }
  0x31   : > { %938 = vmatpush3.bf16.msra.mxu0 %v1106_v17  ;;  %1050 = vmatpush3.bf16.msra.mxu1 %v1106_v17 }
  0x34   : > { %560 = vmatmul.mubr.bf16.vlgmr.msra.gmra.mrb[0].mxu0 %v1107_v18  ;;  %624 = vmatmul.mubr.bf16.vlgmr.msra.gmra.mrb[0].mxu1 %v1110_v19 }
  0x35   : > { %567 = vmatprep.mubr.bf16.mxu0 %v1113_v20  ;;  %631 = vmatprep.mubr.bf16.mxu1 %v1115_v21 }
  0x3c   : > { %568 = vmatmul.mubr.bf16.gmra.mrb[4].mxu0 %v1117_v22  ;;  %632 = vmatmul.mubr.bf16.gmra.mrb[4].mxu1 %v1118_v23 }
  0x3d   : > { %575 = vmatprep.mubr.bf16.mxu0 %v1119_v24  ;;  %639 = vmatprep.mubr.bf16.mxu1 %v1121_v25 }
  0x44   : > { %576 = vmatmul.mubr.bf16.gmra.mrb[8].mxu0 %v1123_v26  ;;  %640 = vmatmul.mubr.bf16.gmra.mrb[8].mxu1 %v1124_v27 }
  0x45   : > { %583 = vmatprep.mubr.bf16.mxu0 %v1125_v28  ;;  %647 = vmatprep.mubr.bf16.mxu1 %v1127_v29 }
  0x4c   : > { %584 = vmatmul.mubr.bf16.gmra.mrb[12].mxu0 %v1129_v30  ;;  %648 = vmatmul.mubr.bf16.gmra.mrb[12].mxu1 %v1130_v31 }
  0x4d   : > { %591 = vmatprep.mubr.bf16.mxu0 %v1131_v32  ;;  %655 = vmatprep.mubr.bf16.mxu1 %v1133_v33 }
  0x54   : > { %592 = vmatmul.mubr.bf16.gmra.mrb[16].mxu0 %v1135_v34  ;;  %656 = vmatmul.mubr.bf16.gmra.mrb[16].mxu1 %v1136_v35 }
  0x55   : > { %599 = vmatprep.mubr.bf16.mxu0 %v1137_v36  ;;  %663 = vmatprep.mubr.bf16.mxu1 %v1139_v37 }
  0x5c   : > { %600 = vmatmul.mubr.bf16.gmra.mrb[20].mxu0 %v1141_v38  ;;  %664 = vmatmul.mubr.bf16.gmra.mrb[20].mxu1 %v1142_v39 }
  0x5d   : > { %607 = vmatprep.mubr.bf16.mxu0 %v1143_v40  ;;  %671 = vmatprep.mubr.bf16.mxu1 %v1145_v41 }
  0x64   : > { %608 = vmatmul.mubr.bf16.gmra.mrb[24].mxu0 %v1147_v42  ;;  %672 = vmatmul.mubr.bf16.gmra.mrb[24].mxu1 %v1148_v43 }
  0x65   : > { %615 = vmatprep.mubr.bf16.mxu0 %v1149_v44  ;;  %679 = vmatprep.mubr.bf16.mxu1 %v1151_v45 }
  0x6c   : > { %616 = vmatmul.mubr.bf16.gmra.mrb[28].mxu0 %v1153_v46  ;;  %680 = vmatmul.mubr.bf16.gmra.mrb[28].mxu1 %v1154_v47 }
 0x107   : > { %v939_v48 = vpop.f32.mrb[0].mxu0  ;;  %v987_v49 = vpop.f32.mrb[0].mxu1 }
 0x108   : > { %v940_v50 = vpop.f32.mrb[1].mxu0  ;;  %v988_v51 = vpop.f32.mrb[1].mxu1 }
 0x109   : > { %v941_v52 = vadd.f32 %v940_v50, %v939_v48  ;;  %v989_v53 = vadd.f32 %v988_v51, %v987_v49  ;;  %v942_v54 = vpop.f32.mrb[2].mxu0  ;;  %v990_v55 = vpop.f32.mrb[2].mxu1 }
 0x10a   : > { %v943_v56 = vpop.f32.mrb[3].mxu0  ;;  %v991_v57 = vpop.f32.mrb[3].mxu1 }
 0x10b   : > { %1155 = vtanh.f32 %v941_v52  ;;  %v944_v58 = vadd.f32 %v943_v56, %v942_v54  ;;  %v992_v59 = vadd.f32 %v991_v57, %v990_v55 }
 0x10c   : > { %1157 = vtanh.f32 %v989_v53 }
 0x10d   : > { %1159 = vtanh.f32 %v944_v58 }
 0x10e   : > { %1161 = vtanh.f32 %v992_v59 }
 0x10f   : > { %v945_v60 = vpop.f32.mrb[4].mxu0  ;;  %v993_v61 = vpop.f32.mrb[4].mxu1 }
 0x110   : > { %v946_v62 = vpop.f32.mrb[5].mxu0  ;;  %v994_v63 = vpop.f32.mrb[5].mxu1 }
 0x111   : > { %v947_v0 = vadd.f32 %v946_v62, %v945_v60  ;;  %v995_v1 = vadd.f32 %v994_v63, %v993_v61  ;;  %v948_v2 = vpop.f32.mrb[6].mxu0  ;;  %v996_v3 = vpop.f32.mrb[6].mxu1 }
 0x112   : > { %v949_v4 = vpop.f32.mrb[7].mxu0  ;;  %v997_v5 = vpop.f32.mrb[7].mxu1 }
 0x113   : > { %1163 = vtanh.f32 %v947_v0  ;;  %v950_v6 = vadd.f32 %v949_v4, %v948_v2  ;;  %v998_v7 = vadd.f32 %v997_v5, %v996_v3 }
 0x114   : > { %1165 = vtanh.f32 %v995_v1 }
 0x115   : > { %v1156_v8 = vpop.eup %1155  ;;  %1167 = vtanh.f32 %v950_v6 }
 0x116   : > { %v1158_v9 = vpop.eup %1157  ;;  %721 = vst.msk [vmem:[%s1368_s4] sm:$0xff] %vm720_vm0, %v1156_v8  ;;  %1169 = vtanh.f32 %v998_v7 }
 0x117   : > { %v1160_v10 = vpop.eup %1159  ;;  %737 = vst.msk [vmem:[%s1368_s4 + $0x80] sm:$0xff] %vm720_vm0, %v1158_v9  ;;  %v951_v11 = vpop.f32.mrb[8].mxu0 }
 0x118   : > { %v999_v12 = vpop.f32.mrb[8].mxu1  ;;  %v1162_v13 = vpop.eup %1161  ;;  %722 = vst.msk [vmem:[%s1368_s4 + $0x8] sm:$0xff] %vm720_vm0, %v1160_v10 }
 0x119   : > { %v952_v14 = vpop.f32.mrb[9].mxu0  ;;  %v1000_v15 = vpop.f32.mrb[9].mxu1  ;;  %738 = vst.msk [vmem:[%s1368_s4 + $0x88] sm:$0xff] %vm720_vm0, %v1162_v13 }
 0x11a   : > { %v953_v16 = vadd.f32 %v952_v14, %v951_v11  ;;  %v1001_v17 = vadd.f32 %v1000_v15, %v999_v12  ;;  %v954_v18 = vpop.f32.mrb[10].mxu0  ;;  %v1002_v19 = vpop.f32.mrb[10].mxu1 }
 0x11b   : > { %v955_v20 = vpop.f32.mrb[11].mxu0  ;;  %v1003_v21 = vpop.f32.mrb[11].mxu1 }
 0x11c   : > { %1171 = vtanh.f32 %v953_v16  ;;  %v956_v22 = vadd.f32 %v955_v20, %v954_v18  ;;  %v1004_v23 = vadd.f32 %v1003_v21, %v1002_v19 }
 0x11d   : > { %1173 = vtanh.f32 %v1001_v17  ;;  %v1164_v24 = vpop.eup %1163 }
 0x11e   : > { %1175 = vtanh.f32 %v956_v22  ;;  %v1166_v25 = vpop.eup %1165  ;;  %723 = vst.msk [vmem:[%s1368_s4 + $0x10] sm:$0xff] %vm720_vm0, %v1164_v24 }
 0x11f   : > { %1177 = vtanh.f32 %v1004_v23  ;;  %v1168_v26 = vpop.eup %1167  ;;  %739 = vst.msk [vmem:[%s1368_s4 + $0x90] sm:$0xff] %vm720_vm0, %v1166_v25  ;;  %v957_v27 = vpop.f32.mrb[12].mxu0 }
 0x120   : > { %v1005_v28 = vpop.f32.mrb[12].mxu1  ;;  %v1170_v29 = vpop.eup %1169  ;;  %724 = vst.msk [vmem:[%s1368_s4 + $0x18] sm:$0xff] %vm720_vm0, %v1168_v26 }
 0x121   : > { %v958_v30 = vpop.f32.mrb[13].mxu0  ;;  %v1006_v31 = vpop.f32.mrb[13].mxu1  ;;  %740 = vst.msk [vmem:[%s1368_s4 + $0x98] sm:$0xff] %vm720_vm0, %v1170_v29 }
 0x122   : > { %v959_v32 = vadd.f32 %v958_v30, %v957_v27  ;;  %v1007_v33 = vadd.f32 %v1006_v31, %v1005_v28  ;;  %v960_v34 = vpop.f32.mrb[14].mxu0  ;;  %v1008_v35 = vpop.f32.mrb[14].mxu1 }
 0x123   : > { %v961_v36 = vpop.f32.mrb[15].mxu0  ;;  %v1009_v37 = vpop.f32.mrb[15].mxu1 }
 0x124   : > { %1179 = vtanh.f32 %v959_v32  ;;  %v962_v38 = vadd.f32 %v961_v36, %v960_v34  ;;  %v1010_v39 = vadd.f32 %v1009_v37, %v1008_v35 }
 0x125   : > { %1181 = vtanh.f32 %v1007_v33 }
 0x126   : > { %v1172_v40 = vpop.eup %1171  ;;  %1183 = vtanh.f32 %v962_v38 }
 0x127   : > { %v1174_v41 = vpop.eup %1173  ;;  %725 = vst.msk [vmem:[%s1368_s4 + $0x20] sm:$0xff] %vm720_vm0, %v1172_v40  ;;  %1185 = vtanh.f32 %v1010_v39  ;;  %v963_v43 = vpop.f32.mrb[16].mxu0 }
 0x128   : > { %v1176_v42 = vpop.eup %1175  ;;  %741 = vst.msk [vmem:[%s1368_s4 + $0xa0] sm:$0xff] %vm720_vm0, %v1174_v41  ;;  %v1011_v44 = vpop.f32.mrb[16].mxu1 }
 0x129   : > { %v1178_v45 = vpop.eup %1177  ;;  %726 = vst.msk [vmem:[%s1368_s4 + $0x28] sm:$0xff] %vm720_vm0, %v1176_v42  ;;  %v964_v46 = vpop.f32.mrb[17].mxu0 }
 0x12a   : > { %v1012_v47 = vpop.f32.mrb[17].mxu1  ;;  %742 = vst.msk [vmem:[%s1368_s4 + $0xa8] sm:$0xff] %vm720_vm0, %v1178_v45  ;;  %v965_v48 = vadd.f32 %v964_v46, %v963_v43  ;;  %v966_v50 = vpop.f32.mrb[18].mxu0 }
 0x12b   : > { %v1013_v49 = vadd.f32 %v1012_v47, %v1011_v44  ;;  %v1014_v51 = vpop.f32.mrb[18].mxu1  ;;  %v967_v52 = vpop.f32.mrb[19].mxu0 }
 0x12c   : > { %v1015_v53 = vpop.f32.mrb[19].mxu1  ;;  %1187 = vtanh.f32 %v965_v48  ;;  %v968_v54 = vadd.f32 %v967_v52, %v966_v50 }
 0x12d   : > { %v1016_v55 = vadd.f32 %v1015_v53, %v1014_v51  ;;  %1189 = vtanh.f32 %v1013_v49 }
 0x12e   : > { %v1180_v56 = vpop.eup %1179  ;;  %1191 = vtanh.f32 %v968_v54 }
 0x12f   : > { %v1182_v57 = vpop.eup %1181  ;;  %727 = vst.msk [vmem:[%s1368_s4 + $0x30] sm:$0xff] %vm720_vm0, %v1180_v56  ;;  %1193 = vtanh.f32 %v1016_v55  ;;  %v969_v59 = vpop.f32.mrb[20].mxu0 }
 0x130   : > { %v1184_v58 = vpop.eup %1183  ;;  %743 = vst.msk [vmem:[%s1368_s4 + $0xb0] sm:$0xff] %vm720_vm0, %v1182_v57  ;;  %v1017_v60 = vpop.f32.mrb[20].mxu1 }
 0x131   : > { %v1186_v61 = vpop.eup %1185  ;;  %728 = vst.msk [vmem:[%s1368_s4 + $0x38] sm:$0xff] %vm720_vm0, %v1184_v58  ;;  %v970_v62 = vpop.f32.mrb[21].mxu0 }
 0x132   : > { %v1018_v63 = vpop.f32.mrb[21].mxu1  ;;  %744 = vst.msk [vmem:[%s1368_s4 + $0xb8] sm:$0xff] %vm720_vm0, %v1186_v61  ;;  %v971_v0 = vadd.f32 %v970_v62, %v969_v59  ;;  %v972_v2 = vpop.f32.mrb[22].mxu0 }
 0x133   : > { %v1019_v1 = vadd.f32 %v1018_v63, %v1017_v60  ;;  %v1020_v3 = vpop.f32.mrb[22].mxu1  ;;  %v973_v4 = vpop.f32.mrb[23].mxu0 }
 0x134   : > { %v1021_v5 = vpop.f32.mrb[23].mxu1  ;;  %1195 = vtanh.f32 %v971_v0  ;;  %v974_v6 = vadd.f32 %v973_v4, %v972_v2 }
 0x135   : > { %v1022_v7 = vadd.f32 %v1021_v5, %v1020_v3  ;;  %1197 = vtanh.f32 %v1019_v1 }
 0x136   : > { %v1188_v8 = vpop.eup %1187  ;;  %1199 = vtanh.f32 %v974_v6 }
 0x137   : > { %v1190_v9 = vpop.eup %1189  ;;  %729 = vst.msk [vmem:[%s1368_s4 + $0x40] sm:$0xff] %vm720_vm0, %v1188_v8  ;;  %1201 = vtanh.f32 %v1022_v7  ;;  %v975_v11 = vpop.f32.mrb[24].mxu0 }
 0x138   : > { %v1192_v10 = vpop.eup %1191  ;;  %745 = vst.msk [vmem:[%s1368_s4 + $0xc0] sm:$0xff] %vm720_vm0, %v1190_v9  ;;  %v1023_v12 = vpop.f32.mrb[24].mxu1 }
 0x139   : > { %v1194_v13 = vpop.eup %1193  ;;  %730 = vst.msk [vmem:[%s1368_s4 + $0x48] sm:$0xff] %vm720_vm0, %v1192_v10  ;;  %v976_v14 = vpop.f32.mrb[25].mxu0 }
 0x13a   : > { %v1024_v15 = vpop.f32.mrb[25].mxu1  ;;  %746 = vst.msk [vmem:[%s1368_s4 + $0xc8] sm:$0xff] %vm720_vm0, %v1194_v13  ;;  %v977_v16 = vadd.f32 %v976_v14, %v975_v11  ;;  %v978_v18 = vpop.f32.mrb[26].mxu0 }
 0x13b   : > { %v1025_v17 = vadd.f32 %v1024_v15, %v1023_v12  ;;  %v1026_v19 = vpop.f32.mrb[26].mxu1  ;;  %v979_v20 = vpop.f32.mrb[27].mxu0 }
 0x13c   : > { %v1027_v21 = vpop.f32.mrb[27].mxu1  ;;  %1203 = vtanh.f32 %v977_v16  ;;  %v980_v22 = vadd.f32 %v979_v20, %v978_v18 }
 0x13d   : > { %v1028_v23 = vadd.f32 %v1027_v21, %v1026_v19  ;;  %1205 = vtanh.f32 %v1025_v17 }
 0x13e   : > { %v1196_v24 = vpop.eup %1195  ;;  %1207 = vtanh.f32 %v980_v22 }
 0x13f   : > { %v1198_v25 = vpop.eup %1197  ;;  %731 = vst.msk [vmem:[%s1368_s4 + $0x50] sm:$0xff] %vm720_vm0, %v1196_v24  ;;  %1209 = vtanh.f32 %v1028_v23  ;;  %v981_v27 = vpop.f32.mrb[28].mxu0 }
 0x140   : > { %v1200_v26 = vpop.eup %1199  ;;  %747 = vst.msk [vmem:[%s1368_s4 + $0xd0] sm:$0xff] %vm720_vm0, %v1198_v25  ;;  %v1029_v28 = vpop.f32.mrb[28].mxu1 }
 0x141   : > { %v1202_v29 = vpop.eup %1201  ;;  %732 = vst.msk [vmem:[%s1368_s4 + $0x58] sm:$0xff] %vm720_vm0, %v1200_v26  ;;  %v982_v30 = vpop.f32.mrb[29].mxu0 }
 0x142   : > { %v1030_v31 = vpop.f32.mrb[29].mxu1  ;;  %748 = vst.msk [vmem:[%s1368_s4 + $0xd8] sm:$0xff] %vm720_vm0, %v1202_v29  ;;  %v983_v32 = vadd.f32 %v982_v30, %v981_v27  ;;  %v984_v34 = vpop.f32.mrb[30].mxu0 }
 0x143   : > { %v1031_v33 = vadd.f32 %v1030_v31, %v1029_v28  ;;  %v1032_v35 = vpop.f32.mrb[30].mxu1  ;;  %v985_v36 = vpop.f32.mrb[31].mxu0 }
 0x144   : > { %v1033_v37 = vpop.f32.mrb[31].mxu1  ;;  %1211 = vtanh.f32 %v983_v32  ;;  %v986_v38 = vadd.f32 %v985_v36, %v984_v34 }
 0x145   : > { %v1034_v39 = vadd.f32 %v1033_v37, %v1032_v35  ;;  %1213 = vtanh.f32 %v1031_v33 }
 0x146   : > { %v1204_v40 = vpop.eup %1203  ;;  %1215 = vtanh.f32 %v986_v38 }
 0x147   : > { %v1206_v41 = vpop.eup %1205  ;;  %733 = vst.msk [vmem:[%s1368_s4 + $0x60] sm:$0xff] %vm720_vm0, %v1204_v40  ;;  %1217 = vtanh.f32 %v1034_v39 }
 0x148   : > { %v1208_v42 = vpop.eup %1207  ;;  %749 = vst.msk [vmem:[%s1368_s4 + $0xe0] sm:$0xff] %vm720_vm0, %v1206_v41 }
 0x149   : > { %v1210_v43 = vpop.eup %1209  ;;  %734 = vst.msk [vmem:[%s1368_s4 + $0x68] sm:$0xff] %vm720_vm0, %v1208_v42 }
 0x14a   : > { %750 = vst.msk [vmem:[%s1368_s4 + $0xe8] sm:$0xff] %vm720_vm0, %v1210_v43 }
 0x14e   : > { %v1212_v44 = vpop.eup %1211 }
 0x14f   : > { %v1214_v45 = vpop.eup %1213  ;;  %735 = vst.msk [vmem:[%s1368_s4 + $0x70] sm:$0xff] %vm720_vm0, %v1212_v44 }
 0x150   : > { %v1216_v46 = vpop.eup %1215  ;;  %751 = vst.msk [vmem:[%s1368_s4 + $0xf0] sm:$0xff] %vm720_vm0, %v1214_v45 }
 0x151   : > { %v1218_v47 = vpop.eup %1217  ;;  %736 = vst.msk [vmem:[%s1368_s4 + $0x78] sm:$0xff] %vm720_vm0, %v1216_v46 }
 0x152   : > { %752 = vst.msk [vmem:[%s1368_s4 + $0xf8] sm:$0xff] %vm720_vm0, %v1218_v47 }
 0x153 PF: > { %s12_s13 = sadd.s32 1, %s1257_s13   ;;  %s1452_s9 = smov %s1249_s11 }
 0x154   : > { %p9_p7 = scmp.ge.s32.totalorder %s12_s13, 10   ;;  %s1453_s10 = smov %s1253_s12 }
 0x155   : > { %s1454_s11 = smov %s1457_s14  ;;  %s1455_s12 = smov %s1461_s15 }
 0x156   :  { %11 = sbr.rel (!%p9_p7) target bundleno = 3 (0x3), region = 61 }

</bundles_post_ra>
